<compile_context>
chip_gen: v7x
topology: tpu7x:2x2x1
jax: 0.10.0
libtpu: 0.0.40
codegen_flags: <defaults>
</compile_context>

<pallas_src>
import jax
import jax.numpy as jnp
from jax.experimental import pallas as pl
from jax.experimental.pallas import tpu as pltpu

# ----------------------------- configuration --------------------------------
B = 2                       # batch
C_IN = 4                    # HPA 4-channel input
H = W = 64                  # input spatial (small demo size, divisible by 32)
C1, C2, C3, C4, C5 = 64, 256, 512, 1024, 1024     # DenseNet-121 stage widths
C_PYR = C1 + C2 + C3 + C4 + C5                    # 2880 pyramid channels
BN_EPS = 1e-5

K_STEM = 49 * C_IN          # raw im2col K for the 7x7 stem conv (196)
K_PAD = 256                 # zero-padded, lane-aligned K
HS, WS = H // 2, W // 2     # stem conv output spatial   (32 x 32)
HM, WM = HS // 2, WS // 2   # post-maxpool spatial       (16 x 16)
H3, W3 = HM // 2, WM // 2   # encoder3 spatial           ( 8 x  8)
H4, W4 = H3 // 2, W3 // 2   # encoder4 / pyramid spatial ( 4 x  4)
H5, W5 = H4 // 2, W4 // 2   # encoder5 spatial           ( 2 x  2)
NPIX = H4 * W4              # pyramid pixels per image (16)
NQ = HM * WM                # maxpool output pixels (256)


# ----------------------- pooling matrices (layout only) ----------------------
def _avg_pool_matrix(h, w, k, dtype=jnp.bfloat16):
    """(oh*ow, h*w) averaging matrix; left-multiplies channels-last (h*w, C)."""
    oh, ow = h // k, w // k
    o = jnp.arange(oh * ow)
    i = jnp.arange(h * w)
    oy, ox = o // ow, o % ow
    iy, ix = i // w, i % w
    hit = (iy[None, :] // k == oy[:, None]) & (ix[None, :] // k == ox[:, None])
    return (hit.astype(jnp.float32) / float(k * k)).astype(dtype)


def _maxpool_x_gather_matrix(h, w, dtype=jnp.bfloat16):
    """Stacked one-hot gather matrix (3*oh*ow, h*w) for the x-direction taps of
    a 3x3 / stride-2 / pad-1 max pool.  Row d*oh*ow + (oy*ow+ox) selects input
    pixel (2*oy, 2*ox + dx) with dx = d-1; out-of-bounds taps are all-zero rows
    (valid because the pooled activations are post-ReLU, i.e. >= 0)."""
    oh, ow = h // 2, w // 2
    o = jnp.arange(oh * ow)
    i = jnp.arange(h * w)
    oy, ox = o // ow, o % ow
    iy, ix = i // w, i % w
    mats = []
    for dx in (-1, 0, 1):
        hit = (iy[None, :] == 2 * oy[:, None]) & (ix[None, :] == 2 * ox[:, None] + dx)
        mats.append(hit.astype(jnp.float32))
    return jnp.concatenate(mats, axis=0).astype(dtype)        # (3*oh*ow, h*w)


def _upsample2_matrix(h, w, dtype=jnp.bfloat16):
    """(4*h*w, h*w) one-hot matrix for nearest-neighbour 2x upsampling."""
    oh, ow = 2 * h, 2 * w
    o = jnp.arange(oh * ow)
    i = jnp.arange(h * w)
    oy, ox = o // ow, o % ow
    iy, ix = i // w, i % w
    hit = (iy[None, :] == oy[:, None] // 2) & (ix[None, :] == ox[:, None] // 2)
    return hit.astype(jnp.float32).astype(dtype)


def _im2col_7x7_s2(x_nchw):
    """(B, C, H, W) -> (B, (H/2)*(W/2), 49*C) patches, tap-major (dy, dx, c) order."""
    b, c, h, w = x_nchw.shape
    oh, ow = h // 2, w // 2
    xp = jnp.pad(jnp.transpose(x_nchw, (0, 2, 3, 1)), ((0, 0), (3, 3), (3, 3), (0, 0)))
    cols = [xp[:, dy:dy + 2 * oh - 1:2, dx:dx + 2 * ow - 1:2, :]
            for dy in range(7) for dx in range(7)]
    return jnp.concatenate(cols, axis=-1).reshape(b, oh * ow, 49 * c)


# --------------------------------- kernel ------------------------------------
def _pyramid_kernel(patches_ref, w1_ref, s1_ref, h1_ref, mpx_ref,
                    w2_ref, b2_ref, t3_ref, w3_ref, b3_ref,
                    t4_ref, w4_ref, b4_ref, t5_ref, w5_ref, b5_ref,
                    pa1_ref, pa2_ref, up5_ref,
                    o1_ref, o2_ref, o3_ref, o4_ref, o5_ref):
    f32, bf16 = jnp.float32, jnp.bfloat16

    def mm(a, b):  # bf16 MXU operands, f32 accumulation
        return jnp.dot(a.astype(bf16), b.astype(bf16), preferred_element_type=f32)

    # ---- stem: 7x7 / stride-2 conv as one im2col matmul (K zero-padded to 256)
    conv1 = mm(patches_ref[0], w1_ref[...])                      # (1024, 64) raw conv
    # pyramid branch 1 = avg_pool1(conv_features1): computed + stored right here
    # so conv1's 256 KiB live range ends immediately (no spills downstream).
    o1_ref[0] = mm(pa1_ref[...], conv1)                          # (16, 64)
    # bn1 + relu1 (f32 on the VPU)
    f1 = jnp.maximum(conv1 * s1_ref[...] + h1_ref[...], 0.0)     # (1024, 64)

    # ---- maxpool1: 3x3 / stride 2 / pad 1 -----------------------------------
    # y-direction 3-tap max on the VPU via whole-row shifts (zero padding ==
    # -inf padding because f1 is post-ReLU); x-direction 3-tap / stride-2
    # select as ONE stacked one-hot gather matmul (vs 9 matmuls before).
    zrow = jnp.zeros((WS, C1), f32)
    ymax = jnp.maximum(f1, jnp.concatenate([f1[WS:], zrow], axis=0))      # y, y+1
    ymax = jnp.maximum(ymax, jnp.concatenate([zrow, f1[:-WS]], axis=0))   # y-1
    g = mm(mpx_ref[...], ymax)                                   # (3*256, 64)
    m = jnp.maximum(jnp.maximum(g[:NQ], g[NQ:2 * NQ]), g[2 * NQ:])        # (256, 64)

    # ---- encoder2 (denseblock1 substitute): pointwise 64->256 + ReLU --------
    e2 = jnp.maximum(mm(m, w2_ref[...]) + b2_ref[...], 0.0)      # (256, 256)
    e2b = e2.astype(bf16)                                        # cast once, reused
    # pyramid branch 2 = avg_pool2(conv_features2)
    o2_ref[0] = mm(pa2_ref[...], e2b)                            # (16, 256)

    # ---- encoder3 (transition1 2x2 avgpool + denseblock2 substitute) --------
    e3 = jnp.maximum(mm(mm(t3_ref[...], e2b), w3_ref[...]) + b3_ref[...], 0.0)   # (64, 512)
    # transition2 2x2 avgpool == avg_pool3(conv_features3): pyramid branch 3
    p4 = mm(t4_ref[...], e3)                                     # (16, 512)
    o3_ref[0] = p4

    # ---- encoder4 (transition2 avgpool + denseblock3 substitute) ------------
    e4 = jnp.maximum(mm(p4, w4_ref[...]) + b4_ref[...], 0.0)     # (16, 1024)
    o4_ref[0] = e4                                               # pyramid branch 4

    # ---- encoder5 (transition3 avgpool + denseblock4 substitute) ------------
    e5 = jnp.maximum(mm(mm(t5_ref[...], e4), w5_ref[...]) + b5_ref[...], 0.0)    # (4, 1024)
    # pyramid branch 5 = nearest-neighbour 2x upsample of conv_features5
    o5_ref[0] = mm(up5_ref[...], e5)                             # (16, 1024)


# ------------------------------- parameters ----------------------------------
def init_params(key):
    ks = iter(jax.random.split(key, 16))

    def nrm(shape, scale):
        return (scale * jax.random.normal(next(ks), shape)).astype(jnp.bfloat16)

    # Stem 7x7 conv weight in im2col layout, rows ordered (dy, dx, c_in).
    # (A PyTorch OIHW weight maps via w.permute(2, 3, 1, 0).reshape(49*C_IN, C1).)
    w1 = nrm((K_STEM, C1), 0.05)
    gamma = 1.0 + 0.1 * jax.random.normal(next(ks), (C1,))
    beta = 0.1 * jax.random.normal(next(ks), (C1,))
    mean = 0.1 * jax.random.normal(next(ks), (C1,))
    var = jnp.abs(jax.random.normal(next(ks), (C1,))) + 0.5
    scale = gamma * jax.lax.rsqrt(var + BN_EPS)

    def bias(n):
        return (0.01 * jax.random.normal(next(ks), (1, n))).astype(jnp.float32)

    return dict(
        w1=w1,
        bn1_scale=scale.reshape(1, C1).astype(jnp.float32),
        bn1_shift=(beta - mean * scale).reshape(1, C1).astype(jnp.float32),
        w2=nrm((C1, C2), 0.10), b2=bias(C2),
        w3=nrm((C2, C3), 0.05), b3=bias(C3),
        w4=nrm((C3, C4), 0.03), b4=bias(C4),
        w5=nrm((C4, C5), 0.03), b5=bias(C5),
    )


# --------------------------------- forward -----------------------------------
def densenet121_pyramid_forward(params, x):
    assert x.shape[1:] == (C_IN, H, W), x.shape
    b = x.shape[0]

    # im2col for the 7x7/s2/p3 stem conv, K zero-padded 196 -> 256 (lane-aligned).
    patches = _im2col_7x7_s2(x).astype(jnp.bfloat16)
    patches = jnp.pad(patches, ((0, 0), (0, 0), (0, K_PAD - K_STEM)))
    w1p = jnp.pad(params['w1'], ((0, K_PAD - K_STEM), (0, 0)))

    mpx = _maxpool_x_gather_matrix(HS, WS)          # maxpool1 x-taps  (768, 1024)
    t3 = _avg_pool_matrix(HM, WM, 2)                # transition1 pool
    t4 = _avg_pool_matrix(H3, W3, 2)                # transition2 pool (== avg_pool3)
    t5 = _avg_pool_matrix(H4, W4, 2)                # transition3 pool
    pa1 = _avg_pool_matrix(HS, WS, 8)               # avg_pool1
    pa2 = _avg_pool_matrix(HM, WM, 4)               # avg_pool2
    up5 = _upsample2_matrix(H5, W5)                 # upsample5 (nearest 2x)

    operands = (patches, w1p, params['bn1_scale'], params['bn1_shift'], mpx,
                params['w2'], params['b2'], t3, params['w3'], params['b3'],
                t4, params['w4'], params['b4'], t5, params['w5'], params['b5'],
                pa1, pa2, up5)

    def _inv(a):  # grid-invariant operand: whole array, block index always 0
        nd = a.ndim
        return pl.BlockSpec(a.shape, lambda i, _nd=nd: (0,) * _nd)

    in_specs = [pl.BlockSpec((1, HS * WS, K_PAD), lambda i: (i, 0, 0))]
    in_specs += [_inv(a) for a in operands[1:]]

    # Five lane-aligned per-branch outputs (no misaligned 2880-wide slab store).
    out_shape = tuple(jax.ShapeDtypeStruct((b, NPIX, c), jnp.float32)
                      for c in (C1, C2, C3, C4, C5))
    out_specs = tuple(pl.BlockSpec((1, NPIX, c), lambda i: (i, 0, 0))
                      for c in (C1, C2, C3, C4, C5))

    brs = pl.pallas_call(
        _pyramid_kernel,
        out_shape=out_shape,
        grid=(b,),
        in_specs=in_specs,
        out_specs=out_specs,
        compiler_params=pltpu.CompilerParams(
            dimension_semantics=("parallel",),
            vmem_limit_bytes=28 * 1024 * 1024),
        cost_estimate=pl.CostEstimate(flops=300_000_000, transcendentals=0,
                                      bytes_accessed=12_000_000),
    )(*operands)

    # Wrapper-side concat + NCHW transpose (pure layout plumbing in XLA).
    pyr = jnp.concatenate(brs, axis=-1)                           # (B, 16, 2880)
    return jnp.transpose(pyr.reshape(b, H4, W4, C_PYR), (0, 3, 1, 2))


# ---------------------- independent pure-JAX reference ------------------------
def reference_forward(params, x):
    """lax.conv / reduce_window reference with the kernel's bf16 operand rounding."""
    f32, bf16 = jnp.float32, jnp.bfloat16
    hi = jax.lax.Precision.HIGHEST

    def r16(a):  # round activation to bf16 like the kernel's MXU operands
        return a.astype(bf16).astype(f32)

    xb = r16(x)
    w1 = params['w1'].astype(f32).reshape(7, 7, C_IN, C1)                 # HWIO
    conv1 = jax.lax.conv_general_dilated(
        xb, w1, window_strides=(2, 2), padding=((3, 3), (3, 3)),
        dimension_numbers=('NCHW', 'HWIO', 'NCHW'), precision=hi)         # (B,64,32,32)
    f1 = jnp.maximum(conv1 * params['bn1_scale'].reshape(1, C1, 1, 1)
                     + params['bn1_shift'].reshape(1, C1, 1, 1), 0.0)
    mp = jax.lax.reduce_window(f1, -jnp.inf, jax.lax.max,
                               (1, 1, 3, 3), (1, 1, 2, 2),
                               ((0, 0), (0, 0), (1, 1), (1, 1)))          # (B,64,16,16)

    def pw(a, wname, bname):   # pointwise conv + bias + ReLU
        y = jnp.einsum('bchw,cd->bdhw', r16(a), params[wname].astype(f32),
                       precision=hi)
        return jnp.maximum(y + params[bname].reshape(1, -1, 1, 1), 0.0)

    def avgp(a, k):
        bb, cc, hh, ww = a.shape
        return r16(a).reshape(bb, cc, hh // k, k, ww // k, k).mean(axis=(3, 5))

    e2 = pw(mp, 'w2', 'b2')                     # (B,  256, 16, 16)
    e3 = pw(avgp(e2, 2), 'w3', 'b3')            # (B,  512,  8,  8)
    e4 = pw(avgp(e3, 2), 'w4', 'b4')            # (B, 1024,  4,  4)
    e5 = pw(avgp(e4, 2), 'w5', 'b5')            # (B, 1024,  2,  2)
    up5 = jnp.repeat(jnp.repeat(r16(e5), 2, axis=2), 2, axis=3)
    return jnp.concatenate([avgp(conv1, 8), avgp(e2, 4), avgp(e3, 2), e4, up5], axis=1)


# ----------------------------------- main -------------------------------------
if __name__ == "__main__":
    key = jax.random.PRNGKey(0)
    k_par, k_img = jax.random.split(key)

    params = init_params(k_par)
    x = jax.random.normal(k_img, (B, C_IN, H, W), dtype=jnp.float32)

    pyramid = jax.jit(densenet121_pyramid_forward)(params, x)
    pyramid = jax.block_until_ready(pyramid)

    assert pyramid.shape == (B, C_PYR, H // 16, W // 16), pyramid.shape
    assert bool(jnp.all(jnp.isfinite(pyramid)))

    # Numerical check against the independent pure-JAX reference.
    ref = jax.block_until_ready(jax.jit(reference_forward)(params, x))
    rel = float(jnp.max(jnp.abs(pyramid - ref)) / (jnp.max(jnp.abs(ref)) + 1e-6))
    assert rel < 2e-2, f"kernel/reference mismatch: rel={rel}"

    print("KERNEL_OK")
</pallas_src>

<mosaic_0001>
module attributes {stable_mosaic.version = 11 : i64} {
  func.func @_pyramid_kernel(%arg0: i32, %arg1: memref<1x1024x256xbf16, #tpu.memory_space<vmem>>, %arg2: memref<256x64xbf16, #tpu.memory_space<vmem>>, %arg3: memref<1x64xf32, #tpu.memory_space<vmem>>, %arg4: memref<1x64xf32, #tpu.memory_space<vmem>>, %arg5: memref<768x1024xbf16, #tpu.memory_space<vmem>>, %arg6: memref<64x256xbf16, #tpu.memory_space<vmem>>, %arg7: memref<1x256xf32, #tpu.memory_space<vmem>>, %arg8: memref<64x256xbf16, #tpu.memory_space<vmem>>, %arg9: memref<256x512xbf16, #tpu.memory_space<vmem>>, %arg10: memref<1x512xf32, #tpu.memory_space<vmem>>, %arg11: memref<16x64xbf16, #tpu.memory_space<vmem>>, %arg12: memref<512x1024xbf16, #tpu.memory_space<vmem>>, %arg13: memref<1x1024xf32, #tpu.memory_space<vmem>>, %arg14: memref<4x16xbf16, #tpu.memory_space<vmem>>, %arg15: memref<1024x1024xbf16, #tpu.memory_space<vmem>>, %arg16: memref<1x1024xf32, #tpu.memory_space<vmem>>, %arg17: memref<16x1024xbf16, #tpu.memory_space<vmem>>, %arg18: memref<16x256xbf16, #tpu.memory_space<vmem>>, %arg19: memref<16x4xbf16, #tpu.memory_space<vmem>>, %arg20: memref<1x16x64xf32, #tpu.memory_space<vmem>>, %arg21: memref<1x16x256xf32, #tpu.memory_space<vmem>>, %arg22: memref<1x16x512xf32, #tpu.memory_space<vmem>>, %arg23: memref<1x16x1024xf32, #tpu.memory_space<vmem>>, %arg24: memref<1x16x1024xf32, #tpu.memory_space<vmem>>) attributes {dimension_semantics = [#tpu.dimension_semantics<parallel>], iteration_bounds = array<i64: 2>, scalar_prefetch = 0 : i64, scratch_operands = 0 : i64, tpu.core_type = #tpu.core_type<tc>, window_params = [{transform_indices = @transform_0, window_bounds = array<i64: 1, 1024, 256>}, {pipeline_mode = #tpu.pipeline_mode<synchronous>, transform_indices = @transform_1, window_bounds = array<i64: 256, 64>}, {pipeline_mode = #tpu.pipeline_mode<synchronous>, transform_indices = @transform_2, window_bounds = array<i64: 1, 64>}, {pipeline_mode = #tpu.pipeline_mode<synchronous>, transform_indices = @transform_3, window_bounds = array<i64: 1, 64>}, {pipeline_mode = #tpu.pipeline_mode<synchronous>, transform_indices = @transform_4, window_bounds = array<i64: 768, 1024>}, {pipeline_mode = #tpu.pipeline_mode<synchronous>, transform_indices = @transform_5, window_bounds = array<i64: 64, 256>}, {pipeline_mode = #tpu.pipeline_mode<synchronous>, transform_indices = @transform_6, window_bounds = array<i64: 1, 256>}, {pipeline_mode = #tpu.pipeline_mode<synchronous>, transform_indices = @transform_7, window_bounds = array<i64: 64, 256>}, {pipeline_mode = #tpu.pipeline_mode<synchronous>, transform_indices = @transform_8, window_bounds = array<i64: 256, 512>}, {pipeline_mode = #tpu.pipeline_mode<synchronous>, transform_indices = @transform_9, window_bounds = array<i64: 1, 512>}, {pipeline_mode = #tpu.pipeline_mode<synchronous>, transform_indices = @transform_10, window_bounds = array<i64: 16, 64>}, {pipeline_mode = #tpu.pipeline_mode<synchronous>, transform_indices = @transform_11, window_bounds = array<i64: 512, 1024>}, {pipeline_mode = #tpu.pipeline_mode<synchronous>, transform_indices = @transform_12, window_bounds = array<i64: 1, 1024>}, {pipeline_mode = #tpu.pipeline_mode<synchronous>, transform_indices = @transform_13, window_bounds = array<i64: 4, 16>}, {pipeline_mode = #tpu.pipeline_mode<synchronous>, transform_indices = @transform_14, window_bounds = array<i64: 1024, 1024>}, {pipeline_mode = #tpu.pipeline_mode<synchronous>, transform_indices = @transform_15, window_bounds = array<i64: 1, 1024>}, {pipeline_mode = #tpu.pipeline_mode<synchronous>, transform_indices = @transform_16, window_bounds = array<i64: 16, 1024>}, {pipeline_mode = #tpu.pipeline_mode<synchronous>, transform_indices = @transform_17, window_bounds = array<i64: 16, 256>}, {pipeline_mode = #tpu.pipeline_mode<synchronous>, transform_indices = @transform_18, window_bounds = array<i64: 16, 4>}, {transform_indices = @transform_19, window_bounds = array<i64: 1, 16, 64>}, {transform_indices = @transform_20, window_bounds = array<i64: 1, 16, 256>}, {transform_indices = @transform_21, window_bounds = array<i64: 1, 16, 512>}, {transform_indices = @transform_22, window_bounds = array<i64: 1, 16, 1024>}, {transform_indices = @transform_23, window_bounds = array<i64: 1, 16, 1024>}]} {
    %c0 = arith.constant 0 : index
    %c0_0 = arith.constant 0 : index
    %c0_1 = arith.constant 0 : index
    %0 = vector.load %arg1[%c0, %c0_0, %c0_1] : memref<1x1024x256xbf16, #tpu.memory_space<vmem>>, vector<1x1024x256xbf16>
    %1 = vector.shape_cast %0 : vector<1x1024x256xbf16> to vector<1024x256xbf16>
    %c0_2 = arith.constant 0 : index
    %c0_3 = arith.constant 0 : index
    %2 = vector.load %arg2[%c0_2, %c0_3] : memref<256x64xbf16, #tpu.memory_space<vmem>>, vector<256x64xbf16>
    %cst = arith.constant dense<0.000000e+00> : vector<1024x64xf32>
    %3 = tpu.matmul %1, %2, %cst {dimension_numbers = #tpu.dot_dimension_numbers<[1], [0], [0], [1], [0, 0, 1, 1], [], []>} : vector<1024x256xbf16>, vector<256x64xbf16>, vector<1024x64xf32> -> vector<1024x64xf32>
    %c0_4 = arith.constant 0 : index
    %c0_5 = arith.constant 0 : index
    %4 = vector.load %arg17[%c0_4, %c0_5] : memref<16x1024xbf16, #tpu.memory_space<vmem>>, vector<16x1024xbf16>
    %5 = arith.truncf %3 : vector<1024x64xf32> to vector<1024x64xbf16>
    %cst_6 = arith.constant dense<0.000000e+00> : vector<16x64xf32>
    %6 = tpu.matmul %4, %5, %cst_6 {dimension_numbers = #tpu.dot_dimension_numbers<[1], [0], [0], [1], [0, 0, 1, 1], [], []>} : vector<16x1024xbf16>, vector<1024x64xbf16>, vector<16x64xf32> -> vector<16x64xf32>
    %c0_7 = arith.constant 0 : index
    %c0_8 = arith.constant 0 : index
    %c0_9 = arith.constant 0 : index
    %7 = vector.load %arg20[%c0_7, %c0_8, %c0_9] : memref<1x16x64xf32, #tpu.memory_space<vmem>>, vector<1x16x64xf32>
    %8 = vector.shape_cast %7 : vector<1x16x64xf32> to vector<16x64xf32>
    %9 = vector.shape_cast %6 : vector<16x64xf32> to vector<1x16x64xf32>
    tpu.vector_store %arg20[%c0_7, %c0_8, %c0_9], %9 {strides = array<i32>} : memref<1x16x64xf32, #tpu.memory_space<vmem>>, vector<1x16x64xf32>,
    %c0_10 = arith.constant 0 : index
    %c0_11 = arith.constant 0 : index
    %10 = vector.load %arg3[%c0_10, %c0_11] : memref<1x64xf32, #tpu.memory_space<vmem>>, vector<1x64xf32>
    %11 = vector.broadcast %10 : vector<1x64xf32> to vector<1024x64xf32>
    %12 = arith.mulf %3, %11 : vector<1024x64xf32>
    %c0_12 = arith.constant 0 : index
    %c0_13 = arith.constant 0 : index
    %13 = vector.load %arg4[%c0_12, %c0_13] : memref<1x64xf32, #tpu.memory_space<vmem>>, vector<1x64xf32>
    %14 = vector.broadcast %13 : vector<1x64xf32> to vector<1024x64xf32>
    %15 = arith.addf %12, %14 : vector<1024x64xf32>
    %cst_14 = arith.constant 0.000000e+00 : f32
    %16 = vector.broadcast %cst_14 : f32 to vector<1024x64xf32>
    %17 = arith.maximumf %15, %16 : vector<1024x64xf32>
    %cst_15 = arith.constant 0.000000e+00 : f32
    %18 = vector.broadcast %cst_15 : f32 to vector<32x64xf32>
    %19 = vector.extract_strided_slice %17 {offsets = [32, 0], sizes = [992, 64], strides = [1, 1]} : vector<1024x64xf32> to vector<992x64xf32>
    %20 = tpu.concatenate %19, %18 in 0 : vector<992x64xf32>, vector<32x64xf32> -> vector<1024x64xf32>
    %21 = arith.maximumf %17, %20 : vector<1024x64xf32>
    %22 = vector.extract_strided_slice %17 {offsets = [0, 0], sizes = [992, 64], strides = [1, 1]} : vector<1024x64xf32> to vector<992x64xf32>
    %23 = tpu.concatenate %18, %22 in 0 : vector<32x64xf32>, vector<992x64xf32> -> vector<1024x64xf32>
    %24 = arith.maximumf %21, %23 : vector<1024x64xf32>
    %c0_16 = arith.constant 0 : index
    %c0_17 = arith.constant 0 : index
    %25 = vector.load %arg5[%c0_16, %c0_17] : memref<768x1024xbf16, #tpu.memory_space<vmem>>, vector<768x1024xbf16>
    %26 = arith.truncf %24 : vector<1024x64xf32> to vector<1024x64xbf16>
    %cst_18 = arith.constant dense<0.000000e+00> : vector<768x64xf32>
    %27 = tpu.matmul %25, %26, %cst_18 {dimension_numbers = #tpu.dot_dimension_numbers<[1], [0], [0], [1], [0, 0, 1, 1], [], []>} : vector<768x1024xbf16>, vector<1024x64xbf16>, vector<768x64xf32> -> vector<768x64xf32>
    %28 = vector.extract_strided_slice %27 {offsets = [0, 0], sizes = [256, 64], strides = [1, 1]} : vector<768x64xf32> to vector<256x64xf32>
    %29 = vector.extract_strided_slice %27 {offsets = [256, 0], sizes = [256, 64], strides = [1, 1]} : vector<768x64xf32> to vector<256x64xf32>
    %30 = arith.maximumf %28, %29 : vector<256x64xf32>
    %31 = vector.extract_strided_slice %27 {offsets = [512, 0], sizes = [256, 64], strides = [1, 1]} : vector<768x64xf32> to vector<256x64xf32>
    %32 = arith.maximumf %30, %31 : vector<256x64xf32>
    %c0_19 = arith.constant 0 : index
    %c0_20 = arith.constant 0 : index
    %33 = vector.load %arg6[%c0_19, %c0_20] : memref<64x256xbf16, #tpu.memory_space<vmem>>, vector<64x256xbf16>
    %34 = arith.truncf %32 : vector<256x64xf32> to vector<256x64xbf16>
    %cst_21 = arith.constant dense<0.000000e+00> : vector<256x256xf32>
    %35 = tpu.matmul %34, %33, %cst_21 {dimension_numbers = #tpu.dot_dimension_numbers<[1], [0], [0], [1], [0, 0, 1, 1], [], []>} : vector<256x64xbf16>, vector<64x256xbf16>, vector<256x256xf32> -> vector<256x256xf32>
    %c0_22 = arith.constant 0 : index
    %c0_23 = arith.constant 0 : index
    %36 = vector.load %arg7[%c0_22, %c0_23] : memref<1x256xf32, #tpu.memory_space<vmem>>, vector<1x256xf32>
    %37 = vector.broadcast %36 : vector<1x256xf32> to vector<256x256xf32>
    %38 = arith.addf %35, %37 : vector<256x256xf32>
    %cst_24 = arith.constant 0.000000e+00 : f32
    %39 = vector.broadcast %cst_24 : f32 to vector<256x256xf32>
    %40 = arith.maximumf %38, %39 : vector<256x256xf32>
    %41 = arith.truncf %40 : vector<256x256xf32> to vector<256x256xbf16>
    %c0_25 = arith.constant 0 : index
    %c0_26 = arith.constant 0 : index
    %42 = vector.load %arg18[%c0_25, %c0_26] : memref<16x256xbf16, #tpu.memory_space<vmem>>, vector<16x256xbf16>
    %cst_27 = arith.constant dense<0.000000e+00> : vector<16x256xf32>
    %43 = tpu.matmul %42, %41, %cst_27 {dimension_numbers = #tpu.dot_dimension_numbers<[1], [0], [0], [1], [0, 0, 1, 1], [], []>} : vector<16x256xbf16>, vector<256x256xbf16>, vector<16x256xf32> -> vector<16x256xf32>
    %c0_28 = arith.constant 0 : index
    %c0_29 = arith.constant 0 : index
    %c0_30 = arith.constant 0 : index
    %44 = vector.load %arg21[%c0_28, %c0_29, %c0_30] : memref<1x16x256xf32, #tpu.memory_space<vmem>>, vector<1x16x256xf32>
    %45 = vector.shape_cast %44 : vector<1x16x256xf32> to vector<16x256xf32>
    %46 = vector.shape_cast %43 : vector<16x256xf32> to vector<1x16x256xf32>
    tpu.vector_store %arg21[%c0_28, %c0_29, %c0_30], %46 {strides = array<i32>} : memref<1x16x256xf32, #tpu.memory_space<vmem>>, vector<1x16x256xf32>,
    %c0_31 = arith.constant 0 : index
    %c0_32 = arith.constant 0 : index
    %47 = vector.load %arg8[%c0_31, %c0_32] : memref<64x256xbf16, #tpu.memory_space<vmem>>, vector<64x256xbf16>
    %cst_33 = arith.constant dense<0.000000e+00> : vector<64x256xf32>
    %48 = tpu.matmul %47, %41, %cst_33 {dimension_numbers = #tpu.dot_dimension_numbers<[1], [0], [0], [1], [0, 0, 1, 1], [], []>} : vector<64x256xbf16>, vector<256x256xbf16>, vector<64x256xf32> -> vector<64x256xf32>
    %c0_34 = arith.constant 0 : index
    %c0_35 = arith.constant 0 : index
    %49 = vector.load %arg9[%c0_34, %c0_35] : memref<256x512xbf16, #tpu.memory_space<vmem>>, vector<256x512xbf16>
    %50 = arith.truncf %48 : vector<64x256xf32> to vector<64x256xbf16>
    %cst_36 = arith.constant dense<0.000000e+00> : vector<64x512xf32>
    %51 = tpu.matmul %50, %49, %cst_36 {dimension_numbers = #tpu.dot_dimension_numbers<[1], [0], [0], [1], [0, 0, 1, 1], [], []>} : vector<64x256xbf16>, vector<256x512xbf16>, vector<64x512xf32> -> vector<64x512xf32>
    %c0_37 = arith.constant 0 : index
    %c0_38 = arith.constant 0 : index
    %52 = vector.load %arg10[%c0_37, %c0_38] : memref<1x512xf32, #tpu.memory_space<vmem>>, vector<1x512xf32>
    %53 = vector.broadcast %52 : vector<1x512xf32> to vector<64x512xf32>
    %54 = arith.addf %51, %53 : vector<64x512xf32>
    %cst_39 = arith.constant 0.000000e+00 : f32
    %55 = vector.broadcast %cst_39 : f32 to vector<64x512xf32>
    %56 = arith.maximumf %54, %55 : vector<64x512xf32>
    %c0_40 = arith.constant 0 : index
    %c0_41 = arith.constant 0 : index
    %57 = vector.load %arg11[%c0_40, %c0_41] : memref<16x64xbf16, #tpu.memory_space<vmem>>, vector<16x64xbf16>
    %58 = arith.truncf %56 : vector<64x512xf32> to vector<64x512xbf16>
    %cst_42 = arith.constant dense<0.000000e+00> : vector<16x512xf32>
    %59 = tpu.matmul %57, %58, %cst_42 {dimension_numbers = #tpu.dot_dimension_numbers<[1], [0], [0], [1], [0, 0, 1, 1], [], []>} : vector<16x64xbf16>, vector<64x512xbf16>, vector<16x512xf32> -> vector<16x512xf32>
    %c0_43 = arith.constant 0 : index
    %c0_44 = arith.constant 0 : index
    %c0_45 = arith.constant 0 : index
    %60 = vector.load %arg22[%c0_43, %c0_44, %c0_45] : memref<1x16x512xf32, #tpu.memory_space<vmem>>, vector<1x16x512xf32>
    %61 = vector.shape_cast %60 : vector<1x16x512xf32> to vector<16x512xf32>
    %62 = vector.shape_cast %59 : vector<16x512xf32> to vector<1x16x512xf32>
    tpu.vector_store %arg22[%c0_43, %c0_44, %c0_45], %62 {strides = array<i32>} : memref<1x16x512xf32, #tpu.memory_space<vmem>>, vector<1x16x512xf32>,
    %c0_46 = arith.constant 0 : index
    %c0_47 = arith.constant 0 : index
    %63 = vector.load %arg12[%c0_46, %c0_47] : memref<512x1024xbf16, #tpu.memory_space<vmem>>, vector<512x1024xbf16>
    %64 = arith.truncf %59 : vector<16x512xf32> to vector<16x512xbf16>
    %cst_48 = arith.constant dense<0.000000e+00> : vector<16x1024xf32>
    %65 = tpu.matmul %64, %63, %cst_48 {dimension_numbers = #tpu.dot_dimension_numbers<[1], [0], [0], [1], [0, 0, 1, 1], [], []>} : vector<16x512xbf16>, vector<512x1024xbf16>, vector<16x1024xf32> -> vector<16x1024xf32>
    %c0_49 = arith.constant 0 : index
    %c0_50 = arith.constant 0 : index
    %66 = vector.load %arg13[%c0_49, %c0_50] : memref<1x1024xf32, #tpu.memory_space<vmem>>, vector<1x1024xf32>
    %67 = vector.broadcast %66 : vector<1x1024xf32> to vector<16x1024xf32>
    %68 = arith.addf %65, %67 : vector<16x1024xf32>
    %cst_51 = arith.constant 0.000000e+00 : f32
    %69 = vector.broadcast %cst_51 : f32 to vector<16x1024xf32>
    %70 = arith.maximumf %68, %69 : vector<16x1024xf32>
    %c0_52 = arith.constant 0 : index
    %c0_53 = arith.constant 0 : index
    %c0_54 = arith.constant 0 : index
    %71 = vector.load %arg23[%c0_52, %c0_53, %c0_54] : memref<1x16x1024xf32, #tpu.memory_space<vmem>>, vector<1x16x1024xf32>
    %72 = vector.shape_cast %71 : vector<1x16x1024xf32> to vector<16x1024xf32>
    %73 = vector.shape_cast %70 : vector<16x1024xf32> to vector<1x16x1024xf32>
    tpu.vector_store %arg23[%c0_52, %c0_53, %c0_54], %73 {strides = array<i32>} : memref<1x16x1024xf32, #tpu.memory_space<vmem>>, vector<1x16x1024xf32>,
    %c0_55 = arith.constant 0 : index
    %c0_56 = arith.constant 0 : index
    %74 = vector.load %arg14[%c0_55, %c0_56] : memref<4x16xbf16, #tpu.memory_space<vmem>>, vector<4x16xbf16>
    %75 = arith.truncf %70 : vector<16x1024xf32> to vector<16x1024xbf16>
    %cst_57 = arith.constant dense<0.000000e+00> : vector<4x1024xf32>
    %76 = tpu.matmul %74, %75, %cst_57 {dimension_numbers = #tpu.dot_dimension_numbers<[1], [0], [0], [1], [0, 0, 1, 1], [], []>} : vector<4x16xbf16>, vector<16x1024xbf16>, vector<4x1024xf32> -> vector<4x1024xf32>
    %c0_58 = arith.constant 0 : index
    %c0_59 = arith.constant 0 : index
    %77 = vector.load %arg15[%c0_58, %c0_59] : memref<1024x1024xbf16, #tpu.memory_space<vmem>>, vector<1024x1024xbf16>
    %78 = arith.truncf %76 : vector<4x1024xf32> to vector<4x1024xbf16>
    %cst_60 = arith.constant dense<0.000000e+00> : vector<4x1024xf32>
    %79 = tpu.matmul %78, %77, %cst_60 {dimension_numbers = #tpu.dot_dimension_numbers<[1], [0], [0], [1], [0, 0, 1, 1], [], []>} : vector<4x1024xbf16>, vector<1024x1024xbf16>, vector<4x1024xf32> -> vector<4x1024xf32>
    %c0_61 = arith.constant 0 : index
    %c0_62 = arith.constant 0 : index
    %80 = vector.load %arg16[%c0_61, %c0_62] : memref<1x1024xf32, #tpu.memory_space<vmem>>, vector<1x1024xf32>
    %81 = vector.broadcast %80 : vector<1x1024xf32> to vector<4x1024xf32>
    %82 = arith.addf %79, %81 : vector<4x1024xf32>
    %cst_63 = arith.constant 0.000000e+00 : f32
    %83 = vector.broadcast %cst_63 : f32 to vector<4x1024xf32>
    %84 = arith.maximumf %82, %83 : vector<4x1024xf32>
    %c0_64 = arith.constant 0 : index
    %c0_65 = arith.constant 0 : index
    %85 = vector.load %arg19[%c0_64, %c0_65] : memref<16x4xbf16, #tpu.memory_space<vmem>>, vector<16x4xbf16>
    %86 = arith.truncf %84 : vector<4x1024xf32> to vector<4x1024xbf16>
    %cst_66 = arith.constant dense<0.000000e+00> : vector<16x1024xf32>
    %87 = tpu.matmul %85, %86, %cst_66 {dimension_numbers = #tpu.dot_dimension_numbers<[1], [0], [0], [1], [0, 0, 1, 1], [], []>} : vector<16x4xbf16>, vector<4x1024xbf16>, vector<16x1024xf32> -> vector<16x1024xf32>
    %c0_67 = arith.constant 0 : index
    %c0_68 = arith.constant 0 : index
    %c0_69 = arith.constant 0 : index
    %88 = vector.load %arg24[%c0_67, %c0_68, %c0_69] : memref<1x16x1024xf32, #tpu.memory_space<vmem>>, vector<1x16x1024xf32>
    %89 = vector.shape_cast %88 : vector<1x16x1024xf32> to vector<16x1024xf32>
    %90 = vector.shape_cast %87 : vector<16x1024xf32> to vector<1x16x1024xf32>
    tpu.vector_store %arg24[%c0_67, %c0_68, %c0_69], %90 {strides = array<i32>} : memref<1x16x1024xf32, #tpu.memory_space<vmem>>, vector<1x16x1024xf32>,
    return
  }
  func.func @transform_0(%arg0: i32) -> (i32, i32, i32) {
    %c0_i32 = arith.constant 0 : i32
    %c0_i32_0 = arith.constant 0 : i32
    %c0_i32_1 = arith.constant 0 : i32
    return %arg0, %c0_i32, %c0_i32_0 : i32, i32, i32
  }
  func.func @transform_1(%arg0: i32) -> (i32, i32) {
    %c0_i32 = arith.constant 0 : i32
    %c0_i32_0 = arith.constant 0 : i32
    %c0_i32_1 = arith.constant 0 : i32
    return %c0_i32, %c0_i32_0 : i32, i32
  }
  func.func @transform_2(%arg0: i32) -> (i32, i32) {
    %c0_i32 = arith.constant 0 : i32
    %c0_i32_0 = arith.constant 0 : i32
    %c0_i32_1 = arith.constant 0 : i32
    return %c0_i32, %c0_i32_0 : i32, i32
  }
  func.func @transform_3(%arg0: i32) -> (i32, i32) {
    %c0_i32 = arith.constant 0 : i32
    %c0_i32_0 = arith.constant 0 : i32
    %c0_i32_1 = arith.constant 0 : i32
    return %c0_i32, %c0_i32_0 : i32, i32
  }
  func.func @transform_4(%arg0: i32) -> (i32, i32) {
    %c0_i32 = arith.constant 0 : i32
    %c0_i32_0 = arith.constant 0 : i32
    %c0_i32_1 = arith.constant 0 : i32
    return %c0_i32, %c0_i32_0 : i32, i32
  }
  func.func @transform_5(%arg0: i32) -> (i32, i32) {
    %c0_i32 = arith.constant 0 : i32
    %c0_i32_0 = arith.constant 0 : i32
    %c0_i32_1 = arith.constant 0 : i32
    return %c0_i32, %c0_i32_0 : i32, i32
  }
  func.func @transform_6(%arg0: i32) -> (i32, i32) {
    %c0_i32 = arith.constant 0 : i32
    %c0_i32_0 = arith.constant 0 : i32
    %c0_i32_1 = arith.constant 0 : i32
    return %c0_i32, %c0_i32_0 : i32, i32
  }
  func.func @transform_7(%arg0: i32) -> (i32, i32) {
    %c0_i32 = arith.constant 0 : i32
    %c0_i32_0 = arith.constant 0 : i32
    %c0_i32_1 = arith.constant 0 : i32
    return %c0_i32, %c0_i32_0 : i32, i32
  }
  func.func @transform_8(%arg0: i32) -> (i32, i32) {
    %c0_i32 = arith.constant 0 : i32
    %c0_i32_0 = arith.constant 0 : i32
    %c0_i32_1 = arith.constant 0 : i32
    return %c0_i32, %c0_i32_0 : i32, i32
  }
  func.func @transform_9(%arg0: i32) -> (i32, i32) {
    %c0_i32 = arith.constant 0 : i32
    %c0_i32_0 = arith.constant 0 : i32
    %c0_i32_1 = arith.constant 0 : i32
    return %c0_i32, %c0_i32_0 : i32, i32
  }
  func.func @transform_10(%arg0: i32) -> (i32, i32) {
    %c0_i32 = arith.constant 0 : i32
    %c0_i32_0 = arith.constant 0 : i32
    %c0_i32_1 = arith.constant 0 : i32
    return %c0_i32, %c0_i32_0 : i32, i32
  }
  func.func @transform_11(%arg0: i32) -> (i32, i32) {
    %c0_i32 = arith.constant 0 : i32
    %c0_i32_0 = arith.constant 0 : i32
    %c0_i32_1 = arith.constant 0 : i32
    return %c0_i32, %c0_i32_0 : i32, i32
  }
  func.func @transform_12(%arg0: i32) -> (i32, i32) {
    %c0_i32 = arith.constant 0 : i32
    %c0_i32_0 = arith.constant 0 : i32
    %c0_i32_1 = arith.constant 0 : i32
    return %c0_i32, %c0_i32_0 : i32, i32
  }
  func.func @transform_13(%arg0: i32) -> (i32, i32) {
    %c0_i32 = arith.constant 0 : i32
    %c0_i32_0 = arith.constant 0 : i32
    %c0_i32_1 = arith.constant 0 : i32
    return %c0_i32, %c0_i32_0 : i32, i32
  }
  func.func @transform_14(%arg0: i32) -> (i32, i32) {
    %c0_i32 = arith.constant 0 : i32
    %c0_i32_0 = arith.constant 0 : i32
    %c0_i32_1 = arith.constant 0 : i32
    return %c0_i32, %c0_i32_0 : i32, i32
  }
  func.func @transform_15(%arg0: i32) -> (i32, i32) {
    %c0_i32 = arith.constant 0 : i32
    %c0_i32_0 = arith.constant 0 : i32
    %c0_i32_1 = arith.constant 0 : i32
    return %c0_i32, %c0_i32_0 : i32, i32
  }
  func.func @transform_16(%arg0: i32) -> (i32, i32) {
    %c0_i32 = arith.constant 0 : i32
    %c0_i32_0 = arith.constant 0 : i32
    %c0_i32_1 = arith.constant 0 : i32
    return %c0_i32, %c0_i32_0 : i32, i32
  }
  func.func @transform_17(%arg0: i32) -> (i32, i32) {
    %c0_i32 = arith.constant 0 : i32
    %c0_i32_0 = arith.constant 0 : i32
    %c0_i32_1 = arith.constant 0 : i32
    return %c0_i32, %c0_i32_0 : i32, i32
  }
  func.func @transform_18(%arg0: i32) -> (i32, i32) {
    %c0_i32 = arith.constant 0 : i32
    %c0_i32_0 = arith.constant 0 : i32
    %c0_i32_1 = arith.constant 0 : i32
    return %c0_i32, %c0_i32_0 : i32, i32
  }
  func.func @transform_19(%arg0: i32) -> (i32, i32, i32) {
    %c0_i32 = arith.constant 0 : i32
    %c0_i32_0 = arith.constant 0 : i32
    %c0_i32_1 = arith.constant 0 : i32
    return %arg0, %c0_i32, %c0_i32_0 : i32, i32, i32
  }
  func.func @transform_20(%arg0: i32) -> (i32, i32, i32) {
    %c0_i32 = arith.constant 0 : i32
    %c0_i32_0 = arith.constant 0 : i32
    %c0_i32_1 = arith.constant 0 : i32
    return %arg0, %c0_i32, %c0_i32_0 : i32, i32, i32
  }
  func.func @transform_21(%arg0: i32) -> (i32, i32, i32) {
    %c0_i32 = arith.constant 0 : i32
    %c0_i32_0 = arith.constant 0 : i32
    %c0_i32_1 = arith.constant 0 : i32
    return %arg0, %c0_i32, %c0_i32_0 : i32, i32, i32
  }
  func.func @transform_22(%arg0: i32) -> (i32, i32, i32) {
    %c0_i32 = arith.constant 0 : i32
    %c0_i32_0 = arith.constant 0 : i32
    %c0_i32_1 = arith.constant 0 : i32
    return %arg0, %c0_i32, %c0_i32_0 : i32, i32, i32
  }
  func.func @transform_23(%arg0: i32) -> (i32, i32, i32) {
    %c0_i32 = arith.constant 0 : i32
    %c0_i32_0 = arith.constant 0 : i32
    %c0_i32_1 = arith.constant 0 : i32
    return %arg0, %c0_i32, %c0_i32_0 : i32, i32, i32
  }
}

</mosaic_0001>

<bundles_post_ra>
// kernel: densenet121_pyramid_forward.1
= control target key start
LH: loop header
LB: loop body
LE: loop exit
PB: predicated region body
PF: predicated region fallthrough
CT: control target
= control target key end

     0   :  { %s24240_s0 = inlined_call_operand.vmem [shape: bf16[2,1024,256], index: 0, kind: input, shape index: {}]   ;;  %s24241_s1 = inlined_call_operand.vmem [shape: bf16[256,64], index: 1, kind: input, shape index: {}]   ;;  %s24242_s2 = inlined_call_operand.vmem [shape: f32[1,64], index: 2, kind: input, shape index: {}]   ;;  %s24243_s3 = inlined_call_operand.vmem [shape: f32[1,64], index: 3, kind: input, shape index: {}]   ;;  %s24244_s4 = inlined_call_operand.vmem [shape: bf16[768,1024], index: 4, kind: input, shape index: {}]   ;;  %s24245_s5 = inlined_call_operand.vmem [shape: bf16[64,256], index: 5, kind: input, shape index: {}]   ;;  %s24246_s6 = inlined_call_operand.vmem [shape: f32[1,256], index: 6, kind: input, shape index: {}]   ;;  %s24247_s7 = inlined_call_operand.vmem [shape: bf16[64,256], index: 7, kind: input, shape index: {}]   ;;  %s24248_s8 = inlined_call_operand.vmem [shape: bf16[256,512], index: 8, kind: input, shape index: {}]   ;;  %s24249_s9 = inlined_call_operand.vmem [shape: f32[1,512], index: 9, kind: input, shape index: {}]   ;;  %s24250_s10 = inlined_call_operand.vmem [shape: bf16[16,64], index: 10, kind: input, shape index: {}]   ;;  %s24251_s11 = inlined_call_operand.vmem [shape: bf16[512,1024], index: 11, kind: input, shape index: {}]   ;;  %s24252_s12 = inlined_call_operand.vmem [shape: f32[1,1024], index: 12, kind: input, shape index: {}]   ;;  %s24253_s13 = inlined_call_operand.vmem [shape: bf16[4,16], index: 13, kind: input, shape index: {}]   ;;  %s24254_s14 = inlined_call_operand.vmem [shape: bf16[1024,1024], index: 14, kind: input, shape index: {}]   ;;  %s24255_s15 = inlined_call_operand.vmem [shape: f32[1,1024], index: 15, kind: input, shape index: {}]   ;;  %s24256_s16 = inlined_call_operand.vmem [shape: bf16[16,1024], index: 16, kind: input, shape index: {}]   ;;  %s24257_s17 = inlined_call_operand.vmem [shape: bf16[16,256], index: 17, kind: input, shape index: {}]   ;;  %s24258_s18 = inlined_call_operand.vmem [shape: bf16[16,4], index: 18, kind: input, shape index: {}]   ;;  %s24259_s19 = inlined_call_operand.vmem [shape: f32[2,16,64], index: 19, kind: output, shape index: {0}]   ;;  %s24260_s20 = inlined_call_operand.vmem [shape: f32[2,16,256], index: 20, kind: output, shape index: {1}]   ;;  %s24261_s21 = inlined_call_operand.vmem [shape: f32[2,16,512], index: 21, kind: output, shape index: {2}]   ;;  %s24262_s22 = inlined_call_operand.vmem [shape: f32[2,16,1024], index: 22, kind: output, shape index: {3}]   ;;  %s24263_s23 = inlined_call_operand.vmem [shape: f32[2,16,1024], index: 23, kind: output, shape index: {4}]  }
   0x1   :  { %24368 = sst [smem:[#allocation79_spill]] %s24240_s0 }
   0x2   :  { %24369 = sst [smem:[#allocation80_spill]] %s24241_s1 }
   0x3   :  { %24370 = sst [smem:[#allocation81_spill]] %s24242_s2 }
   0x4   :  { %24371 = sst [smem:[#allocation82_spill]] %s24243_s3 }
   0x5   :  { %24372 = sst [smem:[#allocation83_spill]] %s24244_s4  ;;  %s17566_s4 = smov 0  }
   0x6   :  { %24373 = sst [smem:[#allocation84_spill]] %s24245_s5 }
   0x7   :  { %24374 = sst [smem:[#allocation85_spill]] %s24246_s6 }
   0x8   :  { %24375 = sst [smem:[#allocation86_spill]] %s24247_s7 }
   0x9 LB: > { %s14880_s30 = sadd.s32 4294967295, %s17443_s4   ;;  %p14884_p0 = scmp.ge.s32.totalorder %s17443_s4, 1  ;;  %s17443_s4 = sphi %s17566_s4, %s34_s4  }
   0xa   : > { %p646_p1 = scmp.lt.s32.totalorder %s17443_s4, 3 }
   0xc   : > { %p647_p2 = pnand %p14884_p0, %p646_p1 }
   0xe   : > { %650 = sbr.rel (%p647_p2) target bundleno = 5160 (0x1428), region = 96 }
  0x15   : > { %s24376_s5 = sld [smem:[#allocation80_spill]]  ;;  %v24270_v1 = vmov 0   ;;  %p730_p3 = scmp.lt.s32.totalorder %s14880_s30, 1  ;;  %vm2478_vm0 = vcmask 523264   ;;  %vm10507_vm1 = vcmask 130048   ;;  %vm14480_vm2 = vcmask 1041408  }
  0x16   : > { %1657 = vmatprep.subr.bf16.mxu0 %v24270_v1  ;;  %s24377_s25 = sld [smem:[#allocation79_spill]]  ;;  %s24378_s6 = sld [smem:[#allocation81_spill]]  ;;  %vm14476_vm3 = vcmask 31744  }
  0x17   : > { %s24670_s30 = smov (!%p730_p3, %s14880_s30), 1  ;;  %s24605_s2 = sld [smem:[#allocation84_spill]] }
  0x18   : > { %s16319_s28 = sshll.u32 %s24670_s30, 10  ;;  %s16320_s7 = sshll.u32 %s24670_s30, 4 }
  0x19   : > { %s739_s0 = scalar_lea.vmem %s24259_s19, %s16320_s7  ;;  %s24666_s24 = sld [smem:[#allocation85_spill]] }
  0x1a   : > { %s24667_s3 = sld [smem:[#allocation86_spill]]  ;;  %s24668_s7 = sshll.u32 %s24670_s30, 7 }
  0x1b   : > { %v17100_v0 = vld [vmem:[%s24376_s5] sm:$0xff]   ;;  %v17101_v2 = vld [vmem:[%s24376_s5 + $0x8] sm:$0xff]   ;;  %v17102_v3 = vld [vmem:[%s24376_s5 + $0x10] sm:$0xff]  }
  0x1c   : > { %1658 = vmatpush1.bf16.msra.mxu0 %v17100_v0  ;;  %v17103_v4 = vld [vmem:[%s24376_s5 + $0x18] sm:$0xff]   ;;  %v17104_v5 = vld [vmem:[%s24376_s5 + $0x20] sm:$0xff]   ;;  %s17599_s1 = scalar_lea.vmem %s24377_s25, %s16319_s28  ;;  %v17105_v7 = vld [vmem:[%s24376_s5 + $0x28] sm:$0xff]   ;;  %s24379_s28 = sld [smem:[#allocation82_spill]] }
  0x1d   : > { %1659 = vmatprep.subr.bf16.mxu0 %v24270_v1  ;;  %v17118_v6 = vld [vmem:[%s17599_s1 + $0x4] ss:$8 sps:$4 sm:$0xff]   ;;  %v17106_v8 = vld [vmem:[%s24376_s5 + $0x30] sm:$0xff]   ;;  %v17107_v9 = vld [vmem:[%s24376_s5 + $0x38] sm:$0xff]  }
  0x1e   : > { %1689 = vmatprep.mubr.bf16.mxu0 %v17118_v6  ;;  %v17108_v10 = vld [vmem:[%s24376_s5 + $0x40] sm:$0xff]   ;;  %v17109_v11 = vld [vmem:[%s24376_s5 + $0x48] sm:$0xff]   ;;  %v17110_v12 = vld [vmem:[%s24376_s5 + $0x50] sm:$0xff]  }
  0x1f   : > { %v17111_v13 = vld [vmem:[%s24376_s5 + $0x58] sm:$0xff]   ;;  %v17112_v14 = vld [vmem:[%s24376_s5 + $0x60] sm:$0xff]   ;;  %v17113_v15 = vld [vmem:[%s24376_s5 + $0x68] sm:$0xff]  }
  0x20   : > { %1660 = vmatpush1.bf16.msra.mxu0 %v17101_v2  ;;  %v17114_v16 = vld [vmem:[%s24376_s5 + $0x70] sm:$0xff]   ;;  %v17115_v17 = vld [vmem:[%s24376_s5 + $0x78] sm:$0xff]   ;;  %v17116_v18 = vld [vmem:[%s17599_s1] ss:$8 sps:$4 sm:$0xff]   ;;  %s16321_s5 = sshll.u32 %s24670_s30, 5 }
  0x21   : > { %1661 = vmatprep.subr.bf16.mxu0 %v24270_v1  ;;  %v17119_v19 = vld [vmem:[%s17599_s1 + $0x14] ss:$8 sps:$4 sm:$0xff]   ;;  %v17121_v20 = vld [vmem:[%s17599_s1 + $0x10] ss:$8 sps:$4 sm:$0xff]   ;;  %v17122_v21 = vld [vmem:[%s17599_s1 + $0x24] ss:$8 sps:$4 sm:$0xff]   ;;  %s744_s26 = scalar_lea.vmem %s24260_s20, %s16321_s5  ;;  %s24212_s5 = scalar_lea.vmem %s24263_s23, %s24668_s7 }
  0x22   : > { %v17124_v22 = vld [vmem:[%s17599_s1 + $0x20] ss:$8 sps:$4 sm:$0xff]   ;;  %v17125_v23 = vld [vmem:[%s17599_s1 + $0x34] ss:$8 sps:$4 sm:$0xff]   ;;  %v17127_v24 = vld [vmem:[%s17599_s1 + $0x30] ss:$8 sps:$4 sm:$0xff]  }
  0x23   : > { %v17128_v25 = vld [vmem:[%s17599_s1 + $0x44] ss:$8 sps:$4 sm:$0xff]   ;;  %v17130_v26 = vld [vmem:[%s17599_s1 + $0x40] ss:$8 sps:$4 sm:$0xff]   ;;  %v17131_v27 = vld [vmem:[%s17599_s1 + $0x54] ss:$8 sps:$4 sm:$0xff]  }
  0x24   : > { %1662 = vmatpush1.bf16.msra.mxu0 %v17102_v3  ;;  %v17133_v28 = vld [vmem:[%s17599_s1 + $0x50] ss:$8 sps:$4 sm:$0xff]   ;;  %v17134_v29 = vld [vmem:[%s17599_s1 + $0x64] ss:$8 sps:$4 sm:$0xff]   ;;  %v17136_v30 = vld [vmem:[%s17599_s1 + $0x60] ss:$8 sps:$4 sm:$0xff]  }
  0x25   : > { %1663 = vmatprep.subr.bf16.mxu0 %v24270_v1  ;;  %v17137_v31 = vld [vmem:[%s17599_s1 + $0x74] ss:$8 sps:$4 sm:$0xff]   ;;  %v17139_v32 = vld [vmem:[%s17599_s1 + $0x70] ss:$8 sps:$4 sm:$0xff]   ;;  %v17140_v33 = vld [vmem:[%s17599_s1 + $0x84] ss:$8 sps:$4 sm:$0xff]  }
  0x26   : > { %v17142_v34 = vld [vmem:[%s17599_s1 + $0x80] ss:$8 sps:$4 sm:$0xff]   ;;  %v17143_v35 = vld [vmem:[%s17599_s1 + $0x94] ss:$8 sps:$4 sm:$0xff]   ;;  %v17145_v36 = vld [vmem:[%s17599_s1 + $0x90] ss:$8 sps:$4 sm:$0xff]  }
  0x27   : > { %v17146_v37 = vld [vmem:[%s17599_s1 + $0xa4] ss:$8 sps:$4 sm:$0xff]   ;;  %v17148_v38 = vld [vmem:[%s17599_s1 + $0xa0] ss:$8 sps:$4 sm:$0xff]   ;;  %v17149_v39 = vld [vmem:[%s17599_s1 + $0xb4] ss:$8 sps:$4 sm:$0xff]  }
  0x28   : > { %1664 = vmatpush1.bf16.msra.mxu0 %v17103_v4  ;;  %v17151_v40 = vld [vmem:[%s17599_s1 + $0xb0] ss:$8 sps:$4 sm:$0xff]   ;;  %v17152_v41 = vld [vmem:[%s17599_s1 + $0xc4] ss:$8 sps:$4 sm:$0xff]   ;;  %v17154_v42 = vld [vmem:[%s17599_s1 + $0xc0] ss:$8 sps:$4 sm:$0xff]  }
  0x29   : > { %1665 = vmatprep.subr.bf16.mxu0 %v24270_v1  ;;  %v17155_v43 = vld [vmem:[%s17599_s1 + $0xd4] ss:$8 sps:$4 sm:$0xff]   ;;  %v17157_v44 = vld [vmem:[%s17599_s1 + $0xd0] ss:$8 sps:$4 sm:$0xff]   ;;  %v17158_v45 = vld [vmem:[%s17599_s1 + $0xe4] ss:$8 sps:$4 sm:$0xff]  }
  0x2a   : > { %v17160_v46 = vld [vmem:[%s17599_s1 + $0xe0] ss:$8 sps:$4 sm:$0xff]   ;;  %v17161_v47 = vld [vmem:[%s17599_s1 + $0xf4] ss:$8 sps:$4 sm:$0xff]   ;;  %v17163_v48 = vld [vmem:[%s17599_s1 + $0xf0] ss:$8 sps:$4 sm:$0xff]  }
  0x2b   : > { %v17164_v49 = vld [vmem:[%s17599_s1 + $0x104] ss:$8 sps:$4 sm:$0xff]   ;;  %v17166_v50 = vld [vmem:[%s17599_s1 + $0x100] ss:$8 sps:$4 sm:$0xff]   ;;  %v17167_v51 = vld [vmem:[%s17599_s1 + $0x114] ss:$8 sps:$4 sm:$0xff]  }
  0x2c   : > { %1666 = vmatpush1.bf16.msra.mxu0 %v17104_v5  ;;  %v17169_v52 = vld [vmem:[%s17599_s1 + $0x110] ss:$8 sps:$4 sm:$0xff]   ;;  %v17170_v53 = vld [vmem:[%s17599_s1 + $0x124] ss:$8 sps:$4 sm:$0xff]   ;;  %v17172_v54 = vld [vmem:[%s17599_s1 + $0x120] ss:$8 sps:$4 sm:$0xff]  }
  0x2d   : > { %1667 = vmatprep.subr.bf16.mxu0 %v24270_v1  ;;  %v17173_v55 = vld [vmem:[%s17599_s1 + $0x134] ss:$8 sps:$4 sm:$0xff]   ;;  %v17175_v56 = vld [vmem:[%s17599_s1 + $0x130] ss:$8 sps:$4 sm:$0xff]   ;;  %v17176_v57 = vld [vmem:[%s17599_s1 + $0x144] ss:$8 sps:$4 sm:$0xff]  }
  0x2e   : > { %v17178_v58 = vld [vmem:[%s17599_s1 + $0x140] ss:$8 sps:$4 sm:$0xff]   ;;  %v17179_v59 = vld [vmem:[%s17599_s1 + $0x154] ss:$8 sps:$4 sm:$0xff]   ;;  %v17181_v60 = vld [vmem:[%s17599_s1 + $0x150] ss:$8 sps:$4 sm:$0xff]  }
  0x2f   : > { %v17182_v61 = vld [vmem:[%s17599_s1 + $0x164] ss:$8 sps:$4 sm:$0xff]   ;;  %v17184_v62 = vld [vmem:[%s17599_s1 + $0x160] ss:$8 sps:$4 sm:$0xff]   ;;  %v17185_v63 = vld [vmem:[%s17599_s1 + $0x174] ss:$8 sps:$4 sm:$0xff]  }
  0x30   : > { %1668 = vmatpush1.bf16.msra.mxu0 %v17105_v7  ;;  %v17187_v0 = vld [vmem:[%s17599_s1 + $0x170] ss:$8 sps:$4 sm:$0xff]   ;;  %v17188_v2 = vld [vmem:[%s17599_s1 + $0x184] ss:$8 sps:$4 sm:$0xff]   ;;  %v17190_v3 = vld [vmem:[%s17599_s1 + $0x180] ss:$8 sps:$4 sm:$0xff]  }
  0x31   : > { %1669 = vmatprep.subr.bf16.mxu0 %v24270_v1  ;;  %v17191_v4 = vld [vmem:[%s17599_s1 + $0x194] ss:$8 sps:$4 sm:$0xff]   ;;  %v17193_v5 = vld [vmem:[%s17599_s1 + $0x190] ss:$8 sps:$4 sm:$0xff]   ;;  %v17194_v6 = vld [vmem:[%s17599_s1 + $0x1a4] ss:$8 sps:$4 sm:$0xff]  }
  0x32   : > { %v17196_v7 = vld [vmem:[%s17599_s1 + $0x1a0] ss:$8 sps:$4 sm:$0xff]  }
  0x34   : > { %1670 = vmatpush1.bf16.msra.mxu0 %v17106_v8  ;;  %v17197_v8 = vld [vmem:[%s17599_s1 + $0x1b4] ss:$8 sps:$4 sm:$0xff]  }
  0x35   : > { %1671 = vmatprep.subr.bf16.mxu0 %v24270_v1 }
  0x38   : > { %1672 = vmatpush1.bf16.msra.mxu0 %v17107_v9 }
  0x39   : > { %1673 = vmatprep.subr.bf16.mxu0 %v24270_v1 }
  0x3c   : > { %1674 = vmatpush1.bf16.msra.mxu0 %v17108_v10 }
  0x3d   : > { %1675 = vmatprep.subr.bf16.mxu0 %v24270_v1 }
  0x40   : > { %1676 = vmatpush1.bf16.msra.mxu0 %v17109_v11  ;;  %v17199_v11 = vld [vmem:[%s17599_s1 + $0x1b0] ss:$8 sps:$4 sm:$0xff]  }
  0x41   : > { %1677 = vmatprep.subr.bf16.mxu0 %v24270_v1 }
  0x44   : > { %1678 = vmatpush1.bf16.msra.mxu0 %v17110_v12 }
  0x45   : > { %1679 = vmatprep.subr.bf16.mxu0 %v24270_v1 }
  0x48   : > { %1680 = vmatpush1.bf16.msra.mxu0 %v17111_v13  ;;  %v17200_v13 = vld [vmem:[%s17599_s1 + $0x1c4] ss:$8 sps:$4 sm:$0xff]  }
  0x49   : > { %1681 = vmatprep.subr.bf16.mxu0 %v24270_v1 }
  0x4c   : > { %1682 = vmatpush1.bf16.msra.mxu0 %v17112_v14 }
  0x4d   : > { %1683 = vmatprep.subr.bf16.mxu0 %v24270_v1 }
  0x50   : > { %1684 = vmatpush1.bf16.msra.mxu0 %v17113_v15 }
  0x51   : > { %1685 = vmatprep.subr.bf16.mxu0 %v24270_v1 }
  0x54   : > { %1686 = vmatpush1.bf16.msra.mxu0 %v17114_v16 }
  0x55   : > { %1687 = vmatprep.subr.bf16.mxu0 %v24270_v1 }
  0x58   : > { %1688 = vmatpush1.bf16.msra.mxu0 %v17115_v17 }
  0x59   : > { %5503 = vmatprep.subr.bf16.mxu0 %v24270_v1 }
  0x5b   : > { %1690 = vmatmul.mubr.bf16.vlgmr.msra.gmra.mrb[0].mxu0 %v17116_v18  ;;  %v17202_v18 = vld [vmem:[%s17599_s1 + $0x1c0] ss:$8 sps:$4 sm:$0xff]  }
  0x5c   : > { %1697 = vmatprep.mubr.bf16.mxu0 %v17119_v19  ;;  %v17716_v19 = vld [vmem:[%s24378_s6] ss:$0 sm:$0xff] }
  0x63   : > { %1698 = vmatmul.mubr.bf16.gmra.mrb[4].mxu0 %v17121_v20 }
  0x64   : > { %1705 = vmatprep.mubr.bf16.mxu0 %v17122_v21  ;;  %v17203_v21 = vld [vmem:[%s17599_s1 + $0x1d4] ss:$8 sps:$4 sm:$0xff]  }
  0x6b   : > { %1706 = vmatmul.mubr.bf16.gmra.mrb[8].mxu0 %v17124_v22 }
  0x6c   : > { %1713 = vmatprep.mubr.bf16.mxu0 %v17125_v23 }
  0x73   : > { %1714 = vmatmul.mubr.bf16.gmra.mrb[12].mxu0 %v17127_v24 }
  0x74   : > { %1721 = vmatprep.mubr.bf16.mxu0 %v17128_v25  ;;  %v17728_v25 = vld [vmem:[%s24379_s28] ss:$0 sm:$0xff] }
  0x7b   : > { %1722 = vmatmul.mubr.bf16.gmra.mrb[16].mxu0 %v17130_v26 }
  0x7c   : > { %1729 = vmatprep.mubr.bf16.mxu0 %v17131_v27 }
  0x83   : > { %1730 = vmatmul.mubr.bf16.gmra.mrb[20].mxu0 %v17133_v28 }
  0x84   : > { %1737 = vmatprep.mubr.bf16.mxu0 %v17134_v29 }
  0x8b   : > { %1738 = vmatmul.mubr.bf16.gmra.mrb[24].mxu0 %v17136_v30 }
  0x8c   : > { %1745 = vmatprep.mubr.bf16.mxu0 %v17137_v31  ;;  %v17205_v31 = vld [vmem:[%s17599_s1 + $0x1d0] ss:$8 sps:$4 sm:$0xff]  }
  0x93   : > { %1746 = vmatmul.mubr.bf16.gmra.mrb[28].mxu0 %v17139_v32 }
  0x94   : > { %1753 = vmatprep.mubr.bf16.mxu0 %v17140_v33  ;;  %v17206_v33 = vld [vmem:[%s17599_s1 + $0x1e4] ss:$8 sps:$4 sm:$0xff]  }
  0x9b   : > { %1754 = vmatmul.mubr.bf16.gmra.mrb[32].mxu0 %v17142_v34 }
  0x9c   : > { %1761 = vmatprep.mubr.bf16.mxu0 %v17143_v35 }
  0xa3   : > { %1762 = vmatmul.mubr.bf16.gmra.mrb[36].mxu0 %v17145_v36 }
  0xa4   : > { %1769 = vmatprep.mubr.bf16.mxu0 %v17146_v37 }
  0xab   : > { %1770 = vmatmul.mubr.bf16.gmra.mrb[40].mxu0 %v17148_v38 }
  0xac   : > { %1777 = vmatprep.mubr.bf16.mxu0 %v17149_v39 }
  0xb3   : > { %1778 = vmatmul.mubr.bf16.gmra.mrb[44].mxu0 %v17151_v40 }
  0xb4   : > { %1785 = vmatprep.mubr.bf16.mxu0 %v17152_v41 }
  0xbb   : > { %1786 = vmatmul.mubr.bf16.gmra.mrb[48].mxu0 %v17154_v42 }
  0xbc   : > { %1793 = vmatprep.mubr.bf16.mxu0 %v17155_v43 }
  0xc3   : > { %1794 = vmatmul.mubr.bf16.gmra.mrb[52].mxu0 %v17157_v44 }
  0xc4   : > { %1801 = vmatprep.mubr.bf16.mxu0 %v17158_v45 }
  0xcb   : > { %1802 = vmatmul.mubr.bf16.gmra.mrb[56].mxu0 %v17160_v46 }
  0xcc   : > { %1809 = vmatprep.mubr.bf16.mxu0 %v17161_v47 }
  0xd3   : > { %1810 = vmatmul.mubr.bf16.gmra.mrb[60].mxu0 %v17163_v48 }
  0xd4   : > { %1817 = vmatprep.mubr.bf16.mxu0 %v17164_v49 }
  0xdb   : > { %1818 = vmatmul.mubr.bf16.gmra.mrb[64].mxu0 %v17166_v50 }
  0xdc   : > { %1825 = vmatprep.mubr.bf16.mxu0 %v17167_v51  ;;  %v17208_v51 = vld [vmem:[%s17599_s1 + $0x1e0] ss:$8 sps:$4 sm:$0xff]  }
  0xe3   : > { %1826 = vmatmul.mubr.bf16.gmra.mrb[68].mxu0 %v17169_v52 }
  0xe4   : > { %1833 = vmatprep.mubr.bf16.mxu0 %v17170_v53 }
  0xeb   : > { %1834 = vmatmul.mubr.bf16.gmra.mrb[72].mxu0 %v17172_v54 }
  0xec   : > { %1841 = vmatprep.mubr.bf16.mxu0 %v17173_v55 }
  0xf3   : > { %1842 = vmatmul.mubr.bf16.gmra.mrb[76].mxu0 %v17175_v56  ;;  %v17209_v56 = vld [vmem:[%s17599_s1 + $0x1f4] ss:$8 sps:$4 sm:$0xff]  }
  0xf4   : > { %1849 = vmatprep.mubr.bf16.mxu0 %v17176_v57 }
  0xfb   : > { %1850 = vmatmul.mubr.bf16.gmra.mrb[80].mxu0 %v17178_v58 }
  0xfc   : > { %1857 = vmatprep.mubr.bf16.mxu0 %v17179_v59 }
 0x103   : > { %1858 = vmatmul.mubr.bf16.gmra.mrb[84].mxu0 %v17181_v60 }
 0x104   : > { %1865 = vmatprep.mubr.bf16.mxu0 %v17182_v61 }
 0x10b   : > { %1866 = vmatmul.mubr.bf16.gmra.mrb[88].mxu0 %v17184_v62 }
 0x10c   : > { %1873 = vmatprep.mubr.bf16.mxu0 %v17185_v63 }
 0x113   : > { %1874 = vmatmul.mubr.bf16.gmra.mrb[92].mxu0 %v17187_v0 }
 0x114   : > { %1881 = vmatprep.mubr.bf16.mxu0 %v17188_v2 }
 0x11b   : > { %1882 = vmatmul.mubr.bf16.gmra.mrb[96].mxu0 %v17190_v3 }
 0x11c   : > { %1889 = vmatprep.mubr.bf16.mxu0 %v17191_v4 }
 0x123   : > { %1890 = vmatmul.mubr.bf16.gmra.mrb[100].mxu0 %v17193_v5 }
 0x124   : > { %1897 = vmatprep.mubr.bf16.mxu0 %v17194_v6 }
 0x12b   : > { %1898 = vmatmul.mubr.bf16.gmra.mrb[104].mxu0 %v17196_v7 }
 0x12c   : > { %1905 = vmatprep.mubr.bf16.mxu0 %v17197_v8 }
 0x12e   : > { %v17702_v9 = vpop.f32.mrb[0].mxu0 }
 0x12f   : > { %v1693_v10 = vpop.f32.mrb[1].mxu0  ;;  %v2488_v24 = vmul.f32 %v17716_v19, %v17702_v9 }
 0x130   : > { %v17705_v12 = vpop.f32.mrb[2].mxu0  ;;  %v17211_v10 = vld [vmem:[%s17599_s1 + $0x1f0] ss:$8 sps:$4 sm:$0xff]  }
 0x131   : > { %v1696_v14 = vpop.f32.mrb[3].mxu0  ;;  %v2210_v15 = vpack.c.bf16 %v17705_v12, %v17702_v9  ;;  %v2489_v26 = vmul.f32 %v17716_v19, %v17705_v12  ;;  %v17735_v28 = vadd.f32 %v17728_v25, %v2488_v24 }
 0x133   : > { %1906 = vmatmul.mubr.bf16.gmra.mrb[108].mxu0 %v17199_v11  ;;  %v17744_v34 = vadd.f32 %v17728_v25, %v2489_v26  ;;  %v2751_v39 = vmax.f32 %v17735_v28, 0.0 }
 0x134   : > { %1913 = vmatprep.mubr.bf16.mxu0 %v17200_v13 }
 0x135   : > { %v2752_v44 = vmax.f32 %v17744_v34, 0.0 }
 0x136   : > { %v17710_v16 = vpop.f32.mrb[4].mxu0 }
 0x137   : > { %v1701_v17 = vpop.f32.mrb[5].mxu0  ;;  %v2490_v40 = vmul.f32 %v17716_v19, %v17710_v16 }
 0x138   : > { %v17718_v20 = vpop.f32.mrb[6].mxu0  ;;  %v17212_v17 = vld [vmem:[%s17599_s1 + $0x204] ss:$8 sps:$4 sm:$0xff]  }
 0x139   : > { %v1704_v22 = vpop.f32.mrb[7].mxu0  ;;  %v2211_v23 = vpack.c.bf16 %v17718_v20, %v17710_v16  ;;  %v2491_v43 = vmul.f32 %v17716_v19, %v17718_v20  ;;  %v17768_v48 = vadd.f32 %v17728_v25, %v2490_v40  ;;  %v17214_v40 = vld [vmem:[%s17599_s1 + $0x200] ss:$8 sps:$4 sm:$0xff]  }
 0x13b   : > { %1914 = vmatmul.mubr.bf16.gmra.mrb[112].mxu0 %v17202_v18  ;;  %v17775_v53 = vadd.f32 %v17728_v25, %v2491_v43  ;;  %v2753_v62 = vmax.f32 %v17768_v48, 0.0  ;;  %v17215_v48 = vld [vmem:[%s17599_s1 + $0x214] ss:$8 sps:$4 sm:$0xff]  }
 0x13c   : > { %1921 = vmatprep.mubr.bf16.mxu0 %v17203_v21 }
 0x13d   : > { %v2754_v3 = vmax.f32 %v17775_v53, 0.0 }
 0x13e   : > { %v17732_v27 = vpop.f32.mrb[8].mxu0 }
 0x13f   : > { %v2492_v29 = vmul.f32 %v17716_v19, %v17732_v27  ;;  %v1709_v30 = vpop.f32.mrb[9].mxu0 }
 0x140   : > { %v17740_v32 = vpop.f32.mrb[10].mxu0 }
 0x141   : > { %v2627_v35 = vadd.f32 %v17728_v25, %v2492_v29  ;;  %v2493_v36 = vmul.f32 %v17716_v19, %v17740_v32  ;;  %v1712_v37 = vpop.f32.mrb[11].mxu0  ;;  %v2212_v38 = vpack.c.bf16 %v17740_v32, %v17732_v27 }
 0x143   : > { %v17754_v41 = vmax.f32 %v2627_v35, 0.0  ;;  %v2628_v42 = vadd.f32 %v17728_v25, %v2493_v36  ;;  %1922 = vmatmul.mubr.bf16.gmra.mrb[116].mxu0 %v17205_v31 }
 0x144   : > { %1929 = vmatprep.mubr.bf16.mxu0 %v17206_v33 }
 0x145   : > { %v17760_v45 = vmax.f32 %v2628_v42, 0.0  ;;  %v2879_v46 = vmax.f32 %v2751_v39, %v17754_v41 }
 0x146   : > { %v17765_v47 = vpop.f32.mrb[12].mxu0 }
 0x147   : > { %v2494_v49 = vmul.f32 %v17716_v19, %v17765_v47  ;;  %v1717_v50 = vpop.f32.mrb[13].mxu0  ;;  %v2880_v52 = vmax.f32 %v2752_v44, %v17760_v45  ;;  %v3007_v55 = vmax.f32 %v2879_v46, 0.0 }
 0x148   : > { %v17777_v54 = vpop.f32.mrb[14].mxu0 }
 0x149   : > { %v2629_v57 = vadd.f32 %v17728_v25, %v2494_v49  ;;  %v2495_v58 = vmul.f32 %v17716_v19, %v17777_v54  ;;  %v1720_v59 = vpop.f32.mrb[15].mxu0  ;;  %v3008_v60 = vmax.f32 %v2880_v52, 0.0  ;;  %v2213_v61 = vpack.c.bf16 %v17777_v54, %v17765_v47 }
 0x14b   : > { %v17786_v63 = vmax.f32 %v2629_v57, 0.0  ;;  %v2630_v0 = vadd.f32 %v17728_v25, %v2495_v58  ;;  %1930 = vmatmul.mubr.bf16.gmra.mrb[120].mxu0 %v17208_v51  ;;  %v17789_v2 = vpack.c.bf16 %v3008_v60, %v3007_v55  ;;  %v17217_v60 = vld [vmem:[%s17599_s1 + $0x210] ss:$8 sps:$4 sm:$0xff]  }
 0x14c   : > { %1937 = vmatprep.mubr.bf16.mxu0 %v17209_v56 }
 0x14d   : > { %v17792_v4 = vmax.f32 %v2630_v0, 0.0  ;;  %5504 = vmatpush1.bf16.msra.mxu0 %v17789_v2  ;;  %v2881_v5 = vmax.f32 %v2753_v62, %v17786_v63 }
 0x14e   : > { %v17796_v6 = vpop.f32.mrb[16].mxu0  ;;  %5505 = vmatprep.subr.bf16.mxu0 %v24270_v1 }
 0x14f   : > { %v2496_v7 = vmul.f32 %v17716_v19, %v17796_v6  ;;  %v1725_v8 = vpop.f32.mrb[17].mxu0  ;;  %v2882_v11 = vmax.f32 %v2754_v3, %v17792_v4  ;;  %v3009_v14 = vmax.f32 %v2881_v5, 0.0 }
 0x150   : > { %v17803_v13 = vpop.f32.mrb[18].mxu0  ;;  %v17218_v8 = vld [vmem:[%s17599_s1 + $0x224] ss:$8 sps:$4 sm:$0xff]  }
 0x151   : > { %v2631_v18 = vadd.f32 %v17728_v25, %v2496_v7  ;;  %v2497_v21 = vmul.f32 %v17716_v19, %v17803_v13  ;;  %v1728_v22 = vpop.f32.mrb[19].mxu0  ;;  %v3010_v24 = vmax.f32 %v2882_v11, 0.0  ;;  %v2214_v26 = vpack.c.bf16 %v17803_v13, %v17796_v6 }
 0x153   : > { %v17811_v29 = vmax.f32 %v2631_v18, 0.0  ;;  %v2632_v30 = vadd.f32 %v17728_v25, %v2497_v21  ;;  %1938 = vmatmul.mubr.bf16.gmra.mrb[124].mxu0 %v17211_v10  ;;  %v17814_v31 = vpack.c.bf16 %v3010_v24, %v3009_v14 }
 0x154   : > { %1945 = vmatprep.mubr.bf16.mxu0 %v17212_v17 }
 0x155   : > { %v17816_v33 = vmax.f32 %v2632_v30, 0.0  ;;  %5506 = vmatpush1.bf16.msra.mxu0 %v17814_v31  ;;  %v2883_v34 = vmax.f32 %v17754_v41, %v17811_v29 }
 0x156   : > { %v17821_v35 = vpop.f32.mrb[20].mxu0  ;;  %5507 = vmatprep.subr.bf16.mxu0 %v24270_v1 }
 0x157   : > { %v2498_v36 = vmul.f32 %v17716_v19, %v17821_v35  ;;  %v1733_v37 = vpop.f32.mrb[21].mxu0  ;;  %v2884_v42 = vmax.f32 %v17760_v45, %v17816_v33  ;;  %v3011_v43 = vmax.f32 %v2883_v34, %v2751_v39 }
 0x158   : > { %v17831_v46 = vpop.f32.mrb[22].mxu0  ;;  %v17220_v37 = vld [vmem:[%s17599_s1 + $0x220] ss:$8 sps:$4 sm:$0xff]  }
 0x159   : > { %v2633_v49 = vadd.f32 %v17728_v25, %v2498_v36  ;;  %v2499_v50 = vmul.f32 %v17716_v19, %v17831_v46  ;;  %v1736_v51 = vpop.f32.mrb[23].mxu0  ;;  %v3012_v52 = vmax.f32 %v2884_v42, %v2752_v44  ;;  %v2215_v53 = vpack.c.bf16 %v17831_v46, %v17821_v35 }
 0x15b   : > { %v17839_v55 = vmax.f32 %v2633_v49, 0.0  ;;  %v2634_v28 = vadd.f32 %v17728_v25, %v2499_v50  ;;  %1946 = vmatmul.mubr.bf16.gmra.mrb[128].mxu0 %v17214_v40  ;;  %v17842_v39 = vpack.c.bf16 %v3012_v52, %v3011_v43 }
 0x15c   : > { %1953 = vmatprep.mubr.bf16.mxu0 %v17215_v48  ;;  %v17221_v48 = vld [vmem:[%s17599_s1 + $0x234] ss:$8 sps:$4 sm:$0xff]  }
 0x15d   : > { %v17844_v56 = vmax.f32 %v2634_v28, 0.0  ;;  %5508 = vmatpush1.bf16.msra.mxu0 %v17842_v39  ;;  %v2885_v57 = vmax.f32 %v17786_v63, %v17839_v55 }
 0x15e   : > { %v17849_v44 = vpop.f32.mrb[24].mxu0  ;;  %5509 = vmatprep.subr.bf16.mxu0 %v24270_v1 }
 0x15f   : > { %v2500_v58 = vmul.f32 %v17716_v19, %v17849_v44  ;;  %v1741_v59 = vpop.f32.mrb[25].mxu0  ;;  %v2886_v0 = vmax.f32 %v17792_v4, %v17844_v56  ;;  %v3013_v5 = vmax.f32 %v2885_v57, %v2753_v62 }
 0x160   : > { %v17857_v7 = vpop.f32.mrb[26].mxu0 }
 0x161   : > { %v2635_v10 = vadd.f32 %v17728_v25, %v2500_v58  ;;  %v2501_v11 = vmul.f32 %v17716_v19, %v17857_v7  ;;  %v1744_v14 = vpop.f32.mrb[27].mxu0  ;;  %v3014_v17 = vmax.f32 %v2886_v0, %v2754_v3  ;;  %v2216_v18 = vpack.c.bf16 %v17857_v7, %v17849_v44 }
 0x163   : > { %v17865_v21 = vmax.f32 %v2635_v10, 0.0  ;;  %v2636_v22 = vadd.f32 %v17728_v25, %v2501_v11  ;;  %1954 = vmatmul.mubr.bf16.gmra.mrb[132].mxu0 %v17217_v60  ;;  %v17868_v62 = vpack.c.bf16 %v3014_v17, %v3013_v5  ;;  %v17224_v17 = vld [vmem:[%s17599_s1 + $0x244] ss:$8 sps:$4 sm:$0xff]  }
 0x164   : > { %1961 = vmatprep.mubr.bf16.mxu0 %v17218_v8  ;;  %v17223_v8 = vld [vmem:[%s17599_s1 + $0x230] ss:$8 sps:$4 sm:$0xff]  }
 0x165   : > { %v17870_v24 = vmax.f32 %v2636_v22, 0.0  ;;  %5510 = vmatpush1.bf16.msra.mxu0 %v17868_v62  ;;  %v2887_v30 = vmax.f32 %v17811_v29, %v17865_v21  ;;  %v17913_v22 = vld [vmem:[%s24256_s16] sm:$0xff] }
 0x166   : > { %v17875_v3 = vpop.f32.mrb[28].mxu0  ;;  %5511 = vmatprep.subr.bf16.mxu0 %v24270_v1 }
 0x167   : > { %v2502_v34 = vmul.f32 %v17716_v19, %v17875_v3  ;;  %v1749_v36 = vpop.f32.mrb[29].mxu0  ;;  %v2888_v40 = vmax.f32 %v17816_v33, %v17870_v24  ;;  %v3015_v42 = vmax.f32 %v2887_v30, %v17754_v41  ;;  %v17918_v30 = vld [vmem:[%s24256_s16 + $0x20] sm:$0xff] }
 0x168   : > { %v17884_v43 = vpop.f32.mrb[30].mxu0 }
 0x169   : > { %v2637_v49 = vadd.f32 %v17728_v25, %v2502_v34  ;;  %v2503_v50 = vmul.f32 %v17716_v19, %v17884_v43  ;;  %v1752_v51 = vpop.f32.mrb[31].mxu0  ;;  %v3016_v52 = vmax.f32 %v2888_v40, %v17760_v45  ;;  %v2217_v28 = vpack.c.bf16 %v17884_v43, %v17875_v3 }
 0x16b   : > { %v17893_v57 = vmax.f32 %v2637_v49, 0.0  ;;  %v2638_v41 = vadd.f32 %v17728_v25, %v2503_v50  ;;  %1962 = vmatmul.mubr.bf16.gmra.mrb[136].mxu0 %v17220_v37  ;;  %v17896_v58 = vpack.c.bf16 %v3016_v52, %v3015_v42  ;;  %v15042_v42 = vcombine.high %v17913_v22, %v17918_v30 }
 0x16c   : > { %1969 = vmatprep.mubr.bf16.mxu0 %v17221_v48 }
 0x16d   : > { %v17898_v59 = vmax.f32 %v2638_v41, 0.0  ;;  %5512 = vmatpush1.bf16.msra.mxu0 %v17896_v58  ;;  %v2889_v60 = vmax.f32 %v17839_v55, %v17893_v57  ;;  %2346 = vmatprep.mubr.bf16.mxu1 %v15042_v42  ;;  %v17229_v42 = vld [vmem:[%s17599_s1 + $0x250] ss:$8 sps:$4 sm:$0xff]  }
 0x16e   : > { %v1755_v45 = vpop.f32.mrb[32].mxu0  ;;  %5513 = vmatprep.subr.bf16.mxu0 %v24270_v1 }
 0x16f   : > { %v2504_v0 = vmul.f32 %v17716_v19, %v1755_v45  ;;  %v1757_v5 = vpop.f32.mrb[33].mxu0  ;;  %v2890_v10 = vmax.f32 %v17844_v56, %v17898_v59  ;;  %v3017_v11 = vmax.f32 %v2889_v60, %v17786_v63 }
 0x170   : > { %v1758_v14 = vpop.f32.mrb[34].mxu0 }
 0x171   : > { %v2639_v34 = vadd.f32 %v17728_v25, %v2504_v0  ;;  %v2505_v36 = vmul.f32 %v17716_v19, %v1758_v14  ;;  %v1760_v37 = vpop.f32.mrb[35].mxu0  ;;  %v2218_v40 = vpack.c.bf16 %v1758_v14, %v1755_v45  ;;  %v3018_v63 = vmax.f32 %v2890_v10, %v17792_v4  ;;  %v17226_v45 = vld [vmem:[%s17599_s1 + $0x240] ss:$8 sps:$4 sm:$0xff]   ;;  %v17227_v0 = vld [vmem:[%s17599_s1 + $0x254] ss:$8 sps:$4 sm:$0xff]  }
 0x173   : > { %v17925_v48 = vmax.f32 %v2639_v34, 0.0  ;;  %v2640_v49 = vadd.f32 %v17728_v25, %v2505_v36  ;;  %1970 = vmatmul.mubr.bf16.gmra.mrb[140].mxu0 %v17223_v8  ;;  %16325 = vmatprep.subr.bf16.mxu1 %v2218_v40  ;;  %v17928_v50 = vpack.c.bf16 %v3018_v63, %v3017_v11 }
 0x174   : > { %16326 = vmatpush3.bf16.msra.mxu1 %v2210_v15  ;;  %1977 = vmatprep.mubr.bf16.mxu0 %v17224_v17 }
 0x175   : > { %v17933_v51 = vmax.f32 %v2640_v49, 0.0  ;;  %5514 = vmatpush1.bf16.msra.mxu0 %v17928_v50  ;;  %v2891_v4 = vmax.f32 %v17865_v21, %v17925_v48 }
 0x176   : > { %v1763_v52 = vpop.f32.mrb[36].mxu0  ;;  %5515 = vmatprep.subr.bf16.mxu0 %v24270_v1 }
 0x177   : > { %v2506_v41 = vmul.f32 %v17716_v19, %v1763_v52  ;;  %v1765_v60 = vpop.f32.mrb[37].mxu0  ;;  %v2892_v9 = vmax.f32 %v17870_v24, %v17933_v51  ;;  %v3019_v12 = vmax.f32 %v2891_v4, %v17811_v29 }
 0x178   : > { %v1766_v15 = vpop.f32.mrb[38].mxu0 }
 0x179   : > { %v2641_v5 = vadd.f32 %v17728_v25, %v2506_v41  ;;  %v2507_v8 = vmul.f32 %v17716_v19, %v1766_v15  ;;  %v1768_v10 = vpop.f32.mrb[39].mxu0  ;;  %v2219_v11 = vpack.c.bf16 %v1766_v15, %v1763_v52  ;;  %v3020_v14 = vmax.f32 %v2892_v9, %v17816_v33 }
 0x17a   : > { %v17232_v10 = vld [vmem:[%s17599_s1 + $0x260] ss:$8 sps:$4 sm:$0xff]  }
 0x17b   : > { %v17948_v17 = vmax.f32 %v2641_v5, 0.0  ;;  %v2642_v34 = vadd.f32 %v17728_v25, %v2507_v8  ;;  %1978 = vmatmul.mubr.bf16.gmra.mrb[144].mxu0 %v17226_v45  ;;  %16327 = vmatprep.subr.bf16.mxu1 %v2219_v11  ;;  %v17951_v36 = vpack.c.bf16 %v3020_v14, %v3019_v12 }
 0x17c   : > { %16328 = vmatpush3.bf16.msra.mxu1 %v2211_v23  ;;  %1985 = vmatprep.mubr.bf16.mxu0 %v17227_v0  ;;  %v17230_v23 = vld [vmem:[%s17599_s1 + $0x264] ss:$8 sps:$4 sm:$0xff]  }
 0x17d   : > { %v17956_v29 = vmax.f32 %v2642_v34, 0.0  ;;  %5516 = vmatpush1.bf16.msra.mxu0 %v17951_v36  ;;  %v2893_v33 = vmax.f32 %v17893_v57, %v17948_v17 }
 0x17e   : > { %v1771_v37 = vpop.f32.mrb[40].mxu0  ;;  %5517 = vmatprep.subr.bf16.mxu0 %v24270_v1 }
 0x17f   : > { %v2508_v40 = vmul.f32 %v17716_v19, %v1771_v37  ;;  %v1773_v63 = vpop.f32.mrb[41].mxu0  ;;  %v2894_v49 = vmax.f32 %v17898_v59, %v17956_v29  ;;  %v3021_v16 = vmax.f32 %v2893_v33, %v17839_v55 }
 0x180   : > { %v1774_v20 = vpop.f32.mrb[42].mxu0 }
 0x181   : > { %v2643_v4 = vadd.f32 %v17728_v25, %v2508_v40  ;;  %v2509_v52 = vmul.f32 %v17716_v19, %v1774_v20  ;;  %v1776_v41 = vpop.f32.mrb[43].mxu0  ;;  %v2220_v60 = vpack.c.bf16 %v1774_v20, %v1771_v37  ;;  %v3022_v45 = vmax.f32 %v2894_v49, %v17844_v56 }
 0x183   : > { %v17971_v9 = vmax.f32 %v2643_v4, 0.0  ;;  %v2644_v12 = vadd.f32 %v17728_v25, %v2509_v52  ;;  %1986 = vmatmul.mubr.bf16.gmra.mrb[148].mxu0 %v17229_v42  ;;  %16329 = vmatprep.subr.bf16.mxu1 %v2220_v60  ;;  %v17974_v15 = vpack.c.bf16 %v3022_v45, %v3021_v16  ;;  %v17235_v4 = vld [vmem:[%s17599_s1 + $0x270] ss:$8 sps:$4 sm:$0xff]  }
 0x184   : > { %16330 = vmatpush3.bf16.msra.mxu1 %v2212_v38  ;;  %1993 = vmatprep.mubr.bf16.mxu0 %v17230_v23  ;;  %v17233_v38 = vld [vmem:[%s17599_s1 + $0x274] ss:$8 sps:$4 sm:$0xff]  }
 0x185   : > { %v17979_v55 = vmax.f32 %v2644_v12, 0.0  ;;  %5518 = vmatpush1.bf16.msra.mxu0 %v17974_v15  ;;  %v2895_v56 = vmax.f32 %v17925_v48, %v17971_v9 }
 0x186   : > { %v1779_v0 = vpop.f32.mrb[44].mxu0  ;;  %5519 = vmatprep.subr.bf16.mxu0 %v24270_v1 }
 0x187   : > { %v2510_v5 = vmul.f32 %v17716_v19, %v1779_v0  ;;  %v1781_v8 = vpop.f32.mrb[45].mxu0  ;;  %v2896_v11 = vmax.f32 %v17933_v51, %v17979_v55  ;;  %v3023_v27 = vmax.f32 %v2895_v56, %v17865_v21 }
 0x188   : > { %v1782_v32 = vpop.f32.mrb[46].mxu0 }
 0x189   : > { %v2645_v14 = vadd.f32 %v17728_v25, %v2510_v5  ;;  %v2511_v34 = vmul.f32 %v17716_v19, %v1782_v32  ;;  %v1784_v33 = vpop.f32.mrb[47].mxu0  ;;  %v2221_v37 = vpack.c.bf16 %v1782_v32, %v1779_v0  ;;  %v3024_v40 = vmax.f32 %v2896_v11, %v17870_v24  ;;  %v17238_v32 = vld [vmem:[%s17599_s1 + $0x280] ss:$8 sps:$4 sm:$0xff]  }
 0x18b   : > { %v17994_v63 = vmax.f32 %v2645_v14, 0.0  ;;  %v2646_v42 = vadd.f32 %v17728_v25, %v2511_v34  ;;  %1994 = vmatmul.mubr.bf16.gmra.mrb[152].mxu0 %v17232_v10  ;;  %16331 = vmatprep.subr.bf16.mxu1 %v2221_v37  ;;  %v17997_v49 = vpack.c.bf16 %v3024_v40, %v3023_v27 }
 0x18c   : > { %16332 = vmatpush3.bf16.msra.mxu1 %v2213_v61  ;;  %2001 = vmatprep.mubr.bf16.mxu0 %v17233_v38  ;;  %v17236_v61 = vld [vmem:[%s17599_s1 + $0x284] ss:$8 sps:$4 sm:$0xff]  }
 0x18d   : > { %v18002_v21 = vmax.f32 %v2646_v42, 0.0  ;;  %5520 = vmatpush1.bf16.msra.mxu0 %v17997_v49  ;;  %v2897_v24 = vmax.f32 %v17948_v17, %v17994_v63 }
 0x18e   : > { %v1787_v16 = vpop.f32.mrb[48].mxu0  ;;  %5521 = vmatprep.subr.bf16.mxu0 %v24270_v1 }
 0x18f   : > { %v2512_v20 = vmul.f32 %v17716_v19, %v1787_v16  ;;  %v1789_v23 = vpop.f32.mrb[49].mxu0  ;;  %v2898_v52 = vmax.f32 %v17956_v29, %v18002_v21  ;;  %v3025_v47 = vmax.f32 %v2897_v24, %v17893_v57 }
 0x190   : > { %v1790_v54 = vpop.f32.mrb[50].mxu0 }
 0x191   : > { %v2647_v41 = vadd.f32 %v17728_v25, %v2512_v20  ;;  %v2513_v60 = vmul.f32 %v17716_v19, %v1790_v54  ;;  %v1792_v45 = vpop.f32.mrb[51].mxu0  ;;  %v2222_v12 = vpack.c.bf16 %v1790_v54, %v1787_v16  ;;  %v3026_v56 = vmax.f32 %v2898_v52, %v17898_v59  ;;  %v17241_v52 = vld [vmem:[%s17599_s1 + $0x290] ss:$8 sps:$4 sm:$0xff]  }
 0x193   : > { %v18017_v0 = vmax.f32 %v2647_v41, 0.0  ;;  %v2648_v5 = vadd.f32 %v17728_v25, %v2513_v60  ;;  %2002 = vmatmul.mubr.bf16.gmra.mrb[156].mxu0 %v17235_v4  ;;  %16333 = vmatprep.subr.bf16.mxu1 %v2222_v12  ;;  %v18020_v8 = vpack.c.bf16 %v3026_v56, %v3025_v47 }
 0x194   : > { %16334 = vmatpush3.bf16.msra.mxu1 %v2214_v26  ;;  %2009 = vmatprep.mubr.bf16.mxu0 %v17236_v61  ;;  %v17239_v26 = vld [vmem:[%s17599_s1 + $0x294] ss:$8 sps:$4 sm:$0xff]  }
 0x195   : > { %v18025_v57 = vmax.f32 %v2648_v5, 0.0  ;;  %5522 = vmatpush1.bf16.msra.mxu0 %v18020_v8  ;;  %v2899_v59 = vmax.f32 %v17971_v9, %v18017_v0 }
 0x196   : > { %v1795_v10 = vpop.f32.mrb[52].mxu0  ;;  %5523 = vmatprep.subr.bf16.mxu0 %v24270_v1 }
 0x197   : > { %v2514_v11 = vmul.f32 %v17716_v19, %v1795_v10  ;;  %v1797_v27 = vpop.f32.mrb[53].mxu0  ;;  %v2900_v38 = vmax.f32 %v17979_v55, %v18025_v57  ;;  %v3027_v6 = vmax.f32 %v2899_v59, %v17925_v48 }
 0x198   : > { %v1798_v13 = vpop.f32.mrb[54].mxu0  ;;  %v17244_v27 = vld [vmem:[%s17599_s1 + $0x2a0] ss:$8 sps:$4 sm:$0xff]  }
 0x199   : > { %v2649_v14 = vadd.f32 %v17728_v25, %v2514_v11  ;;  %v2515_v34 = vmul.f32 %v17716_v19, %v1798_v13  ;;  %v1800_v33 = vpop.f32.mrb[55].mxu0  ;;  %v2223_v37 = vpack.c.bf16 %v1798_v13, %v1795_v10  ;;  %v3028_v40 = vmax.f32 %v2900_v38, %v17933_v51 }
 0x19b   : > { %v18040_v42 = vmax.f32 %v2649_v14, 0.0  ;;  %v2650_v24 = vadd.f32 %v17728_v25, %v2515_v34  ;;  %2010 = vmatmul.mubr.bf16.gmra.mrb[160].mxu0 %v17238_v32  ;;  %16335 = vmatprep.subr.bf16.mxu1 %v2223_v37  ;;  %v18043_v16 = vpack.c.bf16 %v3028_v40, %v3027_v6 }
 0x19c   : > { %16336 = vmatpush3.bf16.msra.mxu1 %v2215_v53  ;;  %2017 = vmatprep.mubr.bf16.mxu0 %v17239_v26  ;;  %v17242_v53 = vld [vmem:[%s17599_s1 + $0x2a4] ss:$8 sps:$4 sm:$0xff]  }
 0x19d   : > { %v18048_v48 = vmax.f32 %v2650_v24, 0.0  ;;  %5524 = vmatpush1.bf16.msra.mxu0 %v18043_v16  ;;  %v2901_v51 = vmax.f32 %v17994_v63, %v18040_v42 }
 0x19e   : > { %v1803_v20 = vpop.f32.mrb[56].mxu0  ;;  %5525 = vmatprep.subr.bf16.mxu0 %v24270_v1 }
 0x19f   : > { %v2516_v23 = vmul.f32 %v17716_v19, %v1803_v20  ;;  %v1805_v4 = vpop.f32.mrb[57].mxu0  ;;  %v2902_v47 = vmax.f32 %v18002_v21, %v18048_v48  ;;  %v3029_v35 = vmax.f32 %v2901_v51, %v17948_v17 }
 0x1a0   : > { %v1806_v46 = vpop.f32.mrb[58].mxu0 }
 0x1a1   : > { %v2651_v54 = vadd.f32 %v17728_v25, %v2516_v23  ;;  %v2517_v61 = vmul.f32 %v17716_v19, %v1806_v46  ;;  %v1808_v41 = vpop.f32.mrb[59].mxu0  ;;  %v2224_v60 = vpack.c.bf16 %v1806_v46, %v1803_v20  ;;  %v3030_v45 = vmax.f32 %v2902_v47, %v17956_v29  ;;  %v17248_v20 = vld [vmem:[%s17599_s1 + $0x2c4] ss:$8 sps:$4 sm:$0xff]  }
 0x1a3   : > { %v18063_v12 = vmax.f32 %v2651_v54, 0.0  ;;  %v2652_v56 = vadd.f32 %v17728_v25, %v2517_v61  ;;  %2018 = vmatmul.mubr.bf16.gmra.mrb[164].mxu0 %v17241_v52  ;;  %16337 = vmatprep.subr.bf16.mxu1 %v2224_v60  ;;  %v18066_v5 = vpack.c.bf16 %v3030_v45, %v3029_v35  ;;  %v17250_v45 = vld [vmem:[%s17599_s1 + $0x2c0] ss:$8 sps:$4 sm:$0xff]  }
 0x1a4   : > { %16338 = vmatpush3.bf16.msra.mxu1 %v2216_v18  ;;  %2025 = vmatprep.mubr.bf16.mxu0 %v17242_v53  ;;  %v17245_v18 = vld [vmem:[%s17599_s1 + $0x2b4] ss:$8 sps:$4 sm:$0xff]  }
 0x1a5   : > { %v18071_v17 = vmax.f32 %v2652_v56, 0.0  ;;  %5526 = vmatpush1.bf16.msra.mxu0 %v18066_v5  ;;  %v2903_v29 = vmax.f32 %v18017_v0, %v18063_v12 }
 0x1a6   : > { %v1811_v59 = vpop.f32.mrb[60].mxu0  ;;  %5527 = vmatprep.subr.bf16.mxu0 %v24270_v1 }
 0x1a7   : > { %v2518_v10 = vmul.f32 %v17716_v19, %v1811_v59  ;;  %v1813_v11 = vpop.f32.mrb[61].mxu0  ;;  %v2904_v32 = vmax.f32 %v18025_v57, %v18071_v17  ;;  %v3031_v44 = vmax.f32 %v2903_v29, %v17971_v9  ;;  %v15041_v9 = vcombine.low %v17913_v22, %v17918_v30  ;;  %v17247_v30 = vld [vmem:[%s17599_s1 + $0x2b0] ss:$8 sps:$4 sm:$0xff]  }
 0x1a8   : > { %v1814_v7 = vpop.f32.mrb[62].mxu0 }
 0x1a9   : > { %v2653_v38 = vadd.f32 %v17728_v25, %v2518_v10  ;;  %v2519_v6 = vmul.f32 %v17716_v19, %v1814_v7  ;;  %v1816_v13 = vpop.f32.mrb[63].mxu0  ;;  %v2225_v26 = vpack.c.bf16 %v1814_v7, %v1811_v59  ;;  %v3032_v14 = vmax.f32 %v2904_v32, %v17979_v55  ;;  %v17251_v10 = vld [vmem:[%s17599_s1 + $0x2d4] ss:$8 sps:$4 sm:$0xff]  }
 0x1ab   : > { %v18086_v34 = vmax.f32 %v2653_v38, 0.0  ;;  %v2654_v33 = vadd.f32 %v17728_v25, %v2519_v6  ;;  %2026 = vmatmul.mubr.bf16.gmra.mrb[168].mxu0 %v17244_v27  ;;  %16339 = vmatprep.subr.bf16.mxu1 %v2225_v26  ;;  %v18089_v37 = vpack.c.bf16 %v3032_v14, %v3031_v44 }
 0x1ac   : > { %16340 = vmatpush3.bf16.msra.mxu1 %v2217_v28  ;;  %2033 = vmatprep.mubr.bf16.mxu0 %v17245_v18 }
 0x1ad   : > { %v18096_v40 = vmax.f32 %v2654_v33, 0.0  ;;  %5528 = vmatpush1.bf16.msra.mxu0 %v18089_v37  ;;  %v2905_v55 = vmax.f32 %v18040_v42, %v18086_v34  ;;  %v17253_v33 = vld [vmem:[%s17599_s1 + $0x2d0] ss:$8 sps:$4 sm:$0xff]  }
 0x1ae   : > { %v18101_v24 = vpop.f32.mrb[64].mxu0  ;;  %5529 = vmatprep.subr.bf16.mxu0 %v24270_v1 }
 0x1af   : > { %v2520_v51 = vmul.f32 %v17716_v19, %v18101_v24  ;;  %v1821_v22 = vpop.f32.mrb[65].mxu0  ;;  %v2906_v3 = vmax.f32 %v18048_v48, %v18096_v40  ;;  %v3033_v43 = vmax.f32 %v2905_v55, %v17994_v63  ;;  %2347 = vmatmul.mubr.bf16.vlgmr.msra.gmra.mrb[0].mxu1 %v15041_v9 }
 0x1b0   : > { %v18110_v28 = vpop.f32.mrb[66].mxu0  ;;  %v17254_v22 = vld [vmem:[%s17599_s1 + $0x2e4] ss:$8 sps:$4 sm:$0xff]  }
 0x1b1   : > { %v2655_v23 = vadd.f32 %v17728_v25, %v2520_v51  ;;  %v2521_v52 = vmul.f32 %v17716_v19, %v18110_v28  ;;  %v1824_v47 = vpop.f32.mrb[67].mxu0  ;;  %v3034_v35 = vmax.f32 %v2906_v3, %v18002_v21 }
 0x1b3   : > { %v18119_v46 = vmax.f32 %v2655_v23, 0.0  ;;  %v2656_v63 = vadd.f32 %v17728_v25, %v2521_v52  ;;  %2034 = vmatmul.mubr.bf16.gmra.mrb[172].mxu0 %v17247_v30  ;;  %v18122_v53 = vpack.c.bf16 %v3034_v35, %v3033_v43 }
 0x1b4   : > { %2041 = vmatprep.mubr.bf16.mxu0 %v17248_v20 }
 0x1b5   : > { %v18124_v54 = vmax.f32 %v2656_v63, 0.0  ;;  %5530 = vmatpush1.bf16.msra.mxu0 %v18122_v53  ;;  %v2907_v61 = vmax.f32 %v18063_v12, %v18119_v46 }
 0x1b6   : > { %v18129_v41 = vpop.f32.mrb[68].mxu0  ;;  %5531 = vmatprep.subr.bf16.mxu0 %v24270_v1 }
 0x1b7   : > { %v2522_v21 = vmul.f32 %v17716_v19, %v18129_v41  ;;  %v1829_v60 = vpop.f32.mrb[69].mxu0  ;;  %v2908_v56 = vmax.f32 %v18071_v17, %v18124_v54  ;;  %v3035_v29 = vmax.f32 %v2907_v61, %v18017_v0 }
 0x1b8   : > { %v18138_v59 = vpop.f32.mrb[70].mxu0  ;;  %v17256_v60 = vld [vmem:[%s17599_s1 + $0x2e0] ss:$8 sps:$4 sm:$0xff]  }
 0x1b9   : > { %v2657_v11 = vadd.f32 %v17728_v25, %v2522_v21  ;;  %v2523_v32 = vmul.f32 %v17716_v19, %v18138_v59  ;;  %v1832_v44 = vpop.f32.mrb[71].mxu0  ;;  %v3036_v7 = vmax.f32 %v2908_v56, %v18025_v57 }
 0x1bb   : > { %v18147_v18 = vmax.f32 %v2657_v11, 0.0  ;;  %v2658_v0 = vadd.f32 %v17728_v25, %v2523_v32  ;;  %2042 = vmatmul.mubr.bf16.gmra.mrb[176].mxu0 %v17250_v45  ;;  %v18150_v38 = vpack.c.bf16 %v3036_v7, %v3035_v29 }
 0x1bc   : > { %2049 = vmatprep.mubr.bf16.mxu0 %v17251_v10  ;;  %v17257_v10 = vld [vmem:[%s17599_s1 + $0x2f4] ss:$8 sps:$4 sm:$0xff]  }
 0x1bd   : > { %v18152_v6 = vmax.f32 %v2658_v0, 0.0  ;;  %5532 = vmatpush1.bf16.msra.mxu0 %v18150_v38  ;;  %v2909_v13 = vmax.f32 %v18086_v34, %v18147_v18 }
 0x1be   : > { %v18157_v26 = vpop.f32.mrb[72].mxu0  ;;  %5533 = vmatprep.subr.bf16.mxu0 %v24270_v1 }
 0x1bf   : > { %v2524_v57 = vmul.f32 %v17716_v19, %v18157_v26  ;;  %v1837_v14 = vpop.f32.mrb[73].mxu0  ;;  %v2910_v9 = vmax.f32 %v18096_v40, %v18152_v6  ;;  %v3037_v55 = vmax.f32 %v2909_v13, %v18040_v42 }
 0x1c0   : > { %v18166_v51 = vpop.f32.mrb[74].mxu0 }
 0x1c1   : > { %v2659_v30 = vadd.f32 %v17728_v25, %v2524_v57  ;;  %v2525_v43 = vmul.f32 %v17716_v19, %v18166_v51  ;;  %v1840_v20 = vpop.f32.mrb[75].mxu0  ;;  %v3038_v23 = vmax.f32 %v2910_v9, %v18048_v48 }
 0x1c3   : > { %v18175_v52 = vmax.f32 %v2659_v30, 0.0  ;;  %v2660_v42 = vadd.f32 %v17728_v25, %v2525_v43  ;;  %2050 = vmatmul.mubr.bf16.gmra.mrb[180].mxu0 %v17253_v33  ;;  %v18178_v47 = vpack.c.bf16 %v3038_v23, %v3037_v55  ;;  %v17260_v23 = vld [vmem:[%s17599_s1 + $0x304] ss:$8 sps:$4 sm:$0xff]  }
 0x1c4   : > { %2057 = vmatprep.mubr.bf16.mxu0 %v17254_v22  ;;  %v17259_v22 = vld [vmem:[%s17599_s1 + $0x2f0] ss:$8 sps:$4 sm:$0xff]  }
 0x1c5   : > { %v18180_v35 = vmax.f32 %v2660_v42, 0.0  ;;  %5534 = vmatpush1.bf16.msra.mxu0 %v18178_v47  ;;  %v2911_v63 = vmax.f32 %v18119_v46, %v18175_v52 }
 0x1c6   : > { %v18185_v61 = vpop.f32.mrb[76].mxu0 }
 0x1c7   : > { %v2526_v48 = vmul.f32 %v17716_v19, %v18185_v61  ;;  %v1845_v21 = vpop.f32.mrb[77].mxu0  ;;  %v2912_v45 = vmax.f32 %v18124_v54, %v18180_v35  ;;  %v18193_v56 = vmax.f32 %v2911_v63, %v18063_v12 }
 0x1c8   : > { %v18195_v29 = vpop.f32.mrb[78].mxu0 }
 0x1c9   : > { %v2661_v11 = vadd.f32 %v17728_v25, %v2526_v48  ;;  %v2527_v44 = vmul.f32 %v17716_v19, %v18195_v29  ;;  %v1848_v7 = vpop.f32.mrb[79].mxu0  ;;  %v18204_v0 = vmax.f32 %v2912_v45, %v18071_v17 }
 0x1cb   : > { %v18206_v13 = vmax.f32 %v2661_v11, 0.0  ;;  %v2662_v12 = vadd.f32 %v17728_v25, %v2527_v44  ;;  %2058 = vmatmul.mubr.bf16.gmra.mrb[184].mxu0 %v17256_v60 }
 0x1cc   : > { %2065 = vmatprep.mubr.bf16.mxu0 %v17257_v10 }
 0x1cd   : > { %v18211_v14 = vmax.f32 %v2662_v12, 0.0  ;;  %v2913_v33 = vmax.f32 %v18147_v18, %v18206_v13 }
 0x1ce   : > { %v18215_v9 = vpop.f32.mrb[80].mxu0 }
 0x1cf   : > { %v2528_v17 = vmul.f32 %v17716_v19, %v18215_v9  ;;  %v1853_v55 = vpop.f32.mrb[81].mxu0  ;;  %v2914_v30 = vmax.f32 %v18152_v6, %v18211_v14  ;;  %v18223_v43 = vmax.f32 %v2913_v33, %v18086_v34  ;;  %v17262_v33 = vld [vmem:[%s17599_s1 + $0x300] ss:$8 sps:$4 sm:$0xff]  }
 0x1d0   : > { %v18225_v20 = vpop.f32.mrb[82].mxu0 }
 0x1d1   : > { %v2663_v42 = vadd.f32 %v17728_v25, %v2528_v17  ;;  %v2529_v48 = vmul.f32 %v17716_v19, %v18225_v20  ;;  %v1856_v21 = vpop.f32.mrb[83].mxu0  ;;  %v18234_v60 = vmax.f32 %v2914_v30, %v18096_v40  ;;  %v17263_v30 = vld [vmem:[%s17599_s1 + $0x314] ss:$8 sps:$4 sm:$0xff]  }
 0x1d3   : > { %v18236_v45 = vmax.f32 %v2663_v42, 0.0  ;;  %v2664_v34 = vadd.f32 %v17728_v25, %v2529_v48  ;;  %2066 = vmatmul.mubr.bf16.gmra.mrb[188].mxu0 %v17259_v22 }
 0x1d4   : > { %2073 = vmatprep.mubr.bf16.mxu0 %v17260_v23 }
 0x1d5   : > { %v18241_v11 = vmax.f32 %v2664_v34, 0.0  ;;  %v2915_v44 = vmax.f32 %v18175_v52, %v18236_v45 }
 0x1d6   : > { %v18245_v7 = vpop.f32.mrb[84].mxu0 }
 0x1d7   : > { %v2530_v40 = vmul.f32 %v17716_v19, %v18245_v7  ;;  %v1861_v12 = vpop.f32.mrb[85].mxu0  ;;  %v2916_v17 = vmax.f32 %v18180_v35, %v18241_v11  ;;  %v18253_v55 = vmax.f32 %v2915_v44, %v18119_v46 }
 0x1d8   : > { %v18255_v22 = vpop.f32.mrb[86].mxu0 }
 0x1d9   : > { %24380 = vst [vmem:[#allocation2_spill] sm:$0xff] %v18253_v55  ;;  %v2665_v23 = vadd.f32 %v17728_v25, %v2530_v40  ;;  %v2531_v48 = vmul.f32 %v17716_v19, %v18255_v22  ;;  %v1864_v21 = vpop.f32.mrb[87].mxu0  ;;  %v18264_v34 = vmax.f32 %v2916_v17, %v18124_v54 }
 0x1db   : > { %24381 = vst [vmem:[#allocation3_spill] sm:$0xff] %v18264_v34  ;;  %v18266_v12 = vmax.f32 %v2665_v23, 0.0  ;;  %v2666_v46 = vadd.f32 %v17728_v25, %v2531_v48  ;;  %2074 = vmatmul.mubr.bf16.gmra.mrb[192].mxu0 %v17262_v33  ;;  %v17265_v23 = vld [vmem:[%s17599_s1 + $0x310] ss:$8 sps:$4 sm:$0xff]   ;;  %v24388_v34 = vpack.c.bf16 %v18110_v28, %v18101_v24 }
 0x1dc   : > { %2081 = vmatprep.mubr.bf16.mxu0 %v17263_v30  ;;  %v17266_v30 = vld [vmem:[%s17599_s1 + $0x324] ss:$8 sps:$4 sm:$0xff]  }
 0x1dd   : > { %v18271_v40 = vmax.f32 %v2666_v46, 0.0  ;;  %v2917_v10 = vmax.f32 %v18206_v13, %v18266_v12 }
 0x1de   : > { %v18275_v57 = vpop.f32.mrb[88].mxu0 }
 0x1df   : > { %v2532_v54 = vmul.f32 %v17716_v19, %v18275_v57  ;;  %v1869_v17 = vpop.f32.mrb[89].mxu0  ;;  %v2918_v48 = vmax.f32 %v18211_v14, %v18271_v40  ;;  %v18283_v33 = vmax.f32 %v2917_v10, %v18147_v18 }
 0x1e0   : > { %v18285_v21 = vpop.f32.mrb[90].mxu0 }
 0x1e1   : > { %24382 = vst [vmem:[#allocation4_spill] sm:$0xff] %v18283_v33  ;;  %v2667_v46 = vadd.f32 %v17728_v25, %v2532_v54  ;;  %v2533_v1 = vmul.f32 %v17716_v19, %v18285_v21  ;;  %v1872_v17 = vpop.f32.mrb[91].mxu0  ;;  %v18294_v42 = vmax.f32 %v2918_v48, %v18152_v6 }
 0x1e3   : > { %24383 = vst [vmem:[#allocation5_spill] sm:$0xff] %v18294_v42  ;;  %v18296_v63 = vmax.f32 %v2667_v46, 0.0  ;;  %v2668_v18 = vadd.f32 %v17728_v25, %v2533_v1  ;;  %2082 = vmatmul.mubr.bf16.gmra.mrb[196].mxu0 %v17265_v23  ;;  %v17268_v46 = vld [vmem:[%s17599_s1 + $0x320] ss:$8 sps:$4 sm:$0xff]  }
 0x1e4   : > { %2089 = vmatprep.mubr.bf16.mxu0 %v17266_v30  ;;  %v17269_v30 = vld [vmem:[%s17599_s1 + $0x334] ss:$8 sps:$4 sm:$0xff]  }
 0x1e5   : > { %v18301_v54 = vmax.f32 %v2668_v18, 0.0  ;;  %v2919_v44 = vmax.f32 %v18236_v45, %v18296_v63 }
 0x1e6   : > { %v18305_v32 = vpop.f32.mrb[92].mxu0 }
 0x1e7   : > { %v2534_v6 = vmul.f32 %v17716_v19, %v18305_v32  ;;  %v1877_v48 = vpop.f32.mrb[93].mxu0  ;;  %v2920_v1 = vmax.f32 %v18241_v11, %v18301_v54  ;;  %v18313_v23 = vmax.f32 %v2919_v44, %v18175_v52 }
 0x1e8   : > { %v18315_v17 = vpop.f32.mrb[94].mxu0 }
 0x1e9   : > { %24384 = vst [vmem:[#allocation6_spill] sm:$0xff] %v18313_v23  ;;  %v2669_v18 = vadd.f32 %v17728_v25, %v2534_v6  ;;  %v2535_v3 = vmul.f32 %v17716_v19, %v18315_v17  ;;  %v1880_v48 = vpop.f32.mrb[95].mxu0  ;;  %v18324_v27 = vmax.f32 %v2920_v1, %v18180_v35  ;;  %v17271_v35 = vld [vmem:[%s17599_s1 + $0x330] ss:$8 sps:$4 sm:$0xff]  }
 0x1eb   : > { %24385 = vst [vmem:[#allocation7_spill] sm:$0xff] %v18324_v27  ;;  %v18326_v4 = vmax.f32 %v2669_v18, 0.0  ;;  %v2670_v52 = vadd.f32 %v17728_v25, %v2535_v3  ;;  %2090 = vmatmul.mubr.bf16.gmra.mrb[200].mxu0 %v17268_v46  ;;  %v17272_v46 = vld [vmem:[%s17599_s1 + $0x344] ss:$8 sps:$4 sm:$0xff]  }
 0x1ec   : > { %2097 = vmatprep.mubr.bf16.mxu0 %v17269_v30  ;;  %v18346_v30 = vld [vmem:[%s24256_s16 + $0x8] sm:$0xff] }
 0x1ed   : > { %v18331_v6 = vmax.f32 %v2670_v52, 0.0  ;;  %v2921_v10 = vmax.f32 %v18266_v12, %v18326_v4  ;;  %v18351_v18 = vld [vmem:[%s24256_s16 + $0x28] sm:$0xff] }
 0x1ee   : > { %v1883_v33 = vpop.f32.mrb[96].mxu0  ;;  %v15044_v23 = vcombine.high %v18346_v30, %v18351_v18 }
 0x1ef   : > { %v2536_v48 = vmul.f32 %v17716_v19, %v1883_v33  ;;  %v1885_v42 = vpop.f32.mrb[97].mxu0  ;;  %v2922_v1 = vmax.f32 %v18271_v40, %v18331_v6  ;;  %v18340_v25 = vmax.f32 %v2921_v10, %v18206_v13  ;;  %v18356_v19 = vld [vmem:[%s24379_s28] ss:$0 sm:$0xff] }
 0x1f0   : > { %v1886_v3 = vpop.f32.mrb[98].mxu0  ;;  %v18362_v42 = vld [vmem:[%s24378_s6] ss:$0 sm:$0xff]  ;;  %2387 = vmatprep.mubr.bf16.mxu1 %v15044_v23 }
 0x1f1   : > { %24386 = vst [vmem:[#allocation8_spill] sm:$0xff] %v18340_v25  ;;  %v2671_v13 = vadd.f32 %v18356_v19, %v2536_v48  ;;  %v2537_v10 = vmul.f32 %v18362_v42, %v1886_v3  ;;  %v1888_v52 = vpop.f32.mrb[99].mxu0  ;;  %v2234_v44 = vpack.c.bf16 %v1886_v3, %v1883_v33  ;;  %v18368_v27 = vmax.f32 %v2922_v1, %v18211_v14 }
 0x1f3   : > { %24387 = vst [vmem:[#allocation9_spill] sm:$0xff] %v18368_v27  ;;  %v18370_v55 = vmax.f32 %v2671_v13, 0.0  ;;  %v2672_v48 = vadd.f32 %v18356_v19, %v2537_v10  ;;  %2098 = vmatmul.mubr.bf16.gmra.mrb[204].mxu0 %v17271_v35  ;;  %16347 = vmatprep.subr.bf16.mxu1 %v2234_v44  ;;  %v17274_v35 = vld [vmem:[%s17599_s1 + $0x340] ss:$8 sps:$4 sm:$0xff]  }
 0x1f4   : > { %16348 = vmatpush3.bf16.msra.mxu1 %v24388_v34  ;;  %2105 = vmatprep.mubr.bf16.mxu0 %v17272_v46  ;;  %v17275_v34 = vld [vmem:[%s17599_s1 + $0x354] ss:$8 sps:$4 sm:$0xff]  }
 0x1f5   : > { %v18378_v3 = vmax.f32 %v2672_v48, 0.0  ;;  %v2923_v14 = vmax.f32 %v18296_v63, %v18370_v55 }
 0x1f6   : > { %v1891_v1 = vpop.f32.mrb[100].mxu0 }
 0x1f7   : > { %v2538_v13 = vmul.f32 %v18362_v42, %v1891_v1  ;;  %v1893_v10 = vpop.f32.mrb[101].mxu0  ;;  %v2924_v44 = vmax.f32 %v18301_v54, %v18378_v3  ;;  %v18387_v24 = vmax.f32 %v2923_v14, %v18236_v45  ;;  %v24391_v14 = vpack.c.bf16 %v18138_v59, %v18129_v41  ;;  %v17278_v41 = vld [vmem:[%s17599_s1 + $0x364] ss:$8 sps:$4 sm:$0xff]  }
 0x1f8   : > { %v1894_v28 = vpop.f32.mrb[102].mxu0 }
 0x1f9   : > { %24389 = vst [vmem:[#allocation10_spill] sm:$0xff] %v18387_v24  ;;  %v2673_v46 = vadd.f32 %v18356_v19, %v2538_v13  ;;  %v2539_v23 = vmul.f32 %v18362_v42, %v1894_v28  ;;  %v1896_v52 = vpop.f32.mrb[103].mxu0  ;;  %v2235_v48 = vpack.c.bf16 %v1894_v28, %v1891_v1  ;;  %v18393_v33 = vmax.f32 %v2924_v44, %v18241_v11 }
 0x1fb   : > { %24390 = vst [vmem:[#allocation11_spill] sm:$0xff] %v18393_v33  ;;  %v18395_v10 = vmax.f32 %v2673_v46, 0.0  ;;  %v2674_v25 = vadd.f32 %v18356_v19, %v2539_v23  ;;  %2106 = vmatmul.mubr.bf16.gmra.mrb[208].mxu0 %v17274_v35  ;;  %16349 = vmatprep.subr.bf16.mxu1 %v2235_v48  ;;  %v17277_v46 = vld [vmem:[%s17599_s1 + $0x350] ss:$8 sps:$4 sm:$0xff]  }
 0x1fc   : > { %16350 = vmatpush3.bf16.msra.mxu1 %v24391_v14  ;;  %2113 = vmatprep.mubr.bf16.mxu0 %v17275_v34 }
 0x1fd   : > { %v18403_v13 = vmax.f32 %v2674_v25, 0.0  ;;  %v2925_v11 = vmax.f32 %v18326_v4, %v18395_v10 }
 0x1fe   : > { %v1899_v1 = vpop.f32.mrb[104].mxu0 }
 0x1ff   : > { %v2540_v44 = vmul.f32 %v18362_v42, %v1899_v1  ;;  %v1901_v28 = vpop.f32.mrb[105].mxu0  ;;  %v2926_v35 = vmax.f32 %v18331_v6, %v18403_v13  ;;  %v18412_v23 = vmax.f32 %v2925_v11, %v18266_v12  ;;  %v24394_v11 = vpack.c.bf16 %v18166_v51, %v18157_v26  ;;  %v17281_v26 = vld [vmem:[%s17599_s1 + $0x374] ss:$8 sps:$4 sm:$0xff]  }
 0x200   : > { %v1902_v52 = vpop.f32.mrb[106].mxu0 }
 0x201   : > { %24392 = vst [vmem:[#allocation12_spill] sm:$0xff] %v18412_v23  ;;  %v2675_v59 = vadd.f32 %v18356_v19, %v2540_v44  ;;  %v2541_v25 = vmul.f32 %v18362_v42, %v1902_v52  ;;  %v1904_v34 = vpop.f32.mrb[107].mxu0  ;;  %v2236_v48 = vpack.c.bf16 %v1902_v52, %v1899_v1  ;;  %v18418_v14 = vmax.f32 %v2926_v35, %v18271_v40 }
 0x203   : > { %24393 = vst [vmem:[#allocation13_spill] sm:$0xff] %v18418_v14  ;;  %v18420_v28 = vmax.f32 %v2675_v59, 0.0  ;;  %v2676_v45 = vadd.f32 %v18356_v19, %v2541_v25  ;;  %2114 = vmatmul.mubr.bf16.gmra.mrb[212].mxu0 %v17277_v46  ;;  %16351 = vmatprep.subr.bf16.mxu1 %v2236_v48  ;;  %v17280_v59 = vld [vmem:[%s17599_s1 + $0x360] ss:$8 sps:$4 sm:$0xff]  }
 0x204   : > { %16352 = vmatpush3.bf16.msra.mxu1 %v24394_v11  ;;  %2121 = vmatprep.mubr.bf16.mxu0 %v17278_v41 }
 0x205   : > { %v18428_v44 = vmax.f32 %v2676_v45, 0.0  ;;  %v2927_v40 = vmax.f32 %v18370_v55, %v18420_v28 }
 0x206   : > { %v1907_v1 = vpop.f32.mrb[108].mxu0 }
 0x207   : > { %v2542_v35 = vmul.f32 %v18362_v42, %v1907_v1  ;;  %v1909_v52 = vpop.f32.mrb[109].mxu0  ;;  %v2928_v46 = vmax.f32 %v18378_v3, %v18428_v44  ;;  %v18437_v25 = vmax.f32 %v2927_v40, %v18296_v63  ;;  %v24397_v40 = vpack.c.bf16 %v18195_v29, %v18185_v61  ;;  %v17284_v61 = vld [vmem:[%s17599_s1 + $0x384] ss:$8 sps:$4 sm:$0xff]  }
 0x208   : > { %v1910_v34 = vpop.f32.mrb[110].mxu0 }
 0x209   : > { %24395 = vst [vmem:[#allocation14_spill] sm:$0xff] %v18437_v25  ;;  %v2677_v51 = vadd.f32 %v18356_v19, %v2542_v35  ;;  %v2543_v45 = vmul.f32 %v18362_v42, %v1910_v34  ;;  %v1912_v41 = vpop.f32.mrb[111].mxu0  ;;  %v2237_v48 = vpack.c.bf16 %v1910_v34, %v1907_v1  ;;  %v18443_v11 = vmax.f32 %v2928_v46, %v18301_v54 }
 0x20b   : > { %24396 = vst [vmem:[#allocation15_spill] sm:$0xff] %v18443_v11  ;;  %v18445_v52 = vmax.f32 %v2677_v51, 0.0  ;;  %v2678_v12 = vadd.f32 %v18356_v19, %v2543_v45  ;;  %2122 = vmatmul.mubr.bf16.gmra.mrb[216].mxu0 %v17280_v59  ;;  %16353 = vmatprep.subr.bf16.mxu1 %v2237_v48  ;;  %v17283_v51 = vld [vmem:[%s17599_s1 + $0x370] ss:$8 sps:$4 sm:$0xff]  }
 0x20c   : > { %16354 = vmatpush3.bf16.msra.mxu1 %v24397_v40  ;;  %2129 = vmatprep.mubr.bf16.mxu0 %v17281_v26 }
 0x20d   : > { %v18453_v35 = vmax.f32 %v2678_v12, 0.0  ;;  %v2929_v54 = vmax.f32 %v18395_v10, %v18445_v52 }
 0x20e   : > { %v1915_v1 = vpop.f32.mrb[112].mxu0 }
 0x20f   : > { %v2544_v46 = vmul.f32 %v18362_v42, %v1915_v1  ;;  %v1917_v34 = vpop.f32.mrb[113].mxu0  ;;  %v2930_v59 = vmax.f32 %v18403_v13, %v18453_v35  ;;  %v18462_v45 = vmax.f32 %v2929_v54, %v18326_v4  ;;  %v24400_v54 = vpack.c.bf16 %v18225_v20, %v18215_v9  ;;  %v17287_v9 = vld [vmem:[%s17599_s1 + $0x394] ss:$8 sps:$4 sm:$0xff]  }
 0x210   : > { %v1918_v41 = vpop.f32.mrb[114].mxu0 }
 0x211   : > { %24398 = vst [vmem:[#allocation16_spill] sm:$0xff] %v18462_v45  ;;  %v2679_v29 = vadd.f32 %v18356_v19, %v2544_v46  ;;  %v2545_v12 = vmul.f32 %v18362_v42, %v1918_v41  ;;  %v1920_v26 = vpop.f32.mrb[115].mxu0  ;;  %v2238_v48 = vpack.c.bf16 %v1918_v41, %v1915_v1  ;;  %v18468_v40 = vmax.f32 %v2930_v59, %v18331_v6 }
 0x213   : > { %24399 = vst [vmem:[#allocation17_spill] sm:$0xff] %v18468_v40  ;;  %v18470_v34 = vmax.f32 %v2679_v29, 0.0  ;;  %v2680_v63 = vadd.f32 %v18356_v19, %v2545_v12  ;;  %2130 = vmatmul.mubr.bf16.gmra.mrb[220].mxu0 %v17283_v51  ;;  %16355 = vmatprep.subr.bf16.mxu1 %v2238_v48  ;;  %v17286_v29 = vld [vmem:[%s17599_s1 + $0x380] ss:$8 sps:$4 sm:$0xff]  }
 0x214   : > { %16356 = vmatpush3.bf16.msra.mxu1 %v24400_v54  ;;  %2137 = vmatprep.mubr.bf16.mxu0 %v17284_v61 }
 0x215   : > { %v18478_v46 = vmax.f32 %v2680_v63, 0.0  ;;  %v2931_v6 = vmax.f32 %v18420_v28, %v18470_v34 }
 0x216   : > { %v1923_v1 = vpop.f32.mrb[116].mxu0 }
 0x217   : > { %v2546_v59 = vmul.f32 %v18362_v42, %v1923_v1  ;;  %v1925_v41 = vpop.f32.mrb[117].mxu0  ;;  %v2932_v51 = vmax.f32 %v18428_v44, %v18478_v46  ;;  %v18487_v12 = vmax.f32 %v2931_v6, %v18370_v55  ;;  %v24403_v6 = vpack.c.bf16 %v18255_v22, %v18245_v7  ;;  %v17290_v7 = vld [vmem:[%s17599_s1 + $0x3a4] ss:$8 sps:$4 sm:$0xff]  }
 0x218   : > { %v1926_v26 = vpop.f32.mrb[118].mxu0 }
 0x219   : > { %24401 = vst [vmem:[#allocation18_spill] sm:$0xff] %v18487_v12  ;;  %v2681_v20 = vadd.f32 %v18356_v19, %v2546_v59  ;;  %v2547_v63 = vmul.f32 %v18362_v42, %v1926_v26  ;;  %v1928_v61 = vpop.f32.mrb[119].mxu0  ;;  %v2239_v48 = vpack.c.bf16 %v1926_v26, %v1923_v1  ;;  %v18493_v54 = vmax.f32 %v2932_v51, %v18378_v3 }
 0x21b   : > { %24402 = vst [vmem:[#allocation19_spill] sm:$0xff] %v18493_v54  ;;  %v18495_v41 = vmax.f32 %v2681_v20, 0.0  ;;  %v2682_v4 = vadd.f32 %v18356_v19, %v2547_v63  ;;  %2138 = vmatmul.mubr.bf16.gmra.mrb[224].mxu0 %v17286_v29  ;;  %16357 = vmatprep.subr.bf16.mxu1 %v2239_v48  ;;  %v17289_v20 = vld [vmem:[%s17599_s1 + $0x390] ss:$8 sps:$4 sm:$0xff]  }
 0x21c   : > { %16358 = vmatpush3.bf16.msra.mxu1 %v24403_v6  ;;  %2145 = vmatprep.mubr.bf16.mxu0 %v17287_v9 }
 0x21d   : > { %v18503_v59 = vmax.f32 %v2682_v4, 0.0  ;;  %v2933_v3 = vmax.f32 %v18445_v52, %v18495_v41 }
 0x21e   : > { %v1931_v1 = vpop.f32.mrb[120].mxu0 }
 0x21f   : > { %v2548_v51 = vmul.f32 %v18362_v42, %v1931_v1  ;;  %v1933_v26 = vpop.f32.mrb[121].mxu0  ;;  %v2934_v29 = vmax.f32 %v18453_v35, %v18503_v59  ;;  %v18512_v63 = vmax.f32 %v2933_v3, %v18395_v10  ;;  %v24406_v3 = vpack.c.bf16 %v18285_v21, %v18275_v57  ;;  %v17293_v57 = vld [vmem:[%s17599_s1 + $0x3b4] ss:$8 sps:$4 sm:$0xff]  }
 0x220   : > { %v1934_v61 = vpop.f32.mrb[122].mxu0 }
 0x221   : > { %24404 = vst [vmem:[#allocation20_spill] sm:$0xff] %v18512_v63  ;;  %v2683_v22 = vadd.f32 %v18356_v19, %v2548_v51  ;;  %v2549_v4 = vmul.f32 %v18362_v42, %v1934_v61  ;;  %v1936_v9 = vpop.f32.mrb[123].mxu0  ;;  %v2240_v48 = vpack.c.bf16 %v1934_v61, %v1931_v1  ;;  %v18518_v6 = vmax.f32 %v2934_v29, %v18403_v13 }
 0x223   : > { %24405 = vst [vmem:[#allocation21_spill] sm:$0xff] %v18518_v6  ;;  %v18520_v26 = vmax.f32 %v2683_v22, 0.0  ;;  %v2684_v55 = vadd.f32 %v18356_v19, %v2549_v4  ;;  %2146 = vmatmul.mubr.bf16.gmra.mrb[228].mxu0 %v17289_v20  ;;  %16359 = vmatprep.subr.bf16.mxu1 %v2240_v48  ;;  %v17292_v22 = vld [vmem:[%s17599_s1 + $0x3a0] ss:$8 sps:$4 sm:$0xff]  }
 0x224   : > { %16360 = vmatpush3.bf16.msra.mxu1 %v24406_v3  ;;  %2153 = vmatprep.mubr.bf16.mxu0 %v17290_v7 }
 0x225   : > { %v18528_v51 = vmax.f32 %v2684_v55, 0.0  ;;  %v2935_v13 = vmax.f32 %v18470_v34, %v18520_v26 }
 0x226   : > { %v1939_v1 = vpop.f32.mrb[124].mxu0 }
 0x227   : > { %v2550_v29 = vmul.f32 %v18362_v42, %v1939_v1  ;;  %v1941_v61 = vpop.f32.mrb[125].mxu0  ;;  %v2936_v20 = vmax.f32 %v18478_v46, %v18528_v51  ;;  %v18537_v4 = vmax.f32 %v2935_v13, %v18420_v28  ;;  %v15043_v28 = vcombine.low %v18346_v30, %v18351_v18  ;;  %v17295_v30 = vld [vmem:[%s17599_s1 + $0x3b0] ss:$8 sps:$4 sm:$0xff]  }
 0x228   : > { %v1942_v9 = vpop.f32.mrb[126].mxu0 }
 0x229   : > { %24407 = vst [vmem:[#allocation22_spill] sm:$0xff] %v18537_v4  ;;  %v2685_v21 = vadd.f32 %v18356_v19, %v2550_v29  ;;  %v2551_v55 = vmul.f32 %v18362_v42, %v1942_v9  ;;  %v1944_v7 = vpop.f32.mrb[127].mxu0  ;;  %v2241_v48 = vpack.c.bf16 %v1942_v9, %v1939_v1  ;;  %v18543_v3 = vmax.f32 %v2936_v20, %v18428_v44 }
 0x22a   : > { %v24409_v29 = vpack.c.bf16 %v18315_v17, %v18305_v32 }
 0x22b   : > { %24408 = vst [vmem:[#allocation23_spill] sm:$0xff] %v18543_v3  ;;  %v18545_v61 = vmax.f32 %v2685_v21, 0.0  ;;  %v2686_v10 = vadd.f32 %v18356_v19, %v2551_v55  ;;  %2154 = vmatmul.mubr.bf16.gmra.mrb[232].mxu0 %v17292_v22  ;;  %16361 = vmatprep.subr.bf16.mxu1 %v2241_v48 }
 0x22c   : > { %16362 = vmatpush3.bf16.msra.mxu1 %v24409_v29  ;;  %2161 = vmatprep.mubr.bf16.mxu0 %v17293_v57 }
 0x22d   : > { %v18555_v44 = vmax.f32 %v2686_v10, 0.0  ;;  %v2937_v1 = vmax.f32 %v18495_v41, %v18545_v61  ;;  %v17296_v10 = vld [vmem:[%s17599_s1 + $0x3c4] ss:$8 sps:$4 sm:$0xff]  }
 0x22e   : > { %v18559_v20 = vpop.f32.mrb[128].mxu0 }
 0x22f   : > { %v2552_v22 = vmul.f32 %v18362_v42, %v18559_v20  ;;  %v1949_v9 = vpop.f32.mrb[129].mxu0  ;;  %2388 = vmatmul.mubr.bf16.vlgmr.msra.gmra.mrb[4].mxu1 %v15043_v28  ;;  %v2938_v18 = vmax.f32 %v18503_v59, %v18555_v44  ;;  %v18567_v32 = vmax.f32 %v2937_v1, %v18445_v52 }
 0x230   : > { %v18569_v17 = vpop.f32.mrb[130].mxu0 }
 0x231   : > { %24410 = vst [vmem:[#allocation24_spill] sm:$0xff] %v18567_v32  ;;  %v2687_v57 = vadd.f32 %v18356_v19, %v2552_v22  ;;  %v2553_v55 = vmul.f32 %v18362_v42, %v18569_v17  ;;  %v1952_v7 = vpop.f32.mrb[131].mxu0  ;;  %v18578_v48 = vmax.f32 %v2938_v18, %v18453_v35 }
 0x233   : > { %24411 = vst [vmem:[#allocation25_spill] sm:$0xff] %v18578_v48  ;;  %v18580_v28 = vmax.f32 %v2687_v57, 0.0  ;;  %v2688_v52 = vadd.f32 %v18356_v19, %v2553_v55  ;;  %2162 = vmatmul.mubr.bf16.gmra.mrb[236].mxu0 %v17295_v30  ;;  %v17298_v57 = vld [vmem:[%s17599_s1 + $0x3c0] ss:$8 sps:$4 sm:$0xff]  }
 0x234   : > { %2169 = vmatprep.mubr.bf16.mxu0 %v17296_v10  ;;  %v17299_v10 = vld [vmem:[%s17599_s1 + $0x3d4] ss:$8 sps:$4 sm:$0xff]  }
 0x235   : > { %v18585_v1 = vmax.f32 %v2688_v52, 0.0  ;;  %v2939_v22 = vmax.f32 %v18520_v26, %v18580_v28 }
 0x236   : > { %v18589_v9 = vpop.f32.mrb[132].mxu0 }
 0x237   : > { %v2554_v35 = vmul.f32 %v18362_v42, %v18589_v9  ;;  %v1957_v18 = vpop.f32.mrb[133].mxu0  ;;  %v2940_v55 = vmax.f32 %v18528_v51, %v18585_v1  ;;  %v18597_v30 = vmax.f32 %v2939_v22, %v18470_v34 }
 0x238   : > { %v18599_v7 = vpop.f32.mrb[134].mxu0 }
 0x239   : > { %24412 = vst [vmem:[#allocation26_spill] sm:$0xff] %v18597_v30  ;;  %v2689_v52 = vadd.f32 %v18356_v19, %v2554_v35  ;;  %v2555_v13 = vmul.f32 %v18362_v42, %v18599_v7  ;;  %v1960_v18 = vpop.f32.mrb[135].mxu0  ;;  %v18608_v21 = vmax.f32 %v2940_v55, %v18478_v46 }
 0x23b   : > { %24413 = vst [vmem:[#allocation27_spill] sm:$0xff] %v18608_v21  ;;  %v18610_v32 = vmax.f32 %v2689_v52, 0.0  ;;  %v2690_v34 = vadd.f32 %v18356_v19, %v2555_v13  ;;  %2170 = vmatmul.mubr.bf16.gmra.mrb[240].mxu0 %v17298_v57  ;;  %v17301_v52 = vld [vmem:[%s17599_s1 + $0x3d0] ss:$8 sps:$4 sm:$0xff]  }
 0x23c   : > { %2177 = vmatprep.mubr.bf16.mxu0 %v17299_v10  ;;  %v17302_v10 = vld [vmem:[%s17599_s1 + $0x3e4] ss:$8 sps:$4 sm:$0xff]  }
 0x23d   : > { %v18615_v35 = vmax.f32 %v2690_v34, 0.0  ;;  %v2941_v29 = vmax.f32 %v18545_v61, %v18610_v32 }
 0x23e   : > { %v18619_v48 = vpop.f32.mrb[136].mxu0 }
 0x23f   : > { %v2556_v46 = vmul.f32 %v18362_v42, %v18619_v48  ;;  %v1965_v55 = vpop.f32.mrb[137].mxu0  ;;  %v2942_v13 = vmax.f32 %v18555_v44, %v18615_v35  ;;  %v18627_v57 = vmax.f32 %v2941_v29, %v18495_v41 }
 0x240   : > { %v18629_v18 = vpop.f32.mrb[138].mxu0 }
 0x241   : > { %24414 = vst [vmem:[#allocation28_spill] sm:$0xff] %v18627_v57  ;;  %v2691_v34 = vadd.f32 %v18356_v19, %v2556_v46  ;;  %v2557_v30 = vmul.f32 %v18362_v42, %v18629_v18  ;;  %v1968_v55 = vpop.f32.mrb[139].mxu0  ;;  %v18638_v21 = vmax.f32 %v2942_v13, %v18503_v59 }
 0x243   : > { %24415 = vst [vmem:[#allocation29_spill] sm:$0xff] %v18638_v21  ;;  %v18640_v4 = vmax.f32 %v2691_v34, 0.0  ;;  %v2692_v41 = vadd.f32 %v18356_v19, %v2557_v30  ;;  %2178 = vmatmul.mubr.bf16.gmra.mrb[244].mxu0 %v17301_v52  ;;  %v17304_v34 = vld [vmem:[%s17599_s1 + $0x3e0] ss:$8 sps:$4 sm:$0xff]  }
 0x244   : > { %2185 = vmatprep.mubr.bf16.mxu0 %v17302_v10  ;;  %v17305_v10 = vld [vmem:[%s17599_s1 + $0x3f4] ss:$8 sps:$4 sm:$0xff]  }
 0x245   : > { %v18645_v46 = vmax.f32 %v2692_v41, 0.0  ;;  %v2943_v22 = vmax.f32 %v18580_v28, %v18640_v4 }
 0x246   : > { %v18649_v3 = vpop.f32.mrb[140].mxu0 }
 0x247   : > { %v2558_v59 = vmul.f32 %v18362_v42, %v18649_v3  ;;  %v1973_v13 = vpop.f32.mrb[141].mxu0  ;;  %v2944_v30 = vmax.f32 %v18585_v1, %v18645_v46  ;;  %v18657_v52 = vmax.f32 %v2943_v22, %v18520_v26  ;;  %v18676_v22 = vld [vmem:[%s24256_s16 + $0x10] sm:$0xff] }
 0x248   : > { %v18659_v55 = vpop.f32.mrb[142].mxu0 }
 0x249   : > { %24416 = vst [vmem:[#allocation30_spill] sm:$0xff] %v18657_v52  ;;  %v2693_v41 = vadd.f32 %v18356_v19, %v2558_v59  ;;  %v2559_v57 = vmul.f32 %v18362_v42, %v18659_v55  ;;  %v1976_v21 = vpop.f32.mrb[143].mxu0  ;;  %v18668_v13 = vmax.f32 %v2944_v30, %v18528_v51  ;;  %v18681_v59 = vld [vmem:[%s24256_s16 + $0x30] sm:$0xff] }
 0x24a   : > { %v15046_v21 = vcombine.high %v18676_v22, %v18681_v59  ;;  %v17307_v51 = vld [vmem:[%s17599_s1 + $0x3f0] ss:$8 sps:$4 sm:$0xff]   ;;  %s24481_s1 = sld [smem:[#allocation83_spill]] }
 0x24b   : > { %24417 = vst [vmem:[#allocation31_spill] sm:$0xff] %v18668_v13  ;;  %v18670_v63 = vmax.f32 %v2693_v41, 0.0  ;;  %v2694_v26 = vadd.f32 %v18356_v19, %v2559_v57  ;;  %2186 = vmatmul.mubr.bf16.gmra.mrb[248].mxu0 %v17304_v34 }
 0x24c   : > { %2193 = vmatprep.mubr.bf16.mxu0 %v17305_v10  ;;  %2428 = vmatprep.mubr.bf16.mxu1 %v15046_v21 }
 0x24d   : > { %v18687_v30 = vmax.f32 %v2694_v26, 0.0  ;;  %v2945_v34 = vmax.f32 %v18610_v32, %v18670_v63 }
 0x24e   : > { %v18693_v41 = vpop.f32.mrb[144].mxu0 }
 0x24f   : > { %v2560_v29 = vmul.f32 %v18362_v42, %v18693_v41  ;;  %v1981_v6 = vpop.f32.mrb[145].mxu0  ;;  %v2946_v10 = vmax.f32 %v18615_v35, %v18687_v30  ;;  %v18701_v26 = vmax.f32 %v2945_v34, %v18545_v61 }
 0x250   : > { %v18703_v52 = vpop.f32.mrb[146].mxu0 }
 0x251   : > { %24418 = vst [vmem:[#allocation32_spill] sm:$0xff] %v18701_v26  ;;  %v2695_v57 = vadd.f32 %v18356_v19, %v2560_v29  ;;  %v2561_v21 = vmul.f32 %v18362_v42, %v18703_v52  ;;  %v1984_v12 = vpop.f32.mrb[147].mxu0  ;;  %v18711_v6 = vmax.f32 %v2946_v10, %v18555_v44 }
 0x253   : > { %24419 = vst [vmem:[#allocation33_spill] sm:$0xff] %v18711_v6  ;;  %v18713_v54 = vmax.f32 %v2695_v57, 0.0  ;;  %v2696_v45 = vadd.f32 %v18356_v19, %v2561_v21  ;;  %2194 = vmatmul.mubr.bf16.gmra.mrb[252].mxu0 %v17307_v51 }
 0x255   : > { %v18718_v34 = vmax.f32 %v2696_v45, 0.0  ;;  %v2947_v29 = vmax.f32 %v18640_v4, %v18713_v54 }
 0x256   : > { %v18722_v13 = vpop.f32.mrb[148].mxu0 }
 0x257   : > { %v2562_v12 = vmul.f32 %v18362_v42, %v18722_v13  ;;  %v1989_v44 = vpop.f32.mrb[149].mxu0  ;;  %v2948_v57 = vmax.f32 %v18645_v46, %v18718_v34  ;;  %v18729_v10 = vmax.f32 %v2947_v29, %v18580_v28 }
 0x258   : > { %v18731_v51 = vpop.f32.mrb[150].mxu0 }
 0x259   : > { %24420 = vst [vmem:[#allocation34_spill] sm:$0xff] %v18729_v10  ;;  %v2697_v45 = vadd.f32 %v18356_v19, %v2562_v12  ;;  %v2563_v61 = vmul.f32 %v18362_v42, %v18731_v51  ;;  %v1992_v26 = vpop.f32.mrb[151].mxu0  ;;  %v18739_v6 = vmax.f32 %v2948_v57, %v18585_v1 }
 0x25b   : > { %24421 = vst [vmem:[#allocation35_spill] sm:$0xff] %v18739_v6  ;;  %v18741_v44 = vmax.f32 %v2697_v45, 0.0  ;;  %v2698_v40 = vadd.f32 %v18356_v19, %v2563_v61 }
 0x25d   : > { %v18746_v29 = vmax.f32 %v2698_v40, 0.0  ;;  %v2949_v12 = vmax.f32 %v18670_v63, %v18741_v44 }
 0x25e   : > { %v18750_v21 = vpop.f32.mrb[152].mxu0 }
 0x25f   : > { %v2564_v26 = vmul.f32 %v18362_v42, %v18750_v21  ;;  %v1997_v25 = vpop.f32.mrb[153].mxu0  ;;  %v2950_v1 = vmax.f32 %v18687_v30, %v18746_v29  ;;  %v18757_v57 = vmax.f32 %v2949_v12, %v18610_v32 }
 0x260   : > { %v18759_v61 = vpop.f32.mrb[154].mxu0 }
 0x261   : > { %24422 = vst [vmem:[#allocation36_spill] sm:$0xff] %v18757_v57  ;;  %v2699_v40 = vadd.f32 %v18356_v19, %v2564_v26  ;;  %v2565_v28 = vmul.f32 %v18362_v42, %v18759_v61  ;;  %v2000_v10 = vpop.f32.mrb[155].mxu0  ;;  %v18767_v6 = vmax.f32 %v2950_v1, %v18615_v35 }
 0x263   : > { %24423 = vst [vmem:[#allocation37_spill] sm:$0xff] %v18767_v6  ;;  %v18769_v25 = vmax.f32 %v2699_v40, 0.0  ;;  %v2700_v11 = vadd.f32 %v18356_v19, %v2565_v28 }
 0x265   : > { %v18774_v12 = vmax.f32 %v2700_v11, 0.0  ;;  %v2951_v26 = vmax.f32 %v18713_v54, %v18769_v25 }
 0x266   : > { %v18778_v45 = vpop.f32.mrb[156].mxu0 }
 0x267   : > { %v2566_v10 = vmul.f32 %v18362_v42, %v18778_v45  ;;  %v2005_v23 = vpop.f32.mrb[157].mxu0  ;;  %v2952_v35 = vmax.f32 %v18718_v34, %v18774_v12  ;;  %v18785_v1 = vmax.f32 %v2951_v26, %v18640_v4 }
 0x268   : > { %v18787_v28 = vpop.f32.mrb[158].mxu0 }
 0x269   : > { %24424 = vst [vmem:[#allocation38_spill] sm:$0xff] %v18785_v1  ;;  %v2701_v11 = vadd.f32 %v18356_v19, %v2566_v10  ;;  %v2567_v32 = vmul.f32 %v18362_v42, %v18787_v28  ;;  %v2008_v57 = vpop.f32.mrb[159].mxu0  ;;  %v18795_v6 = vmax.f32 %v2952_v35, %v18645_v46 }
 0x26b   : > { %24425 = vst [vmem:[#allocation39_spill] sm:$0xff] %v18795_v6  ;;  %v18797_v23 = vmax.f32 %v2701_v11, 0.0  ;;  %v2702_v14 = vadd.f32 %v18356_v19, %v2567_v32 }
 0x26d   : > { %v18802_v26 = vmax.f32 %v2702_v14, 0.0  ;;  %v2953_v10 = vmax.f32 %v18741_v44, %v18797_v23 }
 0x26e   : > { %v2011_v40 = vpop.f32.mrb[160].mxu0 }
 0x26f   : > { %v2568_v24 = vmul.f32 %v18362_v42, %v2011_v40  ;;  %v2013_v33 = vpop.f32.mrb[161].mxu0  ;;  %v2954_v46 = vmax.f32 %v18746_v29, %v18802_v26  ;;  %v18810_v57 = vmax.f32 %v2953_v10, %v18670_v63  ;;  %v24428_v63 = vpack.c.bf16 %v18569_v17, %v18559_v20 }
 0x270   : > { %v2014_v35 = vpop.f32.mrb[162].mxu0 }
 0x271   : > { %24426 = vst [vmem:[#allocation40_spill] sm:$0xff] %v18810_v57  ;;  %v2703_v32 = vadd.f32 %v18356_v19, %v2568_v24  ;;  %v2569_v11 = vmul.f32 %v18362_v42, %v2014_v35  ;;  %v2016_v14 = vpop.f32.mrb[163].mxu0  ;;  %v2250_v4 = vpack.c.bf16 %v2014_v35, %v2011_v40  ;;  %v18815_v1 = vmax.f32 %v2954_v46, %v18687_v30 }
 0x273   : > { %24427 = vst [vmem:[#allocation41_spill] sm:$0xff] %v18815_v1  ;;  %v18817_v6 = vmax.f32 %v2703_v32, 0.0  ;;  %v2704_v33 = vadd.f32 %v18356_v19, %v2569_v11  ;;  %16369 = vmatprep.subr.bf16.mxu1 %v2250_v4 }
 0x274   : > { %16370 = vmatpush3.bf16.msra.mxu1 %v24428_v63 }
 0x275   : > { %v18825_v24 = vmax.f32 %v2704_v33, 0.0  ;;  %v2955_v40 = vmax.f32 %v18769_v25, %v18817_v6 }
 0x276   : > { %v2019_v10 = vpop.f32.mrb[164].mxu0 }
 0x277   : > { %v2570_v30 = vmul.f32 %v18362_v42, %v2019_v10  ;;  %v2021_v46 = vpop.f32.mrb[165].mxu0  ;;  %v2956_v35 = vmax.f32 %v18774_v12, %v18825_v24  ;;  %v18833_v4 = vmax.f32 %v2955_v40, %v18713_v54  ;;  %v24431_v54 = vpack.c.bf16 %v18599_v7, %v18589_v9 }
 0x278   : > { %v2022_v32 = vpop.f32.mrb[166].mxu0 }
 0x279   : > { %24429 = vst [vmem:[#allocation42_spill] sm:$0xff] %v18833_v4  ;;  %v2705_v11 = vadd.f32 %v18356_v19, %v2570_v30  ;;  %v2571_v20 = vmul.f32 %v18362_v42, %v2022_v32  ;;  %v2024_v17 = vpop.f32.mrb[167].mxu0  ;;  %v2251_v14 = vpack.c.bf16 %v2022_v32, %v2019_v10  ;;  %v18838_v33 = vmax.f32 %v2956_v35, %v18718_v34 }
 0x27b   : > { %24430 = vst [vmem:[#allocation43_spill] sm:$0xff] %v18838_v33  ;;  %v18840_v63 = vmax.f32 %v2705_v11, 0.0  ;;  %v2706_v46 = vadd.f32 %v18356_v19, %v2571_v20  ;;  %16371 = vmatprep.subr.bf16.mxu1 %v2251_v14 }
 0x27c   : > { %16372 = vmatpush3.bf16.msra.mxu1 %v24431_v54 }
 0x27d   : > { %v18848_v40 = vmax.f32 %v2706_v46, 0.0  ;;  %v2957_v10 = vmax.f32 %v18797_v23, %v18840_v63 }
 0x27e   : > { %v2027_v30 = vpop.f32.mrb[168].mxu0 }
 0x27f   : > { %v2572_v34 = vmul.f32 %v18362_v42, %v2027_v30  ;;  %v2029_v35 = vpop.f32.mrb[169].mxu0  ;;  %v2958_v32 = vmax.f32 %v18802_v26, %v18848_v40  ;;  %v18856_v11 = vmax.f32 %v2957_v10, %v18741_v44  ;;  %v24434_v44 = vpack.c.bf16 %v18629_v18, %v18619_v48 }
 0x280   : > { %v2030_v20 = vpop.f32.mrb[170].mxu0 }
 0x281   : > { %24432 = vst [vmem:[#allocation44_spill] sm:$0xff] %v18856_v11  ;;  %v2707_v17 = vadd.f32 %v18356_v19, %v2572_v34  ;;  %v2573_v9 = vmul.f32 %v18362_v42, %v2030_v20  ;;  %v2032_v7 = vpop.f32.mrb[171].mxu0  ;;  %v2252_v14 = vpack.c.bf16 %v2030_v20, %v2027_v30  ;;  %v18861_v46 = vmax.f32 %v2958_v32, %v18746_v29 }
 0x283   : > { %24433 = vst [vmem:[#allocation45_spill] sm:$0xff] %v18861_v46  ;;  %v18863_v54 = vmax.f32 %v2707_v17, 0.0  ;;  %v2708_v35 = vadd.f32 %v18356_v19, %v2573_v9  ;;  %16373 = vmatprep.subr.bf16.mxu1 %v2252_v14 }
 0x284   : > { %16374 = vmatpush3.bf16.msra.mxu1 %v24434_v44 }
 0x285   : > { %v18871_v10 = vmax.f32 %v2708_v35, 0.0  ;;  %v2959_v30 = vmax.f32 %v18817_v6, %v18863_v54 }
 0x286   : > { %v2035_v34 = vpop.f32.mrb[172].mxu0 }
 0x287   : > { %v2574_v29 = vmul.f32 %v18362_v42, %v2035_v34  ;;  %v2037_v32 = vpop.f32.mrb[173].mxu0  ;;  %v2960_v20 = vmax.f32 %v18825_v24, %v18871_v10  ;;  %v18879_v17 = vmax.f32 %v2959_v30, %v18769_v25  ;;  %v24437_v25 = vpack.c.bf16 %v18659_v55, %v18649_v3 }
 0x288   : > { %v2038_v9 = vpop.f32.mrb[174].mxu0 }
 0x289   : > { %24435 = vst [vmem:[#allocation46_spill] sm:$0xff] %v18879_v17  ;;  %v2709_v7 = vadd.f32 %v18356_v19, %v2574_v29  ;;  %v2575_v48 = vmul.f32 %v18362_v42, %v2038_v9  ;;  %v2040_v18 = vpop.f32.mrb[175].mxu0  ;;  %v2253_v14 = vpack.c.bf16 %v2038_v9, %v2035_v34  ;;  %v18884_v35 = vmax.f32 %v2960_v20, %v18774_v12 }
 0x28b   : > { %24436 = vst [vmem:[#allocation47_spill] sm:$0xff] %v18884_v35  ;;  %v18886_v44 = vmax.f32 %v2709_v7, 0.0  ;;  %v2710_v32 = vadd.f32 %v18356_v19, %v2575_v48  ;;  %16375 = vmatprep.subr.bf16.mxu1 %v2253_v14 }
 0x28c   : > { %16376 = vmatpush3.bf16.msra.mxu1 %v24437_v25 }
 0x28d   : > { %v18894_v30 = vmax.f32 %v2710_v32, 0.0  ;;  %v2961_v34 = vmax.f32 %v18840_v63, %v18886_v44 }
 0x28e   : > { %v2043_v29 = vpop.f32.mrb[176].mxu0 }
 0x28f   : > { %v2576_v12 = vmul.f32 %v18362_v42, %v2043_v29  ;;  %v2045_v20 = vpop.f32.mrb[177].mxu0  ;;  %v2962_v9 = vmax.f32 %v18848_v40, %v18894_v30  ;;  %v18902_v7 = vmax.f32 %v2961_v34, %v18797_v23  ;;  %v24440_v23 = vpack.c.bf16 %v18703_v52, %v18693_v41 }
 0x290   : > { %v2046_v48 = vpop.f32.mrb[178].mxu0 }
 0x291   : > { %24438 = vst [vmem:[#allocation48_spill] sm:$0xff] %v18902_v7  ;;  %v2711_v18 = vadd.f32 %v18356_v19, %v2576_v12  ;;  %v2577_v3 = vmul.f32 %v18362_v42, %v2046_v48  ;;  %v2048_v55 = vpop.f32.mrb[179].mxu0  ;;  %v2254_v14 = vpack.c.bf16 %v2046_v48, %v2043_v29  ;;  %v18907_v32 = vmax.f32 %v2962_v9, %v18802_v26 }
 0x293   : > { %24439 = vst [vmem:[#allocation49_spill] sm:$0xff] %v18907_v32  ;;  %v18909_v25 = vmax.f32 %v2711_v18, 0.0  ;;  %v2712_v20 = vadd.f32 %v18356_v19, %v2577_v3  ;;  %16377 = vmatprep.subr.bf16.mxu1 %v2254_v14 }
 0x294   : > { %16378 = vmatpush3.bf16.msra.mxu1 %v24440_v23 }
 0x295   : > { %v18917_v34 = vmax.f32 %v2712_v20, 0.0  ;;  %v2963_v29 = vmax.f32 %v18863_v54, %v18909_v25 }
 0x296   : > { %v2051_v12 = vpop.f32.mrb[180].mxu0 }
 0x297   : > { %v2578_v26 = vmul.f32 %v18362_v42, %v2051_v12  ;;  %v2053_v9 = vpop.f32.mrb[181].mxu0  ;;  %v2964_v48 = vmax.f32 %v18871_v10, %v18917_v34  ;;  %v18925_v18 = vmax.f32 %v2963_v29, %v18817_v6  ;;  %v24443_v6 = vpack.c.bf16 %v18731_v51, %v18722_v13 }
 0x298   : > { %v2054_v3 = vpop.f32.mrb[182].mxu0 }
 0x299   : > { %24441 = vst [vmem:[#allocation50_spill] sm:$0xff] %v18925_v18  ;;  %v2713_v55 = vadd.f32 %v18356_v19, %v2578_v26  ;;  %v2579_v52 = vmul.f32 %v18362_v42, %v2054_v3  ;;  %v2056_v41 = vpop.f32.mrb[183].mxu0  ;;  %v2255_v14 = vpack.c.bf16 %v2054_v3, %v2051_v12  ;;  %v18930_v20 = vmax.f32 %v2964_v48, %v18825_v24 }
 0x29b   : > { %24442 = vst [vmem:[#allocation51_spill] sm:$0xff] %v18930_v20  ;;  %v18932_v23 = vmax.f32 %v2713_v55, 0.0  ;;  %v2714_v9 = vadd.f32 %v18356_v19, %v2579_v52  ;;  %16379 = vmatprep.subr.bf16.mxu1 %v2255_v14 }
 0x29c   : > { %16380 = vmatpush3.bf16.msra.mxu1 %v24443_v6 }
 0x29d   : > { %v18940_v29 = vmax.f32 %v2714_v9, 0.0  ;;  %v2965_v12 = vmax.f32 %v18886_v44, %v18932_v23 }
 0x29e   : > { %v2059_v26 = vpop.f32.mrb[184].mxu0 }
 0x29f   : > { %v2580_v24 = vmul.f32 %v18362_v42, %v2059_v26  ;;  %v2061_v48 = vpop.f32.mrb[185].mxu0  ;;  %v2966_v3 = vmax.f32 %v18894_v30, %v18940_v29  ;;  %v18948_v55 = vmax.f32 %v2965_v12, %v18840_v63  ;;  %v24446_v63 = vpack.c.bf16 %v18759_v61, %v18750_v21 }
 0x2a0   : > { %v2062_v52 = vpop.f32.mrb[186].mxu0 }
 0x2a1   : > { %24444 = vst [vmem:[#allocation52_spill] sm:$0xff] %v18948_v55  ;;  %v2715_v41 = vadd.f32 %v18356_v19, %v2580_v24  ;;  %v2581_v13 = vmul.f32 %v18362_v42, %v2062_v52  ;;  %v2064_v51 = vpop.f32.mrb[187].mxu0  ;;  %v2256_v14 = vpack.c.bf16 %v2062_v52, %v2059_v26  ;;  %v18953_v9 = vmax.f32 %v2966_v3, %v18848_v40 }
 0x2a3   : > { %24445 = vst [vmem:[#allocation53_spill] sm:$0xff] %v18953_v9  ;;  %v18955_v6 = vmax.f32 %v2715_v41, 0.0  ;;  %v2716_v48 = vadd.f32 %v18356_v19, %v2581_v13  ;;  %16381 = vmatprep.subr.bf16.mxu1 %v2256_v14 }
 0x2a4   : > { %16382 = vmatpush3.bf16.msra.mxu1 %v24446_v63 }
 0x2a5   : > { %v18963_v12 = vmax.f32 %v2716_v48, 0.0  ;;  %v2967_v26 = vmax.f32 %v18909_v25, %v18955_v6 }
 0x2a6   : > { %v2067_v24 = vpop.f32.mrb[188].mxu0 }
 0x2a7   : > { %v2582_v40 = vmul.f32 %v18362_v42, %v2067_v24  ;;  %v2069_v3 = vpop.f32.mrb[189].mxu0  ;;  %v2968_v52 = vmax.f32 %v18917_v34, %v18963_v12  ;;  %v18971_v41 = vmax.f32 %v2967_v26, %v18863_v54  ;;  %v24449_v54 = vpack.c.bf16 %v18787_v28, %v18778_v45  ;;  %v18989_v26 = vld [vmem:[%s24256_s16 + $0x18] sm:$0xff] }
 0x2a8   : > { %v2070_v13 = vpop.f32.mrb[190].mxu0 }
 0x2a9   : > { %24447 = vst [vmem:[#allocation54_spill] sm:$0xff] %v18971_v41  ;;  %v2717_v51 = vadd.f32 %v18356_v19, %v2582_v40  ;;  %v2583_v21 = vmul.f32 %v18362_v42, %v2070_v13  ;;  %v2072_v61 = vpop.f32.mrb[191].mxu0  ;;  %v2257_v14 = vpack.c.bf16 %v2070_v13, %v2067_v24  ;;  %v18976_v48 = vmax.f32 %v2968_v52, %v18871_v10  ;;  %v18994_v10 = vld [vmem:[%s24256_s16 + $0x38] sm:$0xff] }
 0x2aa   : > { %v15048_v40 = vcombine.high %v18989_v26, %v18994_v10 }
 0x2ab   : > { %24448 = vst [vmem:[#allocation55_spill] sm:$0xff] %v18976_v48  ;;  %v18978_v63 = vmax.f32 %v2717_v51, 0.0  ;;  %v2718_v3 = vadd.f32 %v18356_v19, %v2583_v21  ;;  %16383 = vmatprep.subr.bf16.mxu1 %v2257_v14  ;;  %v24450_v21 = vcombine.low %v18676_v22, %v18681_v59 }
 0x2ac   : > { %16384 = vmatpush3.bf16.msra.mxu1 %v24449_v54 }
 0x2ad   : > { %v18996_v24 = vmax.f32 %v2718_v3, 0.0  ;;  %v2969_v52 = vmax.f32 %v18932_v23, %v18978_v63 }
 0x2ae   : > { %v19002_v45 = vpop.f32.mrb[192].mxu0 }
 0x2af   : > { %v2584_v13 = vmul.f32 %v18362_v42, %v19002_v45  ;;  %v2077_v51 = vpop.f32.mrb[193].mxu0  ;;  %2429 = vmatmul.mubr.bf16.vlgmr.msra.gmra.mrb[8].mxu1 %v24450_v21  ;;  %v2970_v61 = vmax.f32 %v18940_v29, %v18996_v24  ;;  %v19014_v14 = vmax.f32 %v2969_v52, %v18886_v44 }
 0x2b0   : > { %v19016_v3 = vpop.f32.mrb[194].mxu0  ;;  %2469 = vmatprep.mubr.bf16.mxu1 %v15048_v40  ;;  %v19080_v51 = vld [vmem:[%s24378_s6] ss:$0 sm:$0xff] }
 0x2b1   : > { %24451 = vst [vmem:[#allocation56_spill] sm:$0xff] %v19014_v14  ;;  %v2585_v54 = vmul.f32 %v18362_v42, %v19016_v3  ;;  %v2080_v27 = vpop.f32.mrb[195].mxu0  ;;  %v19023_v28 = vmax.f32 %v2970_v61, %v18894_v30  ;;  %v2719_v22 = vadd.f32 %v18356_v19, %v2584_v13 }
 0x2b3   : > { %24452 = vst [vmem:[#allocation57_spill] sm:$0xff] %v19023_v28  ;;  %v2720_v44 = vadd.f32 %v18356_v19, %v2585_v54  ;;  %v19029_v52 = vmax.f32 %v2719_v22, 0.0 }
 0x2b5   : > { %v19031_v40 = vmax.f32 %v2720_v44, 0.0  ;;  %v2971_v27 = vmax.f32 %v18955_v6, %v19029_v52 }
 0x2b6   : > { %v19035_v21 = vpop.f32.mrb[196].mxu0 }
 0x2b7   : > { %v2586_v30 = vmul.f32 %v18362_v42, %v19035_v21  ;;  %v2085_v61 = vpop.f32.mrb[197].mxu0  ;;  %v2972_v13 = vmax.f32 %v18963_v12, %v19031_v40  ;;  %v19042_v59 = vmax.f32 %v2971_v27, %v18909_v25 }
 0x2b8   : > { %v19044_v54 = vpop.f32.mrb[198].mxu0 }
 0x2b9   : > { %24453 = vst [vmem:[#allocation58_spill] sm:$0xff] %v19042_v59  ;;  %v2587_v22 = vmul.f32 %v18362_v42, %v19044_v54  ;;  %v2088_v44 = vpop.f32.mrb[199].mxu0  ;;  %v19051_v14 = vmax.f32 %v2972_v13, %v18917_v34  ;;  %v2721_v61 = vadd.f32 %v18356_v19, %v2586_v30 }
 0x2bb   : > { %24454 = vst [vmem:[#allocation59_spill] sm:$0xff] %v19051_v14  ;;  %v2722_v25 = vadd.f32 %v18356_v19, %v2587_v22  ;;  %v19057_v27 = vmax.f32 %v2721_v61, 0.0 }
 0x2bd   : > { %v19059_v41 = vmax.f32 %v2722_v25, 0.0  ;;  %v2973_v44 = vmax.f32 %v18978_v63, %v19057_v27 }
 0x2be   : > { %v19063_v48 = vpop.f32.mrb[200].mxu0 }
 0x2bf   : > { %v2588_v34 = vmul.f32 %v18362_v42, %v19063_v48  ;;  %v2093_v13 = vpop.f32.mrb[201].mxu0  ;;  %v2974_v30 = vmax.f32 %v18996_v24, %v19059_v41  ;;  %v19070_v28 = vmax.f32 %v2973_v44, %v18932_v23 }
 0x2c0   : > { %v19072_v22 = vpop.f32.mrb[202].mxu0 }
 0x2c1   : > { %24455 = vst [vmem:[#allocation60_spill] sm:$0xff] %v19070_v28  ;;  %v2723_v61 = vadd.f32 %v18356_v19, %v2588_v34  ;;  %v2589_v42 = vmul.f32 %v19080_v51, %v19072_v22  ;;  %v2096_v13 = vpop.f32.mrb[203].mxu0  ;;  %v19085_v59 = vmax.f32 %v2974_v30, %v18940_v29  ;;  %v19092_v19 = vld [vmem:[%s24379_s28] ss:$0 sm:$0xff] }
 0x2c3   : > { %24456 = vst [vmem:[#allocation61_spill] sm:$0xff] %v19085_v59  ;;  %v19087_v23 = vmax.f32 %v2723_v61, 0.0  ;;  %v2724_v44 = vadd.f32 %v19092_v19, %v2589_v42 }
 0x2c5   : > { %v19097_v25 = vmax.f32 %v2724_v44, 0.0  ;;  %v2975_v13 = vmax.f32 %v19029_v52, %v19087_v23 }
 0x2c6   : > { %v19101_v14 = vpop.f32.mrb[204].mxu0 }
 0x2c7   : > { %v2590_v29 = vmul.f32 %v19080_v51, %v19101_v14  ;;  %v2101_v30 = vpop.f32.mrb[205].mxu0  ;;  %v2976_v61 = vmax.f32 %v19031_v40, %v19097_v25  ;;  %v19108_v55 = vmax.f32 %v2975_v13, %v18955_v6 }
 0x2c8   : > { %v19110_v42 = vpop.f32.mrb[206].mxu0 }
 0x2c9   : > { %24457 = vst [vmem:[#allocation62_spill] sm:$0xff] %v19108_v55  ;;  %v2725_v44 = vadd.f32 %v19092_v19, %v2590_v29  ;;  %v2591_v28 = vmul.f32 %v19080_v51, %v19110_v42  ;;  %v2104_v59 = vpop.f32.mrb[207].mxu0  ;;  %v19118_v9 = vmax.f32 %v2976_v61, %v18963_v12 }
 0x2cb   : > { %24458 = vst [vmem:[#allocation63_spill] sm:$0xff] %v19118_v9  ;;  %v19120_v30 = vmax.f32 %v2725_v44, 0.0  ;;  %v2726_v18 = vadd.f32 %v19092_v19, %v2591_v28 }
 0x2cd   : > { %v19125_v13 = vmax.f32 %v2726_v18, 0.0  ;;  %v2977_v29 = vmax.f32 %v19057_v27, %v19120_v30 }
 0x2ce   : > { %v19129_v34 = vpop.f32.mrb[208].mxu0 }
 0x2cf   : > { %v2592_v59 = vmul.f32 %v19080_v51, %v19129_v34  ;;  %v2109_v20 = vpop.f32.mrb[209].mxu0  ;;  %v2978_v12 = vmax.f32 %v19059_v41, %v19125_v13  ;;  %v19136_v61 = vmax.f32 %v2977_v29, %v18978_v63 }
 0x2d0   : > { %v19138_v28 = vpop.f32.mrb[210].mxu0 }
 0x2d1   : > { %24459 = vst [vmem:[#allocation64_spill] sm:$0xff] %v19136_v61  ;;  %v2727_v18 = vadd.f32 %v19092_v19, %v2592_v59  ;;  %v2593_v6 = vmul.f32 %v19080_v51, %v19138_v28  ;;  %v2112_v55 = vpop.f32.mrb[211].mxu0  ;;  %v19146_v9 = vmax.f32 %v2978_v12, %v18996_v24 }
 0x2d3   : > { %24460 = vst [vmem:[#allocation65_spill] sm:$0xff] %v19146_v9  ;;  %v19148_v20 = vmax.f32 %v2727_v18, 0.0  ;;  %v2728_v7 = vadd.f32 %v19092_v19, %v2593_v6 }
 0x2d5   : > { %v19153_v29 = vmax.f32 %v2728_v7, 0.0  ;;  %v2979_v59 = vmax.f32 %v19087_v23, %v19148_v20 }
 0x2d6   : > { %v19157_v44 = vpop.f32.mrb[212].mxu0 }
 0x2d7   : > { %v2594_v55 = vmul.f32 %v19080_v51, %v19157_v44  ;;  %v2117_v32 = vpop.f32.mrb[213].mxu0  ;;  %v2980_v24 = vmax.f32 %v19097_v25, %v19153_v29  ;;  %v19164_v12 = vmax.f32 %v2979_v59, %v19029_v52 }
 0x2d8   : > { %v19166_v6 = vpop.f32.mrb[214].mxu0 }
 0x2d9   : > { %24461 = vst [vmem:[#allocation66_spill] sm:$0xff] %v19164_v12  ;;  %v2729_v7 = vadd.f32 %v19092_v19, %v2594_v55  ;;  %v2595_v63 = vmul.f32 %v19080_v51, %v19166_v6  ;;  %v2120_v61 = vpop.f32.mrb[215].mxu0  ;;  %v19174_v9 = vmax.f32 %v2980_v24, %v19031_v40 }
 0x2db   : > { %24462 = vst [vmem:[#allocation67_spill] sm:$0xff] %v19174_v9  ;;  %v19176_v32 = vmax.f32 %v2729_v7, 0.0  ;;  %v2730_v17 = vadd.f32 %v19092_v19, %v2595_v63 }
 0x2dd   : > { %v19181_v59 = vmax.f32 %v2730_v17, 0.0  ;;  %v2981_v55 = vmax.f32 %v19120_v30, %v19176_v32 }
 0x2de   : > { %v19185_v18 = vpop.f32.mrb[216].mxu0 }
 0x2df   : > { %v2596_v61 = vmul.f32 %v19080_v51, %v19185_v18  ;;  %v2125_v35 = vpop.f32.mrb[217].mxu0  ;;  %v2982_v40 = vmax.f32 %v19125_v13, %v19181_v59  ;;  %v19192_v24 = vmax.f32 %v2981_v55, %v19057_v27 }
 0x2e0   : > { %v19194_v63 = vpop.f32.mrb[218].mxu0 }
 0x2e1   : > { %24463 = vst [vmem:[#allocation68_spill] sm:$0xff] %v19192_v24  ;;  %v2731_v17 = vadd.f32 %v19092_v19, %v2596_v61  ;;  %v2597_v52 = vmul.f32 %v19080_v51, %v19194_v63  ;;  %v2128_v12 = vpop.f32.mrb[219].mxu0  ;;  %v19202_v9 = vmax.f32 %v2982_v40, %v19059_v41 }
 0x2e3   : > { %24464 = vst [vmem:[#allocation69_spill] sm:$0xff] %v19202_v9  ;;  %v19204_v35 = vmax.f32 %v2731_v17, 0.0  ;;  %v2732_v11 = vadd.f32 %v19092_v19, %v2597_v52 }
 0x2e5   : > { %v2983_v55 = vmax.f32 %v19148_v20, %v19204_v35  ;;  %v19211_v61 = vmax.f32 %v2732_v11, 0.0 }
 0x2e6   : > { %v19213_v7 = vpop.f32.mrb[220].mxu0 }
 0x2e7   : > { %v2984_v12 = vmax.f32 %v19153_v29, %v19211_v61  ;;  %v2598_v41 = vmul.f32 %v19080_v51, %v19213_v7  ;;  %v2133_v40 = vpop.f32.mrb[221].mxu0  ;;  %v19220_v17 = vmax.f32 %v2983_v55, %v19087_v23 }
 0x2e8   : > { %v19222_v52 = vpop.f32.mrb[222].mxu0 }
 0x2e9   : > { %24465 = vst [vmem:[#allocation70_spill] sm:$0xff] %v19220_v17  ;;  %v2733_v27 = vadd.f32 %v19092_v19, %v2598_v41  ;;  %v2599_v24 = vmul.f32 %v19080_v51, %v19222_v52  ;;  %v2136_v9 = vpop.f32.mrb[223].mxu0  ;;  %v19230_v46 = vmax.f32 %v2984_v12, %v19097_v25 }
 0x2eb   : > { %24466 = vst [vmem:[#allocation71_spill] sm:$0xff] %v19230_v46  ;;  %v19232_v4 = vmax.f32 %v2733_v27, 0.0  ;;  %v2734_v40 = vadd.f32 %v19092_v19, %v2599_v24 }
 0x2ed   : > { %v2985_v55 = vmax.f32 %v19176_v32, %v19232_v4  ;;  %v19239_v41 = vmax.f32 %v2734_v40, 0.0 }
 0x2ee   : > { %v2139_v11 = vpop.f32.mrb[224].mxu0 }
 0x2ef   : > { %v2986_v33 = vmax.f32 %v19181_v59, %v19239_v41  ;;  %v2600_v9 = vmul.f32 %v19080_v51, %v2139_v11  ;;  %v2141_v25 = vpop.f32.mrb[225].mxu0  ;;  %v19245_v27 = vmax.f32 %v2985_v55, %v19120_v30  ;;  %v24467_v30 = vpack.c.bf16 %v19016_v3, %v19002_v45 }
 0x2f0   : > { %v2142_v12 = vpop.f32.mrb[226].mxu0 }
 0x2f1   : > { %v2735_v24 = vadd.f32 %v19092_v19, %v2600_v9  ;;  %v2266_v57 = vpack.c.bf16 %v2142_v12, %v2139_v11  ;;  %v2601_v23 = vmul.f32 %v19080_v51, %v2142_v12  ;;  %v2144_v17 = vpop.f32.mrb[227].mxu0  ;;  %v19250_v40 = vmax.f32 %v2986_v33, %v19125_v13 }
 0x2f3   : > { %v19252_v46 = vmax.f32 %v2735_v24, 0.0  ;;  %v2736_v1 = vadd.f32 %v19092_v19, %v2601_v23  ;;  %16391 = vmatprep.subr.bf16.mxu1 %v2266_v57 }
 0x2f4   : > { %16392 = vmatpush3.bf16.msra.mxu1 %v24467_v30 }
 0x2f5   : > { %v2987_v11 = vmax.f32 %v19204_v35, %v19252_v46  ;;  %v19262_v55 = vmax.f32 %v2736_v1, 0.0 }
 0x2f6   : > { %v2147_v17 = vpop.f32.mrb[228].mxu0 }
 0x2f7   : > { %v2988_v33 = vmax.f32 %v19211_v61, %v19262_v55  ;;  %v2602_v13 = vmul.f32 %v19080_v51, %v2147_v17  ;;  %v2149_v23 = vpop.f32.mrb[229].mxu0  ;;  %v19268_v57 = vmax.f32 %v2987_v11, %v19148_v20  ;;  %v24468_v20 = vpack.c.bf16 %v19044_v54, %v19035_v21 }
 0x2f8   : > { %v2150_v9 = vpop.f32.mrb[230].mxu0 }
 0x2f9   : > { %v2737_v12 = vadd.f32 %v19092_v19, %v2602_v13  ;;  %v2267_v45 = vpack.c.bf16 %v2150_v9, %v2147_v17  ;;  %v2603_v3 = vmul.f32 %v19080_v51, %v2150_v9  ;;  %v2152_v24 = vpop.f32.mrb[231].mxu0  ;;  %v19273_v1 = vmax.f32 %v2988_v33, %v19153_v29 }
 0x2fb   : > { %v19275_v30 = vmax.f32 %v2737_v12, 0.0  ;;  %v2738_v25 = vadd.f32 %v19092_v19, %v2603_v3  ;;  %16393 = vmatprep.subr.bf16.mxu1 %v2267_v45 }
 0x2fc   : > { %16394 = vmatpush3.bf16.msra.mxu1 %v24468_v20 }
 0x2fd   : > { %v2989_v11 = vmax.f32 %v19232_v4, %v19275_v30  ;;  %v19285_v17 = vmax.f32 %v2738_v25, 0.0 }
 0x2fe   : > { %v2155_v13 = vpop.f32.mrb[232].mxu0 }
 0x2ff   : > { %v2990_v29 = vmax.f32 %v19239_v41, %v19285_v17  ;;  %v2604_v33 = vmul.f32 %v19080_v51, %v2155_v13  ;;  %v2157_v9 = vpop.f32.mrb[233].mxu0  ;;  %v19291_v12 = vmax.f32 %v2989_v11, %v19176_v32  ;;  %v24470_v32 = vpack.c.bf16 %v19072_v22, %v19063_v48 }
 0x300   : > { %v2158_v45 = vpop.f32.mrb[234].mxu0 }
 0x301   : > { %24469 = vst [vmem:[#allocation72_spill] sm:$0xff] %v19291_v12  ;;  %v2739_v3 = vadd.f32 %v19092_v19, %v2604_v33  ;;  %v2268_v21 = vpack.c.bf16 %v2158_v45, %v2155_v13  ;;  %v2605_v54 = vmul.f32 %v19080_v51, %v2158_v45  ;;  %v2160_v24 = vpop.f32.mrb[235].mxu0  ;;  %v19296_v25 = vmax.f32 %v2990_v29, %v19181_v59 }
 0x303   : > { %v19298_v20 = vmax.f32 %v2739_v3, 0.0  ;;  %v2740_v23 = vadd.f32 %v19092_v19, %v2605_v54  ;;  %16395 = vmatprep.subr.bf16.mxu1 %v2268_v21 }
 0x304   : > { %16396 = vmatpush3.bf16.msra.mxu1 %v24470_v32 }
 0x305   : > { %v2991_v11 = vmax.f32 %v19252_v46, %v19298_v20  ;;  %v19308_v13 = vmax.f32 %v2740_v23, 0.0 }
 0x306   : > { %v2163_v33 = vpop.f32.mrb[236].mxu0 }
 0x307   : > { %v2992_v59 = vmax.f32 %v19262_v55, %v19308_v13  ;;  %v2606_v29 = vmul.f32 %v19080_v51, %v2163_v33  ;;  %v2165_v45 = vpop.f32.mrb[237].mxu0  ;;  %v19314_v3 = vmax.f32 %v2991_v11, %v19204_v35  ;;  %v24473_v35 = vpack.c.bf16 %v19110_v42, %v19101_v14 }
 0x308   : > { %v2166_v21 = vpop.f32.mrb[238].mxu0 }
 0x309   : > { %24471 = vst [vmem:[#allocation73_spill] sm:$0xff] %v19314_v3  ;;  %v2741_v54 = vadd.f32 %v19092_v19, %v2606_v29  ;;  %v2269_v48 = vpack.c.bf16 %v2166_v21, %v2163_v33  ;;  %v2607_v22 = vmul.f32 %v19080_v51, %v2166_v21  ;;  %v2168_v24 = vpop.f32.mrb[239].mxu0  ;;  %v19319_v23 = vmax.f32 %v2992_v59, %v19211_v61 }
 0x30b   : > { %24472 = vst [vmem:[#allocation74_spill] sm:$0xff] %v19319_v23  ;;  %v19321_v32 = vmax.f32 %v2741_v54, 0.0  ;;  %v2742_v9 = vadd.f32 %v19092_v19, %v2607_v22  ;;  %16397 = vmatprep.subr.bf16.mxu1 %v2269_v48 }
 0x30c   : > { %16398 = vmatpush3.bf16.msra.mxu1 %v24473_v35 }
 0x30d   : > { %v2993_v11 = vmax.f32 %v19275_v30, %v19321_v32  ;;  %v19331_v33 = vmax.f32 %v2742_v9, 0.0 }
 0x30e   : > { %v2171_v29 = vpop.f32.mrb[240].mxu0 }
 0x30f   : > { %v2994_v61 = vmax.f32 %v19285_v17, %v19331_v33  ;;  %v2608_v59 = vmul.f32 %v19080_v51, %v2171_v29  ;;  %v2173_v21 = vpop.f32.mrb[241].mxu0  ;;  %v19337_v54 = vmax.f32 %v2993_v11, %v19232_v4  ;;  %v24476_v4 = vpack.c.bf16 %v19138_v28, %v19129_v34 }
 0x310   : > { %v2174_v48 = vpop.f32.mrb[242].mxu0 }
 0x311   : > { %24474 = vst [vmem:[#allocation75_spill] sm:$0xff] %v19337_v54  ;;  %v2743_v22 = vadd.f32 %v19092_v19, %v2608_v59  ;;  %v2270_v14 = vpack.c.bf16 %v2174_v48, %v2171_v29  ;;  %v2609_v42 = vmul.f32 %v19080_v51, %v2174_v48  ;;  %v2176_v24 = vpop.f32.mrb[243].mxu0  ;;  %v19342_v9 = vmax.f32 %v2994_v61, %v19239_v41 }
 0x313   : > { %24475 = vst [vmem:[#allocation76_spill] sm:$0xff] %v19342_v9  ;;  %v19344_v35 = vmax.f32 %v2743_v22, 0.0  ;;  %v2744_v45 = vadd.f32 %v19092_v19, %v2609_v42  ;;  %16399 = vmatprep.subr.bf16.mxu1 %v2270_v14  ;;  %v16341_v42 = vpop.f32.mrb[0].mxu1 }
 0x314   : > { %16400 = vmatpush3.bf16.msra.mxu1 %v24476_v4 }
 0x315   : > { %v2995_v11 = vmax.f32 %v19298_v20, %v19344_v35  ;;  %v19354_v29 = vmax.f32 %v2744_v45, 0.0  ;;  %v16342_v45 = vpop.f32.mrb[1].mxu1 }
 0x316   : > { %v2179_v59 = vpop.f32.mrb[244].mxu0  ;;  %v16343_v54 = vadd.f32 %v16342_v45, %v16341_v42  ;;  %v16344_v9 = vpop.f32.mrb[2].mxu1 }
 0x317   : > { %v2996_v41 = vmax.f32 %v19308_v13, %v19354_v29  ;;  %v2610_v61 = vmul.f32 %v19080_v51, %v2179_v59  ;;  %v2181_v48 = vpop.f32.mrb[245].mxu0  ;;  %v19360_v22 = vmax.f32 %v2995_v11, %v19252_v46  ;;  %v24479_v11 = vpack.c.bf16 %v19166_v6, %v19157_v44 }
 0x318   : > { %v2182_v14 = vpop.f32.mrb[246].mxu0 }
 0x319   : > { %24477 = vst [vmem:[#allocation77_spill] sm:$0xff] %v19360_v22  ;;  %v2745_v34 = vadd.f32 %v19092_v19, %v2610_v61  ;;  %v2271_v28 = vpack.c.bf16 %v2182_v14, %v2179_v59  ;;  %v2611_v24 = vmul.f32 %v19080_v51, %v2182_v14  ;;  %v2184_v4 = vpop.f32.mrb[247].mxu0  ;;  %v19365_v21 = vmax.f32 %v2996_v41, %v19262_v55  ;;  %v16345_v59 = vpop.f32.mrb[3].mxu1 }
 0x31a   : > { %v16346_v41 = vadd.f32 %v16345_v59, %v16344_v9  ;;  %v16363_v14 = vpop.f32.mrb[4].mxu1 }
 0x31b   : > { %24478 = vst [vmem:[#allocation78_spill] sm:$0xff] %v19365_v21  ;;  %v19367_v3 = vmax.f32 %v2745_v34, 0.0  ;;  %v2746_v48 = vadd.f32 %v19092_v19, %v2611_v24  ;;  %16401 = vmatprep.subr.bf16.mxu1 %v2271_v28  ;;  %v16364_v34 = vpop.f32.mrb[5].mxu1 }
 0x31c   : > { %16402 = vmatpush3.bf16.msra.mxu1 %v24479_v11  ;;  %v16365_v45 = vadd.f32 %v16364_v34, %v16363_v14  ;;  %v16366_v46 = vpop.f32.mrb[6].mxu1 }
 0x31d   : > { %v2997_v61 = vmax.f32 %v19321_v32, %v19367_v3  ;;  %v19377_v55 = vmax.f32 %v2746_v48, 0.0  ;;  %v16367_v11 = vpop.f32.mrb[7].mxu1 }
 0x31e   : > { %v2187_v42 = vpop.f32.mrb[248].mxu0  ;;  %v19387_v21 = vadd.f32 %v16365_v45, %v16343_v54  ;;  %v16368_v23 = vadd.f32 %v16367_v11, %v16366_v46 }
 0x31f   : > { %v2998_v28 = vmax.f32 %v19331_v33, %v19377_v55  ;;  %v2612_v24 = vmul.f32 %v19080_v51, %v2187_v42  ;;  %v2189_v4 = vpop.f32.mrb[249].mxu0  ;;  %v19383_v44 = vmax.f32 %v2997_v61, %v19275_v30  ;;  %v24480_v30 = vpack.c.bf16 %v19194_v63, %v19185_v18 }
 0x320   : > { %v2190_v6 = vpop.f32.mrb[250].mxu0  ;;  %v19396_v61 = vadd.f32 %v16368_v23, %v16346_v41 }
 0x321   : > { %v2747_v48 = vadd.f32 %v19092_v19, %v2612_v24  ;;  %v2272_v22 = vpack.c.bf16 %v2190_v6, %v2187_v42  ;;  %v2613_v9 = vmul.f32 %v19080_v51, %v2190_v6  ;;  %v2192_v59 = vpop.f32.mrb[251].mxu0  ;;  %v19390_v12 = vmax.f32 %v2998_v28, %v19285_v17 }
 0x323   : > { %v2875_v4 = vmax.f32 %v2747_v48, 0.0  ;;  %v2748_v14 = vadd.f32 %v19092_v19, %v2613_v9  ;;  %16403 = vmatprep.subr.bf16.mxu1 %v2272_v22  ;;  %v3578_v42 = vpack.c.bf16 %v19390_v12, %v19383_v44  ;;  %v3209_v44 = vld [vmem:[%s24481_s1 + $0x250] sm:$0xff] }
 0x324   : > { %16404 = vmatpush3.bf16.msra.mxu1 %v24480_v30 }
 0x325   : > { %v2999_v54 = vmax.f32 %v19344_v35, %v2875_v4  ;;  %v3003_v34 = vmax.f32 %v2875_v4, 0.0  ;;  %v2876_v46 = vmax.f32 %v2748_v14, 0.0 }
 0x326   : > { %v2195_v24 = vpop.f32.mrb[252].mxu0 }
 0x327   : > { %v3127_v17 = vmax.f32 %v2999_v54, %v19298_v20  ;;  %v3131_v28 = vmax.f32 %v3003_v34, %v19344_v35  ;;  %v3000_v22 = vmax.f32 %v19354_v29, %v2876_v46  ;;  %v3004_v45 = vmax.f32 %v2876_v46, 0.0  ;;  %v2197_v6 = vpop.f32.mrb[253].mxu0  ;;  %v3207_v20 = vld [vmem:[%s24481_s1 + $0x240] sm:$0xff] }
 0x328   : > { %v2614_v18 = vmul.f32 %v19080_v51, %v2195_v24  ;;  %v2198_v63 = vpop.f32.mrb[254].mxu0  ;;  %v3211_v35 = vld [vmem:[%s24481_s1 + $0x260] sm:$0xff]  ;;  %v24483_v34 = vmov 0  }
 0x329   : > { %v3128_v23 = vmax.f32 %v3000_v22, %v19308_v13  ;;  %v3132_v41 = vmax.f32 %v3004_v45, %v19354_v29  ;;  %v2273_v11 = vpack.c.bf16 %v2198_v63, %v2195_v24  ;;  %v2615_v48 = vmul.f32 %v19080_v51, %v2198_v63  ;;  %v2200_v9 = vpop.f32.mrb[255].mxu0 }
 0x32a   : > { %v2749_v59 = vadd.f32 %v19092_v19, %v2614_v18  ;;  %v24482_v51 = vpack.c.bf16 %v19222_v52, %v19213_v7  ;;  %v15124_v30 = vcombine.high %v3207_v20, %v3211_v35 }
 0x32b   : > { %v2750_v4 = vadd.f32 %v19092_v19, %v2615_v48  ;;  %16405 = vmatprep.subr.bf16.mxu1 %v2273_v11  ;;  %v19416_v13 = vpack.c.bf16 %v3128_v23, %v3127_v17  ;;  %v19418_v29 = vpack.c.bf16 %v3132_v41, %v3131_v28  ;;  %v24484_v17 = vcombine.low %v18989_v26, %v18994_v10  ;;  %v24493_v26 = vld [vmem:[#allocation7_spill] sm:$0xff]  ;;  %v24494_v10 = vld [vmem:[#allocation6_spill] sm:$0xff]  ;;  %v24496_v41 = vld [vmem:[#allocation9_spill] sm:$0xff] }
 0x32c   : > { %v2877_v14 = vmax.f32 %v2749_v59, 0.0  ;;  %16406 = vmatpush3.bf16.msra.mxu1 %v24482_v51  ;;  %v24497_v11 = vld [vmem:[#allocation8_spill] sm:$0xff]  ;;  %v24499_v51 = vld [vmem:[#allocation11_spill] sm:$0xff] }
 0x32d   : > { %v2878_v54 = vmax.f32 %v2750_v4, 0.0  ;;  %16413 = vmatprep.subr.bf16.mxu1 %v24483_v34  ;;  %v24498_v48 = vpack.c.bf16 %v24496_v41, %v24497_v11  ;;  %v24524_v41 = vld [vmem:[#allocation26_spill] sm:$0xff] }
 0x32e   : > { %v3001_v46 = vmax.f32 %v19367_v3, %v2877_v14  ;;  %v3005_v24 = vmax.f32 %v2877_v14, 0.0 }
 0x32f   : > { %v3002_v22 = vmax.f32 %v19377_v55, %v2878_v54  ;;  %v3006_v19 = vmax.f32 %v2878_v54, 0.0  ;;  %2470 = vmatmul.mubr.bf16.vlgmr.msra.gmra.mrb[12].mxu1 %v24484_v17  ;;  %v24503_v17 = vld [vmem:[#allocation12_spill] sm:$0xff] }
 0x330   : > { %v3129_v28 = vmax.f32 %v3001_v46, %v19321_v32  ;;  %v3133_v45 = vmax.f32 %v3005_v24, %v19367_v3  ;;  %16429 = vmatpush1.bf16.msra.mxu1 %v17789_v2  ;;  %5607 = vmatprep.mubr.bf16.mxu1 %v15124_v30  ;;  %v3215_v2 = vld [vmem:[%s24481_s1 + $0x280] sm:$0xff]  ;;  %v24495_v3 = vpack.c.bf16 %v24493_v26, %v24494_v10 }
 0x331   : > { %v3130_v7 = vmax.f32 %v3002_v22, %v19331_v33  ;;  %v3134_v52 = vmax.f32 %v3006_v19, %v19377_v55  ;;  %16414 = vmatprep.subr.bf16.mxu1 %v24483_v34  ;;  %v3239_v32 = vld [vmem:[%s24481_s1 + $0x340] sm:$0xff]  ;;  %v24502_v19 = vld [vmem:[#allocation13_spill] sm:$0xff] }
 0x332   : > { %v3243_v33 = vld [vmem:[%s24481_s1 + $0x360] sm:$0xff] }
 0x333   : > { %v19435_v6 = vpack.c.bf16 %v3130_v7, %v3129_v28  ;;  %v19437_v18 = vpack.c.bf16 %v3134_v52, %v3133_v45  ;;  %v15156_v9 = vcombine.high %v3239_v32, %v3243_v33  ;;  %v24500_v30 = vld [vmem:[#allocation10_spill] sm:$0xff]  ;;  %v15155_v22 = vcombine.low %v3239_v32, %v3243_v33  ;;  %v24520_v32 = vld [vmem:[#allocation25_spill] sm:$0xff]  ;;  %v24521_v33 = vld [vmem:[#allocation24_spill] sm:$0xff] }
 0x334   : > { %16430 = vmatpush1.bf16.msra.mxu1 %v17814_v31  ;;  %v3219_v31 = vld [vmem:[%s24481_s1 + $0x2a0] sm:$0xff]  ;;  %v24501_v54 = vpack.c.bf16 %v24499_v51, %v24500_v30  ;;  %v24504_v28 = vpack.c.bf16 %v24502_v19, %v24503_v17 }
 0x335   : > { %16415 = vmatprep.subr.bf16.mxu1 %v24483_v34  ;;  %v3247_v24 = vld [vmem:[%s24481_s1 + $0x380] sm:$0xff] }
 0x336   : > { %v24506_v7 = vld [vmem:[#allocation14_spill] sm:$0xff] }
 0x337   : > { %v3271_v26 = vld [vmem:[%s24481_s1 + $0x440] sm:$0xff] }
 0x338   : > { %16431 = vmatpush1.bf16.msra.mxu1 %v17842_v39  ;;  %v15123_v39 = vcombine.low %v3207_v20, %v3211_v35  ;;  %v3275_v10 = vld [vmem:[%s24481_s1 + $0x460] sm:$0xff] }
 0x339   : > { %16416 = vmatprep.subr.bf16.mxu1 %v24483_v34  ;;  %v3287_v30 = vld [vmem:[%s24481_s1 + $0x4c0] sm:$0xff] }
 0x33a   : > { %v3299_v19 = vld [vmem:[%s24481_s1 + $0x520] sm:$0xff] }
 0x33c   : > { %16432 = vmatpush1.bf16.msra.mxu1 %v17868_v62  ;;  %v15132_v62 = vcombine.high %v3215_v2, %v3219_v31 }
 0x33d   : > { %16417 = vmatprep.subr.bf16.mxu1 %v24483_v34 }
 0x340   : > { %16433 = vmatpush1.bf16.msra.mxu1 %v17896_v58  ;;  %v24485_v58 = vpack.c.bf16 %v18204_v0, %v18193_v56  ;;  %v24490_v56 = vld [vmem:[#allocation5_spill] sm:$0xff]  ;;  %v24491_v0 = vld [vmem:[#allocation4_spill] sm:$0xff] }
 0x341   : > { %16418 = vmatprep.subr.bf16.mxu1 %v24483_v34 }
 0x344   : > { %16434 = vmatpush1.bf16.msra.mxu1 %v17928_v50  ;;  %v3223_v50 = vld [vmem:[%s24481_s1 + $0x2c0] sm:$0xff] }
 0x345   : > { %16419 = vmatprep.subr.bf16.mxu1 %v24483_v34 }
 0x348   : > { %16435 = vmatpush1.bf16.msra.mxu1 %v17951_v36  ;;  %v3227_v36 = vld [vmem:[%s24481_s1 + $0x2e0] sm:$0xff] }
 0x349   : > { %16420 = vmatprep.subr.bf16.mxu1 %v24483_v34 }
 0x34c   : > { %16436 = vmatpush1.bf16.msra.mxu1 %v17974_v15  ;;  %v15131_v15 = vcombine.low %v3215_v2, %v3219_v31  ;;  %v3255_v2 = vld [vmem:[%s24481_s1 + $0x3c0] sm:$0xff] }
 0x34d   : > { %16421 = vmatprep.subr.bf16.mxu1 %v24483_v34  ;;  %v3259_v31 = vld [vmem:[%s24481_s1 + $0x3e0] sm:$0xff] }
 0x350   : > { %16437 = vmatpush1.bf16.msra.mxu1 %v17997_v49  ;;  %v24486_v49 = vpack.c.bf16 %v18234_v60, %v18223_v43  ;;  %v24492_v43 = vpack.c.bf16 %v24490_v56, %v24491_v0  ;;  %v24517_v0 = vld [vmem:[#allocation23_spill] sm:$0xff] }
 0x351   : > { %16422 = vmatprep.subr.bf16.mxu1 %v24483_v34 }
 0x354   : > { %16438 = vmatpush1.bf16.msra.mxu1 %v18020_v8  ;;  %v15140_v8 = vcombine.high %v3223_v50, %v3227_v36 }
 0x355   : > { %16423 = vmatprep.subr.bf16.mxu1 %v24483_v34 }
 0x358   : > { %16439 = vmatpush1.bf16.msra.mxu1 %v18043_v16  ;;  %v24487_v16 = vld [vmem:[#allocation3_spill] sm:$0xff] }
 0x359   : > { %16424 = vmatprep.subr.bf16.mxu1 %v24483_v34 }
 0x35c   : > { %16440 = vmatpush1.bf16.msra.mxu1 %v18066_v5  ;;  %v24488_v5 = vld [vmem:[#allocation2_spill] sm:$0xff] }
 0x35d   : > { %16425 = vmatprep.subr.bf16.mxu1 %v24483_v34 }
 0x360   : > { %16441 = vmatpush1.bf16.msra.mxu1 %v18089_v37  ;;  %v24489_v37 = vpack.c.bf16 %v24487_v16, %v24488_v5  ;;  %v3263_v16 = vld [vmem:[%s24481_s1 + $0x400] sm:$0xff] }
 0x361   : > { %16426 = vmatprep.subr.bf16.mxu1 %v24483_v34  ;;  %v3267_v5 = vld [vmem:[%s24481_s1 + $0x420] sm:$0xff] }
 0x362   : > { %v15180_v56 = vcombine.high %v3263_v16, %v3267_v5 }
 0x364   : > { %16442 = vmatpush1.bf16.msra.mxu1 %v18122_v53  ;;  %v3231_v53 = vld [vmem:[%s24481_s1 + $0x300] sm:$0xff] }
 0x365   : > { %16427 = vmatprep.subr.bf16.mxu1 %v24483_v34 }
 0x368   : > { %16443 = vmatpush1.bf16.msra.mxu1 %v18150_v38  ;;  %v3235_v38 = vld [vmem:[%s24481_s1 + $0x320] sm:$0xff] }
 0x369   : > { %16428 = vmatprep.subr.bf16.mxu1 %v24483_v34  ;;  %v15148_v60 = vcombine.high %v3231_v53, %v3235_v38  ;;  %v15147_v63 = vcombine.low %v3231_v53, %v3235_v38  ;;  %v24514_v53 = vld [vmem:[#allocation21_spill] sm:$0xff]  ;;  %v24515_v38 = vld [vmem:[#allocation20_spill] sm:$0xff] }
 0x36c   : > { %16444 = vmatpush1.bf16.msra.mxu1 %v18178_v47  ;;  %v15139_v47 = vcombine.low %v3223_v50, %v3227_v36  ;;  %v15172_v36 = vcombine.high %v3255_v2, %v3259_v31 }
 0x36d   : > { %5920 = vmatprep.subr.bf16.mxu1 %v24483_v34 }
 0x36f   : > { %5608 = vmatmul.mubr.bf16.vlgmr.msra.gmra.mrb[16].mxu1 %v15123_v39 }
 0x370   : > { %5921 = vmatpush1.bf16.msra.mxu1 %v24485_v58  ;;  %5615 = vmatprep.mubr.bf16.mxu1 %v15132_v62  ;;  %v24508_v62 = vld [vmem:[#allocation17_spill] sm:$0xff]  ;;  %v24509_v58 = vld [vmem:[#allocation16_spill] sm:$0xff] }
 0x371   : > { %5922 = vmatprep.subr.bf16.mxu1 %v24483_v34  ;;  %v24510_v50 = vpack.c.bf16 %v24508_v62, %v24509_v58  ;;  %v3319_v58 = vld [vmem:[%s24481_s1 + $0x5c0] sm:$0xff] }
 0x374   : > { %5923 = vmatpush1.bf16.msra.mxu1 %v24486_v49  ;;  %v24512_v49 = vld [vmem:[#allocation18_spill] sm:$0xff] }
 0x375   : > { %5924 = vmatprep.subr.bf16.mxu1 %v24483_v34 }
 0x377   : > { %5616 = vmatmul.mubr.bf16.gmra.mrb[20].mxu1 %v15131_v15  ;;  %v24511_v15 = vld [vmem:[#allocation19_spill] sm:$0xff] }
 0x378   : > { %5925 = vmatpush1.bf16.msra.mxu1 %v24489_v37  ;;  %5623 = vmatprep.mubr.bf16.mxu1 %v15140_v8  ;;  %v24513_v8 = vpack.c.bf16 %v24511_v15, %v24512_v49  ;;  %v15171_v37 = vcombine.low %v3255_v2, %v3259_v31  ;;  %v3311_v2 = vld [vmem:[%s24481_s1 + $0x580] sm:$0xff] }
 0x379   : > { %5926 = vmatprep.subr.bf16.mxu1 %v24483_v34  ;;  %v3315_v31 = vld [vmem:[%s24481_s1 + $0x5a0] sm:$0xff] }
 0x37a   : > { %v15228_v62 = vcombine.high %v3311_v2, %v3315_v31  ;;  %v3327_v49 = vld [vmem:[%s24481_s1 + $0x600] sm:$0xff] }
 0x37c   : > { %5927 = vmatpush1.bf16.msra.mxu1 %v24492_v43  ;;  %v24518_v43 = vld [vmem:[#allocation22_spill] sm:$0xff] }
 0x37d   : > { %5928 = vmatprep.subr.bf16.mxu1 %v24483_v34 }
 0x37f   : > { %5624 = vmatmul.mubr.bf16.gmra.mrb[24].mxu1 %v15139_v47  ;;  %v24516_v47 = vpack.c.bf16 %v24514_v53, %v24515_v38  ;;  %v3339_v53 = vld [vmem:[%s24481_s1 + $0x660] sm:$0xff] }
 0x380   : > { %5929 = vmatpush1.bf16.msra.mxu1 %v24495_v3  ;;  %5631 = vmatprep.mubr.bf16.mxu1 %v15148_v60  ;;  %v24519_v60 = vpack.c.bf16 %v24517_v0, %v24518_v43  ;;  %v15179_v3 = vcombine.low %v3263_v16, %v3267_v5  ;;  %v3347_v0 = vld [vmem:[%s24481_s1 + $0x6a0] sm:$0xff] }
 0x381   : > { %5930 = vmatprep.subr.bf16.mxu1 %v24483_v34 }
 0x382   : > { %v16385_v55 = vpop.f32.mrb[8].mxu1 }
 0x383   : > { %v16386_v23 = vpop.f32.mrb[9].mxu1 }
 0x384   : > { %5931 = vmatpush1.bf16.msra.mxu1 %v24498_v48  ;;  %v16387_v20 = vadd.f32 %v16386_v23, %v16385_v55  ;;  %v16388_v35 = vpop.f32.mrb[10].mxu1  ;;  %v24522_v55 = vpack.c.bf16 %v24520_v32, %v24521_v33  ;;  %v24523_v23 = vld [vmem:[#allocation27_spill] sm:$0xff]  ;;  %v3279_v48 = vld [vmem:[%s24481_s1 + $0x480] sm:$0xff] }
 0x385   : > { %5932 = vmatprep.subr.bf16.mxu1 %v24483_v34  ;;  %v16389_v59 = vpop.f32.mrb[11].mxu1  ;;  %v24525_v11 = vpack.c.bf16 %v24523_v23, %v24524_v41  ;;  %v3359_v33 = vld [vmem:[%s24481_s1 + $0x700] sm:$0xff] }
 0x386   : > { %v19518_v4 = vadd.f32 %v16387_v20, %v19387_v21  ;;  %v16390_v14 = vadd.f32 %v16389_v59, %v16388_v35  ;;  %v3251_v21 = vld [vmem:[%s24481_s1 + $0x3a0] sm:$0xff]  ;;  %v15187_v20 = vcombine.low %v3271_v26, %v3275_v10  ;;  %v24526_v35 = vld [vmem:[#allocation29_spill] sm:$0xff]  ;;  %v24527_v59 = vld [vmem:[#allocation28_spill] sm:$0xff] }
 0x387   : > { %5632 = vmatmul.mubr.bf16.gmra.mrb[28].mxu1 %v15147_v63  ;;  %v15164_v45 = vcombine.high %v3247_v24, %v3251_v21  ;;  %v15163_v39 = vcombine.low %v3247_v24, %v3251_v21  ;;  %v15188_v63 = vcombine.high %v3271_v26, %v3275_v10  ;;  %v3351_v26 = vld [vmem:[%s24481_s1 + $0x6c0] sm:$0xff] }
 0x388   : > { %5933 = vmatpush1.bf16.msra.mxu1 %v24501_v54  ;;  %5639 = vmatprep.mubr.bf16.mxu1 %v15156_v9  ;;  %v19524_v46 = vadd.f32 %v16390_v14, %v19396_v61  ;;  %v24505_v61 = vld [vmem:[#allocation15_spill] sm:$0xff]  ;;  %v3283_v9 = vld [vmem:[%s24481_s1 + $0x4a0] sm:$0xff]  ;;  %v24528_v14 = vpack.c.bf16 %v24526_v35, %v24527_v59 }
 0x389   : > { %5934 = vmatprep.subr.bf16.mxu1 %v24483_v34  ;;  %v24507_v52 = vpack.c.bf16 %v24505_v61, %v24506_v7  ;;  %v15196_v51 = vcombine.high %v3279_v48, %v3283_v9  ;;  %v3291_v54 = vld [vmem:[%s24481_s1 + $0x4e0] sm:$0xff]  ;;  %v15195_v24 = vcombine.low %v3279_v48, %v3283_v9 }
 0x38a   : > { %v15204_v21 = vcombine.high %v3287_v30, %v3291_v54  ;;  %v15203_v17 = vcombine.low %v3287_v30, %v3291_v54  ;;  %v3307_v61 = vld [vmem:[%s24481_s1 + $0x560] sm:$0xff] }
 0x38b   : > { %v3355_v10 = vld [vmem:[%s24481_s1 + $0x6e0] sm:$0xff] }
 0x38c   : > { %5935 = vmatpush1.bf16.msra.mxu1 %v24504_v28  ;;  %v15268_v32 = vcombine.high %v3351_v26, %v3355_v10  ;;  %v3367_v41 = vld [vmem:[%s24481_s1 + $0x740] sm:$0xff] }
 0x38d   : > { %5936 = vmatprep.subr.bf16.mxu1 %v24483_v34 }
 0x38f   : > { %5640 = vmatmul.mubr.bf16.gmra.mrb[32].mxu1 %v15155_v22  ;;  %v3295_v22 = vld [vmem:[%s24481_s1 + $0x500] sm:$0xff] }
 0x390   : > { %5937 = vmatpush1.bf16.msra.mxu1 %v24507_v52  ;;  %5647 = vmatprep.mubr.bf16.mxu1 %v15164_v45  ;;  %v15212_v28 = vcombine.high %v3295_v22, %v3299_v19  ;;  %v3303_v45 = vld [vmem:[%s24481_s1 + $0x540] sm:$0xff]  ;;  %v15211_v7 = vcombine.low %v3295_v22, %v3299_v19 }
 0x391   : > { %5938 = vmatprep.subr.bf16.mxu1 %v24483_v34  ;;  %v15220_v52 = vcombine.high %v3303_v45, %v3307_v61  ;;  %v3379_v22 = vld [vmem:[%s24481_s1 + $0x7a0] sm:$0xff] }
 0x394   : > { %5939 = vmatpush1.bf16.msra.mxu1 %v24510_v50  ;;  %v3323_v50 = vld [vmem:[%s24481_s1 + $0x5e0] sm:$0xff] }
 0x395   : > { %5940 = vmatprep.subr.bf16.mxu1 %v24483_v34  ;;  %v15236_v15 = vcombine.high %v3319_v58, %v3323_v50  ;;  %v15235_v16 = vcombine.low %v3319_v58, %v3323_v50  ;;  %v3407_v50 = vld [vmem:[%s24481_s1 + $0x880] sm:$0xff] }
 0x397   : > { %5648 = vmatmul.mubr.bf16.gmra.mrb[36].mxu1 %v15163_v39  ;;  %v15219_v39 = vcombine.low %v3303_v45, %v3307_v61  ;;  %v3391_v61 = vld [vmem:[%s24481_s1 + $0x800] sm:$0xff] }
 0x398   : > { %5941 = vmatpush1.bf16.msra.mxu1 %v24513_v8  ;;  %5655 = vmatprep.mubr.bf16.mxu1 %v15172_v36  ;;  %v15227_v36 = vcombine.low %v3311_v2, %v3315_v31  ;;  %v3331_v8 = vld [vmem:[%s24481_s1 + $0x620] sm:$0xff] }
 0x399   : > { %5942 = vmatprep.subr.bf16.mxu1 %v24483_v34  ;;  %v15244_v5 = vcombine.high %v3327_v49, %v3331_v8  ;;  %v15243_v38 = vcombine.low %v3327_v49, %v3331_v8  ;;  %v3399_v31 = vld [vmem:[%s24481_s1 + $0x840] sm:$0xff] }
 0x39a   : > { %v3415_v8 = vld [vmem:[%s24481_s1 + $0x8c0] sm:$0xff] }
 0x39c   : > { %5943 = vmatpush1.bf16.msra.mxu1 %v24516_v47 }
 0x39d   : > { %5944 = vmatprep.subr.bf16.mxu1 %v24483_v34 }
 0x39f   : > { %5656 = vmatmul.mubr.bf16.gmra.mrb[40].mxu1 %v15171_v37  ;;  %v3335_v37 = vld [vmem:[%s24481_s1 + $0x640] sm:$0xff] }
 0x3a0   : > { %5945 = vmatpush1.bf16.msra.mxu1 %v24519_v60  ;;  %5663 = vmatprep.mubr.bf16.mxu1 %v15180_v56  ;;  %v15252_v47 = vcombine.high %v3335_v37, %v3339_v53  ;;  %v3343_v56 = vld [vmem:[%s24481_s1 + $0x680] sm:$0xff]  ;;  %v15251_v43 = vcombine.low %v3335_v37, %v3339_v53 }
 0x3a1   : > { %5946 = vmatprep.subr.bf16.mxu1 %v24483_v34  ;;  %v15260_v60 = vcombine.high %v3343_v56, %v3347_v0  ;;  %v3423_v53 = vld [vmem:[%s24481_s1 + $0x900] sm:$0xff] }
 0x3a4   : > { %5947 = vmatpush1.bf16.msra.mxu1 %v24522_v55  ;;  %v3363_v55 = vld [vmem:[%s24481_s1 + $0x720] sm:$0xff] }
 0x3a5   : > { %5948 = vmatprep.subr.bf16.mxu1 %v24483_v34  ;;  %v15276_v23 = vcombine.high %v3359_v33, %v3363_v55 }
 0x3a7   : > { %5664 = vmatmul.mubr.bf16.gmra.mrb[44].mxu1 %v15179_v3  ;;  %v15259_v3 = vcombine.low %v3343_v56, %v3347_v0  ;;  %v3431_v0 = vld [vmem:[%s24481_s1 + $0x940] sm:$0xff] }
 0x3a8   : > { %5949 = vmatpush1.bf16.msra.mxu1 %v24525_v11  ;;  %5671 = vmatprep.mubr.bf16.mxu1 %v15188_v63  ;;  %v15267_v63 = vcombine.low %v3351_v26, %v3355_v10  ;;  %v3371_v11 = vld [vmem:[%s24481_s1 + $0x760] sm:$0xff] }
 0x3a9   : > { %5950 = vmatprep.subr.bf16.mxu1 %v24483_v34  ;;  %v15283_v19 = vcombine.low %v3367_v41, %v3371_v11  ;;  %v3439_v10 = vld [vmem:[%s24481_s1 + $0x980] sm:$0xff] }
 0x3ac   : > { %5951 = vmatpush1.bf16.msra.mxu1 %v24528_v14  ;;  %v15284_v14 = vcombine.high %v3367_v41, %v3371_v11  ;;  %v3455_v11 = vld [vmem:[%s24481_s1 + $0xa00] sm:$0xff] }
 0x3ad   : > { %6337 = vmatprep.subr.bf16.mxu1 %v24483_v34 }
 0x3af   : > { %5672 = vmatmul.mubr.bf16.gmra.mrb[48].mxu1 %v15187_v20  ;;  %v15275_v20 = vcombine.low %v3359_v33, %v3363_v55  ;;  %v3447_v55 = vld [vmem:[%s24481_s1 + $0x9c0] sm:$0xff] }
 0x3b0   : > { %5679 = vmatprep.mubr.bf16.mxu1 %v15196_v51 }
 0x3b7   : > { %5680 = vmatmul.mubr.bf16.gmra.mrb[52].mxu1 %v15195_v24 }
 0x3b8   : > { %5687 = vmatprep.mubr.bf16.mxu1 %v15204_v21  ;;  %v3375_v21 = vld [vmem:[%s24481_s1 + $0x780] sm:$0xff] }
 0x3bf   : > { %5688 = vmatmul.mubr.bf16.gmra.mrb[56].mxu1 %v15203_v17  ;;  %v15292_v17 = vcombine.high %v3375_v21, %v3379_v22 }
 0x3c0   : > { %5695 = vmatprep.mubr.bf16.mxu1 %v15212_v28  ;;  %v15291_v28 = vcombine.low %v3375_v21, %v3379_v22  ;;  %v3479_v22 = vld [vmem:[%s24481_s1 + $0xac0] sm:$0xff] }
 0x3c7   : > { %5696 = vmatmul.mubr.bf16.gmra.mrb[60].mxu1 %v15211_v7  ;;  %v3395_v7 = vld [vmem:[%s24481_s1 + $0x820] sm:$0xff] }
 0x3c8   : > { %5703 = vmatprep.mubr.bf16.mxu1 %v15220_v52  ;;  %v15308_v2 = vcombine.high %v3391_v61, %v3395_v7 }
 0x3cf   : > { %5704 = vmatmul.mubr.bf16.gmra.mrb[64].mxu1 %v15219_v39  ;;  %v3403_v39 = vld [vmem:[%s24481_s1 + $0x860] sm:$0xff] }
 0x3d0   : > { %5711 = vmatprep.mubr.bf16.mxu1 %v15228_v62  ;;  %v15307_v62 = vcombine.low %v3391_v61, %v3395_v7  ;;  %v15316_v58 = vcombine.high %v3399_v31, %v3403_v39  ;;  %v3495_v7 = vld [vmem:[%s24481_s1 + $0xb40] sm:$0xff] }
 0x3d7   : > { %5712 = vmatmul.mubr.bf16.gmra.mrb[68].mxu1 %v15227_v36  ;;  %v3411_v36 = vld [vmem:[%s24481_s1 + $0x8a0] sm:$0xff] }
 0x3d8   : > { %5719 = vmatprep.mubr.bf16.mxu1 %v15236_v15  ;;  %v15315_v15 = vcombine.low %v3399_v31, %v3403_v39  ;;  %v15324_v49 = vcombine.high %v3407_v50, %v3411_v36  ;;  %v3503_v39 = vld [vmem:[%s24481_s1 + $0xb80] sm:$0xff] }
 0x3df   : > { %5720 = vmatmul.mubr.bf16.gmra.mrb[72].mxu1 %v15235_v16  ;;  %v3419_v16 = vld [vmem:[%s24481_s1 + $0x8e0] sm:$0xff] }
 0x3e0   : > { %5727 = vmatprep.mubr.bf16.mxu1 %v15244_v5  ;;  %v15323_v5 = vcombine.low %v3407_v50, %v3411_v36  ;;  %v15332_v37 = vcombine.high %v3415_v8, %v3419_v16  ;;  %v3511_v36 = vld [vmem:[%s24481_s1 + $0xbc0] sm:$0xff] }
 0x3e7   : > { %5728 = vmatmul.mubr.bf16.gmra.mrb[76].mxu1 %v15243_v38  ;;  %v3427_v38 = vld [vmem:[%s24481_s1 + $0x920] sm:$0xff] }
 0x3e8   : > { %5735 = vmatprep.mubr.bf16.mxu1 %v15252_v47  ;;  %v15331_v47 = vcombine.low %v3415_v8, %v3419_v16  ;;  %v15340_v56 = vcombine.high %v3423_v53, %v3427_v38  ;;  %v3136_v16 = vld [vmem:[%s24481_s1 + $0x8] sm:$0xff] }
 0x3ef   : > { %5736 = vmatmul.mubr.bf16.gmra.mrb[80].mxu1 %v15251_v43  ;;  %v3435_v43 = vld [vmem:[%s24481_s1 + $0x960] sm:$0xff] }
 0x3f0   : > { %5743 = vmatprep.mubr.bf16.mxu1 %v15260_v60  ;;  %v15339_v60 = vcombine.low %v3423_v53, %v3427_v38  ;;  %v15348_v26 = vcombine.high %v3431_v0, %v3435_v43  ;;  %v3144_v38 = vld [vmem:[%s24481_s1 + $0x48] sm:$0xff] }
 0x3f7   : > { %5744 = vmatmul.mubr.bf16.gmra.mrb[84].mxu1 %v15259_v3  ;;  %v3443_v3 = vld [vmem:[%s24481_s1 + $0x9a0] sm:$0xff] }
 0x3f8   : > { %5751 = vmatprep.mubr.bf16.mxu1 %v15268_v32  ;;  %v15347_v32 = vcombine.low %v3431_v0, %v3435_v43  ;;  %v15356_v33 = vcombine.high %v3439_v10, %v3443_v3  ;;  %v24529_v43 = vld [vmem:[#allocation31_spill] sm:$0xff] }
 0x3ff   : > { %5752 = vmatmul.mubr.bf16.gmra.mrb[88].mxu1 %v15267_v63  ;;  %v3451_v63 = vld [vmem:[%s24481_s1 + $0x9e0] sm:$0xff] }
 0x400   : > { %5759 = vmatprep.mubr.bf16.mxu1 %v15276_v23  ;;  %v15355_v23 = vcombine.low %v3439_v10, %v3443_v3  ;;  %v15364_v41 = vcombine.high %v3447_v55, %v3451_v63  ;;  %v3152_v10 = vld [vmem:[%s24481_s1 + $0x88] sm:$0xff] }
 0x401   : > { %v3156_v3 = vld [vmem:[%s24481_s1 + $0xa8] sm:$0xff] }
 0x402   : > { %v16407_v48 = vpop.f32.mrb[12].mxu1 }
 0x403   : > { %v16408_v9 = vpop.f32.mrb[13].mxu1 }
 0x404   : > { %v16409_v35 = vadd.f32 %v16408_v9, %v16407_v48  ;;  %v16410_v59 = vpop.f32.mrb[14].mxu1  ;;  %v3459_v48 = vld [vmem:[%s24481_s1 + $0xa20] sm:$0xff]  ;;  %v15363_v9 = vcombine.low %v3447_v55, %v3451_v63  ;;  %v24533_v55 = vld [vmem:[#allocation32_spill] sm:$0xff] }
 0x405   : > { %v16411_v51 = vpop.f32.mrb[15].mxu1 }
 0x406   : > { %v2472_v30 = vadd.f32 %v16409_v35, %v19518_v4  ;;  %v16412_v54 = vadd.f32 %v16411_v51, %v16410_v59  ;;  %v3383_v4 = vld [vmem:[%s24481_s1 + $0x7c0] sm:$0xff] }
 0x407   : > { %5760 = vmatmul.mubr.bf16.gmra.mrb[92].mxu1 %v15275_v20  ;;  %v15372_v20 = vcombine.high %v3455_v11, %v3459_v48  ;;  %v3463_v35 = vld [vmem:[%s24481_s1 + $0xa40] sm:$0xff] }
 0x408   : > { %2479 = vst.msk [vmem:[%s739_s0] sm:$0xff] %vm2478_vm0, %v2472_v30  ;;  %v2475_v24 = vadd.f32 %v16412_v54, %v19524_v46  ;;  %5767 = vmatprep.mubr.bf16.mxu1 %v15284_v14  ;;  %v3387_v46 = vld [vmem:[%s24481_s1 + $0x7e0] sm:$0xff]  ;;  %v15371_v14 = vcombine.low %v3455_v11, %v3459_v48 }
 0x409   : > { %v15300_v45 = vcombine.high %v3383_v4, %v3387_v46  ;;  %v15299_v52 = vcombine.low %v3383_v4, %v3387_v46  ;;  %v3467_v59 = vld [vmem:[%s24481_s1 + $0xa60] sm:$0xff] }
 0x40a   : > { %2480 = vst.msk [vmem:[%s739_s0 + $0x8] sm:$0xff] %vm2478_vm0, %v2475_v24  ;;  %v15380_v51 = vcombine.high %v3463_v35, %v3467_v59  ;;  %v3471_v30 = vld [vmem:[%s24481_s1 + $0xa80] sm:$0xff]  ;;  %v15379_v24 = vcombine.low %v3463_v35, %v3467_v59  ;;  %v15069_v35 = vcombine.low %v3152_v10, %v3156_v3  ;;  %v24538_v59 = vld [vmem:[#allocation37_spill] sm:$0xff] }
 0x40b   : > { %v3475_v54 = vld [vmem:[%s24481_s1 + $0xaa0] sm:$0xff] }
 0x40c   : > { %v15388_v21 = vcombine.high %v3471_v30, %v3475_v54  ;;  %v3487_v46 = vld [vmem:[%s24481_s1 + $0xb00] sm:$0xff] }
 0x40d   : > { %v24536_v11 = vld [vmem:[#allocation34_spill] sm:$0xff] }
 0x40f   : > { %5768 = vmatmul.mubr.bf16.gmra.mrb[96].mxu1 %v15283_v19  ;;  %v3483_v19 = vld [vmem:[%s24481_s1 + $0xae0] sm:$0xff] }
 0x410   : > { %5775 = vmatprep.mubr.bf16.mxu1 %v15292_v17  ;;  %v15387_v17 = vcombine.low %v3471_v30, %v3475_v54  ;;  %v15396_v4 = vcombine.high %v3479_v22, %v3483_v19  ;;  %v24541_v54 = vld [vmem:[#allocation39_spill] sm:$0xff] }
 0x417   : > { %5776 = vmatmul.mubr.bf16.gmra.mrb[100].mxu1 %v15291_v28  ;;  %v3491_v28 = vld [vmem:[%s24481_s1 + $0xb20] sm:$0xff] }
 0x418   : > { %5783 = vmatprep.mubr.bf16.mxu1 %v15300_v45  ;;  %v15395_v45 = vcombine.low %v3479_v22, %v3483_v19  ;;  %v15404_v61 = vcombine.high %v3487_v46, %v3491_v28  ;;  %v3168_v22 = vld [vmem:[%s24481_s1 + $0x108] sm:$0xff] }
 0x419   : > { %v3172_v19 = vld [vmem:[%s24481_s1 + $0x128] sm:$0xff] }
 0x41f   : > { %5784 = vmatmul.mubr.bf16.gmra.mrb[104].mxu1 %v15299_v52  ;;  %v3499_v52 = vld [vmem:[%s24481_s1 + $0xb60] sm:$0xff] }
 0x420   : > { %5791 = vmatprep.mubr.bf16.mxu1 %v15308_v2  ;;  %v15403_v2 = vcombine.low %v3487_v46, %v3491_v28  ;;  %v15412_v31 = vcombine.high %v3495_v7, %v3499_v52  ;;  %v24545_v46 = vld [vmem:[#allocation40_spill] sm:$0xff] }
 0x427   : > { %5792 = vmatmul.mubr.bf16.gmra.mrb[108].mxu1 %v15307_v62  ;;  %v3507_v62 = vld [vmem:[%s24481_s1 + $0xba0] sm:$0xff] }
 0x428   : > { %5799 = vmatprep.mubr.bf16.mxu1 %v15316_v58  ;;  %v15411_v58 = vcombine.low %v3495_v7, %v3499_v52  ;;  %v15420_v50 = vcombine.high %v3503_v39, %v3507_v62  ;;  %v24548_v7 = vld [vmem:[#allocation42_spill] sm:$0xff] }
 0x42f   : > { %5800 = vmatmul.mubr.bf16.gmra.mrb[112].mxu1 %v15315_v15  ;;  %v3515_v15 = vld [vmem:[%s24481_s1 + $0xbe0] sm:$0xff] }
 0x430   : > { %5807 = vmatprep.mubr.bf16.mxu1 %v15324_v49  ;;  %v15419_v49 = vcombine.low %v3503_v39, %v3507_v62  ;;  %v15428_v8 = vcombine.high %v3511_v36, %v3515_v15  ;;  %v15085_v39 = vcombine.low %v3168_v22, %v3172_v19  ;;  %v24550_v62 = vld [vmem:[#allocation45_spill] sm:$0xff] }
 0x437   : > { %5808 = vmatmul.mubr.bf16.gmra.mrb[116].mxu1 %v15323_v5  ;;  %v3140_v5 = vld [vmem:[%s24481_s1 + $0x28] sm:$0xff] }
 0x438   : > { %5815 = vmatprep.mubr.bf16.mxu1 %v15332_v37  ;;  %v15427_v37 = vcombine.low %v3511_v36, %v3515_v15  ;;  %v15054_v53 = vcombine.high %v3136_v16, %v3140_v5  ;;  %v24553_v15 = vld [vmem:[#allocation47_spill] sm:$0xff] }
 0x43f   : > { %5816 = vmatmul.mubr.bf16.gmra.mrb[120].mxu1 %v15331_v47  ;;  %v3148_v47 = vld [vmem:[%s24481_s1 + $0x68] sm:$0xff] }
 0x440   : > { %5823 = vmatprep.mubr.bf16.mxu1 %v15340_v56  ;;  %v15053_v56 = vcombine.low %v3136_v16, %v3140_v5  ;;  %v15062_v0 = vcombine.high %v3144_v38, %v3148_v47  ;;  %v3184_v16 = vld [vmem:[%s24481_s1 + $0x188] sm:$0xff] }
 0x441   : > { %v3188_v5 = vld [vmem:[%s24481_s1 + $0x1a8] sm:$0xff] }
 0x447   : > { %5824 = vmatmul.mubr.bf16.gmra.mrb[124].mxu1 %v15339_v60  ;;  %v24530_v60 = vld [vmem:[#allocation30_spill] sm:$0xff] }
 0x448   : > { %5831 = vmatprep.mubr.bf16.mxu1 %v15348_v26  ;;  %v24531_v26 = vpack.c.bf16 %v24529_v43, %v24530_v60  ;;  %v24560_v43 = vld [vmem:[#allocation50_spill] sm:$0xff] }
 0x44f   : > { %5832 = vmatmul.mubr.bf16.gmra.mrb[128].mxu1 %v15347_v32  ;;  %v15061_v32 = vcombine.low %v3144_v38, %v3148_v47  ;;  %v24557_v38 = vld [vmem:[#allocation48_spill] sm:$0xff] }
 0x450   : > { %5839 = vmatprep.mubr.bf16.mxu1 %v15356_v33  ;;  %v24532_v33 = vld [vmem:[#allocation33_spill] sm:$0xff] }
 0x451   : > { %v24534_v63 = vpack.c.bf16 %v24532_v33, %v24533_v55  ;;  %v24563_v33 = vld [vmem:[#allocation52_spill] sm:$0xff] }
 0x457   : > { %5840 = vmatmul.mubr.bf16.gmra.mrb[132].mxu1 %v15355_v23  ;;  %v15070_v23 = vcombine.high %v3152_v10, %v3156_v3  ;;  %v3196_v10 = vld [vmem:[%s24481_s1 + $0x1e8] sm:$0xff]  ;;  %v15101_v3 = vcombine.low %v3184_v16, %v3188_v5 }
 0x458   : > { %5847 = vmatprep.mubr.bf16.mxu1 %v15364_v41  ;;  %v24535_v41 = vld [vmem:[#allocation35_spill] sm:$0xff] }
 0x459   : > { %v24537_v48 = vpack.c.bf16 %v24535_v41, %v24536_v11  ;;  %v24566_v41 = vld [vmem:[#allocation54_spill] sm:$0xff] }
 0x45f   : > { %5848 = vmatmul.mubr.bf16.gmra.mrb[136].mxu1 %v15363_v9  ;;  %v3160_v9 = vld [vmem:[%s24481_s1 + $0xc8] sm:$0xff] }
 0x460   : > { %5855 = vmatprep.mubr.bf16.mxu1 %v15372_v20  ;;  %v3164_v20 = vld [vmem:[%s24481_s1 + $0xe8] sm:$0xff] }
 0x461   : > { %v15078_v30 = vcombine.high %v3160_v9, %v3164_v20 }
 0x467   : > { %5856 = vmatmul.mubr.bf16.gmra.mrb[140].mxu1 %v15371_v14  ;;  %v24539_v14 = vld [vmem:[#allocation36_spill] sm:$0xff] }
 0x468   : > { %5863 = vmatprep.mubr.bf16.mxu1 %v15380_v51  ;;  %v24540_v51 = vpack.c.bf16 %v24538_v59, %v24539_v14  ;;  %v24569_v59 = vld [vmem:[#allocation56_spill] sm:$0xff] }
 0x46f   : > { %5864 = vmatmul.mubr.bf16.gmra.mrb[144].mxu1 %v15379_v24  ;;  %v24542_v24 = vld [vmem:[#allocation38_spill] sm:$0xff] }
 0x470   : > { %5871 = vmatprep.mubr.bf16.mxu1 %v15388_v21  ;;  %v24543_v21 = vpack.c.bf16 %v24541_v54, %v24542_v24  ;;  %v24572_v54 = vld [vmem:[#allocation58_spill] sm:$0xff] }
 0x477   : > { %5872 = vmatmul.mubr.bf16.gmra.mrb[148].mxu1 %v15387_v17  ;;  %v15077_v17 = vcombine.low %v3160_v9, %v3164_v20  ;;  %v3204_v9 = vld [vmem:[%s24481_s1 + $0x228] sm:$0xff] }
 0x478   : > { %5879 = vmatprep.mubr.bf16.mxu1 %v15396_v4  ;;  %v24544_v4 = vld [vmem:[#allocation41_spill] sm:$0xff] }
 0x479   : > { %v24546_v28 = vpack.c.bf16 %v24544_v4, %v24545_v46  ;;  %v24575_v4 = vld [vmem:[#allocation60_spill] sm:$0xff] }
 0x47f   : > { %5880 = vmatmul.mubr.bf16.gmra.mrb[152].mxu1 %v15395_v45  ;;  %v15086_v45 = vcombine.high %v3168_v22, %v3172_v19  ;;  %v3212_v22 = vld [vmem:[%s24481_s1 + $0x268] sm:$0xff] }
 0x480   : > { %5887 = vmatprep.mubr.bf16.mxu1 %v15404_v61  ;;  %v24547_v61 = vld [vmem:[#allocation43_spill] sm:$0xff] }
 0x481   : > { %v24549_v52 = vpack.c.bf16 %v24547_v61, %v24548_v7  ;;  %v3220_v61 = vld [vmem:[%s24481_s1 + $0x2a8] sm:$0xff] }
 0x487   : > { %5888 = vmatmul.mubr.bf16.gmra.mrb[156].mxu1 %v15403_v2  ;;  %v3176_v2 = vld [vmem:[%s24481_s1 + $0x148] sm:$0xff] }
 0x488   : > { %5895 = vmatprep.mubr.bf16.mxu1 %v15412_v31  ;;  %v3180_v31 = vld [vmem:[%s24481_s1 + $0x168] sm:$0xff] }
 0x489   : > { %v15094_v36 = vcombine.high %v3176_v2, %v3180_v31 }
 0x48f   : > { %5896 = vmatmul.mubr.bf16.gmra.mrb[160].mxu1 %v15411_v58  ;;  %v24551_v58 = vld [vmem:[#allocation44_spill] sm:$0xff] }
 0x490   : > { %5903 = vmatprep.mubr.bf16.mxu1 %v15420_v50  ;;  %v24552_v50 = vpack.c.bf16 %v24550_v62, %v24551_v58  ;;  %v3232_v58 = vld [vmem:[%s24481_s1 + $0x308] sm:$0xff] }
 0x497   : > { %5904 = vmatmul.mubr.bf16.gmra.mrb[164].mxu1 %v15419_v49  ;;  %v24554_v49 = vld [vmem:[#allocation46_spill] sm:$0xff] }
 0x498   : > { %5911 = vmatprep.mubr.bf16.mxu1 %v15428_v8  ;;  %v24555_v8 = vpack.c.bf16 %v24553_v15, %v24554_v49  ;;  %v3240_v49 = vld [vmem:[%s24481_s1 + $0x348] sm:$0xff] }
 0x49f   : > { %5912 = vmatmul.mubr.bf16.gmra.mrb[168].mxu1 %v15427_v37  ;;  %v15093_v37 = vcombine.low %v3176_v2, %v3180_v31  ;;  %v3224_v2 = vld [vmem:[%s24481_s1 + $0x2c8] sm:$0xff] }
 0x4a0   : > { %5952 = vmatprep.mubr.bf16.mxu1 %v15054_v53  ;;  %v24556_v53 = vld [vmem:[#allocation49_spill] sm:$0xff]  ;;  %v3228_v31 = vld [vmem:[%s24481_s1 + $0x2e8] sm:$0xff] }
 0x4a1   : > { %v24558_v47 = vpack.c.bf16 %v24556_v53, %v24557_v38  ;;  %v15142_v62 = vcombine.high %v3224_v2, %v3228_v31  ;;  %v3252_v53 = vld [vmem:[%s24481_s1 + $0x3a8] sm:$0xff] }
 0x4a7   : > { %5953 = vmatmul.mubr.bf16.vlgmr.msra.gmra.mrb[172].mxu1 %v15053_v56  ;;  %v15102_v56 = vcombine.high %v3184_v16, %v3188_v5 }
 0x4a8   : > { %6338 = vmatpush1.bf16.msra.mxu1 %v24531_v26  ;;  %5960 = vmatprep.mubr.bf16.mxu1 %v15062_v0  ;;  %v24559_v0 = vld [vmem:[#allocation51_spill] sm:$0xff] }
 0x4a9   : > { %6339 = vmatprep.subr.bf16.mxu1 %v24483_v34  ;;  %v24561_v60 = vpack.c.bf16 %v24559_v0, %v24560_v43  ;;  %v3192_v26 = vld [vmem:[%s24481_s1 + $0x1c8] sm:$0xff] }
 0x4aa   : > { %v15109_v20 = vcombine.low %v3192_v26, %v3196_v10  ;;  %v3260_v0 = vld [vmem:[%s24481_s1 + $0x3e8] sm:$0xff] }
 0x4ac   : > { %6340 = vmatpush1.bf16.msra.mxu1 %v24534_v63  ;;  %v15110_v63 = vcombine.high %v3192_v26, %v3196_v10  ;;  %v3264_v26 = vld [vmem:[%s24481_s1 + $0x408] sm:$0xff] }
 0x4ad   : > { %6341 = vmatprep.subr.bf16.mxu1 %v24483_v34  ;;  %v3268_v10 = vld [vmem:[%s24481_s1 + $0x428] sm:$0xff] }
 0x4af   : > { %5961 = vmatmul.mubr.bf16.gmra.mrb[176].mxu1 %v15061_v32  ;;  %v24562_v32 = vld [vmem:[#allocation53_spill] sm:$0xff] }
 0x4b0   : > { %6342 = vmatpush1.bf16.msra.mxu1 %v24537_v48  ;;  %5968 = vmatprep.mubr.bf16.mxu1 %v15070_v23  ;;  %v24564_v55 = vpack.c.bf16 %v24562_v32, %v24563_v33  ;;  %v24565_v23 = vld [vmem:[#allocation55_spill] sm:$0xff]  ;;  %v15182_v32 = vcombine.high %v3264_v26, %v3268_v10 }
 0x4b1   : > { %6343 = vmatprep.subr.bf16.mxu1 %v24483_v34  ;;  %v24567_v11 = vpack.c.bf16 %v24565_v23, %v24566_v41  ;;  %v3200_v48 = vld [vmem:[%s24481_s1 + $0x208] sm:$0xff] }
 0x4b2   : > { %v15117_v19 = vcombine.low %v3200_v48, %v3204_v9  ;;  %v3272_v33 = vld [vmem:[%s24481_s1 + $0x448] sm:$0xff] }
 0x4b3   : > { %v3280_v41 = vld [vmem:[%s24481_s1 + $0x488] sm:$0xff] }
 0x4b4   : > { %6344 = vmatpush1.bf16.msra.mxu1 %v24540_v51  ;;  %v15118_v51 = vcombine.high %v3200_v48, %v3204_v9 }
 0x4b5   : > { %6345 = vmatprep.subr.bf16.mxu1 %v24483_v34 }
 0x4b7   : > { %5969 = vmatmul.mubr.bf16.gmra.mrb[180].mxu1 %v15069_v35  ;;  %v24568_v35 = vld [vmem:[#allocation57_spill] sm:$0xff] }
 0x4b8   : > { %6346 = vmatpush1.bf16.msra.mxu1 %v24543_v21  ;;  %5976 = vmatprep.mubr.bf16.mxu1 %v15078_v30  ;;  %v24570_v14 = vpack.c.bf16 %v24568_v35, %v24569_v59  ;;  %v24571_v30 = vld [vmem:[#allocation59_spill] sm:$0xff] }
 0x4b9   : > { %6347 = vmatprep.subr.bf16.mxu1 %v24483_v34  ;;  %v24573_v24 = vpack.c.bf16 %v24571_v30, %v24572_v54  ;;  %v3208_v21 = vld [vmem:[%s24481_s1 + $0x248] sm:$0xff] }
 0x4ba   : > { %v15125_v7 = vcombine.low %v3208_v21, %v3212_v22  ;;  %v3292_v35 = vld [vmem:[%s24481_s1 + $0x4e8] sm:$0xff] }
 0x4bb   : > { %v3300_v30 = vld [vmem:[%s24481_s1 + $0x528] sm:$0xff] }
 0x4bc   : > { %6348 = vmatpush1.bf16.msra.mxu1 %v24546_v28  ;;  %v15126_v28 = vcombine.high %v3208_v21, %v3212_v22  ;;  %v3304_v21 = vld [vmem:[%s24481_s1 + $0x548] sm:$0xff] }
 0x4bd   : > { %6349 = vmatprep.subr.bf16.mxu1 %v24483_v34  ;;  %v3308_v22 = vld [vmem:[%s24481_s1 + $0x568] sm:$0xff] }
 0x4bf   : > { %5977 = vmatmul.mubr.bf16.gmra.mrb[184].mxu1 %v15077_v17  ;;  %v24574_v17 = vld [vmem:[#allocation61_spill] sm:$0xff] }
 0x4c0   : > { %6350 = vmatpush1.bf16.msra.mxu1 %v24549_v52  ;;  %5984 = vmatprep.mubr.bf16.mxu1 %v15086_v45  ;;  %v24576_v46 = vpack.c.bf16 %v24574_v17, %v24575_v4  ;;  %v3216_v45 = vld [vmem:[%s24481_s1 + $0x288] sm:$0xff]  ;;  %v15222_v17 = vcombine.high %v3304_v21, %v3308_v22 }
 0x4c1   : > { %6351 = vmatprep.subr.bf16.mxu1 %v24483_v34  ;;  %v15134_v52 = vcombine.high %v3216_v45, %v3220_v61  ;;  %v3312_v4 = vld [vmem:[%s24481_s1 + $0x588] sm:$0xff] }
 0x4c4   : > { %6352 = vmatpush1.bf16.msra.mxu1 %v24552_v50  ;;  %v3236_v50 = vld [vmem:[%s24481_s1 + $0x328] sm:$0xff] }
 0x4c5   : > { %6353 = vmatprep.subr.bf16.mxu1 %v24483_v34  ;;  %v15150_v15 = vcombine.high %v3232_v58, %v3236_v50  ;;  %v15149_v16 = vcombine.low %v3232_v58, %v3236_v50  ;;  %v3336_v50 = vld [vmem:[%s24481_s1 + $0x648] sm:$0xff] }
 0x4c7   : > { %5985 = vmatmul.mubr.bf16.gmra.mrb[188].mxu1 %v15085_v39  ;;  %v15133_v39 = vcombine.low %v3216_v45, %v3220_v61  ;;  %v3320_v61 = vld [vmem:[%s24481_s1 + $0x5c8] sm:$0xff] }
 0x4c8   : > { %6354 = vmatpush1.bf16.msra.mxu1 %v24555_v8  ;;  %5992 = vmatprep.mubr.bf16.mxu1 %v15094_v36  ;;  %v15141_v36 = vcombine.low %v3224_v2, %v3228_v31  ;;  %v3244_v8 = vld [vmem:[%s24481_s1 + $0x368] sm:$0xff] }
 0x4c9   : > { %6355 = vmatprep.subr.bf16.mxu1 %v24483_v34  ;;  %v15158_v5 = vcombine.high %v3240_v49, %v3244_v8  ;;  %v15157_v38 = vcombine.low %v3240_v49, %v3244_v8  ;;  %v3328_v31 = vld [vmem:[%s24481_s1 + $0x608] sm:$0xff] }
 0x4ca   : > { %v3344_v8 = vld [vmem:[%s24481_s1 + $0x688] sm:$0xff] }
 0x4cc   : > { %6356 = vmatpush1.bf16.msra.mxu1 %v24558_v47 }
 0x4cd   : > { %6357 = vmatprep.subr.bf16.mxu1 %v24483_v34 }
 0x4cf   : > { %5993 = vmatmul.mubr.bf16.gmra.mrb[192].mxu1 %v15093_v37  ;;  %v3248_v37 = vld [vmem:[%s24481_s1 + $0x388] sm:$0xff] }
 0x4d0   : > { %6358 = vmatpush1.bf16.msra.mxu1 %v24561_v60  ;;  %6000 = vmatprep.mubr.bf16.mxu1 %v15102_v56  ;;  %v15166_v47 = vcombine.high %v3248_v37, %v3252_v53  ;;  %v3256_v56 = vld [vmem:[%s24481_s1 + $0x3c8] sm:$0xff]  ;;  %v15165_v43 = vcombine.low %v3248_v37, %v3252_v53 }
 0x4d1   : > { %6359 = vmatprep.subr.bf16.mxu1 %v24483_v34  ;;  %v15174_v60 = vcombine.high %v3256_v56, %v3260_v0  ;;  %v3352_v53 = vld [vmem:[%s24481_s1 + $0x6c8] sm:$0xff] }
 0x4d4   : > { %6360 = vmatpush1.bf16.msra.mxu1 %v24564_v55  ;;  %v3276_v55 = vld [vmem:[%s24481_s1 + $0x468] sm:$0xff] }
 0x4d5   : > { %6361 = vmatprep.subr.bf16.mxu1 %v24483_v34  ;;  %v15190_v23 = vcombine.high %v3272_v33, %v3276_v55  ;;  %v15189_v48 = vcombine.low %v3272_v33, %v3276_v55  ;;  %v3376_v55 = vld [vmem:[%s24481_s1 + $0x788] sm:$0xff] }
 0x4d7   : > { %6001 = vmatmul.mubr.bf16.gmra.mrb[196].mxu1 %v15101_v3  ;;  %v15173_v3 = vcombine.low %v3256_v56, %v3260_v0  ;;  %v3360_v0 = vld [vmem:[%s24481_s1 + $0x708] sm:$0xff] }
 0x4d8   : > { %6362 = vmatpush1.bf16.msra.mxu1 %v24567_v11  ;;  %6008 = vmatprep.mubr.bf16.mxu1 %v15110_v63  ;;  %v15181_v63 = vcombine.low %v3264_v26, %v3268_v10  ;;  %v3284_v11 = vld [vmem:[%s24481_s1 + $0x4a8] sm:$0xff] }
 0x4d9   : > { %6363 = vmatprep.subr.bf16.mxu1 %v24483_v34  ;;  %v15198_v9 = vcombine.high %v3280_v41, %v3284_v11  ;;  %v15197_v59 = vcombine.low %v3280_v41, %v3284_v11  ;;  %v3368_v10 = vld [vmem:[%s24481_s1 + $0x748] sm:$0xff] }
 0x4da   : > { %v3384_v11 = vld [vmem:[%s24481_s1 + $0x7c8] sm:$0xff] }
 0x4dc   : > { %6364 = vmatpush1.bf16.msra.mxu1 %v24570_v14 }
 0x4dd   : > { %6365 = vmatprep.subr.bf16.mxu1 %v24483_v34 }
 0x4df   : > { %6009 = vmatmul.mubr.bf16.gmra.mrb[200].mxu1 %v15109_v20  ;;  %v3288_v20 = vld [vmem:[%s24481_s1 + $0x4c8] sm:$0xff] }
 0x4e0   : > { %6366 = vmatpush1.bf16.msra.mxu1 %v24573_v24  ;;  %6016 = vmatprep.mubr.bf16.mxu1 %v15118_v51  ;;  %v15206_v14 = vcombine.high %v3288_v20, %v3292_v35  ;;  %v3296_v51 = vld [vmem:[%s24481_s1 + $0x508] sm:$0xff]  ;;  %v15205_v54 = vcombine.low %v3288_v20, %v3292_v35 }
 0x4e1   : > { %6367 = vmatprep.subr.bf16.mxu1 %v24483_v34  ;;  %v15214_v24 = vcombine.high %v3296_v51, %v3300_v30  ;;  %v3392_v35 = vld [vmem:[%s24481_s1 + $0x808] sm:$0xff] }
 0x4e4   : > { %6368 = vmatpush1.bf16.msra.mxu1 %v24576_v46  ;;  %v3316_v46 = vld [vmem:[%s24481_s1 + $0x5a8] sm:$0xff] }
 0x4e5   : > { %6754 = vmatprep.subr.bf16.mxu1 %v24483_v34  ;;  %v15230_v45 = vcombine.high %v3312_v4, %v3316_v46 }
 0x4e7   : > { %6017 = vmatmul.mubr.bf16.gmra.mrb[204].mxu1 %v15117_v19  ;;  %v15213_v19 = vcombine.low %v3296_v51, %v3300_v30  ;;  %v3400_v30 = vld [vmem:[%s24481_s1 + $0x848] sm:$0xff] }
 0x4e8   : > { %6024 = vmatprep.mubr.bf16.mxu1 %v15126_v28  ;;  %v15221_v28 = vcombine.low %v3304_v21, %v3308_v22  ;;  %v3408_v22 = vld [vmem:[%s24481_s1 + $0x888] sm:$0xff] }
 0x4ef   : > { %6025 = vmatmul.mubr.bf16.gmra.mrb[16].mxu1 %v15125_v7  ;;  %v3324_v7 = vld [vmem:[%s24481_s1 + $0x5e8] sm:$0xff] }
 0x4f0   : > { %6032 = vmatprep.mubr.bf16.mxu1 %v15134_v52  ;;  %v15229_v52 = vcombine.low %v3312_v4, %v3316_v46  ;;  %v15238_v2 = vcombine.high %v3320_v61, %v3324_v7  ;;  %v3416_v46 = vld [vmem:[%s24481_s1 + $0x8c8] sm:$0xff] }
 0x4f7   : > { %6033 = vmatmul.mubr.bf16.gmra.mrb[20].mxu1 %v15133_v39  ;;  %v3332_v39 = vld [vmem:[%s24481_s1 + $0x628] sm:$0xff] }
 0x4f8   : > { %6040 = vmatprep.mubr.bf16.mxu1 %v15142_v62  ;;  %v15237_v62 = vcombine.low %v3320_v61, %v3324_v7  ;;  %v15246_v58 = vcombine.high %v3328_v31, %v3332_v39  ;;  %v3424_v7 = vld [vmem:[%s24481_s1 + $0x908] sm:$0xff] }
 0x4ff   : > { %6041 = vmatmul.mubr.bf16.gmra.mrb[24].mxu1 %v15141_v36  ;;  %v3340_v36 = vld [vmem:[%s24481_s1 + $0x668] sm:$0xff] }
 0x500   : > { %6048 = vmatprep.mubr.bf16.mxu1 %v15150_v15  ;;  %v15245_v15 = vcombine.low %v3328_v31, %v3332_v39  ;;  %v15254_v49 = vcombine.high %v3336_v50, %v3340_v36  ;;  %v3432_v39 = vld [vmem:[%s24481_s1 + $0x948] sm:$0xff] }
 0x507   : > { %6049 = vmatmul.mubr.bf16.gmra.mrb[28].mxu1 %v15149_v16  ;;  %v3348_v16 = vld [vmem:[%s24481_s1 + $0x6a8] sm:$0xff] }
 0x508   : > { %6056 = vmatprep.mubr.bf16.mxu1 %v15158_v5  ;;  %v15253_v5 = vcombine.low %v3336_v50, %v3340_v36  ;;  %v15262_v37 = vcombine.high %v3344_v8, %v3348_v16  ;;  %v3440_v36 = vld [vmem:[%s24481_s1 + $0x988] sm:$0xff] }
 0x50f   : > { %6057 = vmatmul.mubr.bf16.gmra.mrb[32].mxu1 %v15157_v38  ;;  %v3356_v38 = vld [vmem:[%s24481_s1 + $0x6e8] sm:$0xff] }
 0x510   : > { %6064 = vmatprep.mubr.bf16.mxu1 %v15166_v47  ;;  %v15261_v47 = vcombine.low %v3344_v8, %v3348_v16  ;;  %v15270_v56 = vcombine.high %v3352_v53, %v3356_v38  ;;  %v3448_v16 = vld [vmem:[%s24481_s1 + $0x9c8] sm:$0xff] }
 0x517   : > { %6065 = vmatmul.mubr.bf16.gmra.mrb[36].mxu1 %v15165_v43  ;;  %v3364_v43 = vld [vmem:[%s24481_s1 + $0x728] sm:$0xff] }
 0x518   : > { %6072 = vmatprep.mubr.bf16.mxu1 %v15174_v60  ;;  %v15269_v60 = vcombine.low %v3352_v53, %v3356_v38  ;;  %v15278_v26 = vcombine.high %v3360_v0, %v3364_v43  ;;  %v3456_v38 = vld [vmem:[%s24481_s1 + $0xa08] sm:$0xff] }
 0x51f   : > { %6073 = vmatmul.mubr.bf16.gmra.mrb[40].mxu1 %v15173_v3  ;;  %v3372_v3 = vld [vmem:[%s24481_s1 + $0x768] sm:$0xff] }
 0x520   : > { %6080 = vmatprep.mubr.bf16.mxu1 %v15182_v32  ;;  %v15277_v32 = vcombine.low %v3360_v0, %v3364_v43  ;;  %v15286_v33 = vcombine.high %v3368_v10, %v3372_v3  ;;  %v3464_v43 = vld [vmem:[%s24481_s1 + $0xa48] sm:$0xff] }
 0x527   : > { %6081 = vmatmul.mubr.bf16.gmra.mrb[44].mxu1 %v15181_v63  ;;  %v3380_v63 = vld [vmem:[%s24481_s1 + $0x7a8] sm:$0xff] }
 0x528   : > { %6088 = vmatprep.mubr.bf16.mxu1 %v15190_v23  ;;  %v15285_v23 = vcombine.low %v3368_v10, %v3372_v3  ;;  %v15294_v41 = vcombine.high %v3376_v55, %v3380_v63  ;;  %v3472_v3 = vld [vmem:[%s24481_s1 + $0xa88] sm:$0xff] }
 0x52f   : > { %6089 = vmatmul.mubr.bf16.gmra.mrb[48].mxu1 %v15189_v48  ;;  %v3388_v48 = vld [vmem:[%s24481_s1 + $0x7e8] sm:$0xff] }
 0x530   : > { %6096 = vmatprep.mubr.bf16.mxu1 %v15198_v9  ;;  %v15293_v9 = vcombine.low %v3376_v55, %v3380_v63  ;;  %v15302_v20 = vcombine.high %v3384_v11, %v3388_v48  ;;  %v3480_v63 = vld [vmem:[%s24481_s1 + $0xac8] sm:$0xff] }
 0x537   : > { %6097 = vmatmul.mubr.bf16.gmra.mrb[52].mxu1 %v15197_v59  ;;  %v3396_v59 = vld [vmem:[%s24481_s1 + $0x828] sm:$0xff] }
 0x538   : > { %6104 = vmatprep.mubr.bf16.mxu1 %v15206_v14  ;;  %v15301_v14 = vcombine.low %v3384_v11, %v3388_v48  ;;  %v15310_v51 = vcombine.high %v3392_v35, %v3396_v59  ;;  %v3488_v48 = vld [vmem:[%s24481_s1 + $0xb08] sm:$0xff] }
 0x53f   : > { %6105 = vmatmul.mubr.bf16.gmra.mrb[56].mxu1 %v15205_v54  ;;  %v3404_v54 = vld [vmem:[%s24481_s1 + $0x868] sm:$0xff] }
 0x540   : > { %6112 = vmatprep.mubr.bf16.mxu1 %v15214_v24  ;;  %v15309_v24 = vcombine.low %v3392_v35, %v3396_v59  ;;  %v15318_v21 = vcombine.high %v3400_v30, %v3404_v54  ;;  %v3496_v59 = vld [vmem:[%s24481_s1 + $0xb48] sm:$0xff] }
 0x547   : > { %6113 = vmatmul.mubr.bf16.gmra.mrb[60].mxu1 %v15213_v19  ;;  %v3412_v19 = vld [vmem:[%s24481_s1 + $0x8a8] sm:$0xff] }
 0x548   : > { %6120 = vmatprep.mubr.bf16.mxu1 %v15222_v17  ;;  %v15317_v17 = vcombine.low %v3400_v30, %v3404_v54  ;;  %v15326_v4 = vcombine.high %v3408_v22, %v3412_v19  ;;  %v3504_v54 = vld [vmem:[%s24481_s1 + $0xb88] sm:$0xff] }
 0x54f   : > { %6121 = vmatmul.mubr.bf16.gmra.mrb[64].mxu1 %v15221_v28  ;;  %v3420_v28 = vld [vmem:[%s24481_s1 + $0x8e8] sm:$0xff] }
 0x550   : > { %6128 = vmatprep.mubr.bf16.mxu1 %v15230_v45  ;;  %v15325_v45 = vcombine.low %v3408_v22, %v3412_v19  ;;  %v15334_v61 = vcombine.high %v3416_v46, %v3420_v28  ;;  %v3512_v19 = vld [vmem:[%s24481_s1 + $0xbc8] sm:$0xff] }
 0x557   : > { %6129 = vmatmul.mubr.bf16.gmra.mrb[68].mxu1 %v15229_v52  ;;  %v3428_v52 = vld [vmem:[%s24481_s1 + $0x928] sm:$0xff] }
 0x558   : > { %6136 = vmatprep.mubr.bf16.mxu1 %v15238_v2  ;;  %v15333_v2 = vcombine.low %v3416_v46, %v3420_v28  ;;  %v15342_v31 = vcombine.high %v3424_v7, %v3428_v52  ;;  %v3137_v28 = vld [vmem:[%s24481_s1 + $0x10] sm:$0xff] }
 0x55f   : > { %6137 = vmatmul.mubr.bf16.gmra.mrb[72].mxu1 %v15237_v62  ;;  %v3436_v62 = vld [vmem:[%s24481_s1 + $0x968] sm:$0xff] }
 0x560   : > { %6144 = vmatprep.mubr.bf16.mxu1 %v15246_v58  ;;  %v15341_v58 = vcombine.low %v3424_v7, %v3428_v52  ;;  %v15350_v50 = vcombine.high %v3432_v39, %v3436_v62  ;;  %v3145_v52 = vld [vmem:[%s24481_s1 + $0x50] sm:$0xff] }
 0x567   : > { %6145 = vmatmul.mubr.bf16.gmra.mrb[76].mxu1 %v15245_v15  ;;  %v3444_v15 = vld [vmem:[%s24481_s1 + $0x9a8] sm:$0xff] }
 0x568   : > { %6152 = vmatprep.mubr.bf16.mxu1 %v15254_v49  ;;  %v15349_v49 = vcombine.low %v3432_v39, %v3436_v62  ;;  %v15358_v8 = vcombine.high %v3440_v36, %v3444_v15  ;;  %v24577_v62 = vld [vmem:[#allocation63_spill] sm:$0xff] }
 0x56f   : > { %6153 = vmatmul.mubr.bf16.gmra.mrb[80].mxu1 %v15253_v5  ;;  %v3452_v5 = vld [vmem:[%s24481_s1 + $0x9e8] sm:$0xff] }
 0x570   : > { %6160 = vmatprep.mubr.bf16.mxu1 %v15262_v37  ;;  %v15357_v37 = vcombine.low %v3440_v36, %v3444_v15  ;;  %v15366_v53 = vcombine.high %v3448_v16, %v3452_v5  ;;  %v3153_v36 = vld [vmem:[%s24481_s1 + $0x90] sm:$0xff] }
 0x571   : > { %v3157_v15 = vld [vmem:[%s24481_s1 + $0xb0] sm:$0xff] }
 0x577   : > { %6161 = vmatmul.mubr.bf16.gmra.mrb[84].mxu1 %v15261_v47  ;;  %v3460_v47 = vld [vmem:[%s24481_s1 + $0xa28] sm:$0xff] }
 0x578   : > { %6168 = vmatprep.mubr.bf16.mxu1 %v15270_v56  ;;  %v15365_v56 = vcombine.low %v3448_v16, %v3452_v5  ;;  %v15374_v0 = vcombine.high %v3456_v38, %v3460_v47  ;;  %v24581_v16 = vld [vmem:[#allocation64_spill] sm:$0xff] }
 0x57f   : > { %6169 = vmatmul.mubr.bf16.gmra.mrb[88].mxu1 %v15269_v60  ;;  %v3468_v60 = vld [vmem:[%s24481_s1 + $0xa68] sm:$0xff] }
 0x580   : > { %6176 = vmatprep.mubr.bf16.mxu1 %v15278_v26  ;;  %v15373_v26 = vcombine.low %v3456_v38, %v3460_v47  ;;  %v15382_v10 = vcombine.high %v3464_v43, %v3468_v60  ;;  %v24584_v38 = vld [vmem:[#allocation66_spill] sm:$0xff] }
 0x587   : > { %6177 = vmatmul.mubr.bf16.gmra.mrb[92].mxu1 %v15277_v32  ;;  %v3476_v32 = vld [vmem:[%s24481_s1 + $0xaa8] sm:$0xff] }
 0x588   : > { %6184 = vmatprep.mubr.bf16.mxu1 %v15286_v33  ;;  %v15381_v33 = vcombine.low %v3464_v43, %v3468_v60  ;;  %v15390_v55 = vcombine.high %v3472_v3, %v3476_v32  ;;  %v15071_v43 = vcombine.low %v3153_v36, %v3157_v15  ;;  %v24586_v60 = vld [vmem:[#allocation69_spill] sm:$0xff] }
 0x58f   : > { %6185 = vmatmul.mubr.bf16.gmra.mrb[96].mxu1 %v15285_v23  ;;  %v3484_v23 = vld [vmem:[%s24481_s1 + $0xae8] sm:$0xff] }
 0x590   : > { %6192 = vmatprep.mubr.bf16.mxu1 %v15294_v41  ;;  %v15389_v41 = vcombine.low %v3472_v3, %v3476_v32  ;;  %v15398_v11 = vcombine.high %v3480_v63, %v3484_v23  ;;  %v24589_v32 = vld [vmem:[#allocation71_spill] sm:$0xff] }
 0x597   : > { %6193 = vmatmul.mubr.bf16.gmra.mrb[100].mxu1 %v15293_v9  ;;  %v3492_v9 = vld [vmem:[%s24481_s1 + $0xb28] sm:$0xff] }
 0x598   : > { %6200 = vmatprep.mubr.bf16.mxu1 %v15302_v20  ;;  %v15397_v20 = vcombine.low %v3480_v63, %v3484_v23  ;;  %v15406_v35 = vcombine.high %v3488_v48, %v3492_v9  ;;  %v3169_v63 = vld [vmem:[%s24481_s1 + $0x110] sm:$0xff] }
 0x599   : > { %v3173_v23 = vld [vmem:[%s24481_s1 + $0x130] sm:$0xff] }
 0x59f   : > { %6201 = vmatmul.mubr.bf16.gmra.mrb[104].mxu1 %v15301_v14  ;;  %v3500_v14 = vld [vmem:[%s24481_s1 + $0xb68] sm:$0xff] }
 0x5a0   : > { %6208 = vmatprep.mubr.bf16.mxu1 %v15310_v51  ;;  %v15405_v51 = vcombine.low %v3488_v48, %v3492_v9  ;;  %v15414_v30 = vcombine.high %v3496_v59, %v3500_v14  ;;  %v15088_v48 = vcombine.high %v3169_v63, %v3173_v23  ;;  %v24593_v9 = vpack.c.bf16 %v19273_v1, %v19268_v57  ;;  %v24596_v57 = vld [vmem:[#allocation74_spill] sm:$0xff]  ;;  %v24597_v1 = vld [vmem:[#allocation73_spill] sm:$0xff] }
 0x5a7   : > { %6209 = vmatmul.mubr.bf16.gmra.mrb[108].mxu1 %v15309_v24  ;;  %v3508_v24 = vld [vmem:[%s24481_s1 + $0xba8] sm:$0xff] }
 0x5a8   : > { %6216 = vmatprep.mubr.bf16.mxu1 %v15318_v21  ;;  %v15413_v21 = vcombine.low %v3496_v59, %v3500_v14  ;;  %v15422_v22 = vcombine.high %v3504_v54, %v3508_v24 }
 0x5af   : > { %6217 = vmatmul.mubr.bf16.gmra.mrb[112].mxu1 %v15317_v17  ;;  %v3516_v17 = vld [vmem:[%s24481_s1 + $0xbe8] sm:$0xff] }
 0x5b0   : > { %6224 = vmatprep.mubr.bf16.mxu1 %v15326_v4  ;;  %v15421_v4 = vcombine.low %v3504_v54, %v3508_v24  ;;  %v15430_v46 = vcombine.high %v3512_v19, %v3516_v17  ;;  %v24599_v24 = vld [vmem:[#allocation76_spill] sm:$0xff] }
 0x5b7   : > { %6225 = vmatmul.mubr.bf16.gmra.mrb[116].mxu1 %v15325_v45  ;;  %v3141_v45 = vld [vmem:[%s24481_s1 + $0x30] sm:$0xff] }
 0x5b8   : > { %6232 = vmatprep.mubr.bf16.mxu1 %v15334_v61  ;;  %v15429_v61 = vcombine.low %v3512_v19, %v3516_v17  ;;  %v15056_v7 = vcombine.high %v3137_v28, %v3141_v45  ;;  %v24602_v17 = vld [vmem:[#allocation78_spill] sm:$0xff] }
 0x5bf   : > { %6233 = vmatmul.mubr.bf16.gmra.mrb[120].mxu1 %v15333_v2  ;;  %v3149_v2 = vld [vmem:[%s24481_s1 + $0x70] sm:$0xff] }
 0x5c0   : > { %6240 = vmatprep.mubr.bf16.mxu1 %v15342_v31  ;;  %v15055_v31 = vcombine.low %v3137_v28, %v3141_v45  ;;  %v15064_v39 = vcombine.high %v3145_v52, %v3149_v2  ;;  %v3193_v28 = vld [vmem:[%s24481_s1 + $0x1d0] sm:$0xff] }
 0x5c1   : > { %v3197_v45 = vld [vmem:[%s24481_s1 + $0x1f0] sm:$0xff] }
 0x5c7   : > { %6241 = vmatmul.mubr.bf16.gmra.mrb[124].mxu1 %v15341_v58  ;;  %v24578_v58 = vld [vmem:[#allocation62_spill] sm:$0xff] }
 0x5c8   : > { %6248 = vmatprep.mubr.bf16.mxu1 %v15350_v50  ;;  %v24579_v50 = vpack.c.bf16 %v24577_v62, %v24578_v58 }
 0x5cf   : > { %6249 = vmatmul.mubr.bf16.gmra.mrb[128].mxu1 %v15349_v49  ;;  %v15063_v49 = vcombine.low %v3145_v52, %v3149_v2  ;;  %v3201_v52 = vld [vmem:[%s24481_s1 + $0x210] sm:$0xff] }
 0x5d0   : > { %6256 = vmatprep.mubr.bf16.mxu1 %v15358_v8  ;;  %v24580_v8 = vld [vmem:[#allocation65_spill] sm:$0xff]  ;;  %v3205_v2 = vld [vmem:[%s24481_s1 + $0x230] sm:$0xff] }
 0x5d1   : > { %v24582_v5 = vpack.c.bf16 %v24580_v8, %v24581_v16  ;;  %v15120_v12 = vcombine.high %v3201_v52, %v3205_v2  ;;  %v3237_v8 = vld [vmem:[%s24481_s1 + $0x330] sm:$0xff] }
 0x5d7   : > { %6257 = vmatmul.mubr.bf16.gmra.mrb[132].mxu1 %v15357_v37  ;;  %v15072_v37 = vcombine.high %v3153_v36, %v3157_v15 }
 0x5d8   : > { %6264 = vmatprep.mubr.bf16.mxu1 %v15366_v53  ;;  %v24583_v53 = vld [vmem:[#allocation67_spill] sm:$0xff] }
 0x5d9   : > { %v24585_v47 = vpack.c.bf16 %v24583_v53, %v24584_v38  ;;  %v3245_v53 = vld [vmem:[%s24481_s1 + $0x370] sm:$0xff] }
 0x5df   : > { %6265 = vmatmul.mubr.bf16.gmra.mrb[136].mxu1 %v15365_v56  ;;  %v3161_v56 = vld [vmem:[%s24481_s1 + $0xd0] sm:$0xff] }
 0x5e0   : > { %6272 = vmatprep.mubr.bf16.mxu1 %v15374_v0  ;;  %v3165_v0 = vld [vmem:[%s24481_s1 + $0xf0] sm:$0xff] }
 0x5e1   : > { %v15080_v3 = vcombine.high %v3161_v56, %v3165_v0 }
 0x5e7   : > { %6273 = vmatmul.mubr.bf16.gmra.mrb[140].mxu1 %v15373_v26  ;;  %v24587_v26 = vld [vmem:[#allocation68_spill] sm:$0xff] }
 0x5e8   : > { %6280 = vmatprep.mubr.bf16.mxu1 %v15382_v10  ;;  %v24588_v10 = vpack.c.bf16 %v24586_v60, %v24587_v26  ;;  %v3257_v26 = vld [vmem:[%s24481_s1 + $0x3d0] sm:$0xff] }
 0x5ef   : > { %6281 = vmatmul.mubr.bf16.gmra.mrb[144].mxu1 %v15381_v33  ;;  %v24590_v33 = vld [vmem:[#allocation70_spill] sm:$0xff] }
 0x5f0   : > { %6288 = vmatprep.mubr.bf16.mxu1 %v15390_v55  ;;  %v24591_v55 = vpack.c.bf16 %v24589_v32, %v24590_v33  ;;  %v3265_v33 = vld [vmem:[%s24481_s1 + $0x410] sm:$0xff] }
 0x5f7   : > { %6289 = vmatmul.mubr.bf16.gmra.mrb[148].mxu1 %v15389_v41  ;;  %v15079_v41 = vcombine.low %v3161_v56, %v3165_v0  ;;  %v3249_v56 = vld [vmem:[%s24481_s1 + $0x390] sm:$0xff] }
 0x5f8   : > { %6296 = vmatprep.mubr.bf16.mxu1 %v15398_v11  ;;  %v24592_v11 = vpack.c.bf16 %v19250_v40, %v19245_v27  ;;  %v3181_v27 = vld [vmem:[%s24481_s1 + $0x170] sm:$0xff]  ;;  %v15087_v40 = vcombine.low %v3169_v63, %v3173_v23 }
 0x5f9   : > { %v3253_v0 = vld [vmem:[%s24481_s1 + $0x3b0] sm:$0xff] }
 0x5fa   : > { %v15168_v60 = vcombine.high %v3249_v56, %v3253_v0 }
 0x5ff   : > { %6297 = vmatmul.mubr.bf16.gmra.mrb[152].mxu1 %v15397_v20  ;;  %v3177_v20 = vld [vmem:[%s24481_s1 + $0x150] sm:$0xff] }
 0x600   : > { %6304 = vmatprep.mubr.bf16.mxu1 %v15406_v35  ;;  %v24594_v35 = vld [vmem:[#allocation72_spill] sm:$0xff]  ;;  %v15096_v14 = vcombine.high %v3177_v20, %v3181_v27  ;;  %v15095_v54 = vcombine.low %v3177_v20, %v3181_v27 }
 0x601   : > { %v24595_v59 = vpack.c.bf16 %v19296_v25, %v24594_v35  ;;  %v3189_v25 = vld [vmem:[%s24481_s1 + $0x1b0] sm:$0xff] }
 0x602   : > { %v3281_v20 = vld [vmem:[%s24481_s1 + $0x490] sm:$0xff] }
 0x603   : > { %v3285_v27 = vld [vmem:[%s24481_s1 + $0x4b0] sm:$0xff] }
 0x604   : > { %v15200_v35 = vcombine.high %v3281_v20, %v3285_v27 }
 0x607   : > { %6305 = vmatmul.mubr.bf16.gmra.mrb[156].mxu1 %v15405_v51  ;;  %v24598_v51 = vpack.c.bf16 %v24596_v57, %v24597_v1  ;;  %v15199_v57 = vcombine.low %v3281_v20, %v3285_v27  ;;  %v3401_v27 = vld [vmem:[%s24481_s1 + $0x850] sm:$0xff] }
 0x608   : > { %6312 = vmatprep.mubr.bf16.mxu1 %v15414_v30  ;;  %v3185_v30 = vld [vmem:[%s24481_s1 + $0x190] sm:$0xff] }
 0x609   : > { %v15104_v19 = vcombine.high %v3185_v30, %v3189_v25 }
 0x60f   : > { %6313 = vmatmul.mubr.bf16.gmra.mrb[160].mxu1 %v15413_v21  ;;  %v24600_v21 = vld [vmem:[#allocation75_spill] sm:$0xff] }
 0x610   : > { %6320 = vmatprep.mubr.bf16.mxu1 %v15422_v22  ;;  %v24601_v22 = vpack.c.bf16 %v24599_v24, %v24600_v21  ;;  %v3305_v24 = vld [vmem:[%s24481_s1 + $0x550] sm:$0xff] }
 0x611   : > { %v3309_v21 = vld [vmem:[%s24481_s1 + $0x570] sm:$0xff] }
 0x617   : > { %6321 = vmatmul.mubr.bf16.gmra.mrb[164].mxu1 %v15421_v4  ;;  %v24603_v4 = vld [vmem:[#allocation77_spill] sm:$0xff] }
 0x618   : > { %6328 = vmatprep.mubr.bf16.mxu1 %v15430_v46  ;;  %v24604_v46 = vpack.c.bf16 %v24602_v17, %v24603_v4  ;;  %v3313_v17 = vld [vmem:[%s24481_s1 + $0x590] sm:$0xff] }
 0x619   : > { %v3317_v4 = vld [vmem:[%s24481_s1 + $0x5b0] sm:$0xff] }
 0x61f   : > { %6329 = vmatmul.mubr.bf16.gmra.mrb[168].mxu1 %v15429_v61  ;;  %v15103_v61 = vcombine.low %v3185_v30, %v3189_v25  ;;  %v3301_v30 = vld [vmem:[%s24481_s1 + $0x530] sm:$0xff] }
 0x620   : > { %6369 = vmatprep.mubr.bf16.mxu1 %v15056_v7  ;;  %v15112_v7 = vcombine.high %v3193_v28, %v3197_v45 }
 0x627   : > { %6370 = vmatmul.mubr.bf16.vlgmr.msra.gmra.mrb[172].mxu1 %v15055_v31  ;;  %v15111_v31 = vcombine.low %v3193_v28, %v3197_v45  ;;  %v15232_v28 = vcombine.high %v3313_v17, %v3317_v4  ;;  %v3321_v45 = vld [vmem:[%s24481_s1 + $0x5d0] sm:$0xff] }
 0x628   : > { %6755 = vmatpush1.bf16.msra.mxu1 %v24579_v50  ;;  %6377 = vmatprep.mubr.bf16.mxu1 %v15064_v39  ;;  %v3221_v39 = vld [vmem:[%s24481_s1 + $0x2b0] sm:$0xff] }
 0x629   : > { %6756 = vmatprep.subr.bf16.mxu1 %v24483_v34  ;;  %v3225_v50 = vld [vmem:[%s24481_s1 + $0x2d0] sm:$0xff] }
 0x62c   : > { %6757 = vmatpush1.bf16.msra.mxu1 %v24582_v5 }
 0x62d   : > { %6758 = vmatprep.subr.bf16.mxu1 %v24483_v34 }
 0x62f   : > { %6378 = vmatmul.mubr.bf16.gmra.mrb[176].mxu1 %v15063_v49  ;;  %v3233_v49 = vld [vmem:[%s24481_s1 + $0x310] sm:$0xff] }
 0x630   : > { %6759 = vmatpush1.bf16.msra.mxu1 %v24585_v47  ;;  %6385 = vmatprep.mubr.bf16.mxu1 %v15072_v37  ;;  %v15152_v5 = vcombine.high %v3233_v49, %v3237_v8  ;;  %v3241_v37 = vld [vmem:[%s24481_s1 + $0x350] sm:$0xff]  ;;  %v15151_v38 = vcombine.low %v3233_v49, %v3237_v8 }
 0x631   : > { %6760 = vmatprep.subr.bf16.mxu1 %v24483_v34  ;;  %v15160_v47 = vcombine.high %v3241_v37, %v3245_v53  ;;  %v3361_v8 = vld [vmem:[%s24481_s1 + $0x710] sm:$0xff] }
 0x634   : > { %6761 = vmatpush1.bf16.msra.mxu1 %v24588_v10  ;;  %v3261_v10 = vld [vmem:[%s24481_s1 + $0x3f0] sm:$0xff] }
 0x635   : > { %6762 = vmatprep.subr.bf16.mxu1 %v24483_v34  ;;  %v15176_v32 = vcombine.high %v3257_v26, %v3261_v10  ;;  %v15175_v63 = vcombine.low %v3257_v26, %v3261_v10  ;;  %v3385_v10 = vld [vmem:[%s24481_s1 + $0x7d0] sm:$0xff] }
 0x637   : > { %6386 = vmatmul.mubr.bf16.gmra.mrb[180].mxu1 %v15071_v43  ;;  %v15159_v43 = vcombine.low %v3241_v37, %v3245_v53  ;;  %v3369_v53 = vld [vmem:[%s24481_s1 + $0x750] sm:$0xff] }
 0x638   : > { %6763 = vmatpush1.bf16.msra.mxu1 %v24591_v55  ;;  %6393 = vmatprep.mubr.bf16.mxu1 %v15080_v3  ;;  %v15167_v3 = vcombine.low %v3249_v56, %v3253_v0  ;;  %v3269_v55 = vld [vmem:[%s24481_s1 + $0x430] sm:$0xff] }
 0x639   : > { %6764 = vmatprep.subr.bf16.mxu1 %v24483_v34  ;;  %v15184_v23 = vcombine.high %v3265_v33, %v3269_v55  ;;  %v3377_v0 = vld [vmem:[%s24481_s1 + $0x790] sm:$0xff] }
 0x63c   : > { %6765 = vmatpush1.bf16.msra.mxu1 %v24592_v11  ;;  %v3277_v11 = vld [vmem:[%s24481_s1 + $0x470] sm:$0xff] }
 0x63d   : > { %6766 = vmatprep.subr.bf16.mxu1 %v24483_v34 }
 0x63f   : > { %6394 = vmatmul.mubr.bf16.gmra.mrb[184].mxu1 %v15079_v41  ;;  %v3273_v41 = vld [vmem:[%s24481_s1 + $0x450] sm:$0xff] }
 0x640   : > { %6767 = vmatpush1.bf16.msra.mxu1 %v24593_v9  ;;  %6401 = vmatprep.mubr.bf16.mxu1 %v15088_v48  ;;  %v15183_v48 = vcombine.low %v3265_v33, %v3269_v55  ;;  %v15192_v9 = vcombine.high %v3273_v41, %v3277_v11  ;;  %v3393_v55 = vld [vmem:[%s24481_s1 + $0x810] sm:$0xff] }
 0x641   : > { %6768 = vmatprep.subr.bf16.mxu1 %v24483_v34 }
 0x644   : > { %6769 = vmatpush1.bf16.msra.mxu1 %v24595_v59  ;;  %v3289_v59 = vld [vmem:[%s24481_s1 + $0x4d0] sm:$0xff] }
 0x645   : > { %6770 = vmatprep.subr.bf16.mxu1 %v24483_v34 }
 0x647   : > { %6402 = vmatmul.mubr.bf16.gmra.mrb[188].mxu1 %v15087_v40  ;;  %v15191_v40 = vcombine.low %v3273_v41, %v3277_v11  ;;  %v3135_v11 = vld [vmem:[%s24481_s1] sm:$0xff] }
 0x648   : > { %6771 = vmatpush1.bf16.msra.mxu1 %v24598_v51  ;;  %6409 = vmatprep.mubr.bf16.mxu1 %v15096_v14  ;;  %v3293_v14 = vld [vmem:[%s24481_s1 + $0x4f0] sm:$0xff] }
 0x649   : > { %6772 = vmatprep.subr.bf16.mxu1 %v24483_v34  ;;  %v15208_v1 = vcombine.high %v3289_v59, %v3293_v14  ;;  %v3297_v51 = vld [vmem:[%s24481_s1 + $0x510] sm:$0xff]  ;;  %v15207_v25 = vcombine.low %v3289_v59, %v3293_v14  ;;  %v3143_v14 = vld [vmem:[%s24481_s1 + $0x40] sm:$0xff] }
 0x64c   : > { %6773 = vmatpush1.bf16.msra.mxu1 %v24601_v22  ;;  %v15215_v22 = vcombine.low %v3297_v51, %v3301_v30 }
 0x64d   : > { %6774 = vmatprep.subr.bf16.mxu1 %v24483_v34 }
 0x64f   : > { %6410 = vmatmul.mubr.bf16.gmra.mrb[192].mxu1 %v15095_v54  ;;  %v15216_v54 = vcombine.high %v3297_v51, %v3301_v30  ;;  %v3409_v30 = vld [vmem:[%s24481_s1 + $0x890] sm:$0xff] }
 0x650   : > { %6775 = vmatpush1.bf16.msra.mxu1 %v24604_v46  ;;  %6417 = vmatprep.mubr.bf16.mxu1 %v15104_v19  ;;  %v15224_v19 = vcombine.high %v3305_v24, %v3309_v21  ;;  %v15223_v46 = vcombine.low %v3305_v24, %v3309_v21  ;;  %v3151_v21 = vld [vmem:[%s24481_s1 + $0x80] sm:$0xff] }
 0x651   : > { %6776 = vmatprep.subr.bf16.mxu1 %v24483_v34 }
 0x654   : > { %6777 = vmatpush1.bf16.msra.mxu1 %v3578_v42  ;;  %v3213_v42 = vld [vmem:[%s24481_s1 + $0x270] sm:$0xff] }
 0x655   : > { %6778 = vmatprep.subr.bf16.mxu1 %v24483_v34  ;;  %v15127_v62 = vcombine.low %v3209_v44, %v3213_v42 }
 0x657   : > { %6418 = vmatmul.mubr.bf16.gmra.mrb[196].mxu1 %v15103_v61  ;;  %v3325_v61 = vld [vmem:[%s24481_s1 + $0x5f0] sm:$0xff] }
 0x658   : > { %6779 = vmatpush1.bf16.msra.mxu1 %v19416_v13  ;;  %6425 = vmatprep.mubr.bf16.mxu1 %v15112_v7  ;;  %v15119_v13 = vcombine.low %v3201_v52, %v3205_v2  ;;  %v15231_v7 = vcombine.low %v3313_v17, %v3317_v4  ;;  %v15240_v52 = vcombine.high %v3321_v45, %v3325_v61  ;;  %v3329_v2 = vld [vmem:[%s24481_s1 + $0x610] sm:$0xff] }
 0x659   : > { %6780 = vmatprep.subr.bf16.mxu1 %v24483_v34  ;;  %v3417_v4 = vld [vmem:[%s24481_s1 + $0x8d0] sm:$0xff] }
 0x65c   : > { %6781 = vmatpush1.bf16.msra.mxu1 %v19435_v6  ;;  %v15128_v6 = vcombine.high %v3209_v44, %v3213_v42  ;;  %v3337_v42 = vld [vmem:[%s24481_s1 + $0x650] sm:$0xff] }
 0x65d   : > { %6782 = vmatprep.subr.bf16.mxu1 %v24483_v34 }
 0x65f   : > { %6426 = vmatmul.mubr.bf16.gmra.mrb[200].mxu1 %v15111_v31  ;;  %v3333_v31 = vld [vmem:[%s24481_s1 + $0x630] sm:$0xff] }
 0x660   : > { %6783 = vmatpush1.bf16.msra.mxu1 %v19418_v29  ;;  %6433 = vmatprep.mubr.bf16.mxu1 %v15120_v12  ;;  %v3217_v29 = vld [vmem:[%s24481_s1 + $0x290] sm:$0xff]  ;;  %v15239_v12 = vcombine.low %v3321_v45, %v3325_v61  ;;  %v15248_v44 = vcombine.high %v3329_v2, %v3333_v31  ;;  %v3159_v61 = vld [vmem:[%s24481_s1 + $0xc0] sm:$0xff] }
 0x661   : > { %6784 = vmatprep.subr.bf16.mxu1 %v24483_v34  ;;  %v15136_v58 = vcombine.high %v3217_v29, %v3221_v39  ;;  %v15135_v36 = vcombine.low %v3217_v29, %v3221_v39  ;;  %v3345_v39 = vld [vmem:[%s24481_s1 + $0x690] sm:$0xff] }
 0x664   : > { %6785 = vmatpush1.bf16.msra.mxu1 %v19437_v18  ;;  %v3229_v18 = vld [vmem:[%s24481_s1 + $0x2f0] sm:$0xff] }
 0x665   : > { %v15144_v15 = vcombine.high %v3225_v50, %v3229_v18  ;;  %v15143_v16 = vcombine.low %v3225_v50, %v3229_v18  ;;  %v3353_v18 = vld [vmem:[%s24481_s1 + $0x6d0] sm:$0xff] }
 0x667   : > { %6434 = vmatmul.mubr.bf16.gmra.mrb[204].mxu1 %v15119_v13  ;;  %v3341_v13 = vld [vmem:[%s24481_s1 + $0x670] sm:$0xff] }
 0x668   : > { %6441 = vmatprep.mubr.bf16.mxu1 %v15128_v6  ;;  %v15247_v6 = vcombine.low %v3329_v2, %v3333_v31  ;;  %v15256_v29 = vcombine.high %v3337_v42, %v3341_v13  ;;  %v3425_v31 = vld [vmem:[%s24481_s1 + $0x910] sm:$0xff] }
 0x66f   : > { %6442 = vmatmul.mubr.bf16.gmra.mrb[16].mxu1 %v15127_v62  ;;  %v3349_v62 = vld [vmem:[%s24481_s1 + $0x6b0] sm:$0xff] }
 0x670   : > { %6449 = vmatprep.mubr.bf16.mxu1 %v15136_v58  ;;  %v15255_v58 = vcombine.low %v3337_v42, %v3341_v13  ;;  %v15264_v50 = vcombine.high %v3345_v39, %v3349_v62  ;;  %v3167_v13 = vld [vmem:[%s24481_s1 + $0x100] sm:$0xff] }
 0x677   : > { %6450 = vmatmul.mubr.bf16.gmra.mrb[20].mxu1 %v15135_v36  ;;  %v3357_v36 = vld [vmem:[%s24481_s1 + $0x6f0] sm:$0xff] }
 0x678   : > { %6457 = vmatprep.mubr.bf16.mxu1 %v15144_v15  ;;  %v15263_v15 = vcombine.low %v3345_v39, %v3349_v62  ;;  %v15272_v49 = vcombine.high %v3353_v18, %v3357_v36  ;;  %v3433_v62 = vld [vmem:[%s24481_s1 + $0x950] sm:$0xff] }
 0x67f   : > { %6458 = vmatmul.mubr.bf16.gmra.mrb[24].mxu1 %v15143_v16  ;;  %v3365_v16 = vld [vmem:[%s24481_s1 + $0x730] sm:$0xff] }
 0x680   : > { %6465 = vmatprep.mubr.bf16.mxu1 %v15152_v5  ;;  %v15271_v5 = vcombine.low %v3353_v18, %v3357_v36  ;;  %v15280_v37 = vcombine.high %v3361_v8, %v3365_v16  ;;  %v3175_v36 = vld [vmem:[%s24481_s1 + $0x140] sm:$0xff] }
 0x687   : > { %6466 = vmatmul.mubr.bf16.gmra.mrb[28].mxu1 %v15151_v38  ;;  %v3373_v38 = vld [vmem:[%s24481_s1 + $0x770] sm:$0xff] }
 0x688   : > { %6473 = vmatprep.mubr.bf16.mxu1 %v15160_v47  ;;  %v15279_v47 = vcombine.low %v3361_v8, %v3365_v16  ;;  %v15288_v56 = vcombine.high %v3369_v53, %v3373_v38  ;;  %v3441_v16 = vld [vmem:[%s24481_s1 + $0x990] sm:$0xff] }
 0x68f   : > { %6474 = vmatmul.mubr.bf16.gmra.mrb[32].mxu1 %v15159_v43  ;;  %v3381_v43 = vld [vmem:[%s24481_s1 + $0x7b0] sm:$0xff] }
 0x690   : > { %6481 = vmatprep.mubr.bf16.mxu1 %v15168_v60  ;;  %v15287_v60 = vcombine.low %v3369_v53, %v3373_v38  ;;  %v15296_v26 = vcombine.high %v3377_v0, %v3381_v43  ;;  %v3183_v38 = vld [vmem:[%s24481_s1 + $0x180] sm:$0xff] }
 0x697   : > { %6482 = vmatmul.mubr.bf16.gmra.mrb[36].mxu1 %v15167_v3  ;;  %v3389_v3 = vld [vmem:[%s24481_s1 + $0x7f0] sm:$0xff] }
 0x698   : > { %6489 = vmatprep.mubr.bf16.mxu1 %v15176_v32  ;;  %v15295_v32 = vcombine.low %v3377_v0, %v3381_v43  ;;  %v15304_v33 = vcombine.high %v3385_v10, %v3389_v3  ;;  %v3449_v43 = vld [vmem:[%s24481_s1 + $0x9d0] sm:$0xff] }
 0x69f   : > { %6490 = vmatmul.mubr.bf16.gmra.mrb[40].mxu1 %v15175_v63  ;;  %v3397_v63 = vld [vmem:[%s24481_s1 + $0x830] sm:$0xff] }
 0x6a0   : > { %6497 = vmatprep.mubr.bf16.mxu1 %v15184_v23  ;;  %v15303_v23 = vcombine.low %v3385_v10, %v3389_v3  ;;  %v15312_v41 = vcombine.high %v3393_v55, %v3397_v63  ;;  %v3191_v3 = vld [vmem:[%s24481_s1 + $0x1c0] sm:$0xff] }
 0x6a7   : > { %6498 = vmatmul.mubr.bf16.gmra.mrb[44].mxu1 %v15183_v48  ;;  %v3139_v48 = vld [vmem:[%s24481_s1 + $0x20] sm:$0xff] }
 0x6a8   : > { %6505 = vmatprep.mubr.bf16.mxu1 %v15192_v9  ;;  %v15051_v9 = vcombine.low %v3135_v11, %v3139_v48  ;;  %v15052_v20 = vcombine.high %v3135_v11, %v3139_v48  ;;  %v3199_v48 = vld [vmem:[%s24481_s1 + $0x200] sm:$0xff] }
 0x6aa   : > { %5535 = vmatprep.mubr.bf16.mxu0 %v15052_v20 }
 0x6ab   : > { %5536 = vmatmul.mubr.bf16.vlgmr.msra.gmra.mrb[0].mxu0 %v15051_v9  ;;  %v3203_v9 = vld [vmem:[%s24481_s1 + $0x220] sm:$0xff] }
 0x6ac   : > { %v15115_v20 = vcombine.low %v3199_v48, %v3203_v9 }
 0x6af   : > { %6506 = vmatmul.mubr.bf16.gmra.mrb[48].mxu1 %v15191_v40  ;;  %v3405_v40 = vld [vmem:[%s24481_s1 + $0x870] sm:$0xff] }
 0x6b0   : > { %6513 = vmatprep.mubr.bf16.mxu1 %v15200_v35  ;;  %v15311_v35 = vcombine.low %v3393_v55, %v3397_v63  ;;  %v15320_v59 = vcombine.high %v3401_v27, %v3405_v40  ;;  %v3457_v63 = vld [vmem:[%s24481_s1 + $0xa10] sm:$0xff] }
 0x6b7   : > { %6514 = vmatmul.mubr.bf16.gmra.mrb[52].mxu1 %v15199_v57  ;;  %v3147_v57 = vld [vmem:[%s24481_s1 + $0x60] sm:$0xff] }
 0x6b8   : > { %6521 = vmatprep.mubr.bf16.mxu1 %v15208_v1  ;;  %v15059_v1 = vcombine.low %v3143_v14, %v3147_v57  ;;  %v15060_v51 = vcombine.high %v3143_v14, %v3147_v57  ;;  %v3473_v57 = vld [vmem:[%s24481_s1 + $0xa90] sm:$0xff] }
 0x6ba   : > { %5543 = vmatprep.mubr.bf16.mxu0 %v15060_v51 }
 0x6bb   : > { %5544 = vmatmul.mubr.bf16.gmra.mrb[4].mxu0 %v15059_v1  ;;  %v3477_v1 = vld [vmem:[%s24481_s1 + $0xab0] sm:$0xff] }
 0x6bf   : > { %6522 = vmatmul.mubr.bf16.gmra.mrb[56].mxu1 %v15207_v25  ;;  %v3413_v25 = vld [vmem:[%s24481_s1 + $0x8b0] sm:$0xff] }
 0x6c0   : > { %6529 = vmatprep.mubr.bf16.mxu1 %v15216_v54  ;;  %v15319_v54 = vcombine.low %v3401_v27, %v3405_v40  ;;  %v15328_v24 = vcombine.high %v3409_v30, %v3413_v25  ;;  %v15116_v27 = vcombine.high %v3199_v48, %v3203_v9  ;;  %v3465_v40 = vld [vmem:[%s24481_s1 + $0xa50] sm:$0xff]  ;;  %v3202_v9 = vld [vmem:[%s24481_s1 + $0x218] sm:$0xff] }
 0x6c7   : > { %6530 = vmatmul.mubr.bf16.gmra.mrb[60].mxu1 %v15215_v22  ;;  %v3155_v22 = vld [vmem:[%s24481_s1 + $0xa0] sm:$0xff] }
 0x6c8   : > { %6537 = vmatprep.mubr.bf16.mxu1 %v15224_v19  ;;  %v15067_v19 = vcombine.low %v3151_v21, %v3155_v22  ;;  %v15068_v17 = vcombine.high %v3151_v21, %v3155_v22  ;;  %v3489_v22 = vld [vmem:[%s24481_s1 + $0xb10] sm:$0xff] }
 0x6ca   : > { %5551 = vmatprep.mubr.bf16.mxu0 %v15068_v17 }
 0x6cb   : > { %5552 = vmatmul.mubr.bf16.gmra.mrb[8].mxu0 %v15067_v19  ;;  %v3493_v19 = vld [vmem:[%s24481_s1 + $0xb30] sm:$0xff] }
 0x6cf   : > { %6538 = vmatmul.mubr.bf16.gmra.mrb[64].mxu1 %v15223_v46  ;;  %v3421_v46 = vld [vmem:[%s24481_s1 + $0x8f0] sm:$0xff] }
 0x6d0   : > { %6545 = vmatprep.mubr.bf16.mxu1 %v15232_v28  ;;  %v15327_v28 = vcombine.low %v3409_v30, %v3413_v25  ;;  %v15336_v45 = vcombine.high %v3417_v4, %v3421_v46  ;;  %v15392_v30 = vcombine.high %v3473_v57, %v3477_v1  ;;  %v3481_v25 = vld [vmem:[%s24481_s1 + $0xad0] sm:$0xff] }
 0x6d7   : > { %6546 = vmatmul.mubr.bf16.gmra.mrb[68].mxu1 %v15231_v7  ;;  %v3163_v7 = vld [vmem:[%s24481_s1 + $0xe0] sm:$0xff] }
 0x6d8   : > { %6553 = vmatprep.mubr.bf16.mxu1 %v15240_v52  ;;  %v15075_v52 = vcombine.low %v3159_v61, %v3163_v7  ;;  %v15076_v2 = vcombine.high %v3159_v61, %v3163_v7  ;;  %v3505_v7 = vld [vmem:[%s24481_s1 + $0xb90] sm:$0xff] }
 0x6da   : > { %5559 = vmatprep.mubr.bf16.mxu0 %v15076_v2 }
 0x6db   : > { %5560 = vmatmul.mubr.bf16.gmra.mrb[12].mxu0 %v15075_v52  ;;  %v3509_v52 = vld [vmem:[%s24481_s1 + $0xbb0] sm:$0xff] }
 0x6df   : > { %6554 = vmatmul.mubr.bf16.gmra.mrb[72].mxu1 %v15239_v12  ;;  %v3429_v12 = vld [vmem:[%s24481_s1 + $0x930] sm:$0xff] }
 0x6e0   : > { %6561 = vmatprep.mubr.bf16.mxu1 %v15248_v44  ;;  %v15335_v44 = vcombine.low %v3417_v4, %v3421_v46  ;;  %v15344_v42 = vcombine.high %v3425_v31, %v3429_v12  ;;  %v15408_v4 = vcombine.high %v3489_v22, %v3493_v19  ;;  %v3497_v46 = vld [vmem:[%s24481_s1 + $0xb50] sm:$0xff] }
 0x6e7   : > { %6562 = vmatmul.mubr.bf16.gmra.mrb[76].mxu1 %v15247_v6  ;;  %v3171_v6 = vld [vmem:[%s24481_s1 + $0x120] sm:$0xff] }
 0x6e8   : > { %6569 = vmatprep.mubr.bf16.mxu1 %v15256_v29  ;;  %v15083_v29 = vcombine.low %v3167_v13, %v3171_v6  ;;  %v15084_v39 = vcombine.high %v3167_v13, %v3171_v6  ;;  %v3138_v6 = vld [vmem:[%s24481_s1 + $0x18] sm:$0xff] }
 0x6ea   : > { %5567 = vmatprep.mubr.bf16.mxu0 %v15084_v39 }
 0x6eb   : > { %5568 = vmatmul.mubr.bf16.gmra.mrb[16].mxu0 %v15083_v29  ;;  %v3142_v29 = vld [vmem:[%s24481_s1 + $0x38] sm:$0xff] }
 0x6ef   : > { %6570 = vmatmul.mubr.bf16.gmra.mrb[80].mxu1 %v15255_v58  ;;  %v3437_v58 = vld [vmem:[%s24481_s1 + $0x970] sm:$0xff] }
 0x6f0   : > { %6577 = vmatprep.mubr.bf16.mxu1 %v15264_v50  ;;  %v15343_v50 = vcombine.low %v3425_v31, %v3429_v12  ;;  %v15352_v18 = vcombine.high %v3433_v62, %v3437_v58  ;;  %v15424_v31 = vcombine.high %v3505_v7, %v3509_v52  ;;  %v3513_v12 = vld [vmem:[%s24481_s1 + $0xbd0] sm:$0xff] }
 0x6f7   : > { %6578 = vmatmul.mubr.bf16.gmra.mrb[84].mxu1 %v15263_v15  ;;  %v3179_v15 = vld [vmem:[%s24481_s1 + $0x160] sm:$0xff] }
 0x6f8   : > { %6585 = vmatprep.mubr.bf16.mxu1 %v15272_v49  ;;  %v15091_v49 = vcombine.low %v3175_v36, %v3179_v15  ;;  %v15092_v8 = vcombine.high %v3175_v36, %v3179_v15  ;;  %v3154_v15 = vld [vmem:[%s24481_s1 + $0x98] sm:$0xff] }
 0x6fa   : > { %5575 = vmatprep.mubr.bf16.mxu0 %v15092_v8 }
 0x6fb   : > { %5576 = vmatmul.mubr.bf16.gmra.mrb[20].mxu0 %v15091_v49  ;;  %v3158_v49 = vld [vmem:[%s24481_s1 + $0xb8] sm:$0xff] }
 0x6ff   : > { %6586 = vmatmul.mubr.bf16.gmra.mrb[88].mxu1 %v15271_v5  ;;  %v3445_v5 = vld [vmem:[%s24481_s1 + $0x9b0] sm:$0xff] }
 0x700   : > { %6593 = vmatprep.mubr.bf16.mxu1 %v15280_v37  ;;  %v15351_v37 = vcombine.low %v3433_v62, %v3437_v58  ;;  %v15360_v53 = vcombine.high %v3441_v16, %v3445_v5  ;;  %v15058_v62 = vcombine.high %v3138_v6, %v3142_v29  ;;  %v3146_v58 = vld [vmem:[%s24481_s1 + $0x58] sm:$0xff] }
 0x707   : > { %6594 = vmatmul.mubr.bf16.gmra.mrb[92].mxu1 %v15279_v47  ;;  %v3187_v47 = vld [vmem:[%s24481_s1 + $0x1a0] sm:$0xff] }
 0x708   : > { %6601 = vmatprep.mubr.bf16.mxu1 %v15288_v56  ;;  %v15099_v56 = vcombine.low %v3183_v38, %v3187_v47  ;;  %v15100_v0 = vcombine.high %v3183_v38, %v3187_v47  ;;  %v3170_v47 = vld [vmem:[%s24481_s1 + $0x118] sm:$0xff] }
 0x70a   : > { %5583 = vmatprep.mubr.bf16.mxu0 %v15100_v0 }
 0x70b   : > { %5584 = vmatmul.mubr.bf16.gmra.mrb[24].mxu0 %v15099_v56  ;;  %v3174_v56 = vld [vmem:[%s24481_s1 + $0x138] sm:$0xff] }
 0x70f   : > { %6602 = vmatmul.mubr.bf16.gmra.mrb[96].mxu1 %v15287_v60  ;;  %v3453_v60 = vld [vmem:[%s24481_s1 + $0x9f0] sm:$0xff] }
 0x710   : > { %6609 = vmatprep.mubr.bf16.mxu1 %v15296_v26  ;;  %v15359_v26 = vcombine.low %v3441_v16, %v3445_v5  ;;  %v15368_v10 = vcombine.high %v3449_v43, %v3453_v60  ;;  %v15074_v16 = vcombine.high %v3154_v15, %v3158_v49  ;;  %v3162_v5 = vld [vmem:[%s24481_s1 + $0xd8] sm:$0xff] }
 0x717   : > { %6610 = vmatmul.mubr.bf16.gmra.mrb[100].mxu1 %v15295_v32  ;;  %v3195_v32 = vld [vmem:[%s24481_s1 + $0x1e0] sm:$0xff] }
 0x718   : > { %6617 = vmatprep.mubr.bf16.mxu1 %v15304_v33  ;;  %v15107_v33 = vcombine.low %v3191_v3, %v3195_v32  ;;  %v15108_v55 = vcombine.high %v3191_v3, %v3195_v32  ;;  %v3186_v32 = vld [vmem:[%s24481_s1 + $0x198] sm:$0xff] }
 0x71a   : > { %5591 = vmatprep.mubr.bf16.mxu0 %v15108_v55 }
 0x71b   : > { %5592 = vmatmul.mubr.bf16.gmra.mrb[28].mxu0 %v15107_v33  ;;  %v3190_v33 = vld [vmem:[%s24481_s1 + $0x1b8] sm:$0xff] }
 0x71c   : > { %5599 = vmatprep.mubr.bf16.mxu0 %v15116_v27 }
 0x71f   : > { %6618 = vmatmul.mubr.bf16.gmra.mrb[104].mxu1 %v15303_v23  ;;  %v3461_v23 = vld [vmem:[%s24481_s1 + $0xa30] sm:$0xff] }
 0x720   : > { %6625 = vmatprep.mubr.bf16.mxu1 %v15312_v41  ;;  %v15367_v41 = vcombine.low %v3449_v43, %v3453_v60  ;;  %v15376_v11 = vcombine.high %v3457_v63, %v3461_v23  ;;  %v15090_v43 = vcombine.high %v3170_v47, %v3174_v56  ;;  %v3178_v60 = vld [vmem:[%s24481_s1 + $0x158] sm:$0xff] }
 0x723   : > { %5600 = vmatmul.mubr.bf16.gmra.mrb[32].mxu0 %v15115_v20  ;;  %v3206_v20 = vld [vmem:[%s24481_s1 + $0x238] sm:$0xff] }
 0x724   : > { %7391 = vmatprep.mubr.bf16.mxu0 %v24483_v34 }
 0x727   : > { %6626 = vmatmul.mubr.bf16.gmra.mrb[108].mxu1 %v15311_v35  ;;  %v3469_v35 = vld [vmem:[%s24481_s1 + $0xa70] sm:$0xff] }
 0x728   : > { %6633 = vmatprep.mubr.bf16.mxu1 %v15320_v59  ;;  %v15375_v59 = vcombine.low %v3457_v63, %v3461_v23  ;;  %v15384_v14 = vcombine.high %v3465_v40, %v3469_v35  ;;  %v15383_v51 = vcombine.low %v3465_v40, %v3469_v35  ;;  %v15106_v63 = vcombine.high %v3186_v32, %v3190_v33  ;;  %v3194_v23 = vld [vmem:[%s24481_s1 + $0x1d8] sm:$0xff] }
 0x729   : > { %v15122_v40 = vcombine.high %v3202_v9, %v3206_v20  ;;  %v3210_v35 = vld [vmem:[%s24481_s1 + $0x258] sm:$0xff] }
 0x72f   : > { %6634 = vmatmul.mubr.bf16.gmra.mrb[112].mxu1 %v15319_v54  ;;  %v3485_v54 = vld [vmem:[%s24481_s1 + $0xaf0] sm:$0xff] }
 0x730   : > { %6641 = vmatprep.mubr.bf16.mxu1 %v15328_v24  ;;  %v15391_v24 = vcombine.low %v3473_v57, %v3477_v1  ;;  %v15400_v21 = vcombine.high %v3481_v25, %v3485_v54  ;;  %v15399_v17 = vcombine.low %v3481_v25, %v3485_v54  ;;  %v3218_v1 = vld [vmem:[%s24481_s1 + $0x298] sm:$0xff] }
 0x731   : > { %v3226_v54 = vld [vmem:[%s24481_s1 + $0x2d8] sm:$0xff] }
 0x737   : > { %6642 = vmatmul.mubr.bf16.gmra.mrb[116].mxu1 %v15327_v28  ;;  %v3501_v28 = vld [vmem:[%s24481_s1 + $0xb70] sm:$0xff] }
 0x738   : > { %6649 = vmatprep.mubr.bf16.mxu1 %v15336_v45  ;;  %v15407_v45 = vcombine.low %v3489_v22, %v3493_v19  ;;  %v15416_v61 = vcombine.high %v3497_v46, %v3501_v28  ;;  %v15415_v2 = vcombine.low %v3497_v46, %v3501_v28  ;;  %v3238_v46 = vld [vmem:[%s24481_s1 + $0x338] sm:$0xff] }
 0x73f   : > { %6650 = vmatmul.mubr.bf16.gmra.mrb[120].mxu1 %v15335_v44  ;;  %v3517_v44 = vld [vmem:[%s24481_s1 + $0xbf0] sm:$0xff] }
 0x740   : > { %6657 = vmatprep.mubr.bf16.mxu1 %v15344_v42  ;;  %v15423_v42 = vcombine.low %v3505_v7, %v3509_v52  ;;  %v15432_v13 = vcombine.high %v3513_v12, %v3517_v44  ;;  %v15431_v39 = vcombine.low %v3513_v12, %v3517_v44  ;;  %v3246_v12 = vld [vmem:[%s24481_s1 + $0x378] sm:$0xff] }
 0x747   : > { %6658 = vmatmul.mubr.bf16.gmra.mrb[124].mxu1 %v15343_v50  ;;  %v3150_v50 = vld [vmem:[%s24481_s1 + $0x78] sm:$0xff] }
 0x748   : > { %6665 = vmatprep.mubr.bf16.mxu1 %v15352_v18  ;;  %v15057_v18 = vcombine.low %v3138_v6, %v3142_v29  ;;  %v15066_v36 = vcombine.high %v3146_v58, %v3150_v50  ;;  %v15065_v8 = vcombine.low %v3146_v58, %v3150_v50  ;;  %v3254_v58 = vld [vmem:[%s24481_s1 + $0x3b8] sm:$0xff] }
 0x74f   : > { %6666 = vmatmul.mubr.bf16.gmra.mrb[128].mxu1 %v15351_v37  ;;  %v3166_v37 = vld [vmem:[%s24481_s1 + $0xf8] sm:$0xff] }
 0x750   : > { %6673 = vmatprep.mubr.bf16.mxu1 %v15360_v53  ;;  %v15073_v53 = vcombine.low %v3154_v15, %v3158_v49  ;;  %v15082_v38 = vcombine.high %v3162_v5, %v3166_v37  ;;  %v15081_v0 = vcombine.low %v3162_v5, %v3166_v37  ;;  %v3262_v5 = vld [vmem:[%s24481_s1 + $0x3f8] sm:$0xff] }
 0x757   : > { %6674 = vmatmul.mubr.bf16.gmra.mrb[132].mxu1 %v15359_v26  ;;  %v3182_v26 = vld [vmem:[%s24481_s1 + $0x178] sm:$0xff] }
 0x758   : > { %6681 = vmatprep.mubr.bf16.mxu1 %v15368_v10  ;;  %v15089_v10 = vcombine.low %v3170_v47, %v3174_v56  ;;  %v15098_v3 = vcombine.high %v3178_v60, %v3182_v26  ;;  %v15097_v55 = vcombine.low %v3178_v60, %v3182_v26  ;;  %v3270_v60 = vld [vmem:[%s24481_s1 + $0x438] sm:$0xff] }
 0x75f   : > { %6682 = vmatmul.mubr.bf16.gmra.mrb[136].mxu1 %v15367_v41  ;;  %v3198_v41 = vld [vmem:[%s24481_s1 + $0x1f8] sm:$0xff] }
 0x760   : > { %6689 = vmatprep.mubr.bf16.mxu1 %v15376_v11  ;;  %v15105_v11 = vcombine.low %v3186_v32, %v3190_v33  ;;  %v15114_v48 = vcombine.high %v3194_v23, %v3198_v41  ;;  %v15113_v27 = vcombine.low %v3194_v23, %v3198_v41  ;;  %v3278_v23 = vld [vmem:[%s24481_s1 + $0x478] sm:$0xff] }
 0x767   : > { %6690 = vmatmul.mubr.bf16.gmra.mrb[140].mxu1 %v15375_v59  ;;  %v3214_v59 = vld [vmem:[%s24481_s1 + $0x278] sm:$0xff] }
 0x768   : > { %6697 = vmatprep.mubr.bf16.mxu1 %v15384_v14  ;;  %v15121_v14 = vcombine.low %v3202_v9, %v3206_v20  ;;  %v15130_v57 = vcombine.high %v3210_v35, %v3214_v59 }
 0x76f   : > { %6698 = vmatmul.mubr.bf16.gmra.mrb[144].mxu1 %v15383_v51  ;;  %v3222_v51 = vld [vmem:[%s24481_s1 + $0x2b8] sm:$0xff] }
 0x770   : > { %6705 = vmatprep.mubr.bf16.mxu1 %v15392_v30  ;;  %v15129_v30 = vcombine.low %v3210_v35, %v3214_v59  ;;  %v15138_v25 = vcombine.high %v3218_v1, %v3222_v51  ;;  %v3286_v35 = vld [vmem:[%s24481_s1 + $0x4b8] sm:$0xff] }
 0x777   : > { %6706 = vmatmul.mubr.bf16.gmra.mrb[148].mxu1 %v15391_v24  ;;  %v3230_v24 = vld [vmem:[%s24481_s1 + $0x2f8] sm:$0xff] }
 0x778   : > { %6713 = vmatprep.mubr.bf16.mxu1 %v15400_v21  ;;  %v15137_v21 = vcombine.low %v3218_v1, %v3222_v51  ;;  %v15146_v22 = vcombine.high %v3226_v54, %v3230_v24  ;;  %v15145_v28 = vcombine.low %v3226_v54, %v3230_v24  ;;  %v3294_v54 = vld [vmem:[%s24481_s1 + $0x4f8] sm:$0xff] }
 0x77e   : > { %v20597_v19 = vpop.f32.mrb[0].mxu0 }
 0x77f   : > { %6714 = vmatmul.mubr.bf16.gmra.mrb[152].mxu1 %v15399_v17  ;;  %v5539_v17 = vpop.f32.mrb[1].mxu0 }
 0x780   : > { %6721 = vmatprep.mubr.bf16.mxu1 %v15408_v4  ;;  %v3234_v4 = vld [vmem:[%s24481_s1 + $0x318] sm:$0xff] }
 0x781   : > { %v15153_v44 = vcombine.low %v3234_v4, %v3238_v46 }
 0x787   : > { %6722 = vmatmul.mubr.bf16.gmra.mrb[156].mxu1 %v15407_v45  ;;  %v20605_v45 = vpop.f32.mrb[2].mxu0 }
 0x788   : > { %6729 = vmatprep.mubr.bf16.mxu1 %v15416_v61  ;;  %v15154_v61 = vcombine.high %v3234_v4, %v3238_v46  ;;  %v5542_v7 = vpop.f32.mrb[3].mxu0 }
 0x78e   : > { %v20607_v52 = vpop.f32.mrb[4].mxu0 }
 0x78f   : > { %6730 = vmatmul.mubr.bf16.gmra.mrb[160].mxu1 %v15415_v2  ;;  %v5547_v2 = vpop.f32.mrb[5].mxu0 }
 0x790   : > { %6737 = vmatprep.mubr.bf16.mxu1 %v15424_v31  ;;  %v3242_v31 = vld [vmem:[%s24481_s1 + $0x358] sm:$0xff] }
 0x791   : > { %v15161_v50 = vcombine.low %v3242_v31, %v3246_v12 }
 0x797   : > { %6738 = vmatmul.mubr.bf16.gmra.mrb[164].mxu1 %v15423_v42  ;;  %v20615_v42 = vpop.f32.mrb[6].mxu0 }
 0x798   : > { %6745 = vmatprep.mubr.bf16.mxu1 %v15432_v13  ;;  %v15162_v13 = vcombine.high %v3242_v31, %v3246_v12  ;;  %v5550_v6 = vpop.f32.mrb[7].mxu0 }
 0x79e   : > { %v20617_v29 = vpop.f32.mrb[8].mxu0 }
 0x79f   : > { %6746 = vmatmul.mubr.bf16.gmra.mrb[168].mxu1 %v15431_v39  ;;  %v5555_v39 = vpop.f32.mrb[9].mxu0 }
 0x7a0   : > { %6786 = vmatprep.mubr.bf16.mxu1 %v15058_v62  ;;  %v3250_v62 = vld [vmem:[%s24481_s1 + $0x398] sm:$0xff] }
 0x7a1   : > { %v15169_v37 = vcombine.low %v3250_v62, %v3254_v58 }
 0x7a7   : > { %6787 = vmatmul.mubr.bf16.vlgmr.msra.gmra.mrb[172].mxu1 %v15057_v18  ;;  %v20625_v18 = vpop.f32.mrb[10].mxu0 }
 0x7a8   : > { %6794 = vmatprep.mubr.bf16.mxu1 %v15066_v36  ;;  %v15170_v36 = vcombine.high %v3250_v62, %v3254_v58  ;;  %v5558_v15 = vpop.f32.mrb[11].mxu0  ;;  %v3314_v62 = vld [vmem:[%s24481_s1 + $0x598] sm:$0xff] }
 0x7a9   : > { %v3318_v58 = vld [vmem:[%s24481_s1 + $0x5b8] sm:$0xff] }
 0x7aa   : > { %v3322_v15 = vld [vmem:[%s24481_s1 + $0x5d8] sm:$0xff] }
 0x7ae   : > { %v20627_v49 = vpop.f32.mrb[12].mxu0 }
 0x7af   : > { %6795 = vmatmul.mubr.bf16.gmra.mrb[176].mxu1 %v15065_v8  ;;  %v5563_v8 = vpop.f32.mrb[13].mxu0 }
 0x7b0   : > { %6802 = vmatprep.mubr.bf16.mxu1 %v15074_v16  ;;  %v3258_v16 = vld [vmem:[%s24481_s1 + $0x3d8] sm:$0xff] }
 0x7b1   : > { %v15177_v26 = vcombine.low %v3258_v16, %v3262_v5  ;;  %v3326_v8 = vld [vmem:[%s24481_s1 + $0x5f8] sm:$0xff] }
 0x7b7   : > { %6803 = vmatmul.mubr.bf16.gmra.mrb[180].mxu1 %v15073_v53  ;;  %v20635_v53 = vpop.f32.mrb[14].mxu0 }
 0x7b8   : > { %6810 = vmatprep.mubr.bf16.mxu1 %v15082_v38  ;;  %v15178_v38 = vcombine.high %v3258_v16, %v3262_v5  ;;  %v5566_v47 = vpop.f32.mrb[15].mxu0  ;;  %v15233_v16 = vcombine.low %v3314_v62, %v3318_v58  ;;  %v15242_v5 = vcombine.high %v3322_v15, %v3326_v8 }
 0x7b9   : > { %v15241_v47 = vcombine.low %v3322_v15, %v3326_v8  ;;  %v3386_v8 = vld [vmem:[%s24481_s1 + $0x7d8] sm:$0xff] }
 0x7be   : > { %v20637_v56 = vpop.f32.mrb[16].mxu0 }
 0x7bf   : > { %6811 = vmatmul.mubr.bf16.gmra.mrb[184].mxu1 %v15081_v0  ;;  %v5571_v0 = vpop.f32.mrb[17].mxu0 }
 0x7c0   : > { %6818 = vmatprep.mubr.bf16.mxu1 %v15090_v43  ;;  %v3266_v43 = vld [vmem:[%s24481_s1 + $0x418] sm:$0xff] }
 0x7c1   : > { %v15185_v41 = vcombine.low %v3266_v43, %v3270_v60 }
 0x7c7   : > { %6819 = vmatmul.mubr.bf16.gmra.mrb[188].mxu1 %v15089_v10  ;;  %v20645_v10 = vpop.f32.mrb[18].mxu0 }
 0x7c8   : > { %6826 = vmatprep.mubr.bf16.mxu1 %v15098_v3  ;;  %v15186_v3 = vcombine.high %v3266_v43, %v3270_v60  ;;  %v5574_v32 = vpop.f32.mrb[19].mxu0  ;;  %v3338_v43 = vld [vmem:[%s24481_s1 + $0x658] sm:$0xff] }
 0x7c9   : > { %v3342_v60 = vld [vmem:[%s24481_s1 + $0x678] sm:$0xff] }
 0x7ca   : > { %v3346_v32 = vld [vmem:[%s24481_s1 + $0x698] sm:$0xff] }
 0x7ce   : > { %v20647_v33 = vpop.f32.mrb[20].mxu0 }
 0x7cf   : > { %6827 = vmatmul.mubr.bf16.gmra.mrb[192].mxu1 %v15097_v55  ;;  %v5579_v55 = vpop.f32.mrb[21].mxu0 }
 0x7d0   : > { %6834 = vmatprep.mubr.bf16.mxu1 %v15106_v63  ;;  %v3274_v63 = vld [vmem:[%s24481_s1 + $0x458] sm:$0xff] }
 0x7d1   : > { %v15193_v59 = vcombine.low %v3274_v63, %v3278_v23  ;;  %v3350_v55 = vld [vmem:[%s24481_s1 + $0x6b8] sm:$0xff] }
 0x7d7   : > { %6835 = vmatmul.mubr.bf16.gmra.mrb[196].mxu1 %v15105_v11  ;;  %v20655_v11 = vpop.f32.mrb[22].mxu0 }
 0x7d8   : > { %6842 = vmatprep.mubr.bf16.mxu1 %v15114_v48  ;;  %v15194_v48 = vcombine.high %v3274_v63, %v3278_v23  ;;  %v5582_v9 = vpop.f32.mrb[23].mxu0  ;;  %v15257_v63 = vcombine.low %v3338_v43, %v3342_v60  ;;  %v15266_v23 = vcombine.high %v3346_v32, %v3350_v55 }
 0x7d9   : > { %v15265_v9 = vcombine.low %v3346_v32, %v3350_v55 }
 0x7de   : > { %v20657_v20 = vpop.f32.mrb[24].mxu0 }
 0x7df   : > { %6843 = vmatmul.mubr.bf16.gmra.mrb[200].mxu1 %v15113_v27  ;;  %v5587_v27 = vpop.f32.mrb[25].mxu0 }
 0x7e0   : > { %6850 = vmatprep.mubr.bf16.mxu1 %v15122_v40  ;;  %v3282_v40 = vld [vmem:[%s24481_s1 + $0x498] sm:$0xff] }
 0x7e1   : > { %v15201_v24 = vcombine.low %v3282_v40, %v3286_v35 }
 0x7e7   : > { %6851 = vmatmul.mubr.bf16.gmra.mrb[204].mxu1 %v15121_v14  ;;  %v20665_v14 = vpop.f32.mrb[26].mxu0 }
 0x7e8   : > { %6858 = vmatprep.mubr.bf16.mxu1 %v15130_v57  ;;  %v15202_v57 = vcombine.high %v3282_v40, %v3286_v35  ;;  %v5590_v1 = vpop.f32.mrb[27].mxu0  ;;  %v3362_v40 = vld [vmem:[%s24481_s1 + $0x718] sm:$0xff] }
 0x7e9   : > { %v3366_v35 = vld [vmem:[%s24481_s1 + $0x738] sm:$0xff] }
 0x7ee   : > { %v20667_v51 = vpop.f32.mrb[28].mxu0 }
 0x7ef   : > { %6859 = vmatmul.mubr.bf16.gmra.mrb[16].mxu1 %v15129_v30  ;;  %v5595_v30 = vpop.f32.mrb[29].mxu0 }
 0x7f0   : > { %6866 = vmatprep.mubr.bf16.mxu1 %v15138_v25  ;;  %v3290_v25 = vld [vmem:[%s24481_s1 + $0x4d8] sm:$0xff] }
 0x7f1   : > { %v15209_v7 = vcombine.low %v3290_v25, %v3294_v54 }
 0x7f7   : > { %6867 = vmatmul.mubr.bf16.gmra.mrb[20].mxu1 %v15137_v21  ;;  %v20675_v21 = vpop.f32.mrb[30].mxu0 }
 0x7f8   : > { %6874 = vmatprep.mubr.bf16.mxu1 %v15146_v22  ;;  %v15210_v22 = vcombine.high %v3290_v25, %v3294_v54  ;;  %v5598_v17 = vpop.f32.mrb[31].mxu0  ;;  %v15282_v54 = vcombine.high %v3362_v40, %v3366_v35 }
 0x7f9   : > { %v20677_v4 = vpop.f32.mrb[32].mxu0  ;;  %v3370_v17 = vld [vmem:[%s24481_s1 + $0x758] sm:$0xff] }
 0x7fa   : > { %v5603_v46 = vpop.f32.mrb[33].mxu0 }
 0x7fb   : > { %v20685_v2 = vpop.f32.mrb[34].mxu0  ;;  %v3374_v46 = vld [vmem:[%s24481_s1 + $0x778] sm:$0xff] }
 0x7fc   : > { %v5606_v12 = vpop.f32.mrb[35].mxu0 }
 0x7ff   : > { %6875 = vmatmul.mubr.bf16.gmra.mrb[24].mxu1 %v15145_v28  ;;  %v3298_v28 = vld [vmem:[%s24481_s1 + $0x518] sm:$0xff] }
 0x800   : > { %6882 = vmatprep.mubr.bf16.mxu1 %v15154_v61  ;;  %v3302_v61 = vld [vmem:[%s24481_s1 + $0x538] sm:$0xff] }
 0x801   : > { %v15218_v31 = vcombine.high %v3298_v28, %v3302_v61  ;;  %v15217_v6 = vcombine.low %v3298_v28, %v3302_v61 }
 0x807   : > { %6883 = vmatmul.mubr.bf16.gmra.mrb[28].mxu1 %v15153_v44  ;;  %v3306_v44 = vld [vmem:[%s24481_s1 + $0x558] sm:$0xff] }
 0x808   : > { %6890 = vmatprep.mubr.bf16.mxu1 %v15162_v13  ;;  %v3310_v13 = vld [vmem:[%s24481_s1 + $0x578] sm:$0xff] }
 0x809   : > { %v15226_v39 = vcombine.high %v3306_v44, %v3310_v13 }
 0x80f   : > { %6891 = vmatmul.mubr.bf16.gmra.mrb[32].mxu1 %v15161_v50  ;;  %v15225_v50 = vcombine.low %v3306_v44, %v3310_v13  ;;  %v3378_v13 = vld [vmem:[%s24481_s1 + $0x798] sm:$0xff] }
 0x810   : > { %6898 = vmatprep.mubr.bf16.mxu1 %v15170_v36  ;;  %v15234_v36 = vcombine.high %v3314_v62, %v3318_v58  ;;  %v15289_v58 = vcombine.low %v3370_v17, %v3374_v46 }
 0x817   : > { %6899 = vmatmul.mubr.bf16.gmra.mrb[36].mxu1 %v15169_v37  ;;  %v3330_v37 = vld [vmem:[%s24481_s1 + $0x618] sm:$0xff] }
 0x818   : > { %6906 = vmatprep.mubr.bf16.mxu1 %v15178_v38  ;;  %v3334_v38 = vld [vmem:[%s24481_s1 + $0x638] sm:$0xff] }
 0x819   : > { %v15250_v0 = vcombine.high %v3330_v37, %v3334_v38 }
 0x81f   : > { %6907 = vmatmul.mubr.bf16.gmra.mrb[40].mxu1 %v15177_v26  ;;  %v15249_v26 = vcombine.low %v3330_v37, %v3334_v38 }
 0x820   : > { %6914 = vmatprep.mubr.bf16.mxu1 %v15186_v3  ;;  %v15258_v3 = vcombine.high %v3338_v43, %v3342_v60  ;;  %v3394_v60 = vld [vmem:[%s24481_s1 + $0x818] sm:$0xff] }
 0x827   : > { %6915 = vmatmul.mubr.bf16.gmra.mrb[44].mxu1 %v15185_v41  ;;  %v3354_v41 = vld [vmem:[%s24481_s1 + $0x6d8] sm:$0xff] }
 0x828   : > { %6922 = vmatprep.mubr.bf16.mxu1 %v15194_v48  ;;  %v3358_v48 = vld [vmem:[%s24481_s1 + $0x6f8] sm:$0xff] }
 0x829   : > { %v15274_v27 = vcombine.high %v3354_v41, %v3358_v48  ;;  %v15273_v30 = vcombine.low %v3354_v41, %v3358_v48  ;;  %v3402_v48 = vld [vmem:[%s24481_s1 + $0x858] sm:$0xff] }
 0x82f   : > { %6923 = vmatmul.mubr.bf16.gmra.mrb[48].mxu1 %v15193_v59 }
 0x830   : > { %6930 = vmatprep.mubr.bf16.mxu1 %v15202_v57 }
 0x837   : > { %6931 = vmatmul.mubr.bf16.gmra.mrb[52].mxu1 %v15201_v24 }
 0x838   : > { %6938 = vmatprep.mubr.bf16.mxu1 %v15210_v22 }
 0x83f   : > { %6939 = vmatmul.mubr.bf16.gmra.mrb[56].mxu1 %v15209_v7  ;;  %v15281_v7 = vcombine.low %v3362_v40, %v3366_v35 }
 0x840   : > { %6946 = vmatprep.mubr.bf16.mxu1 %v15218_v31 }
 0x847   : > { %6947 = vmatmul.mubr.bf16.gmra.mrb[60].mxu1 %v15217_v6  ;;  %v3382_v6 = vld [vmem:[%s24481_s1 + $0x7b8] sm:$0xff] }
 0x848   : > { %6954 = vmatprep.mubr.bf16.mxu1 %v15226_v39  ;;  %v15297_v38 = vcombine.low %v3378_v13, %v3382_v6 }
 0x84f   : > { %6955 = vmatmul.mubr.bf16.gmra.mrb[64].mxu1 %v15225_v50 }
 0x850   : > { %6962 = vmatprep.mubr.bf16.mxu1 %v15234_v36 }
 0x857   : > { %6963 = vmatmul.mubr.bf16.gmra.mrb[68].mxu1 %v15233_v16  ;;  %v3390_v16 = vld [vmem:[%s24481_s1 + $0x7f8] sm:$0xff] }
 0x858   : > { %6970 = vmatprep.mubr.bf16.mxu1 %v15242_v5  ;;  %v15305_v55 = vcombine.low %v3386_v8, %v3390_v16 }
 0x85f   : > { %6971 = vmatmul.mubr.bf16.gmra.mrb[72].mxu1 %v15241_v47 }
 0x860   : > { %6978 = vmatprep.mubr.bf16.mxu1 %v15250_v0 }
 0x867   : > { %6979 = vmatmul.mubr.bf16.gmra.mrb[76].mxu1 %v15249_v26  ;;  %v3398_v26 = vld [vmem:[%s24481_s1 + $0x838] sm:$0xff] }
 0x868   : > { %6986 = vmatprep.mubr.bf16.mxu1 %v15258_v3  ;;  %v15313_v35 = vcombine.low %v3394_v60, %v3398_v26 }
 0x86f   : > { %6987 = vmatmul.mubr.bf16.gmra.mrb[80].mxu1 %v15257_v63 }
 0x870   : > { %6994 = vmatprep.mubr.bf16.mxu1 %v15266_v23 }
 0x877   : > { %6995 = vmatmul.mubr.bf16.gmra.mrb[84].mxu1 %v15265_v9  ;;  %v3406_v9 = vld [vmem:[%s24481_s1 + $0x878] sm:$0xff] }
 0x878   : > { %7002 = vmatprep.mubr.bf16.mxu1 %v15274_v27 }
 0x87a   : > { %v6788_v59 = vpop.f32.mrb[172].mxu1 }
 0x87b   : > { %v20736_v57 = vadd.f32 %v6788_v59, %v20597_v19  ;;  %v6790_v1 = vpop.f32.mrb[173].mxu1 }
 0x87c   : > { %v6791_v25 = vpop.f32.mrb[174].mxu1 }
 0x87d   : > { %v20739_v24 = vadd.f32 %v6791_v25, %v20605_v45  ;;  %v6793_v22 = vpop.f32.mrb[175].mxu1  ;;  %v15290_v45 = vcombine.high %v3370_v17, %v3374_v46  ;;  %v3410_v25 = vld [vmem:[%s24481_s1 + $0x898] sm:$0xff]  ;;  %v15321_v46 = vcombine.low %v3402_v48, %v3406_v9 }
 0x87f   : > { %7003 = vmatmul.mubr.bf16.gmra.mrb[88].mxu1 %v15273_v30 }
 0x880   : > { %7010 = vmatprep.mubr.bf16.mxu1 %v15282_v54  ;;  %v3414_v54 = vld [vmem:[%s24481_s1 + $0x8b8] sm:$0xff] }
 0x882   : > { %v6796_v19 = vpop.f32.mrb[176].mxu1 }
 0x883   : > { %v20748_v28 = vadd.f32 %v6796_v19, %v20607_v52  ;;  %v6798_v61 = vpop.f32.mrb[177].mxu1 }
 0x884   : > { %v6799_v31 = vpop.f32.mrb[178].mxu1 }
 0x885   : > { %v20751_v12 = vadd.f32 %v6799_v31, %v20615_v42  ;;  %v6801_v44 = vpop.f32.mrb[179].mxu1  ;;  %v15298_v42 = vcombine.high %v3378_v13, %v3382_v6  ;;  %v3418_v31 = vld [vmem:[%s24481_s1 + $0x8d8] sm:$0xff]  ;;  %v15329_v6 = vcombine.low %v3410_v25, %v3414_v54 }
 0x887   : > { %7011 = vmatmul.mubr.bf16.gmra.mrb[92].mxu1 %v15281_v7 }
 0x888   : > { %7018 = vmatprep.mubr.bf16.mxu1 %v15290_v45  ;;  %v3422_v45 = vld [vmem:[%s24481_s1 + $0x8f8] sm:$0xff] }
 0x88a   : > { %v6804_v52 = vpop.f32.mrb[180].mxu1 }
 0x88b   : > { %v20760_v39 = vadd.f32 %v6804_v52, %v20617_v29  ;;  %v6806_v62 = vpop.f32.mrb[181].mxu1 }
 0x88c   : > { %v6807_v50 = vpop.f32.mrb[182].mxu1 }
 0x88d   : > { %v20763_v36 = vadd.f32 %v6807_v50, %v20625_v18  ;;  %v6809_v15 = vpop.f32.mrb[183].mxu1  ;;  %v15306_v18 = vcombine.high %v3386_v8, %v3390_v16  ;;  %v3426_v50 = vld [vmem:[%s24481_s1 + $0x918] sm:$0xff]  ;;  %v15337_v16 = vcombine.low %v3418_v31, %v3422_v45 }
 0x88f   : > { %7019 = vmatmul.mubr.bf16.gmra.mrb[96].mxu1 %v15289_v58 }
 0x890   : > { %7026 = vmatprep.mubr.bf16.mxu1 %v15298_v42  ;;  %v3430_v42 = vld [vmem:[%s24481_s1 + $0x938] sm:$0xff] }
 0x892   : > { %v6812_v29 = vpop.f32.mrb[184].mxu1 }
 0x893   : > { %v20772_v5 = vadd.f32 %v6812_v29, %v20627_v49  ;;  %v6814_v37 = vpop.f32.mrb[185].mxu1 }
 0x894   : > { %v6815_v47 = vpop.f32.mrb[186].mxu1 }
 0x895   : > { %v20775_v0 = vadd.f32 %v6815_v47, %v20635_v53  ;;  %v6817_v43 = vpop.f32.mrb[187].mxu1  ;;  %v15314_v53 = vcombine.high %v3394_v60, %v3398_v26  ;;  %v17308_v47 = vld [vmem:[%s24605_s2] ss:$8 sps:$4 sm:$0xff]   ;;  %v15345_v26 = vcombine.low %v3426_v50, %v3430_v42 }
 0x897   : > { %7027 = vmatmul.mubr.bf16.gmra.mrb[100].mxu1 %v15297_v38 }
 0x898   : > { %7034 = vmatprep.mubr.bf16.mxu1 %v15306_v18  ;;  %v17310_v18 = vld [vmem:[%s24605_s2 + $0x4] ss:$8 sps:$4 sm:$0xff]  }
 0x899   : > { %7359 = vmatprep.subr.bf16.mxu0 %v17310_v18  ;;  %v3474_v18 = vld [vmem:[%s24481_s1 + $0xa98] sm:$0xff] }
 0x89a   : > { %v6820_v49 = vpop.f32.mrb[188].mxu1  ;;  %7360 = vmatpush1.bf16.msra.mxu0 %v17308_v47 }
 0x89b   : > { %v20784_v3 = vadd.f32 %v6820_v49, %v20637_v56  ;;  %v6822_v32 = vpop.f32.mrb[189].mxu1 }
 0x89c   : > { %v6823_v63 = vpop.f32.mrb[190].mxu1 }
 0x89d   : > { %v20787_v23 = vadd.f32 %v6823_v63, %v20645_v10  ;;  %v6825_v41 = vpop.f32.mrb[191].mxu1  ;;  %v15322_v10 = vcombine.high %v3402_v48, %v3406_v9  ;;  %v3442_v63 = vld [vmem:[%s24481_s1 + $0x998] sm:$0xff] }
 0x89f   : > { %7035 = vmatmul.mubr.bf16.gmra.mrb[104].mxu1 %v15305_v55 }
 0x8a0   : > { %7042 = vmatprep.mubr.bf16.mxu1 %v15314_v53  ;;  %v3446_v53 = vld [vmem:[%s24481_s1 + $0x9b8] sm:$0xff] }
 0x8a2   : > { %v6828_v56 = vpop.f32.mrb[192].mxu1 }
 0x8a3   : > { %v20796_v27 = vadd.f32 %v6828_v56, %v20647_v33  ;;  %v6830_v40 = vpop.f32.mrb[193].mxu1 }
 0x8a4   : > { %v6831_v59 = vpop.f32.mrb[194].mxu1  ;;  %v15362_v40 = vcombine.high %v3442_v63, %v3446_v53 }
 0x8a5   : > { %v20799_v1 = vadd.f32 %v6831_v59, %v20655_v11  ;;  %v6833_v30 = vpop.f32.mrb[195].mxu1  ;;  %v15330_v11 = vcombine.high %v3410_v25, %v3414_v54  ;;  %v17311_v59 = vld [vmem:[%s24605_s2 + $0x10] ss:$8 sps:$4 sm:$0xff]  }
 0x8a6   : > { %v3450_v30 = vld [vmem:[%s24481_s1 + $0x9d8] sm:$0xff] }
 0x8a7   : > { %7043 = vmatmul.mubr.bf16.gmra.mrb[108].mxu1 %v15313_v35  ;;  %v3454_v25 = vld [vmem:[%s24481_s1 + $0x9f8] sm:$0xff] }
 0x8a8   : > { %7050 = vmatprep.mubr.bf16.mxu1 %v15322_v10  ;;  %v17313_v10 = vld [vmem:[%s24605_s2 + $0x14] ss:$8 sps:$4 sm:$0xff]  }
 0x8a9   : > { %7361 = vmatprep.subr.bf16.mxu0 %v17313_v10  ;;  %v17319_v10 = vld [vmem:[%s24605_s2 + $0x34] ss:$8 sps:$4 sm:$0xff]  }
 0x8aa   : > { %v6836_v33 = vpop.f32.mrb[196].mxu1  ;;  %7362 = vmatpush1.bf16.msra.mxu0 %v17311_v59  ;;  %v17317_v59 = vld [vmem:[%s24605_s2 + $0x30] ss:$8 sps:$4 sm:$0xff]  }
 0x8ab   : > { %v20808_v22 = vadd.f32 %v6836_v33, %v20657_v20  ;;  %v6838_v17 = vpop.f32.mrb[197].mxu1 }
 0x8ac   : > { %v6839_v19 = vpop.f32.mrb[198].mxu1  ;;  %v15361_v17 = vcombine.low %v3442_v63, %v3446_v53  ;;  %v3482_v53 = vld [vmem:[%s24481_s1 + $0xad8] sm:$0xff] }
 0x8ad   : > { %v20811_v61 = vadd.f32 %v6839_v19, %v20665_v14  ;;  %v6841_v7 = vpop.f32.mrb[199].mxu1  ;;  %v15338_v14 = vcombine.high %v3418_v31, %v3422_v45  ;;  %v15370_v19 = vcombine.high %v3450_v30, %v3454_v25  ;;  %v3462_v31 = vld [vmem:[%s24481_s1 + $0xa38] sm:$0xff] }
 0x8ae   : > { %v3458_v7 = vld [vmem:[%s24481_s1 + $0xa18] sm:$0xff] }
 0x8af   : > { %7051 = vmatmul.mubr.bf16.gmra.mrb[112].mxu1 %v15321_v46 }
 0x8b0   : > { %7058 = vmatprep.mubr.bf16.mxu1 %v15330_v11 }
 0x8b2   : > { %v6844_v20 = vpop.f32.mrb[200].mxu1 }
 0x8b3   : > { %v20820_v44 = vadd.f32 %v6844_v20, %v20667_v51  ;;  %v6846_v13 = vpop.f32.mrb[201].mxu1 }
 0x8b4   : > { %v6847_v52 = vpop.f32.mrb[202].mxu1  ;;  %v15369_v13 = vcombine.low %v3450_v30, %v3454_v25 }
 0x8b5   : > { %v20823_v62 = vadd.f32 %v6847_v52, %v20675_v21  ;;  %v6849_v58 = vpop.f32.mrb[203].mxu1  ;;  %v15346_v21 = vcombine.high %v3426_v50, %v3430_v42  ;;  %v15378_v52 = vcombine.high %v3458_v7, %v3462_v31  ;;  %v17316_v50 = vld [vmem:[%s24605_s2 + $0x24] ss:$8 sps:$4 sm:$0xff]   ;;  %v3466_v42 = vld [vmem:[%s24481_s1 + $0xa58] sm:$0xff] }
 0x8b6   : > { %v17314_v58 = vld [vmem:[%s24605_s2 + $0x20] ss:$8 sps:$4 sm:$0xff]   ;;  %7363 = vmatprep.subr.bf16.mxu0 %v17316_v50  ;;  %v3498_v50 = vld [vmem:[%s24481_s1 + $0xb58] sm:$0xff]  ;;  %s16322_s2 = sshll.u32 %s24670_s30, 6 }
 0x8b7   : > { %7059 = vmatmul.mubr.bf16.gmra.mrb[116].mxu1 %v15329_v6  ;;  %7364 = vmatpush1.bf16.msra.mxu0 %v17314_v58  ;;  %s21789_s25 = scalar_lea.vmem %s24261_s21, %s16322_s2 }
 0x8b8   : > { %7066 = vmatprep.mubr.bf16.mxu1 %v15338_v14  ;;  %7365 = vmatprep.subr.bf16.mxu0 %v17319_v10 }
 0x8ba   : > { %v6852_v51 = vpop.f32.mrb[204].mxu1 }
 0x8bb   : > { %v20832_v15 = vadd.f32 %v6852_v51, %v20677_v4  ;;  %v6854_v8 = vpop.f32.mrb[205].mxu1  ;;  %v3434_v4 = vld [vmem:[%s24481_s1 + $0x958] sm:$0xff]  ;;  %7366 = vmatpush1.bf16.msra.mxu0 %v17317_v59 }
 0x8bc   : > { %v6855_v29 = vpop.f32.mrb[206].mxu1  ;;  %v3470_v51 = vld [vmem:[%s24481_s1 + $0xa78] sm:$0xff] }
 0x8bd   : > { %v20835_v37 = vadd.f32 %v6855_v29, %v20685_v2  ;;  %v6857_v38 = vpop.f32.mrb[207].mxu1  ;;  %v3438_v2 = vld [vmem:[%s24481_s1 + $0x978] sm:$0xff]  ;;  %v15377_v29 = vcombine.low %v3458_v7, %v3462_v31 }
 0x8be   : > { %v15354_v32 = vcombine.high %v3434_v4, %v3438_v2  ;;  %v15353_v9 = vcombine.low %v3434_v4, %v3438_v2  ;;  %v15386_v38 = vcombine.high %v3466_v42, %v3470_v51  ;;  %v3478_v4 = vld [vmem:[%s24481_s1 + $0xab8] sm:$0xff] }
 0x8bf   : > { %7067 = vmatmul.mubr.bf16.gmra.mrb[120].mxu1 %v15337_v16 }
 0x8c0   : > { %7074 = vmatprep.mubr.bf16.mxu1 %v15346_v21 }
 0x8c2   : > { %v20849_v43 = vpop.f32.mrb[16].mxu1 }
 0x8c3   : > { %v6862_v60 = vpop.f32.mrb[17].mxu1 }
 0x8c4   : > { %v20851_v49 = vpop.f32.mrb[18].mxu1 }
 0x8c5   : > { %v6865_v55 = vpop.f32.mrb[19].mxu1 }
 0x8c6   : > { %v15394_v55 = vcombine.high %v3474_v18, %v3478_v4 }
 0x8c7   : > { %7075 = vmatmul.mubr.bf16.gmra.mrb[124].mxu1 %v15345_v26  ;;  %v15385_v26 = vcombine.low %v3466_v42, %v3470_v51  ;;  %v3502_v42 = vld [vmem:[%s24481_s1 + $0xb78] sm:$0xff] }
 0x8c8   : > { %7082 = vmatprep.mubr.bf16.mxu1 %v15354_v32 }
 0x8ca   : > { %v20859_v41 = vpop.f32.mrb[20].mxu1 }
 0x8cb   : > { %v6870_v48 = vpop.f32.mrb[21].mxu1 }
 0x8cc   : > { %v20861_v56 = vpop.f32.mrb[22].mxu1  ;;  %v3486_v48 = vld [vmem:[%s24481_s1 + $0xaf8] sm:$0xff] }
 0x8cd   : > { %v6873_v35 = vpop.f32.mrb[23].mxu1  ;;  %v15402_v25 = vcombine.high %v3482_v53, %v3486_v48 }
 0x8ce   : > { %v15393_v35 = vcombine.low %v3474_v18, %v3478_v4  ;;  %v15418_v18 = vcombine.high %v3498_v50, %v3502_v42 }
 0x8cf   : > { %7083 = vmatmul.mubr.bf16.gmra.mrb[128].mxu1 %v15353_v9 }
 0x8d0   : > { %7090 = vmatprep.mubr.bf16.mxu1 %v15362_v40 }
 0x8d2   : > { %v20875_v54 = vpop.f32.mrb[24].mxu1 }
 0x8d3   : > { %v6878_v33 = vpop.f32.mrb[25].mxu1 }
 0x8d4   : > { %v20877_v46 = vpop.f32.mrb[26].mxu1 }
 0x8d5   : > { %v6881_v11 = vpop.f32.mrb[27].mxu1 }
 0x8d7   : > { %7091 = vmatmul.mubr.bf16.gmra.mrb[132].mxu1 %v15361_v17  ;;  %v3490_v17 = vld [vmem:[%s24481_s1 + $0xb18] sm:$0xff] }
 0x8d8   : > { %7098 = vmatprep.mubr.bf16.mxu1 %v15370_v19  ;;  %v3494_v19 = vld [vmem:[%s24481_s1 + $0xb38] sm:$0xff] }
 0x8da   : > { %v20885_v45 = vpop.f32.mrb[28].mxu1 }
 0x8db   : > { %v6886_v20 = vpop.f32.mrb[29].mxu1 }
 0x8dc   : > { %v20887_v6 = vpop.f32.mrb[30].mxu1  ;;  %v15401_v20 = vcombine.low %v3482_v53, %v3486_v48 }
 0x8dd   : > { %v6889_v14 = vpop.f32.mrb[31].mxu1 }
 0x8df   : > { %7099 = vmatmul.mubr.bf16.gmra.mrb[136].mxu1 %v15369_v13 }
 0x8e0   : > { %7106 = vmatprep.mubr.bf16.mxu1 %v15378_v52  ;;  %v15410_v52 = vcombine.high %v3490_v17, %v3494_v19 }
 0x8e2   : > { %v20901_v8 = vpop.f32.mrb[32].mxu1 }
 0x8e3   : > { %v6894_v16 = vpop.f32.mrb[33].mxu1 }
 0x8e4   : > { %v20903_v21 = vpop.f32.mrb[34].mxu1 }
 0x8e5   : > { %v6897_v47 = vpop.f32.mrb[35].mxu1 }
 0x8e7   : > { %7107 = vmatmul.mubr.bf16.gmra.mrb[140].mxu1 %v15377_v29 }
 0x8e8   : > { %7114 = vmatprep.mubr.bf16.mxu1 %v15386_v38  ;;  %v15409_v38 = vcombine.low %v3490_v17, %v3494_v19  ;;  %v3518_v17 = vld [vmem:[%s24481_s1 + $0xbf8] sm:$0xff] }
 0x8ea   : > { %v20911_v2 = vpop.f32.mrb[36].mxu1 }
 0x8eb   : > { %24606 = vst [vmem:[#allocation3_spill] sm:$0xff] %v20911_v2  ;;  %v6902_v60 = vpop.f32.mrb[37].mxu1 }
 0x8ec   : > { %v20913_v32 = vpop.f32.mrb[38].mxu1 }
 0x8ed   : > { %24607 = vst [vmem:[#allocation2_spill] sm:$0xff] %v20913_v32  ;;  %v6905_v63 = vpop.f32.mrb[39].mxu1 }
 0x8ef   : > { %7115 = vmatmul.mubr.bf16.gmra.mrb[144].mxu1 %v15385_v26  ;;  %v3506_v26 = vld [vmem:[%s24481_s1 + $0xb98] sm:$0xff] }
 0x8f0   : > { %7122 = vmatprep.mubr.bf16.mxu1 %v15394_v55  ;;  %v3510_v55 = vld [vmem:[%s24481_s1 + $0xbb8] sm:$0xff] }
 0x8f1   : > { %v15426_v59 = vcombine.high %v3506_v26, %v3510_v55 }
 0x8f2   : > { %v20921_v9 = vpop.f32.mrb[40].mxu1 }
 0x8f3   : > { %v6910_v40 = vpop.f32.mrb[41].mxu1 }
 0x8f4   : > { %v20929_v30 = vpop.f32.mrb[42].mxu1  ;;  %v15417_v40 = vcombine.low %v3498_v50, %v3502_v42 }
 0x8f5   : > { %v6913_v33 = vpop.f32.mrb[43].mxu1 }
 0x8f6   : > { %v3514_v33 = vld [vmem:[%s24481_s1 + $0xbd8] sm:$0xff] }
 0x8f7   : > { %7123 = vmatmul.mubr.bf16.gmra.mrb[148].mxu1 %v15393_v35  ;;  %v15434_v50 = vcombine.high %v3514_v33, %v3518_v17 }
 0x8f8   : > { %7130 = vmatprep.mubr.bf16.mxu1 %v15402_v25 }
 0x8fa   : > { %v20937_v11 = vpop.f32.mrb[44].mxu1 }
 0x8fb   : > { %v6918_v31 = vpop.f32.mrb[45].mxu1 }
 0x8fc   : > { %v20941_v13 = vpop.f32.mrb[46].mxu1 }
 0x8fd   : > { %v6921_v58 = vpop.f32.mrb[47].mxu1 }
 0x8ff   : > { %7131 = vmatmul.mubr.bf16.gmra.mrb[152].mxu1 %v15401_v20 }
 0x900   : > { %7138 = vmatprep.mubr.bf16.mxu1 %v15410_v52  ;;  %v15425_v52 = vcombine.low %v3506_v26, %v3510_v55 }
 0x902   : > { %v20951_v51 = vpop.f32.mrb[48].mxu1 }
 0x903   : > { %v6926_v29 = vpop.f32.mrb[49].mxu1 }
 0x904   : > { %v20955_v47 = vpop.f32.mrb[50].mxu1 }
 0x905   : > { %v6929_v60 = vpop.f32.mrb[51].mxu1 }
 0x907   : > { %7139 = vmatmul.mubr.bf16.gmra.mrb[156].mxu1 %v15409_v38 }
 0x908   : > { %7146 = vmatprep.mubr.bf16.mxu1 %v15418_v18 }
 0x90a   : > { %v20965_v63 = vpop.f32.mrb[52].mxu1 }
 0x90b   : > { %v6934_v48 = vpop.f32.mrb[53].mxu1 }
 0x90c   : > { %v20969_v35 = vpop.f32.mrb[54].mxu1  ;;  %v15433_v48 = vcombine.low %v3514_v33, %v3518_v17 }
 0x90d   : > { %v6937_v25 = vpop.f32.mrb[55].mxu1 }
 0x90f   : > { %7147 = vmatmul.mubr.bf16.gmra.mrb[160].mxu1 %v15417_v40 }
 0x910   : > { %7154 = vmatprep.mubr.bf16.mxu1 %v15426_v59 }
 0x912   : > { %v20979_v19 = vpop.f32.mrb[56].mxu1 }
 0x913   : > { %v6942_v20 = vpop.f32.mrb[57].mxu1 }
 0x914   : > { %v20983_v58 = vpop.f32.mrb[58].mxu1 }
 0x915   : > { %v6945_v29 = vpop.f32.mrb[59].mxu1 }
 0x917   : > { %7155 = vmatmul.mubr.bf16.gmra.mrb[164].mxu1 %v15425_v52 }
 0x918   : > { %7162 = vmatprep.mubr.bf16.mxu1 %v15434_v50 }
 0x91a   : > { %v20987_v38 = vpop.f32.mrb[60].mxu1 }
 0x91b   : > { %v6950_v60 = vpop.f32.mrb[61].mxu1 }
 0x91c   : > { %v20991_v40 = vpop.f32.mrb[62].mxu1 }
 0x91d   : > { %v6953_v55 = vpop.f32.mrb[63].mxu1 }
 0x91f   : > { %7163 = vmatmul.mubr.bf16.gmra.mrb[168].mxu1 %v15433_v48 }
 0x922   : > { %v20995_v59 = vpop.f32.mrb[64].mxu1 }
 0x923   : > { %v6958_v20 = vpop.f32.mrb[65].mxu1 }
 0x924   : > { %v20999_v52 = vpop.f32.mrb[66].mxu1 }
 0x925   : > { %v6961_v29 = vpop.f32.mrb[67].mxu1 }
 0x92a   : > { %v21003_v33 = vpop.f32.mrb[68].mxu1 }
 0x92b   : > { %v6966_v60 = vpop.f32.mrb[69].mxu1 }
 0x92c   : > { %v21007_v55 = vpop.f32.mrb[70].mxu1 }
 0x92d   : > { %v6969_v26 = vpop.f32.mrb[71].mxu1 }
 0x932   : > { %v21011_v25 = vpop.f32.mrb[72].mxu1 }
 0x933   : > { %v6974_v18 = vpop.f32.mrb[73].mxu1 }
 0x934   : > { %v21015_v50 = vpop.f32.mrb[74].mxu1 }
 0x935   : > { %v6977_v42 = vpop.f32.mrb[75].mxu1 }
 0x93a   : > { %v21019_v17 = vpop.f32.mrb[76].mxu1 }
 0x93b   : > { %v6982_v31 = vpop.f32.mrb[77].mxu1 }
 0x93c   : > { %v21023_v48 = vpop.f32.mrb[78].mxu1 }
 0x93d   : > { %v6985_v10 = vpop.f32.mrb[79].mxu1 }
 0x942   : > { %v21027_v20 = vpop.f32.mrb[80].mxu1 }
 0x943   : > { %v6990_v53 = vpop.f32.mrb[81].mxu1 }
 0x944   : > { %v21031_v29 = vpop.f32.mrb[82].mxu1 }
 0x945   : > { %24608 = vst [vmem:[#allocation5_spill] sm:$0xff] %v21031_v29  ;;  %v6993_v4 = vpop.f32.mrb[83].mxu1 }
 0x94a   : > { %v21035_v60 = vpop.f32.mrb[84].mxu1 }
 0x94b   : > { %24609 = vst [vmem:[#allocation4_spill] sm:$0xff] %v21035_v60  ;;  %v6998_v16 = vpop.f32.mrb[85].mxu1 }
 0x94c   : > { %v21039_v26 = vpop.f32.mrb[86].mxu1 }
 0x94d   : > { %24610 = vst [vmem:[#allocation7_spill] sm:$0xff] %v21039_v26  ;;  %v7001_v14 = vpop.f32.mrb[87].mxu1 }
 0x952   : > { %v21043_v18 = vpop.f32.mrb[88].mxu1 }
 0x953   : > { %24611 = vst [vmem:[#allocation6_spill] sm:$0xff] %v21043_v18  ;;  %v7006_v7 = vpop.f32.mrb[89].mxu1 }
 0x954   : > { %v21047_v42 = vpop.f32.mrb[90].mxu1 }
 0x955   : > { %24612 = vst [vmem:[#allocation9_spill] sm:$0xff] %v21047_v42  ;;  %v7009_v29 = vpop.f32.mrb[91].mxu1 }
 0x95a   : > { %v21051_v31 = vpop.f32.mrb[92].mxu1 }
 0x95b   : > { %24613 = vst [vmem:[#allocation8_spill] sm:$0xff] %v21051_v31  ;;  %v7014_v60 = vpop.f32.mrb[93].mxu1 }
 0x95c   : > { %v21055_v10 = vpop.f32.mrb[94].mxu1 }
 0x95d   : > { %24614 = vst [vmem:[#allocation11_spill] sm:$0xff] %v21055_v10  ;;  %v7017_v26 = vpop.f32.mrb[95].mxu1 }
 0x962   : > { %v21059_v53 = vpop.f32.mrb[96].mxu1 }
 0x963   : > { %24615 = vst [vmem:[#allocation10_spill] sm:$0xff] %v21059_v53  ;;  %v7022_v18 = vpop.f32.mrb[97].mxu1 }
 0x964   : > { %v21063_v4 = vpop.f32.mrb[98].mxu1 }
 0x965   : > { %24616 = vst [vmem:[#allocation13_spill] sm:$0xff] %v21063_v4  ;;  %v7025_v42 = vpop.f32.mrb[99].mxu1 }
 0x96a   : > { %v21067_v16 = vpop.f32.mrb[100].mxu1 }
 0x96b   : > { %24617 = vst [vmem:[#allocation12_spill] sm:$0xff] %v21067_v16  ;;  %v7030_v31 = vpop.f32.mrb[101].mxu1 }
 0x96c   : > { %v21071_v14 = vpop.f32.mrb[102].mxu1  ;;  %v24620_v31 = vmax.f32 %v20736_v57, %v20937_v11 }
 0x96d   : > { %24618 = vst [vmem:[#allocation15_spill] sm:$0xff] %v21071_v14  ;;  %v7033_v10 = vpop.f32.mrb[103].mxu1 }
 0x96e   : > { %v24621_v10 = vmax.f32 %v20739_v24, %v20941_v13  ;;  %v24624_v13 = vmax.f32 %v20760_v39, %v20965_v63  ;;  %v24627_v63 = vmax.f32 %v20775_v0, %v20983_v58 }
 0x972   : > { %v21075_v7 = vpop.f32.mrb[104].mxu1 }
 0x973   : > { %v7038_v53 = vpop.f32.mrb[105].mxu1 }
 0x974   : > { %v21079_v29 = vpop.f32.mrb[106].mxu1 }
 0x975   : > { %24619 = vst [vmem:[#allocation14_spill] sm:$0xff] %v21079_v29  ;;  %v7041_v4 = vpop.f32.mrb[107].mxu1 }
 0x976   : > { %v24622_v4 = vmax.f32 %v20748_v28, %v20951_v51  ;;  %v24625_v51 = vmax.f32 %v20763_v36, %v20969_v35 }
 0x97a   : > { %v7044_v60 = vpop.f32.mrb[108].mxu1 }
 0x97b   : > { %v7203_v16 = vmax.f32 %v24620_v31, %v7044_v60  ;;  %v7046_v2 = vpop.f32.mrb[109].mxu1 }
 0x97c   : > { %v7047_v26 = vpop.f32.mrb[110].mxu1  ;;  %v24623_v2 = vmax.f32 %v20751_v12, %v20955_v47 }
 0x97d   : > { %v7204_v14 = vmax.f32 %v24621_v10, %v7047_v26  ;;  %v7049_v32 = vpop.f32.mrb[111].mxu1 }
 0x97f   : > { %v7243_v18 = vpack.c.bf16 %v7204_v14, %v7203_v16 }
 0x981   : > { %15443 = vmatmul.mubr.msk.bf16.vlgmr.msra.gmra.mrb[36].mxu0 %vm2478_vm0, %v7243_v18  ;;  %v24626_v18 = vmax.f32 %v20772_v5, %v20979_v19  ;;  %v24629_v19 = vmax.f32 %v20787_v23, %v20991_v40 }
 0x982   : > { %v7052_v53 = vpop.f32.mrb[112].mxu1  ;;  %7401 = vmatprep.mubr.bf16.mxu0 %v24483_v34 }
 0x983   : > { %v7205_v42 = vmax.f32 %v24622_v4, %v7052_v53  ;;  %v7054_v29 = vpop.f32.mrb[113].mxu1  ;;  %v24628_v4 = vmax.f32 %v20784_v3, %v20987_v38  ;;  %v24631_v38 = vmax.f32 %v20799_v1, %v20999_v52 }
 0x984   : > { %v7055_v57 = vpop.f32.mrb[114].mxu1 }
 0x985   : > { %v7206_v11 = vmax.f32 %v24623_v2, %v7055_v57  ;;  %v7057_v60 = vpop.f32.mrb[115].mxu1 }
 0x987   : > { %v7244_v24 = vpack.c.bf16 %v7206_v11, %v7205_v42 }
 0x989   : > { %15444 = vmatmul.mubr.msk.bf16.gmra.mrb[40].mxu0 %vm2478_vm0, %v7244_v24  ;;  %v24630_v24 = vmax.f32 %v20796_v27, %v20995_v59  ;;  %v24633_v59 = vmax.f32 %v20811_v61, %v21007_v55 }
 0x98a   : > { %v7060_v32 = vpop.f32.mrb[116].mxu1  ;;  %7411 = vmatprep.mubr.bf16.mxu0 %v24483_v34 }
 0x98b   : > { %v7207_v16 = vmax.f32 %v24624_v13, %v7060_v32  ;;  %v7062_v14 = vpop.f32.mrb[117].mxu1 }
 0x98c   : > { %v7063_v28 = vpop.f32.mrb[118].mxu1 }
 0x98d   : > { %v7208_v29 = vmax.f32 %v24625_v51, %v7063_v28  ;;  %v7065_v26 = vpop.f32.mrb[119].mxu1  ;;  %v24632_v28 = vmax.f32 %v20808_v22, %v21003_v33  ;;  %v24635_v33 = vmax.f32 %v20823_v62, %v21015_v50 }
 0x98f   : > { %v7245_v12 = vpack.c.bf16 %v7208_v29, %v7207_v16 }
 0x991   : > { %15445 = vmatmul.mubr.msk.bf16.gmra.mrb[44].mxu0 %vm2478_vm0, %v7245_v12 }
 0x992   : > { %v7068_v47 = vpop.f32.mrb[120].mxu1  ;;  %7421 = vmatprep.mubr.bf16.mxu0 %v24483_v34 }
 0x993   : > { %v7209_v42 = vmax.f32 %v24626_v18, %v7068_v47  ;;  %v7070_v31 = vpop.f32.mrb[121].mxu1  ;;  %v24634_v47 = vmax.f32 %v20820_v44, %v21011_v25  ;;  %v24637_v25 = vmax.f32 %v20835_v37, %v21023_v48 }
 0x994   : > { %v7071_v39 = vpop.f32.mrb[122].mxu1 }
 0x995   : > { %v7210_v10 = vmax.f32 %v24627_v63, %v7071_v39  ;;  %v7073_v53 = vpop.f32.mrb[123].mxu1  ;;  %v24636_v63 = vmax.f32 %v20832_v15, %v21019_v17  ;;  %v24639_v17 = vld [vmem:[#allocation5_spill] sm:$0xff] }
 0x997   : > { %v7246_v36 = vpack.c.bf16 %v7210_v10, %v7209_v42 }
 0x999   : > { %15446 = vmatmul.mubr.msk.bf16.gmra.mrb[48].mxu0 %vm2478_vm0, %v7246_v36 }
 0x99a   : > { %v7076_v35 = vpop.f32.mrb[124].mxu1  ;;  %7431 = vmatprep.mubr.bf16.mxu0 %v24483_v34 }
 0x99b   : > { %v7211_v57 = vmax.f32 %v24628_v4, %v7076_v35  ;;  %v7078_v2 = vpop.f32.mrb[125].mxu1  ;;  %v24638_v4 = vmax.f32 %v20849_v43, %v21027_v20  ;;  %v24643_v20 = vld [vmem:[#allocation7_spill] sm:$0xff] }
 0x99c   : > { %v7079_v5 = vpop.f32.mrb[126].mxu1 }
 0x99d   : > { %v7212_v11 = vmax.f32 %v24629_v19, %v7079_v5  ;;  %v7081_v60 = vpop.f32.mrb[127].mxu1  ;;  %v24640_v5 = vmax.f32 %v20851_v49, %v24639_v17 }
 0x99e   : > { %v24641_v60 = vld [vmem:[#allocation4_spill] sm:$0xff] }
 0x99f   : > { %v7247_v0 = vpack.c.bf16 %v7212_v11, %v7211_v57 }
 0x9a1   : > { %15447 = vmatmul.mubr.msk.bf16.gmra.mrb[52].mxu0 %vm2478_vm0, %v7247_v0  ;;  %v24642_v0 = vmax.f32 %v20859_v41, %v24641_v60 }
 0x9a2   : > { %v7084_v58 = vpop.f32.mrb[128].mxu1  ;;  %7441 = vmatprep.mubr.bf16.mxu0 %v24483_v34 }
 0x9a3   : > { %v7213_v32 = vmax.f32 %v24630_v24, %v7084_v58  ;;  %v7086_v13 = vpop.f32.mrb[129].mxu1 }
 0x9a4   : > { %v7087_v3 = vpop.f32.mrb[130].mxu1 }
 0x9a5   : > { %v7214_v16 = vmax.f32 %v24631_v38, %v7087_v3  ;;  %v7089_v14 = vpop.f32.mrb[131].mxu1 }
 0x9a7   : > { %v7248_v23 = vpack.c.bf16 %v7214_v16, %v7213_v32  ;;  %v24644_v32 = vmax.f32 %v20861_v56, %v24643_v20  ;;  %v24645_v16 = vld [vmem:[#allocation6_spill] sm:$0xff] }
 0x9a8   : > { %v24646_v14 = vmax.f32 %v20875_v54, %v24645_v16 }
 0x9a9   : > { %15448 = vmatmul.mubr.msk.bf16.gmra.mrb[56].mxu0 %vm2478_vm0, %v7248_v23 }
 0x9aa   : > { %v7092_v40 = vpop.f32.mrb[132].mxu1  ;;  %7451 = vmatprep.mubr.bf16.mxu0 %v24483_v34 }
 0x9ab   : > { %v7215_v51 = vmax.f32 %v24632_v28, %v7092_v40  ;;  %v7094_v29 = vpop.f32.mrb[133].mxu1  ;;  %v24647_v28 = vld [vmem:[#allocation9_spill] sm:$0xff] }
 0x9ac   : > { %v7095_v27 = vpop.f32.mrb[134].mxu1 }
 0x9ad   : > { %v7216_v26 = vmax.f32 %v24633_v59, %v7095_v27  ;;  %v7097_v12 = vpop.f32.mrb[135].mxu1 }
 0x9af   : > { %v7249_v1 = vpack.c.bf16 %v7216_v26, %v7215_v51  ;;  %v24648_v51 = vmax.f32 %v20877_v46, %v24647_v28  ;;  %v24649_v26 = vld [vmem:[#allocation8_spill] sm:$0xff] }
 0x9b0   : > { %v24650_v12 = vmax.f32 %v20885_v45, %v24649_v26 }
 0x9b1   : > { %15449 = vmatmul.mubr.msk.bf16.gmra.mrb[60].mxu0 %vm2478_vm0, %v7249_v1 }
 0x9b2   : > { %v7100_v52 = vpop.f32.mrb[136].mxu1  ;;  %7461 = vmatprep.mubr.bf16.mxu0 %v24483_v34 }
 0x9b3   : > { %v7217_v18 = vmax.f32 %v24634_v47, %v7100_v52  ;;  %v7102_v42 = vpop.f32.mrb[137].mxu1  ;;  %v24651_v47 = vld [vmem:[#allocation11_spill] sm:$0xff] }
 0x9b4   : > { %v7103_v22 = vpop.f32.mrb[138].mxu1 }
 0x9b5   : > { %v7218_v31 = vmax.f32 %v24635_v33, %v7103_v22  ;;  %v7105_v39 = vpop.f32.mrb[139].mxu1 }
 0x9b7   : > { %v7250_v61 = vpack.c.bf16 %v7218_v31, %v7217_v18  ;;  %v24652_v18 = vmax.f32 %v20887_v6, %v24651_v47  ;;  %v24653_v31 = vld [vmem:[#allocation10_spill] sm:$0xff] }
 0x9b8   : > { %v24654_v39 = vmax.f32 %v20901_v8, %v24653_v31 }
 0x9b9   : > { %15450 = vmatmul.mubr.msk.bf16.gmra.mrb[64].mxu0 %vm2478_vm0, %v7250_v61 }
 0x9ba   : > { %v7108_v55 = vpop.f32.mrb[140].mxu1  ;;  %7471 = vmatprep.mubr.bf16.mxu0 %v24483_v34 }
 0x9bb   : > { %v7219_v10 = vmax.f32 %v24636_v63, %v7108_v55  ;;  %v7110_v53 = vpop.f32.mrb[141].mxu1  ;;  %v24655_v63 = vld [vmem:[#allocation13_spill] sm:$0xff] }
 0x9bc   : > { %v7111_v44 = vpop.f32.mrb[142].mxu1 }
 0x9bd   : > { %v7220_v36 = vmax.f32 %v24637_v25, %v7111_v44  ;;  %v7113_v35 = vpop.f32.mrb[143].mxu1 }
 0x9be   : > { %v24658_v35 = vld [vmem:[#allocation12_spill] sm:$0xff] }
 0x9bf   : > { %v7251_v62 = vpack.c.bf16 %v7220_v36, %v7219_v10  ;;  %v24656_v10 = vmax.f32 %v20903_v21, %v24655_v63  ;;  %v24657_v36 = vld [vmem:[#allocation3_spill] sm:$0xff] }
 0x9c1   : > { %15451 = vmatmul.mubr.msk.bf16.gmra.mrb[68].mxu0 %vm2478_vm0, %v7251_v62  ;;  %v24659_v62 = vmax.f32 %v24657_v36, %v24658_v35 }
 0x9c2   : > { %v7116_v50 = vpop.f32.mrb[144].mxu1  ;;  %7481 = vmatprep.mubr.bf16.mxu0 %v24483_v34 }
 0x9c3   : > { %v7221_v57 = vmax.f32 %v24638_v4, %v7116_v50  ;;  %v7118_v2 = vpop.f32.mrb[145].mxu1 }
 0x9c4   : > { %v7119_v15 = vpop.f32.mrb[146].mxu1  ;;  %v24661_v2 = vld [vmem:[#allocation15_spill] sm:$0xff] }
 0x9c5   : > { %v7222_v19 = vmax.f32 %v24640_v5, %v7119_v15  ;;  %v7121_v11 = vpop.f32.mrb[147].mxu1 }
 0x9c6   : > { %v24663_v11 = vmax.f32 %v20921_v9, %v21075_v7  ;;  %v7259_v9 = vld [vmem:[%s24666_s24] sm:$0x3]  ;;  %s24366_s24 = sshll.u32 %s24670_s30, 7 }
 0x9c7   : > { %v7252_v37 = vpack.c.bf16 %v7222_v19, %v7221_v57  ;;  %v24660_v57 = vld [vmem:[#allocation2_spill] sm:$0xff]  ;;  %s22274_s1 = scalar_lea.vmem %s24262_s22, %s24366_s24 }
 0x9c8   : > { %v24662_v15 = vmax.f32 %v24660_v57, %v24661_v2 }
 0x9c9   : > { %15452 = vmatmul.mubr.msk.bf16.gmra.mrb[72].mxu0 %vm2478_vm0, %v7252_v37 }
 0x9ca   : > { %v7124_v48 = vpop.f32.mrb[148].mxu1  ;;  %7491 = vmatprep.mubr.bf16.mxu0 %v24483_v34 }
 0x9cb   : > { %v7223_v58 = vmax.f32 %v24642_v0, %v7124_v48  ;;  %v7126_v24 = vpop.f32.mrb[149].mxu1  ;;  %v24664_v0 = vld [vmem:[#allocation14_spill] sm:$0xff] }
 0x9cc   : > { %v7127_v43 = vpop.f32.mrb[150].mxu1 }
 0x9cd   : > { %v7224_v13 = vmax.f32 %v24644_v32, %v7127_v43  ;;  %v7129_v3 = vpop.f32.mrb[151].mxu1  ;;  %v7261_v32 = vlaneseq }
 0x9cf   : > { %v7253_v49 = vpack.c.bf16 %v7224_v13, %v7223_v58  ;;  %v24665_v58 = vmax.f32 %v20929_v30, %v24664_v0  ;;  %v21210_v13 = vshrl.u32 %v7261_v32, 7 }
 0x9d1   : > { %15453 = vmatmul.mubr.msk.bf16.gmra.mrb[76].mxu0 %vm2478_vm0, %v7253_v49  ;;  %v21213_v3 = vsub.s32 0, %v21210_v13  ;;  %v21219_v7 = vsub.s32 1, %v21210_v13 }
 0x9d2   : > { %v7132_v38 = vpop.f32.mrb[152].mxu1  ;;  %7501 = vmatprep.mubr.bf16.mxu0 %v24483_v34 }
 0x9d3   : > { %v7225_v23 = vmax.f32 %v24646_v14, %v7132_v38  ;;  %v7134_v40 = vpop.f32.mrb[153].mxu1  ;;  %v21222_v30 = vrot.slane %v7259_v9, %v21213_v3  ;;  %v21225_v49 = vrot.slane %v7259_v9, %v21219_v7 }
 0x9d4   : > { %v7135_v41 = vpop.f32.mrb[154].mxu1 }
 0x9d5   : > { %v7226_v29 = vmax.f32 %v24648_v51, %v7135_v41  ;;  %v7137_v27 = vpop.f32.mrb[155].mxu1 }
 0x9d7   : > { %v7254_v56 = vpack.c.bf16 %v7226_v29, %v7225_v23  ;;  %v17322_v29 = vld [vmem:[%s24257_s17 + $0x4] ss:$8 sps:$4 sm:$0xff]  }
 0x9d9   : > { %15454 = vmatmul.mubr.msk.bf16.gmra.mrb[80].mxu0 %vm2478_vm0, %v7254_v56 }
 0x9da   : > { %v7140_v59 = vpop.f32.mrb[156].mxu1  ;;  %7511 = vmatprep.mubr.bf16.mxu0 %v24483_v34 }
 0x9db   : > { %v7227_v1 = vmax.f32 %v24650_v12, %v7140_v59  ;;  %v7142_v52 = vpop.f32.mrb[157].mxu1 }
 0x9dc   : > { %v7143_v54 = vpop.f32.mrb[158].mxu1 }
 0x9dd   : > { %v7228_v42 = vmax.f32 %v24652_v18, %v7143_v54  ;;  %v7145_v22 = vpop.f32.mrb[159].mxu1 }
 0x9df   : > { %v7255_v46 = vpack.c.bf16 %v7228_v42, %v7227_v1 }
 0x9e1   : > { %15455 = vmatmul.mubr.msk.bf16.gmra.mrb[84].mxu0 %vm2478_vm0, %v7255_v46 }
 0x9e2   : > { %v7148_v33 = vpop.f32.mrb[160].mxu1  ;;  %7521 = vmatprep.mubr.bf16.mxu0 %v24483_v34 }
 0x9e3   : > { %v7229_v61 = vmax.f32 %v24654_v39, %v7148_v33  ;;  %v7150_v55 = vpop.f32.mrb[161].mxu1 }
 0x9e4   : > { %v7151_v45 = vpop.f32.mrb[162].mxu1 }
 0x9e5   : > { %v7230_v53 = vmax.f32 %v24656_v10, %v7151_v45  ;;  %v7153_v44 = vpop.f32.mrb[163].mxu1 }
 0x9e7   : > { %v7256_v6 = vpack.c.bf16 %v7230_v53, %v7229_v61 }
 0x9e9   : > { %15456 = vmatmul.mubr.msk.bf16.gmra.mrb[88].mxu0 %vm2478_vm0, %v7256_v6 }
 0x9ea   : > { %v7156_v25 = vpop.f32.mrb[164].mxu1  ;;  %7531 = vmatprep.mubr.bf16.mxu0 %v24483_v34 }
 0x9eb   : > { %v7231_v50 = vmax.f32 %v24659_v62, %v7156_v25  ;;  %v7158_v4 = vpop.f32.mrb[165].mxu1 }
 0x9ec   : > { %v7159_v8 = vpop.f32.mrb[166].mxu1 }
 0x9ed   : > { %v7232_v17 = vmax.f32 %v24662_v15, %v7159_v8  ;;  %v7161_v5 = vpop.f32.mrb[167].mxu1 }
 0x9ef   : > { %v7257_v21 = vpack.c.bf16 %v7232_v17, %v7231_v50 }
 0x9f1   : > { %15457 = vmatmul.mubr.msk.bf16.gmra.mrb[92].mxu0 %vm2478_vm0, %v7257_v21 }
 0x9f2   : > { %v7164_v19 = vpop.f32.mrb[168].mxu1  ;;  %7541 = vmatprep.mubr.bf16.mxu0 %v24483_v34 }
 0x9f3   : > { %v7233_v37 = vmax.f32 %v24663_v11, %v7164_v19  ;;  %v7166_v48 = vpop.f32.mrb[169].mxu1 }
 0x9f4   : > { %v7167_v60 = vpop.f32.mrb[170].mxu1 }
 0x9f5   : > { %v7234_v24 = vmax.f32 %v24665_v58, %v7167_v60  ;;  %v7169_v43 = vpop.f32.mrb[171].mxu1 }
 0x9f7   : > { %v7258_v20 = vpack.c.bf16 %v7234_v24, %v7233_v37 }
 0x9f9   : > { %15458 = vmatmul.mubr.msk.bf16.gmra.mrb[96].mxu0 %vm2478_vm0, %v7258_v20 }
 0x9fa   : > { %7692 = vmatprep.mubr.bf16.mxu0 %v17322_v29 }
 0xa54   : > { %v7393_v38 = vpop.f32.mrb[36].mxu0 }
 0xa55   : > { %v7394_v16 = vadd.f32 %v7393_v38, %v21222_v30  ;;  %v7395_v14 = vpop.f32.mrb[37].mxu0 }
 0xa56   : > { %v7396_v23 = vadd.f32 %v7395_v14, %v21225_v49  ;;  %v7397_v40 = vpop.f32.mrb[38].mxu0 }
 0xa57   : > { %v7398_v41 = vadd.f32 %v7397_v40, %v21222_v30  ;;  %v7399_v28 = vpop.f32.mrb[39].mxu0  ;;  %v7552_v27 = vmax.f32 %v7394_v16, 0.0 }
 0xa58   : > { %v7400_v51 = vadd.f32 %v7399_v28, %v21225_v49  ;;  %v7553_v59 = vmax.f32 %v7396_v23, 0.0 }
 0xa59   : > { %v7554_v56 = vmax.f32 %v7398_v41, 0.0 }
 0xa5a   : > { %v7555_v26 = vmax.f32 %v7400_v51, 0.0 }
 0xa5b   : > { %v21234_v12 = vpack.c.bf16 %v7554_v56, %v7552_v27 }
 0xa5c   : > { %v21236_v1 = vpack.c.bf16 %v7555_v26, %v7553_v59  ;;  %v7403_v52 = vpop.f32.mrb[40].mxu0 }
 0xa5d   : > { %v7404_v54 = vadd.f32 %v7403_v52, %v21222_v30  ;;  %v7405_v47 = vpop.f32.mrb[41].mxu0 }
 0xa5e   : > { %v7406_v18 = vadd.f32 %v7405_v47, %v21225_v49  ;;  %v7407_v42 = vpop.f32.mrb[42].mxu0  ;;  %7660 = vmatprep.subr.bf16.mxu0 %v21236_v1 }
 0xa5f   : > { %v7408_v22 = vadd.f32 %v7407_v42, %v21222_v30  ;;  %v7409_v46 = vpop.f32.mrb[43].mxu0  ;;  %7661 = vmatpush1.bf16.msra.mxu0 %v21234_v12  ;;  %v7556_v31 = vmax.f32 %v7404_v54, 0.0 }
 0xa60   : > { %v7410_v33 = vadd.f32 %v7409_v46, %v21225_v49  ;;  %v7557_v61 = vmax.f32 %v7406_v18, 0.0 }
 0xa61   : > { %v7558_v39 = vmax.f32 %v7408_v22, 0.0 }
 0xa62   : > { %v7559_v55 = vmax.f32 %v7410_v33, 0.0 }
 0xa63   : > { %v21244_v45 = vpack.c.bf16 %v7558_v39, %v7556_v31 }
 0xa64   : > { %v21246_v63 = vpack.c.bf16 %v7559_v55, %v7557_v61  ;;  %v7413_v10 = vpop.f32.mrb[44].mxu0 }
 0xa65   : > { %v7414_v53 = vadd.f32 %v7413_v10, %v21222_v30  ;;  %v7415_v44 = vpop.f32.mrb[45].mxu0 }
 0xa66   : > { %v7416_v6 = vadd.f32 %v7415_v44, %v21225_v49  ;;  %v7417_v25 = vpop.f32.mrb[46].mxu0  ;;  %7662 = vmatprep.subr.bf16.mxu0 %v21246_v63 }
 0xa67   : > { %v7418_v36 = vadd.f32 %v7417_v25, %v21222_v30  ;;  %v7419_v35 = vpop.f32.mrb[47].mxu0  ;;  %7663 = vmatpush1.bf16.msra.mxu0 %v21244_v45  ;;  %v7560_v50 = vmax.f32 %v7414_v53, 0.0 }
 0xa68   : > { %v7420_v62 = vadd.f32 %v7419_v35, %v21225_v49  ;;  %v7561_v8 = vmax.f32 %v7416_v6, 0.0 }
 0xa69   : > { %v7562_v4 = vmax.f32 %v7418_v36, 0.0 }
 0xa6a   : > { %v7563_v57 = vmax.f32 %v7420_v62, 0.0 }
 0xa6b   : > { %v21254_v2 = vpack.c.bf16 %v7562_v4, %v7560_v50 }
 0xa6c   : > { %v21256_v15 = vpack.c.bf16 %v7563_v57, %v7561_v8  ;;  %v7423_v17 = vpop.f32.mrb[48].mxu0 }
 0xa6d   : > { %v7424_v5 = vadd.f32 %v7423_v17, %v21222_v30  ;;  %v7425_v21 = vpop.f32.mrb[49].mxu0 }
 0xa6e   : > { %v7426_v19 = vadd.f32 %v7425_v21, %v21225_v49  ;;  %v7427_v11 = vpop.f32.mrb[50].mxu0  ;;  %7664 = vmatprep.subr.bf16.mxu0 %v21256_v15 }
 0xa6f   : > { %v7428_v37 = vadd.f32 %v7427_v11, %v21222_v30  ;;  %v7429_v48 = vpop.f32.mrb[51].mxu0  ;;  %7665 = vmatpush1.bf16.msra.mxu0 %v21254_v2  ;;  %v7564_v0 = vmax.f32 %v7424_v5, 0.0 }
 0xa70   : > { %v7430_v60 = vadd.f32 %v7429_v48, %v21225_v49  ;;  %v7565_v24 = vmax.f32 %v7426_v19, 0.0 }
 0xa71   : > { %v7566_v58 = vmax.f32 %v7428_v37, 0.0 }
 0xa72   : > { %v7567_v43 = vmax.f32 %v7430_v60, 0.0 }
 0xa73   : > { %v21264_v20 = vpack.c.bf16 %v7566_v58, %v7564_v0 }
 0xa74   : > { %v21266_v32 = vpack.c.bf16 %v7567_v43, %v7565_v24  ;;  %v7433_v9 = vpop.f32.mrb[52].mxu0 }
 0xa75   : > { %v7434_v38 = vadd.f32 %v7433_v9, %v21222_v30  ;;  %v7435_v16 = vpop.f32.mrb[53].mxu0 }
 0xa76   : > { %v7436_v14 = vadd.f32 %v7435_v16, %v21225_v49  ;;  %v7437_v23 = vpop.f32.mrb[54].mxu0  ;;  %7666 = vmatprep.subr.bf16.mxu0 %v21266_v32 }
 0xa77   : > { %v7438_v40 = vadd.f32 %v7437_v23, %v21222_v30  ;;  %v7439_v41 = vpop.f32.mrb[55].mxu0  ;;  %7667 = vmatpush1.bf16.msra.mxu0 %v21264_v20  ;;  %v7568_v51 = vmax.f32 %v7434_v38, 0.0 }
 0xa78   : > { %v7440_v28 = vadd.f32 %v7439_v41, %v21225_v49  ;;  %v7569_v27 = vmax.f32 %v7436_v14, 0.0 }
 0xa79   : > { %v7570_v29 = vmax.f32 %v7438_v40, 0.0 }
 0xa7a   : > { %v7571_v56 = vmax.f32 %v7440_v28, 0.0 }
 0xa7b   : > { %v21274_v59 = vpack.c.bf16 %v7570_v29, %v7568_v51 }
 0xa7c   : > { %v21276_v26 = vpack.c.bf16 %v7571_v56, %v7569_v27  ;;  %v7443_v52 = vpop.f32.mrb[56].mxu0 }
 0xa7d   : > { %v7444_v54 = vadd.f32 %v7443_v52, %v21222_v30  ;;  %v7445_v47 = vpop.f32.mrb[57].mxu0 }
 0xa7e   : > { %v7446_v18 = vadd.f32 %v7445_v47, %v21225_v49  ;;  %v7447_v42 = vpop.f32.mrb[58].mxu0  ;;  %7668 = vmatprep.subr.bf16.mxu0 %v21276_v26 }
 0xa7f   : > { %v7448_v22 = vadd.f32 %v7447_v42, %v21222_v30  ;;  %v7449_v46 = vpop.f32.mrb[59].mxu0  ;;  %7669 = vmatpush1.bf16.msra.mxu0 %v21274_v59  ;;  %v7572_v31 = vmax.f32 %v7444_v54, 0.0 }
 0xa80   : > { %v7450_v33 = vadd.f32 %v7449_v46, %v21225_v49  ;;  %v7573_v61 = vmax.f32 %v7446_v18, 0.0 }
 0xa81   : > { %v7574_v39 = vmax.f32 %v7448_v22, 0.0 }
 0xa82   : > { %v7575_v55 = vmax.f32 %v7450_v33, 0.0 }
 0xa83   : > { %v21284_v10 = vpack.c.bf16 %v7574_v39, %v7572_v31 }
 0xa84   : > { %v21286_v53 = vpack.c.bf16 %v7575_v55, %v7573_v61  ;;  %v7453_v44 = vpop.f32.mrb[60].mxu0 }
 0xa85   : > { %v7454_v6 = vadd.f32 %v7453_v44, %v21222_v30  ;;  %v7455_v25 = vpop.f32.mrb[61].mxu0 }
 0xa86   : > { %v7456_v36 = vadd.f32 %v7455_v25, %v21225_v49  ;;  %v7457_v35 = vpop.f32.mrb[62].mxu0  ;;  %7670 = vmatprep.subr.bf16.mxu0 %v21286_v53 }
 0xa87   : > { %v7458_v62 = vadd.f32 %v7457_v35, %v21222_v30  ;;  %v7459_v50 = vpop.f32.mrb[63].mxu0  ;;  %7671 = vmatpush1.bf16.msra.mxu0 %v21284_v10  ;;  %v7576_v8 = vmax.f32 %v7454_v6, 0.0 }
 0xa88   : > { %v7460_v4 = vadd.f32 %v7459_v50, %v21225_v49  ;;  %v7577_v17 = vmax.f32 %v7456_v36, 0.0 }
 0xa89   : > { %v7578_v57 = vmax.f32 %v7458_v62, 0.0 }
 0xa8a   : > { %v7579_v5 = vmax.f32 %v7460_v4, 0.0 }
 0xa8b   : > { %v21294_v21 = vpack.c.bf16 %v7578_v57, %v7576_v8 }
 0xa8c   : > { %v21296_v19 = vpack.c.bf16 %v7579_v5, %v7577_v17  ;;  %v7463_v11 = vpop.f32.mrb[64].mxu0 }
 0xa8d   : > { %v7464_v37 = vadd.f32 %v7463_v11, %v21222_v30  ;;  %v7465_v48 = vpop.f32.mrb[65].mxu0 }
 0xa8e   : > { %v7466_v60 = vadd.f32 %v7465_v48, %v21225_v49  ;;  %v7467_v0 = vpop.f32.mrb[66].mxu0  ;;  %7672 = vmatprep.subr.bf16.mxu0 %v21296_v19 }
 0xa8f   : > { %v7468_v58 = vadd.f32 %v7467_v0, %v21222_v30  ;;  %v7469_v24 = vpop.f32.mrb[67].mxu0  ;;  %7673 = vmatpush1.bf16.msra.mxu0 %v21294_v21  ;;  %v7580_v9 = vmax.f32 %v7464_v37, 0.0 }
 0xa90   : > { %v7470_v43 = vadd.f32 %v7469_v24, %v21225_v49  ;;  %v7581_v16 = vmax.f32 %v7466_v60, 0.0 }
 0xa91   : > { %v7582_v38 = vmax.f32 %v7468_v58, 0.0 }
 0xa92   : > { %v7583_v14 = vmax.f32 %v7470_v43, 0.0 }
 0xa93   : > { %v21304_v23 = vpack.c.bf16 %v7582_v38, %v7580_v9 }
 0xa94   : > { %v21306_v40 = vpack.c.bf16 %v7583_v14, %v7581_v16  ;;  %v7473_v41 = vpop.f32.mrb[68].mxu0 }
 0xa95   : > { %v7474_v28 = vadd.f32 %v7473_v41, %v21222_v30  ;;  %v7475_v51 = vpop.f32.mrb[69].mxu0 }
 0xa96   : > { %v7476_v29 = vadd.f32 %v7475_v51, %v21225_v49  ;;  %v7477_v27 = vpop.f32.mrb[70].mxu0  ;;  %7674 = vmatprep.subr.bf16.mxu0 %v21306_v40 }
 0xa97   : > { %v7478_v56 = vadd.f32 %v7477_v27, %v21222_v30  ;;  %v7479_v52 = vpop.f32.mrb[71].mxu0  ;;  %7675 = vmatpush1.bf16.msra.mxu0 %v21304_v23  ;;  %v7584_v47 = vmax.f32 %v7474_v28, 0.0 }
 0xa98   : > { %v7480_v54 = vadd.f32 %v7479_v52, %v21225_v49  ;;  %v7585_v42 = vmax.f32 %v7476_v29, 0.0 }
 0xa99   : > { %v7586_v18 = vmax.f32 %v7478_v56, 0.0 }
 0xa9a   : > { %v7587_v22 = vmax.f32 %v7480_v54, 0.0 }
 0xa9b   : > { %v21314_v46 = vpack.c.bf16 %v7586_v18, %v7584_v47 }
 0xa9c   : > { %v21316_v33 = vpack.c.bf16 %v7587_v22, %v7585_v42  ;;  %v7483_v31 = vpop.f32.mrb[72].mxu0 }
 0xa9d   : > { %v7484_v39 = vadd.f32 %v7483_v31, %v21222_v30  ;;  %v7485_v61 = vpop.f32.mrb[73].mxu0 }
 0xa9e   : > { %v7486_v55 = vadd.f32 %v7485_v61, %v21225_v49  ;;  %v7487_v44 = vpop.f32.mrb[74].mxu0  ;;  %7676 = vmatprep.subr.bf16.mxu0 %v21316_v33 }
 0xa9f   : > { %v7488_v6 = vadd.f32 %v7487_v44, %v21222_v30  ;;  %v7489_v25 = vpop.f32.mrb[75].mxu0  ;;  %7677 = vmatpush1.bf16.msra.mxu0 %v21314_v46  ;;  %v7588_v35 = vmax.f32 %v7484_v39, 0.0 }
 0xaa0   : > { %v7490_v36 = vadd.f32 %v7489_v25, %v21225_v49  ;;  %v7589_v50 = vmax.f32 %v7486_v55, 0.0 }
 0xaa1   : > { %v7590_v62 = vmax.f32 %v7488_v6, 0.0 }
 0xaa2   : > { %v7591_v4 = vmax.f32 %v7490_v36, 0.0 }
 0xaa3   : > { %v21324_v8 = vpack.c.bf16 %v7590_v62, %v7588_v35 }
 0xaa4   : > { %v21326_v57 = vpack.c.bf16 %v7591_v4, %v7589_v50  ;;  %v7493_v17 = vpop.f32.mrb[76].mxu0 }
 0xaa5   : > { %v7494_v5 = vadd.f32 %v7493_v17, %v21222_v30  ;;  %v7495_v11 = vpop.f32.mrb[77].mxu0 }
 0xaa6   : > { %v7496_v37 = vadd.f32 %v7495_v11, %v21225_v49  ;;  %v7497_v48 = vpop.f32.mrb[78].mxu0  ;;  %7678 = vmatprep.subr.bf16.mxu0 %v21326_v57 }
 0xaa7   : > { %v7498_v60 = vadd.f32 %v7497_v48, %v21222_v30  ;;  %v7499_v0 = vpop.f32.mrb[79].mxu0  ;;  %7679 = vmatpush1.bf16.msra.mxu0 %v21324_v8  ;;  %v7592_v24 = vmax.f32 %v7494_v5, 0.0 }
 0xaa8   : > { %v7500_v58 = vadd.f32 %v7499_v0, %v21225_v49  ;;  %v7593_v9 = vmax.f32 %v7496_v37, 0.0 }
 0xaa9   : > { %v7594_v43 = vmax.f32 %v7498_v60, 0.0 }
 0xaaa   : > { %v7595_v38 = vmax.f32 %v7500_v58, 0.0 }
 0xaab   : > { %v21334_v16 = vpack.c.bf16 %v7594_v43, %v7592_v24 }
 0xaac   : > { %v21336_v14 = vpack.c.bf16 %v7595_v38, %v7593_v9  ;;  %v7503_v41 = vpop.f32.mrb[80].mxu0 }
 0xaad   : > { %v7504_v28 = vadd.f32 %v7503_v41, %v21222_v30  ;;  %v7505_v51 = vpop.f32.mrb[81].mxu0 }
 0xaae   : > { %v7506_v29 = vadd.f32 %v7505_v51, %v21225_v49  ;;  %v7507_v27 = vpop.f32.mrb[82].mxu0  ;;  %7680 = vmatprep.subr.bf16.mxu0 %v21336_v14 }
 0xaaf   : > { %v7508_v56 = vadd.f32 %v7507_v27, %v21222_v30  ;;  %v7509_v52 = vpop.f32.mrb[83].mxu0  ;;  %7681 = vmatpush1.bf16.msra.mxu0 %v21334_v16  ;;  %v7596_v47 = vmax.f32 %v7504_v28, 0.0 }
 0xab0   : > { %v7510_v54 = vadd.f32 %v7509_v52, %v21225_v49  ;;  %v7597_v42 = vmax.f32 %v7506_v29, 0.0 }
 0xab1   : > { %v7598_v18 = vmax.f32 %v7508_v56, 0.0 }
 0xab2   : > { %v7599_v22 = vmax.f32 %v7510_v54, 0.0 }
 0xab3   : > { %v21344_v31 = vpack.c.bf16 %v7598_v18, %v7596_v47 }
 0xab4   : > { %v21346_v39 = vpack.c.bf16 %v7599_v22, %v7597_v42  ;;  %v7513_v61 = vpop.f32.mrb[84].mxu0 }
 0xab5   : > { %v7514_v55 = vadd.f32 %v7513_v61, %v21222_v30  ;;  %v7515_v44 = vpop.f32.mrb[85].mxu0 }
 0xab6   : > { %v7516_v6 = vadd.f32 %v7515_v44, %v21225_v49  ;;  %v7517_v25 = vpop.f32.mrb[86].mxu0  ;;  %7682 = vmatprep.subr.bf16.mxu0 %v21346_v39 }
 0xab7   : > { %v7518_v36 = vadd.f32 %v7517_v25, %v21222_v30  ;;  %v7519_v35 = vpop.f32.mrb[87].mxu0  ;;  %7683 = vmatpush1.bf16.msra.mxu0 %v21344_v31  ;;  %v7600_v50 = vmax.f32 %v7514_v55, 0.0 }
 0xab8   : > { %v7520_v62 = vadd.f32 %v7519_v35, %v21225_v49  ;;  %v7601_v17 = vmax.f32 %v7516_v6, 0.0 }
 0xab9   : > { %v7602_v4 = vmax.f32 %v7518_v36, 0.0 }
 0xaba   : > { %v7603_v5 = vmax.f32 %v7520_v62, 0.0 }
 0xabb   : > { %v21354_v11 = vpack.c.bf16 %v7602_v4, %v7600_v50 }
 0xabc   : > { %v21356_v37 = vpack.c.bf16 %v7603_v5, %v7601_v17  ;;  %v7523_v48 = vpop.f32.mrb[88].mxu0 }
 0xabd   : > { %v7524_v60 = vadd.f32 %v7523_v48, %v21222_v30  ;;  %v7525_v0 = vpop.f32.mrb[89].mxu0 }
 0xabe   : > { %v7526_v58 = vadd.f32 %v7525_v0, %v21225_v49  ;;  %v7527_v24 = vpop.f32.mrb[90].mxu0  ;;  %7684 = vmatprep.subr.bf16.mxu0 %v21356_v37 }
 0xabf   : > { %v7528_v43 = vadd.f32 %v7527_v24, %v21222_v30  ;;  %v7529_v9 = vpop.f32.mrb[91].mxu0  ;;  %7685 = vmatpush1.bf16.msra.mxu0 %v21354_v11  ;;  %v7604_v41 = vmax.f32 %v7524_v60, 0.0 }
 0xac0   : > { %v7530_v38 = vadd.f32 %v7529_v9, %v21225_v49  ;;  %v7605_v51 = vmax.f32 %v7526_v58, 0.0 }
 0xac1   : > { %v7606_v28 = vmax.f32 %v7528_v43, 0.0 }
 0xac2   : > { %v7607_v29 = vmax.f32 %v7530_v38, 0.0 }
 0xac3   : > { %v21364_v27 = vpack.c.bf16 %v7606_v28, %v7604_v41 }
 0xac4   : > { %v21366_v56 = vpack.c.bf16 %v7607_v29, %v7605_v51  ;;  %v7533_v52 = vpop.f32.mrb[92].mxu0  ;;  %v17320_v51 = vld [vmem:[%s24257_s17] ss:$8 sps:$4 sm:$0xff]   ;;  %v17367_v29 = vld [vmem:[%s24248_s8 + $0x144] ss:$16 sps:$4 sm:$0xff]  }
 0xac5   : > { %v7534_v54 = vadd.f32 %v7533_v52, %v21222_v30  ;;  %v7535_v47 = vpop.f32.mrb[93].mxu0  ;;  %v17368_v52 = vld [vmem:[%s24248_s8 + $0x160] ss:$16 sps:$4 sm:$0xff]  }
 0xac6   : > { %v7536_v18 = vadd.f32 %v7535_v47, %v21225_v49  ;;  %v7537_v42 = vpop.f32.mrb[94].mxu0  ;;  %7686 = vmatprep.subr.bf16.mxu0 %v21366_v56  ;;  %v17371_v47 = vld [vmem:[%s24248_s8 + $0x180] ss:$16 sps:$4 sm:$0xff]  }
 0xac7   : > { %v7538_v22 = vadd.f32 %v7537_v42, %v21222_v30  ;;  %v7539_v61 = vpop.f32.mrb[95].mxu0  ;;  %7687 = vmatpush1.bf16.msra.mxu0 %v21364_v27  ;;  %v7608_v44 = vmax.f32 %v7534_v54, 0.0  ;;  %v17373_v54 = vld [vmem:[%s24248_s8 + $0x184] ss:$16 sps:$4 sm:$0xff]   ;;  %v17374_v42 = vld [vmem:[%s24248_s8 + $0x1a0] ss:$16 sps:$4 sm:$0xff]  }
 0xac8   : > { %v7540_v55 = vadd.f32 %v7539_v61, %v21225_v49  ;;  %v7609_v25 = vmax.f32 %v7536_v18, 0.0  ;;  %v17376_v18 = vld [vmem:[%s24248_s8 + $0x1a4] ss:$16 sps:$4 sm:$0xff]   ;;  %v17377_v61 = vld [vmem:[%s24248_s8 + $0x1c0] ss:$16 sps:$4 sm:$0xff]  }
 0xac9   : > { %v7610_v6 = vmax.f32 %v7538_v22, 0.0  ;;  %v17379_v22 = vld [vmem:[%s24248_s8 + $0x1c4] ss:$16 sps:$4 sm:$0xff]  }
 0xaca   : > { %v7611_v36 = vmax.f32 %v7540_v55, 0.0  ;;  %v17382_v55 = vld [vmem:[%s24248_s8 + $0x1e4] ss:$16 sps:$4 sm:$0xff]  }
 0xacb   : > { %v7644_v35 = vpack.c.bf16 %v7610_v6, %v7608_v44  ;;  %v17380_v44 = vld [vmem:[%s24248_s8 + $0x1e0] ss:$16 sps:$4 sm:$0xff]   ;;  %v17385_v6 = vld [vmem:[%s24248_s8 + $0xc] ss:$16 sps:$4 sm:$0xff]  }
 0xacc   : > { %v7645_v62 = vpack.c.bf16 %v7611_v36, %v7609_v25  ;;  %v7543_v50 = vpop.f32.mrb[96].mxu0 }
 0xacd   : > { %v7544_v4 = vadd.f32 %v7543_v50, %v21222_v30  ;;  %v7545_v17 = vpop.f32.mrb[97].mxu0 }
 0xace   : > { %v7546_v5 = vadd.f32 %v7545_v17, %v21225_v49  ;;  %v7547_v48 = vpop.f32.mrb[98].mxu0  ;;  %7688 = vmatprep.subr.bf16.mxu0 %v7645_v62 }
 0xacf   : > { %v7548_v60 = vadd.f32 %v7547_v48, %v21222_v30  ;;  %v7549_v0 = vpop.f32.mrb[99].mxu0  ;;  %7689 = vmatpush1.bf16.msra.mxu0 %v7644_v35  ;;  %v7612_v24 = vmax.f32 %v7544_v4, 0.0  ;;  %v17325_v30 = vld [vmem:[%s24667_s3 + $0x4] ss:$8 sps:$4 sm:$0xff]  }
 0xad0   : > { %v7550_v58 = vadd.f32 %v7549_v0, %v21225_v49  ;;  %v7613_v9 = vmax.f32 %v7546_v5, 0.0  ;;  %v17323_v49 = vld [vmem:[%s24667_s3] ss:$8 sps:$4 sm:$0xff]  }
 0xad1   : > { %v7614_v43 = vmax.f32 %v7548_v60, 0.0  ;;  %v17383_v0 = vld [vmem:[%s24248_s8 + $0x8] ss:$16 sps:$4 sm:$0xff]  }
 0xad2   : > { %v7615_v38 = vmax.f32 %v7550_v58, 0.0  ;;  %v17388_v58 = vld [vmem:[%s24248_s8 + $0x2c] ss:$16 sps:$4 sm:$0xff]  }
 0xad3   : > { %v7646_v41 = vpack.c.bf16 %v7614_v43, %v7612_v24  ;;  %v17386_v43 = vld [vmem:[%s24248_s8 + $0x28] ss:$16 sps:$4 sm:$0xff]  }
 0xad4   : > { %v7647_v28 = vpack.c.bf16 %v7615_v38, %v7613_v9  ;;  %v17391_v38 = vld [vmem:[%s24248_s8 + $0x4c] ss:$16 sps:$4 sm:$0xff]  }
 0xad6   : > { %7690 = vmatprep.subr.bf16.mxu0 %v7647_v28 }
 0xad7   : > { %7691 = vmatpush1.bf16.msra.mxu0 %v7646_v41 }
 0xad8   : > { %7755 = vmatprep.subr.bf16.mxu0 %v21236_v1  ;;  %v17326_v1 = vld [vmem:[%s24667_s3 + $0x10] ss:$8 sps:$4 sm:$0xff]  }
 0xada   : > { %7693 = vmatmul.mubr.bf16.vlgmr.msra.gmra.mrb[100].mxu0 %v17320_v51 }
 0xadb   : > { %7756 = vmatpush1.bf16.msra.mxu0 %v21234_v12  ;;  %7787 = vmatprep.mubr.bf16.mxu0 %v17325_v30  ;;  %v17328_v12 = vld [vmem:[%s24667_s3 + $0x14] ss:$8 sps:$4 sm:$0xff]  }
 0xadc   : > { %7757 = vmatprep.subr.bf16.mxu0 %v21246_v63  ;;  %v17329_v63 = vld [vmem:[%s24667_s3 + $0x20] ss:$8 sps:$4 sm:$0xff]  }
 0xadf   : > { %7758 = vmatpush1.bf16.msra.mxu0 %v21244_v45  ;;  %v17331_v45 = vld [vmem:[%s24667_s3 + $0x24] ss:$8 sps:$4 sm:$0xff]  }
 0xae0   : > { %7759 = vmatprep.subr.bf16.mxu0 %v21256_v15  ;;  %v17332_v15 = vld [vmem:[%s24667_s3 + $0x30] ss:$8 sps:$4 sm:$0xff]  }
 0xae3   : > { %7760 = vmatpush1.bf16.msra.mxu0 %v21254_v2  ;;  %v17334_v2 = vld [vmem:[%s24667_s3 + $0x34] ss:$8 sps:$4 sm:$0xff]  }
 0xae4   : > { %7761 = vmatprep.subr.bf16.mxu0 %v21266_v32  ;;  %v17337_v32 = vld [vmem:[%s24248_s8 + $0x4] ss:$16 sps:$4 sm:$0xff]  }
 0xae7   : > { %7762 = vmatpush1.bf16.msra.mxu0 %v21264_v20  ;;  %v17335_v20 = vld [vmem:[%s24248_s8] ss:$16 sps:$4 sm:$0xff]  }
 0xae8   : > { %7763 = vmatprep.subr.bf16.mxu0 %v21276_v26  ;;  %v17338_v26 = vld [vmem:[%s24248_s8 + $0x20] ss:$16 sps:$4 sm:$0xff]  }
 0xaeb   : > { %7764 = vmatpush1.bf16.msra.mxu0 %v21274_v59  ;;  %v17340_v59 = vld [vmem:[%s24248_s8 + $0x24] ss:$16 sps:$4 sm:$0xff]  }
 0xaec   : > { %7765 = vmatprep.subr.bf16.mxu0 %v21286_v53  ;;  %v17341_v53 = vld [vmem:[%s24248_s8 + $0x40] ss:$16 sps:$4 sm:$0xff]  }
 0xaef   : > { %7766 = vmatpush1.bf16.msra.mxu0 %v21284_v10  ;;  %v17343_v10 = vld [vmem:[%s24248_s8 + $0x44] ss:$16 sps:$4 sm:$0xff]  }
 0xaf0   : > { %7767 = vmatprep.subr.bf16.mxu0 %v21296_v19  ;;  %v17344_v19 = vld [vmem:[%s24248_s8 + $0x60] ss:$16 sps:$4 sm:$0xff]  }
 0xaf3   : > { %7768 = vmatpush1.bf16.msra.mxu0 %v21294_v21  ;;  %v17346_v21 = vld [vmem:[%s24248_s8 + $0x64] ss:$16 sps:$4 sm:$0xff]  }
 0xaf4   : > { %7769 = vmatprep.subr.bf16.mxu0 %v21306_v40  ;;  %v17347_v40 = vld [vmem:[%s24248_s8 + $0x80] ss:$16 sps:$4 sm:$0xff]  }
 0xaf7   : > { %7770 = vmatpush1.bf16.msra.mxu0 %v21304_v23  ;;  %v17349_v23 = vld [vmem:[%s24248_s8 + $0x84] ss:$16 sps:$4 sm:$0xff]  }
 0xaf8   : > { %7771 = vmatprep.subr.bf16.mxu0 %v21316_v33  ;;  %v17350_v33 = vld [vmem:[%s24248_s8 + $0xa0] ss:$16 sps:$4 sm:$0xff]  }
 0xafb   : > { %7772 = vmatpush1.bf16.msra.mxu0 %v21314_v46  ;;  %v17352_v46 = vld [vmem:[%s24248_s8 + $0xa4] ss:$16 sps:$4 sm:$0xff]  }
 0xafc   : > { %7773 = vmatprep.subr.bf16.mxu0 %v21326_v57  ;;  %v17353_v57 = vld [vmem:[%s24248_s8 + $0xc0] ss:$16 sps:$4 sm:$0xff]  }
 0xaff   : > { %7774 = vmatpush1.bf16.msra.mxu0 %v21324_v8  ;;  %v17355_v8 = vld [vmem:[%s24248_s8 + $0xc4] ss:$16 sps:$4 sm:$0xff]  }
 0xb00   : > { %7775 = vmatprep.subr.bf16.mxu0 %v21336_v14  ;;  %v17356_v14 = vld [vmem:[%s24248_s8 + $0xe0] ss:$16 sps:$4 sm:$0xff]  }
 0xb03   : > { %7776 = vmatpush1.bf16.msra.mxu0 %v21334_v16  ;;  %v17358_v16 = vld [vmem:[%s24248_s8 + $0xe4] ss:$16 sps:$4 sm:$0xff]  }
 0xb04   : > { %7777 = vmatprep.subr.bf16.mxu0 %v21346_v39  ;;  %v17359_v39 = vld [vmem:[%s24248_s8 + $0x100] ss:$16 sps:$4 sm:$0xff]  }
 0xb07   : > { %7778 = vmatpush1.bf16.msra.mxu0 %v21344_v31  ;;  %v17361_v31 = vld [vmem:[%s24248_s8 + $0x104] ss:$16 sps:$4 sm:$0xff]  }
 0xb08   : > { %7779 = vmatprep.subr.bf16.mxu0 %v21356_v37  ;;  %v17362_v37 = vld [vmem:[%s24248_s8 + $0x120] ss:$16 sps:$4 sm:$0xff]  }
 0xb0b   : > { %7780 = vmatpush1.bf16.msra.mxu0 %v21354_v11  ;;  %v17364_v11 = vld [vmem:[%s24248_s8 + $0x124] ss:$16 sps:$4 sm:$0xff]  }
 0xb0c   : > { %7781 = vmatprep.subr.bf16.mxu0 %v21366_v56  ;;  %v17370_v56 = vld [vmem:[%s24248_s8 + $0x164] ss:$16 sps:$4 sm:$0xff]  }
 0xb0f   : > { %7782 = vmatpush1.bf16.msra.mxu0 %v21364_v27  ;;  %v17365_v27 = vld [vmem:[%s24248_s8 + $0x140] ss:$16 sps:$4 sm:$0xff]  }
 0xb10   : > { %7783 = vmatprep.subr.bf16.mxu0 %v7645_v62 }
 0xb13   : > { %7784 = vmatpush1.bf16.msra.mxu0 %v7644_v35 }
 0xb14   : > { %7785 = vmatprep.subr.bf16.mxu0 %v7647_v28 }
 0xb17   : > { %7786 = vmatpush1.bf16.msra.mxu0 %v7646_v41 }
 0xb18   : > { %8242 = vmatprep.subr.bf16.mxu0 %v17337_v32 }
 0xb1a   : > { %7788 = vmatmul.mubr.bf16.vlgmr.msra.gmra.mrb[104].mxu0 %v17323_v49  ;;  %v17389_v49 = vld [vmem:[%s24248_s8 + $0x48] ss:$16 sps:$4 sm:$0xff]  }
 0xb1b   : > { %7797 = vmatprep.mubr.bf16.mxu0 %v17328_v12  ;;  %8243 = vmatpush1.bf16.msra.mxu0 %v17335_v20  ;;  %v17394_v12 = vld [vmem:[%s24248_s8 + $0x6c] ss:$16 sps:$4 sm:$0xff]  }
 0xb1c   : > { %8244 = vmatprep.subr.bf16.mxu0 %v17340_v59 }
 0xb1f   : > { %8245 = vmatpush1.bf16.msra.mxu0 %v17338_v26  ;;  %v17395_v26 = vld [vmem:[%s24248_s8 + $0x88] ss:$16 sps:$4 sm:$0xff]  }
 0xb20   : > { %8246 = vmatprep.subr.bf16.mxu0 %v17343_v10  ;;  %v17400_v10 = vld [vmem:[%s24248_s8 + $0xac] ss:$16 sps:$4 sm:$0xff]  }
 0xb22   : > { %7798 = vmatmul.mubr.bf16.gmra.mrb[108].mxu0 %v17326_v1 }
 0xb23   : > { %7807 = vmatprep.mubr.bf16.mxu0 %v17331_v45  ;;  %8247 = vmatpush1.bf16.msra.mxu0 %v17341_v53  ;;  %v17392_v45 = vld [vmem:[%s24248_s8 + $0x68] ss:$16 sps:$4 sm:$0xff]  }
 0xb24   : > { %8248 = vmatprep.subr.bf16.mxu0 %v17346_v21  ;;  %v17398_v21 = vld [vmem:[%s24248_s8 + $0xa8] ss:$16 sps:$4 sm:$0xff]  }
 0xb27   : > { %8249 = vmatpush1.bf16.msra.mxu0 %v17344_v19 }
 0xb28   : > { %8250 = vmatprep.subr.bf16.mxu0 %v17349_v23  ;;  %v17403_v23 = vld [vmem:[%s24248_s8 + $0xcc] ss:$16 sps:$4 sm:$0xff]  }
 0xb2a   : > { %7808 = vmatmul.mubr.bf16.gmra.mrb[112].mxu0 %v17329_v63 }
 0xb2b   : > { %7817 = vmatprep.mubr.bf16.mxu0 %v17334_v2  ;;  %8251 = vmatpush1.bf16.msra.mxu0 %v17347_v40  ;;  %v17397_v2 = vld [vmem:[%s24248_s8 + $0x8c] ss:$16 sps:$4 sm:$0xff]  }
 0xb2c   : > { %8252 = vmatprep.subr.bf16.mxu0 %v17352_v46 }
 0xb2f   : > { %8253 = vmatpush1.bf16.msra.mxu0 %v17350_v33 }
 0xb30   : > { %8254 = vmatprep.subr.bf16.mxu0 %v17355_v8 }
 0xb32   : > { %7818 = vmatmul.mubr.bf16.gmra.mrb[116].mxu0 %v17332_v15 }
 0xb33   : > { %8255 = vmatpush1.bf16.msra.mxu0 %v17353_v57  ;;  %v17401_v57 = vld [vmem:[%s24248_s8 + $0xc8] ss:$16 sps:$4 sm:$0xff]  }
 0xb34   : > { %8256 = vmatprep.subr.bf16.mxu0 %v17358_v16  ;;  %v17406_v16 = vld [vmem:[%s24248_s8 + $0xec] ss:$16 sps:$4 sm:$0xff]  }
 0xb37   : > { %8257 = vmatpush1.bf16.msra.mxu0 %v17356_v14  ;;  %v17404_v14 = vld [vmem:[%s24248_s8 + $0xe8] ss:$16 sps:$4 sm:$0xff]  }
 0xb38   : > { %8258 = vmatprep.subr.bf16.mxu0 %v17361_v31  ;;  %v17409_v31 = vld [vmem:[%s24248_s8 + $0x10c] ss:$16 sps:$4 sm:$0xff]  }
 0xb3b   : > { %8259 = vmatpush1.bf16.msra.mxu0 %v17359_v39  ;;  %v17407_v39 = vld [vmem:[%s24248_s8 + $0x108] ss:$16 sps:$4 sm:$0xff]  }
 0xb3c   : > { %8260 = vmatprep.subr.bf16.mxu0 %v17364_v11  ;;  %v17412_v11 = vld [vmem:[%s24248_s8 + $0x12c] ss:$16 sps:$4 sm:$0xff]  }
 0xb3f   : > { %8261 = vmatpush1.bf16.msra.mxu0 %v17362_v37  ;;  %v17410_v37 = vld [vmem:[%s24248_s8 + $0x128] ss:$16 sps:$4 sm:$0xff]  }
 0xb40   : > { %8262 = vmatprep.subr.bf16.mxu0 %v17367_v29  ;;  %v17415_v29 = vld [vmem:[%s24248_s8 + $0x14c] ss:$16 sps:$4 sm:$0xff]  }
 0xb43   : > { %8263 = vmatpush1.bf16.msra.mxu0 %v17365_v27  ;;  %v17413_v27 = vld [vmem:[%s24248_s8 + $0x148] ss:$16 sps:$4 sm:$0xff]  }
 0xb44   : > { %8264 = vmatprep.subr.bf16.mxu0 %v17370_v56  ;;  %v17418_v56 = vld [vmem:[%s24248_s8 + $0x16c] ss:$16 sps:$4 sm:$0xff]  }
 0xb47   : > { %8265 = vmatpush1.bf16.msra.mxu0 %v17368_v52  ;;  %v17416_v52 = vld [vmem:[%s24248_s8 + $0x168] ss:$16 sps:$4 sm:$0xff]  }
 0xb48   : > { %8266 = vmatprep.subr.bf16.mxu0 %v17373_v54  ;;  %v17421_v54 = vld [vmem:[%s24248_s8 + $0x18c] ss:$16 sps:$4 sm:$0xff]  }
 0xb4b   : > { %8267 = vmatpush1.bf16.msra.mxu0 %v17371_v47  ;;  %v17419_v47 = vld [vmem:[%s24248_s8 + $0x188] ss:$16 sps:$4 sm:$0xff]  }
 0xb4c   : > { %8268 = vmatprep.subr.bf16.mxu0 %v17376_v18  ;;  %v17424_v18 = vld [vmem:[%s24248_s8 + $0x1ac] ss:$16 sps:$4 sm:$0xff]  }
 0xb4f   : > { %8269 = vmatpush1.bf16.msra.mxu0 %v17374_v42  ;;  %v17422_v42 = vld [vmem:[%s24248_s8 + $0x1a8] ss:$16 sps:$4 sm:$0xff]  }
 0xb50   : > { %8270 = vmatprep.subr.bf16.mxu0 %v17379_v22  ;;  %v17427_v22 = vld [vmem:[%s24248_s8 + $0x1cc] ss:$16 sps:$4 sm:$0xff]  }
 0xb53   : > { %8271 = vmatpush1.bf16.msra.mxu0 %v17377_v61  ;;  %v17425_v61 = vld [vmem:[%s24248_s8 + $0x1c8] ss:$16 sps:$4 sm:$0xff]  }
 0xb54   : > { %8272 = vmatprep.subr.bf16.mxu0 %v17382_v55  ;;  %v17430_v55 = vld [vmem:[%s24248_s8 + $0x1ec] ss:$16 sps:$4 sm:$0xff]  }
 0xb57   : > { %8273 = vmatpush1.bf16.msra.mxu0 %v17380_v44  ;;  %v17428_v44 = vld [vmem:[%s24248_s8 + $0x1e8] ss:$16 sps:$4 sm:$0xff]  }
 0xb58   : > { %8315 = vmatprep.subr.bf16.mxu0 %v17385_v6  ;;  %v21649_v6 = vld [vmem:[%s24249_s9] sm:$0xf] }
 0xbad   : > { %v7694_v25 = vpop.f32.mrb[100].mxu0 }
 0xbae   : > { %7703 = vst [vmem:[%s744_s26] sm:$0xff] %v7694_v25  ;;  %v7696_v36 = vpop.f32.mrb[101].mxu0  ;;  %v7905_v25 = vrot.slane %v21649_v6, %v21213_v3 }
 0xbaf   : > { %7704 = vst [vmem:[%s744_s26 + $0x8] sm:$0xff] %v7696_v36  ;;  %v7698_v35 = vpop.f32.mrb[102].mxu0  ;;  %v7909_v36 = vrot.slane %v21649_v6, %v21219_v7 }
 0xbb0   : > { %7705 = vst [vmem:[%s744_s26 + $0x10] sm:$0xff] %v7698_v35  ;;  %v7700_v62 = vpop.f32.mrb[103].mxu0 }
 0xbb1   : > { %7706 = vst [vmem:[%s744_s26 + $0x18] sm:$0xff] %v7700_v62 }
 0xbed   : > { %v7789_v50 = vpop.f32.mrb[104].mxu0 }
 0xbee   : > { %v7791_v4 = vpop.f32.mrb[105].mxu0 }
 0xbef   : > { %v7793_v17 = vpop.f32.mrb[106].mxu0 }
 0xbf0   : > { %v21536_v5 = vpack.c.bf16 %v7793_v17, %v7789_v50  ;;  %v7795_v48 = vpop.f32.mrb[107].mxu0 }
 0xbf1   : > { %v7893_v60 = vpack.c.bf16 %v7795_v48, %v7791_v4 }
 0xbf3   : > { %8274 = vmatprep.mubr.bf16.mxu0 %v7893_v60 }
 0xbf4   : > { %8275 = vmatmul.mubr.bf16.vlgmr.msra.gmra.mrb[120].mxu0 %v21536_v5 }
 0xbf5   : > { %8316 = vmatpush1.bf16.msra.mxu0 %v17383_v0  ;;  %v7799_v24 = vpop.f32.mrb[108].mxu0 }
 0xbf6   : > { %v7801_v9 = vpop.f32.mrb[109].mxu0  ;;  %8317 = vmatprep.subr.bf16.mxu0 %v17388_v58 }
 0xbf7   : > { %v7803_v41 = vpop.f32.mrb[110].mxu0 }
 0xbf8   : > { %v21551_v28 = vpack.c.bf16 %v7803_v41, %v7799_v24  ;;  %v7805_v51 = vpop.f32.mrb[111].mxu0 }
 0xbf9   : > { %v21553_v30 = vpack.c.bf16 %v7805_v51, %v7801_v9  ;;  %8318 = vmatpush1.bf16.msra.mxu0 %v17386_v43 }
 0xbfa   : > { %8319 = vmatprep.subr.bf16.mxu0 %v17391_v38 }
 0xbfb   : > { %8284 = vmatprep.mubr.bf16.mxu0 %v21553_v30 }
 0xbfc   : > { %8285 = vmatmul.mubr.bf16.gmra.mrb[124].mxu0 %v21551_v28 }
 0xbfd   : > { %8320 = vmatpush1.bf16.msra.mxu0 %v17389_v49  ;;  %v7809_v1 = vpop.f32.mrb[112].mxu0 }
 0xbfe   : > { %v7811_v63 = vpop.f32.mrb[113].mxu0  ;;  %8321 = vmatprep.subr.bf16.mxu0 %v17394_v12 }
 0xbff   : > { %v7813_v15 = vpop.f32.mrb[114].mxu0 }
 0xc00   : > { %v21569_v20 = vpack.c.bf16 %v7813_v15, %v7809_v1  ;;  %v7815_v32 = vpop.f32.mrb[115].mxu0 }
 0xc01   : > { %v7897_v59 = vpack.c.bf16 %v7815_v32, %v7811_v63  ;;  %8322 = vmatpush1.bf16.msra.mxu0 %v17392_v45 }
 0xc02   : > { %8323 = vmatprep.subr.bf16.mxu0 %v17397_v2 }
 0xc03   : > { %8294 = vmatprep.mubr.bf16.mxu0 %v7897_v59 }
 0xc04   : > { %8295 = vmatmul.mubr.bf16.gmra.mrb[128].mxu0 %v21569_v20 }
 0xc05   : > { %8324 = vmatpush1.bf16.msra.mxu0 %v17395_v26  ;;  %v7819_v53 = vpop.f32.mrb[116].mxu0 }
 0xc06   : > { %v7821_v19 = vpop.f32.mrb[117].mxu0  ;;  %8325 = vmatprep.subr.bf16.mxu0 %v17400_v10 }
 0xc07   : > { %v7823_v40 = vpop.f32.mrb[118].mxu0 }
 0xc08   : > { %v7898_v46 = vpack.c.bf16 %v7823_v40, %v7819_v53  ;;  %v7825_v33 = vpop.f32.mrb[119].mxu0 }
 0xc09   : > { %v7899_v8 = vpack.c.bf16 %v7825_v33, %v7821_v19  ;;  %8326 = vmatpush1.bf16.msra.mxu0 %v17398_v21 }
 0xc0a   : > { %8327 = vmatprep.subr.bf16.mxu0 %v17403_v23 }
 0xc0b   : > { %8304 = vmatprep.mubr.bf16.mxu0 %v7899_v8 }
 0xc0c   : > { %8305 = vmatmul.mubr.bf16.gmra.mrb[132].mxu0 %v7898_v46 }
 0xc0d   : > { %8328 = vmatpush1.bf16.msra.mxu0 %v17401_v57  ;;  %8347 = vmatprep.mubr.bf16.mxu0 %v7893_v60 }
 0xc0e   : > { %8329 = vmatprep.subr.bf16.mxu0 %v17406_v16 }
 0xc11   : > { %8330 = vmatpush1.bf16.msra.mxu0 %v17404_v14 }
 0xc12   : > { %8331 = vmatprep.subr.bf16.mxu0 %v17409_v31 }
 0xc15   : > { %8332 = vmatpush1.bf16.msra.mxu0 %v17407_v39 }
 0xc16   : > { %8333 = vmatprep.subr.bf16.mxu0 %v17412_v11 }
 0xc19   : > { %8334 = vmatpush1.bf16.msra.mxu0 %v17410_v37 }
 0xc1a   : > { %8335 = vmatprep.subr.bf16.mxu0 %v17415_v29 }
 0xc1d   : > { %8336 = vmatpush1.bf16.msra.mxu0 %v17413_v27 }
 0xc1e   : > { %8337 = vmatprep.subr.bf16.mxu0 %v17418_v56 }
 0xc21   : > { %8338 = vmatpush1.bf16.msra.mxu0 %v17416_v52 }
 0xc22   : > { %8339 = vmatprep.subr.bf16.mxu0 %v17421_v54 }
 0xc25   : > { %8340 = vmatpush1.bf16.msra.mxu0 %v17419_v47 }
 0xc26   : > { %8341 = vmatprep.subr.bf16.mxu0 %v17424_v18 }
 0xc29   : > { %8342 = vmatpush1.bf16.msra.mxu0 %v17422_v42 }
 0xc2a   : > { %8343 = vmatprep.subr.bf16.mxu0 %v17427_v22 }
 0xc2d   : > { %8344 = vmatpush1.bf16.msra.mxu0 %v17425_v61 }
 0xc2e   : > { %8345 = vmatprep.subr.bf16.mxu0 %v17430_v55 }
 0xc31   : > { %8346 = vmatpush1.bf16.msra.mxu0 %v17428_v44  ;;  %v21658_v44 = vld [vmem:[%s24250_s10] sm:$0xff]  }
 0xc34   : > { %8348 = vmatmul.mubr.bf16.vlgmr.msra.gmra.mrb[136].mxu0 %v21536_v5 }
 0xc35   : > { %8357 = vmatprep.mubr.bf16.mxu0 %v21553_v30 }
 0xc3c   : > { %8358 = vmatmul.mubr.bf16.gmra.mrb[140].mxu0 %v21551_v28 }
 0xc3d   : > { %8367 = vmatprep.mubr.bf16.mxu0 %v7897_v59 }
 0xc44   : > { %8368 = vmatmul.mubr.bf16.gmra.mrb[144].mxu0 %v21569_v20 }
 0xc45   : > { %8377 = vmatprep.mubr.bf16.mxu0 %v7899_v8 }
 0xc4c   : > { %8378 = vmatmul.mubr.bf16.gmra.mrb[148].mxu0 %v7898_v46 }
 0xc4d   : > { %8478 = vmatprep.mubr.bf16.mxu0 %v24483_v34 }
 0xcc7   : > { %v8276_v35 = vpop.f32.mrb[120].mxu0 }
 0xcc8   : > { %v8277_v62 = vadd.f32 %v8276_v35, %v7905_v25  ;;  %v8278_v50 = vpop.f32.mrb[121].mxu0 }
 0xcc9   : > { %v8279_v4 = vadd.f32 %v8278_v50, %v7909_v36  ;;  %v8280_v17 = vpop.f32.mrb[122].mxu0 }
 0xcca   : > { %v8281_v5 = vadd.f32 %v8280_v17, %v7905_v25  ;;  %v8282_v48 = vpop.f32.mrb[123].mxu0  ;;  %v8388_v0 = vmax.f32 %v8277_v62, 0.0 }
 0xccb   : > { %v8283_v60 = vadd.f32 %v8282_v48, %v7909_v36  ;;  %v8389_v24 = vmax.f32 %v8279_v4, 0.0 }
 0xccc   : > { %v8392_v58 = vmax.f32 %v8281_v5, 0.0 }
 0xccd   : > { %v8393_v43 = vmax.f32 %v8283_v60, 0.0 }
 0xcce   : > { %v8422_v9 = vpack.c.bf16 %v8392_v58, %v8388_v0 }
 0xccf   : > { %v8423_v38 = vpack.c.bf16 %v8393_v43, %v8389_v24  ;;  %v8286_v41 = vpop.f32.mrb[124].mxu0 }
 0xcd0   : > { %v8287_v28 = vadd.f32 %v8286_v41, %v7905_v25  ;;  %v8288_v51 = vpop.f32.mrb[125].mxu0 }
 0xcd1   : > { %v8289_v30 = vadd.f32 %v8288_v51, %v7909_v36  ;;  %v8290_v49 = vpop.f32.mrb[126].mxu0  ;;  %8446 = vmatprep.subr.bf16.mxu0 %v8423_v38 }
 0xcd2   : > { %v8291_v12 = vadd.f32 %v8290_v49, %v7905_v25  ;;  %v8292_v1 = vpop.f32.mrb[127].mxu0  ;;  %8447 = vmatpush1.bf16.msra.mxu0 %v8422_v9  ;;  %v8396_v63 = vmax.f32 %v8287_v28, 0.0 }
 0xcd3   : > { %v8293_v45 = vadd.f32 %v8292_v1, %v7909_v36  ;;  %v8397_v15 = vmax.f32 %v8289_v30, 0.0 }
 0xcd4   : > { %v8400_v2 = vmax.f32 %v8291_v12, 0.0 }
 0xcd5   : > { %v8401_v20 = vmax.f32 %v8293_v45, 0.0 }
 0xcd6   : > { %v8426_v32 = vpack.c.bf16 %v8400_v2, %v8396_v63 }
 0xcd7   : > { %v8427_v59 = vpack.c.bf16 %v8401_v20, %v8397_v15  ;;  %v8296_v26 = vpop.f32.mrb[128].mxu0 }
 0xcd8   : > { %v8297_v10 = vadd.f32 %v8296_v26, %v7905_v25  ;;  %v8298_v53 = vpop.f32.mrb[129].mxu0 }
 0xcd9   : > { %v8299_v21 = vadd.f32 %v8298_v53, %v7909_v36  ;;  %v8300_v19 = vpop.f32.mrb[130].mxu0  ;;  %8448 = vmatprep.subr.bf16.mxu0 %v8427_v59 }
 0xcda   : > { %v8301_v23 = vadd.f32 %v8300_v19, %v7905_v25  ;;  %v8302_v40 = vpop.f32.mrb[131].mxu0  ;;  %8449 = vmatpush1.bf16.msra.mxu0 %v8426_v32  ;;  %v8404_v33 = vmax.f32 %v8297_v10, 0.0 }
 0xcdb   : > { %v8303_v46 = vadd.f32 %v8302_v40, %v7909_v36  ;;  %v8405_v57 = vmax.f32 %v8299_v21, 0.0 }
 0xcdc   : > { %v8408_v8 = vmax.f32 %v8301_v23, 0.0 }
 0xcdd   : > { %v8409_v16 = vmax.f32 %v8303_v46, 0.0 }
 0xcde   : > { %v8430_v14 = vpack.c.bf16 %v8408_v8, %v8404_v33 }
 0xcdf   : > { %v8431_v31 = vpack.c.bf16 %v8409_v16, %v8405_v57  ;;  %v8306_v39 = vpop.f32.mrb[132].mxu0 }
 0xce0   : > { %v8307_v11 = vadd.f32 %v8306_v39, %v7905_v25  ;;  %v8308_v37 = vpop.f32.mrb[133].mxu0 }
 0xce1   : > { %v8309_v29 = vadd.f32 %v8308_v37, %v7909_v36  ;;  %v8310_v27 = vpop.f32.mrb[134].mxu0  ;;  %8450 = vmatprep.subr.bf16.mxu0 %v8431_v31 }
 0xce2   : > { %v8311_v56 = vadd.f32 %v8310_v27, %v7905_v25  ;;  %v8312_v52 = vpop.f32.mrb[135].mxu0  ;;  %8451 = vmatpush1.bf16.msra.mxu0 %v8430_v14  ;;  %v8412_v47 = vmax.f32 %v8307_v11, 0.0  ;;  %v21664_v25 = vsub.s32 2, %v21210_v13 }
 0xce3   : > { %v8313_v54 = vadd.f32 %v8312_v52, %v7909_v36  ;;  %v8413_v42 = vmax.f32 %v8309_v29, 0.0  ;;  %v21667_v36 = vsub.s32 3, %v21210_v13 }
 0xce4   : > { %v8416_v18 = vmax.f32 %v8311_v56, 0.0  ;;  %v7913_v35 = vrot.slane %v21649_v6, %v21664_v25 }
 0xce5   : > { %v8417_v22 = vmax.f32 %v8313_v54, 0.0  ;;  %v7917_v62 = vrot.slane %v21649_v6, %v21667_v36 }
 0xce6   : > { %v8434_v61 = vpack.c.bf16 %v8416_v18, %v8412_v47 }
 0xce7   : > { %v8435_v55 = vpack.c.bf16 %v8417_v22, %v8413_v42  ;;  %v8540_v22 = vld [vmem:[%s24251_s11] sm:$0xff] }
 0xce9   : > { %8452 = vmatprep.subr.bf16.mxu0 %v8435_v55 }
 0xcea   : > { %8453 = vmatpush1.bf16.msra.mxu0 %v8434_v61  ;;  %v8544_v61 = vld [vmem:[%s24251_s11 + $0x20] sm:$0xff] }
 0xced   : > { %15534 = vmatmul.mubr.msk.bf16.vlgmr.msra.gmra.mrb[152].mxu0 %vm2478_vm0, %v21658_v44 }
 0xcee   : > { %8521 = vmatprep.mubr.bf16.mxu0 %v24483_v34 }
 0xd07   : > { %v8349_v50 = vpop.f32.mrb[136].mxu0 }
 0xd08   : > { %v8350_v4 = vadd.f32 %v8349_v50, %v7913_v35  ;;  %v8351_v17 = vpop.f32.mrb[137].mxu0 }
 0xd09   : > { %v8352_v5 = vadd.f32 %v8351_v17, %v7917_v62  ;;  %v8353_v48 = vpop.f32.mrb[138].mxu0 }
 0xd0a   : > { %v8354_v60 = vadd.f32 %v8353_v48, %v7913_v35  ;;  %v8355_v0 = vpop.f32.mrb[139].mxu0  ;;  %v8390_v24 = vmax.f32 %v8350_v4, 0.0  ;;  %v15536_v48 = vcombine.low %v8540_v22, %v8544_v61 }
 0xd0b   : > { %v8356_v58 = vadd.f32 %v8355_v0, %v7917_v62  ;;  %v8391_v9 = vmax.f32 %v8352_v5, 0.0  ;;  %v15537_v5 = vcombine.high %v8540_v22, %v8544_v61  ;;  %v8556_v0 = vld [vmem:[%s24251_s11 + $0x80] sm:$0xff] }
 0xd0c   : > { %v8394_v43 = vmax.f32 %v8354_v60, 0.0  ;;  %v8644_v22 = vld [vmem:[%s24251_s11 + $0x340] sm:$0xff] }
 0xd0d   : > { %v8395_v38 = vmax.f32 %v8356_v58, 0.0  ;;  %v8560_v58 = vld [vmem:[%s24251_s11 + $0xa0] sm:$0xff] }
 0xd0e   : > { %v8424_v41 = vpack.c.bf16 %v8394_v43, %v8390_v24  ;;  %v15553_v43 = vcombine.high %v8556_v0, %v8560_v58  ;;  %v8648_v61 = vld [vmem:[%s24251_s11 + $0x360] sm:$0xff] }
 0xd0f   : > { %v8425_v28 = vpack.c.bf16 %v8395_v38, %v8391_v9  ;;  %v8359_v51 = vpop.f32.mrb[140].mxu0  ;;  %v8564_v9 = vld [vmem:[%s24251_s11 + $0xc0] sm:$0xff] }
 0xd10   : > { %v8360_v30 = vadd.f32 %v8359_v51, %v7913_v35  ;;  %v8361_v49 = vpop.f32.mrb[141].mxu0  ;;  %v8568_v38 = vld [vmem:[%s24251_s11 + $0xe0] sm:$0xff] }
 0xd11   : > { %v8362_v12 = vadd.f32 %v8361_v49, %v7917_v62  ;;  %v8363_v1 = vpop.f32.mrb[142].mxu0  ;;  %8489 = vmatprep.subr.bf16.mxu0 %v8425_v28  ;;  %v15561_v28 = vcombine.high %v8564_v9, %v8568_v38  ;;  %v8576_v51 = vld [vmem:[%s24251_s11 + $0x120] sm:$0xff] }
 0xd12   : > { %v8364_v6 = vadd.f32 %v8363_v1, %v7913_v35  ;;  %v8365_v45 = vpop.f32.mrb[143].mxu0  ;;  %8490 = vmatpush1.bf16.msra.mxu0 %v8424_v41  ;;  %v8398_v2 = vmax.f32 %v8360_v30, 0.0  ;;  %v15552_v41 = vcombine.low %v8556_v0, %v8560_v58  ;;  %v15560_v30 = vcombine.low %v8564_v9, %v8568_v38  ;;  %v8584_v1 = vld [vmem:[%s24251_s11 + $0x160] sm:$0xff] }
 0xd13   : > { %v8366_v63 = vadd.f32 %v8365_v45, %v7917_v62  ;;  %v8399_v20 = vmax.f32 %v8362_v12, 0.0  ;;  %v8580_v12 = vld [vmem:[%s24251_s11 + $0x140] sm:$0xff] }
 0xd14   : > { %v8402_v15 = vmax.f32 %v8364_v6, 0.0  ;;  %v15577_v45 = vcombine.high %v8580_v12, %v8584_v1 }
 0xd15   : > { %v8403_v32 = vmax.f32 %v8366_v63, 0.0  ;;  %v8588_v63 = vld [vmem:[%s24251_s11 + $0x180] sm:$0xff] }
 0xd16   : > { %v8428_v59 = vpack.c.bf16 %v8402_v15, %v8398_v2  ;;  %v8592_v2 = vld [vmem:[%s24251_s11 + $0x1a0] sm:$0xff]  ;;  %v15576_v15 = vcombine.low %v8580_v12, %v8584_v1 }
 0xd17   : > { %v8429_v26 = vpack.c.bf16 %v8403_v32, %v8399_v20  ;;  %v8369_v10 = vpop.f32.mrb[144].mxu0  ;;  %v15585_v20 = vcombine.high %v8588_v63, %v8592_v2  ;;  %v8596_v32 = vld [vmem:[%s24251_s11 + $0x1c0] sm:$0xff] }
 0xd18   : > { %v8370_v53 = vadd.f32 %v8369_v10, %v7913_v35  ;;  %v8371_v21 = vpop.f32.mrb[145].mxu0  ;;  %v8684_v12 = vld [vmem:[%s24251_s11 + $0x480] sm:$0xff] }
 0xd19   : > { %v8372_v19 = vadd.f32 %v8371_v21, %v7917_v62  ;;  %v8373_v23 = vpop.f32.mrb[146].mxu0  ;;  %8491 = vmatprep.subr.bf16.mxu0 %v8429_v26  ;;  %v15584_v26 = vcombine.low %v8588_v63, %v8592_v2  ;;  %v8608_v21 = vld [vmem:[%s24251_s11 + $0x220] sm:$0xff] }
 0xd1a   : > { %v8374_v40 = vadd.f32 %v8373_v23, %v7913_v35  ;;  %v8375_v46 = vpop.f32.mrb[147].mxu0  ;;  %8492 = vmatpush1.bf16.msra.mxu0 %v8428_v59  ;;  %v8406_v8 = vmax.f32 %v8370_v53, 0.0  ;;  %v8600_v59 = vld [vmem:[%s24251_s11 + $0x1e0] sm:$0xff] }
 0xd1b   : > { %v8376_v33 = vadd.f32 %v8375_v46, %v7917_v62  ;;  %v8407_v16 = vmax.f32 %v8372_v19, 0.0  ;;  %v15593_v10 = vcombine.high %v8596_v32, %v8600_v59  ;;  %v8604_v53 = vld [vmem:[%s24251_s11 + $0x200] sm:$0xff] }
 0xd1c   : > { %v8410_v57 = vmax.f32 %v8374_v40, 0.0  ;;  %v21732_v19 = vld [vmem:[%s24251_s11 + $0x400] sm:$0xff]  ;;  %v15592_v40 = vcombine.low %v8596_v32, %v8600_v59 }
 0xd1d   : > { %v8411_v14 = vmax.f32 %v8376_v33, 0.0  ;;  %v21737_v23 = vld [vmem:[%s24251_s11 + $0x420] sm:$0xff]  ;;  %v15601_v33 = vcombine.high %v8604_v53, %v8608_v21 }
 0xd1e   : > { %v8432_v31 = vpack.c.bf16 %v8410_v57, %v8406_v8  ;;  %v15664_v46 = vcombine.low %v21732_v19, %v21737_v23  ;;  %v8612_v8 = vld [vmem:[%s24251_s11 + $0x240] sm:$0xff] }
 0xd1f   : > { %v8433_v39 = vpack.c.bf16 %v8411_v14, %v8407_v16  ;;  %v8379_v11 = vpop.f32.mrb[148].mxu0  ;;  %v8616_v57 = vld [vmem:[%s24251_s11 + $0x260] sm:$0xff]  ;;  %v15600_v16 = vcombine.low %v8604_v53, %v8608_v21 }
 0xd20   : > { %v8380_v37 = vadd.f32 %v8379_v11, %v7913_v35  ;;  %v8381_v29 = vpop.f32.mrb[149].mxu0  ;;  %v15609_v14 = vcombine.high %v8612_v8, %v8616_v57  ;;  %v15608_v11 = vcombine.low %v8612_v8, %v8616_v57  ;;  %v8688_v1 = vld [vmem:[%s24251_s11 + $0x4a0] sm:$0xff] }
 0xd21   : > { %v8382_v27 = vadd.f32 %v8381_v29, %v7917_v62  ;;  %v8383_v56 = vpop.f32.mrb[150].mxu0  ;;  %8493 = vmatprep.subr.bf16.mxu0 %v8433_v39  ;;  %v8624_v39 = vld [vmem:[%s24251_s11 + $0x2a0] sm:$0xff] }
 0xd22   : > { %v8384_v52 = vadd.f32 %v8383_v56, %v7913_v35  ;;  %v8385_v54 = vpop.f32.mrb[151].mxu0  ;;  %8494 = vmatpush1.bf16.msra.mxu0 %v8432_v31  ;;  %v8414_v18 = vmax.f32 %v8380_v37, 0.0  ;;  %v8548_v35 = vld [vmem:[%s24251_s11 + $0x40] sm:$0xff] }
 0xd23   : > { %v8386_v47 = vadd.f32 %v8385_v54, %v7917_v62  ;;  %v8415_v55 = vmax.f32 %v8382_v27, 0.0  ;;  %v8552_v62 = vld [vmem:[%s24251_s11 + $0x60] sm:$0xff] }
 0xd24   : > { %v8418_v42 = vmax.f32 %v8384_v52, 0.0  ;;  %v15545_v60 = vcombine.high %v8548_v35, %v8552_v62  ;;  %v15544_v24 = vcombine.low %v8548_v35, %v8552_v62  ;;  %v8620_v31 = vld [vmem:[%s24251_s11 + $0x280] sm:$0xff] }
 0xd25   : > { %v8419_v50 = vmax.f32 %v8386_v47, 0.0  ;;  %v15617_v37 = vcombine.high %v8620_v31, %v8624_v39  ;;  %v8628_v29 = vld [vmem:[%s24251_s11 + $0x2c0] sm:$0xff]  ;;  %v15616_v56 = vcombine.low %v8620_v31, %v8624_v39 }
 0xd26   : > { %v8436_v4 = vpack.c.bf16 %v8418_v42, %v8414_v18  ;;  %v8632_v27 = vld [vmem:[%s24251_s11 + $0x2e0] sm:$0xff] }
 0xd27   : > { %v8437_v17 = vpack.c.bf16 %v8419_v50, %v8415_v55  ;;  %v15625_v52 = vcombine.high %v8628_v29, %v8632_v27  ;;  %v8636_v54 = vld [vmem:[%s24251_s11 + $0x300] sm:$0xff]  ;;  %v15624_v18 = vcombine.low %v8628_v29, %v8632_v27  ;;  %v15641_v50 = vcombine.high %v8644_v22, %v8648_v61 }
 0xd28   : > { %v8640_v47 = vld [vmem:[%s24251_s11 + $0x320] sm:$0xff] }
 0xd29   : > { %8495 = vmatprep.subr.bf16.mxu0 %v8437_v17  ;;  %v15633_v42 = vcombine.high %v8636_v54, %v8640_v47  ;;  %v15632_v55 = vcombine.low %v8636_v54, %v8640_v47  ;;  %v8656_v17 = vld [vmem:[%s24251_s11 + $0x3a0] sm:$0xff] }
 0xd2a   : > { %8496 = vmatpush1.bf16.msra.mxu0 %v8436_v4  ;;  %v8652_v4 = vld [vmem:[%s24251_s11 + $0x380] sm:$0xff] }
 0xd2b   : > { %10122 = vmatprep.subr.bf16.mxu0 %v15537_v5  ;;  %v15640_v5 = vcombine.low %v8644_v22, %v8648_v61  ;;  %v15649_v35 = vcombine.high %v8652_v4, %v8656_v17  ;;  %v8660_v62 = vld [vmem:[%s24251_s11 + $0x3c0] sm:$0xff] }
 0xd2c   : > { %v8692_v63 = vld [vmem:[%s24251_s11 + $0x4c0] sm:$0xff] }
 0xd2d   : > { %15535 = vmatmul.mubr.msk.bf16.vlgmr.msra.gmra.mrb[156].mxu0 %vm2478_vm0, %v21658_v44  ;;  %v8572_v44 = vld [vmem:[%s24251_s11 + $0x100] sm:$0xff] }
 0xd2e   : > { %10123 = vmatpush1.bf16.msra.mxu0 %v15536_v48  ;;  %v15569_v49 = vcombine.high %v8572_v44, %v8576_v51  ;;  %v15568_v6 = vcombine.low %v8572_v44, %v8576_v51  ;;  %v8664_v48 = vld [vmem:[%s24251_s11 + $0x3e0] sm:$0xff] }
 0xd2f   : > { %10124 = vmatprep.subr.bf16.mxu0 %v15545_v60  ;;  %v15648_v60 = vcombine.low %v8652_v4, %v8656_v17  ;;  %v15657_v0 = vcombine.high %v8660_v62, %v8664_v48  ;;  %v15656_v58 = vcombine.low %v8660_v62, %v8664_v48  ;;  %v8696_v2 = vld [vmem:[%s24251_s11 + $0x4e0] sm:$0xff] }
 0xd30   : > { %v8700_v32 = vld [vmem:[%s24251_s11 + $0x500] sm:$0xff] }
 0xd31   : > { %v8704_v59 = vld [vmem:[%s24251_s11 + $0x520] sm:$0xff] }
 0xd32   : > { %10125 = vmatpush1.bf16.msra.mxu0 %v15544_v24  ;;  %v15665_v24 = vcombine.high %v21732_v19, %v21737_v23  ;;  %v8708_v53 = vld [vmem:[%s24251_s11 + $0x540] sm:$0xff]  ;;  %v15696_v19 = vcombine.low %v8700_v32, %v8704_v59 }
 0xd33   : > { %10126 = vmatprep.subr.bf16.mxu0 %v15553_v43  ;;  %v8712_v21 = vld [vmem:[%s24251_s11 + $0x560] sm:$0xff] }
 0xd34   : > { %v15705_v23 = vcombine.high %v8708_v53, %v8712_v21  ;;  %v8724_v57 = vld [vmem:[%s24251_s11 + $0x5c0] sm:$0xff] }
 0xd35   : > { %v8732_v39 = vld [vmem:[%s24251_s11 + $0x600] sm:$0xff] }
 0xd36   : > { %10127 = vmatpush1.bf16.msra.mxu0 %v15552_v41  ;;  %v8676_v41 = vld [vmem:[%s24251_s11 + $0x440] sm:$0xff] }
 0xd37   : > { %10128 = vmatprep.subr.bf16.mxu0 %v15561_v28  ;;  %v8680_v28 = vld [vmem:[%s24251_s11 + $0x460] sm:$0xff] }
 0xd38   : > { %v8740_v27 = vld [vmem:[%s24251_s11 + $0x640] sm:$0xff] }
 0xd39   : > { %v8748_v47 = vld [vmem:[%s24251_s11 + $0x680] sm:$0xff] }
 0xd3a   : > { %10129 = vmatpush1.bf16.msra.mxu0 %v15560_v30  ;;  %v8756_v61 = vld [vmem:[%s24251_s11 + $0x6c0] sm:$0xff] }
 0xd3b   : > { %10130 = vmatprep.subr.bf16.mxu0 %v15569_v49  ;;  %v15673_v49 = vcombine.high %v8676_v41, %v8680_v28  ;;  %v8764_v17 = vld [vmem:[%s24251_s11 + $0x700] sm:$0xff] }
 0xd3c   : > { %v8772_v48 = vld [vmem:[%s24251_s11 + $0x740] sm:$0xff] }
 0xd3e   : > { %10131 = vmatpush1.bf16.msra.mxu0 %v15568_v6  ;;  %v15672_v6 = vcombine.low %v8676_v41, %v8680_v28  ;;  %v8788_v41 = vld [vmem:[%s24251_s11 + $0x7c0] sm:$0xff] }
 0xd3f   : > { %10132 = vmatprep.subr.bf16.mxu0 %v15577_v45  ;;  %v15681_v45 = vcombine.high %v8684_v12, %v8688_v1  ;;  %v8792_v28 = vld [vmem:[%s24251_s11 + $0x7e0] sm:$0xff] }
 0xd42   : > { %10133 = vmatpush1.bf16.msra.mxu0 %v15576_v15  ;;  %v15680_v15 = vcombine.low %v8684_v12, %v8688_v1  ;;  %v8541_v12 = vld [vmem:[%s24251_s11 + $0x8] sm:$0xff] }
 0xd43   : > { %10134 = vmatprep.subr.bf16.mxu0 %v15585_v20  ;;  %v15689_v20 = vcombine.high %v8692_v63, %v8696_v2  ;;  %v8545_v1 = vld [vmem:[%s24251_s11 + $0x28] sm:$0xff] }
 0xd46   : > { %10135 = vmatpush1.bf16.msra.mxu0 %v15584_v26  ;;  %v15688_v26 = vcombine.low %v8692_v63, %v8696_v2  ;;  %v15539_v2 = vcombine.high %v8541_v12, %v8545_v1 }
 0xd47   : > { %10136 = vmatprep.subr.bf16.mxu0 %v15593_v10  ;;  %v15697_v10 = vcombine.high %v8700_v32, %v8704_v59  ;;  %v8553_v32 = vld [vmem:[%s24251_s11 + $0x68] sm:$0xff] }
 0xd4a   : > { %10137 = vmatpush1.bf16.msra.mxu0 %v15592_v40  ;;  %v8716_v40 = vld [vmem:[%s24251_s11 + $0x580] sm:$0xff] }
 0xd4b   : > { %10138 = vmatprep.subr.bf16.mxu0 %v15601_v33  ;;  %v15704_v33 = vcombine.low %v8708_v53, %v8712_v21  ;;  %v15538_v53 = vcombine.low %v8541_v12, %v8545_v1 }
 0xd4e   : > { %10139 = vmatpush1.bf16.msra.mxu0 %v15600_v16  ;;  %v8728_v16 = vld [vmem:[%s24251_s11 + $0x5e0] sm:$0xff] }
 0xd4f   : > { %10140 = vmatprep.subr.bf16.mxu0 %v15609_v14  ;;  %v15721_v31 = vcombine.high %v8724_v57, %v8728_v16 }
 0xd52   : > { %10141 = vmatpush1.bf16.msra.mxu0 %v15608_v11  ;;  %v8736_v11 = vld [vmem:[%s24251_s11 + $0x620] sm:$0xff] }
 0xd53   : > { %10142 = vmatprep.subr.bf16.mxu0 %v15617_v37  ;;  %v15720_v37 = vcombine.low %v8724_v57, %v8728_v16  ;;  %v15729_v29 = vcombine.high %v8732_v39, %v8736_v11 }
 0xd56   : > { %10143 = vmatpush1.bf16.msra.mxu0 %v15616_v56  ;;  %v8744_v56 = vld [vmem:[%s24251_s11 + $0x660] sm:$0xff] }
 0xd57   : > { %10144 = vmatprep.subr.bf16.mxu0 %v15625_v52  ;;  %v15728_v52 = vcombine.low %v8732_v39, %v8736_v11  ;;  %v15737_v54 = vcombine.high %v8740_v27, %v8744_v56 }
 0xd5a   : > { %10145 = vmatpush1.bf16.msra.mxu0 %v15624_v18  ;;  %v8752_v18 = vld [vmem:[%s24251_s11 + $0x6a0] sm:$0xff] }
 0xd5b   : > { %10146 = vmatprep.subr.bf16.mxu0 %v15633_v42  ;;  %v15736_v42 = vcombine.low %v8740_v27, %v8744_v56  ;;  %v15745_v22 = vcombine.high %v8748_v47, %v8752_v18 }
 0xd5e   : > { %10147 = vmatpush1.bf16.msra.mxu0 %v15632_v55  ;;  %v8760_v55 = vld [vmem:[%s24251_s11 + $0x6e0] sm:$0xff] }
 0xd5f   : > { %10148 = vmatprep.subr.bf16.mxu0 %v15641_v50  ;;  %v15744_v50 = vcombine.low %v8748_v47, %v8752_v18  ;;  %v15753_v4 = vcombine.high %v8756_v61, %v8760_v55 }
 0xd62   : > { %10149 = vmatpush1.bf16.msra.mxu0 %v15640_v5  ;;  %v8768_v5 = vld [vmem:[%s24251_s11 + $0x720] sm:$0xff] }
 0xd63   : > { %10150 = vmatprep.subr.bf16.mxu0 %v15649_v35  ;;  %v15752_v35 = vcombine.low %v8756_v61, %v8760_v55  ;;  %v15761_v62 = vcombine.high %v8764_v17, %v8768_v5 }
 0xd66   : > { %10151 = vmatpush1.bf16.msra.mxu0 %v15648_v60  ;;  %v8776_v60 = vld [vmem:[%s24251_s11 + $0x760] sm:$0xff] }
 0xd67   : > { %10152 = vmatprep.subr.bf16.mxu0 %v15657_v0  ;;  %v15760_v0 = vcombine.low %v8764_v17, %v8768_v5 }
 0xd6a   : > { %10153 = vmatpush1.bf16.msra.mxu0 %v15656_v58  ;;  %v15769_v58 = vcombine.high %v8772_v48, %v8776_v60 }
 0xd6b   : > { %10165 = vmatprep.subr.bf16.mxu0 %v15665_v24  ;;  %v8780_v24 = vld [vmem:[%s24251_s11 + $0x780] sm:$0xff] }
 0xdc0   : > { %v8480_v43 = vpop.f32.mrb[152].mxu0 }
 0xdc1   : > { %8532 = vst [vmem:[%s21789_s25] sm:$0xff] %v8480_v43  ;;  %v8482_v9 = vpop.f32.mrb[153].mxu0 }
 0xdc2   : > { %8533 = vst [vmem:[%s21789_s25 + $0x8] sm:$0xff] %v8482_v9  ;;  %v8484_v38 = vpop.f32.mrb[154].mxu0 }
 0xdc3   : > { %8536 = vst [vmem:[%s21789_s25 + $0x20] sm:$0xff] %v8484_v38  ;;  %v21800_v44 = vpack.c.bf16 %v8484_v38, %v8480_v43  ;;  %v8486_v51 = vpop.f32.mrb[155].mxu0  ;;  %v8784_v43 = vld [vmem:[%s24251_s11 + $0x7a0] sm:$0xff] }
 0xdc4   : > { %8537 = vst [vmem:[%s21789_s25 + $0x28] sm:$0xff] %v8486_v51  ;;  %v21803_v30 = vpack.c.bf16 %v8486_v51, %v8482_v9  ;;  %v15768_v9 = vcombine.low %v8772_v48, %v8776_v60  ;;  %v15777_v38 = vcombine.high %v8780_v24, %v8784_v43  ;;  %v15776_v51 = vcombine.low %v8780_v24, %v8784_v43 }
 0xdc6   : > { %10154 = vmatprep.mubr.bf16.mxu0 %v21803_v30 }
 0xdc7   : > { %10155 = vmatmul.mubr.bf16.vlgmr.msra.gmra.mrb[160].mxu0 %v21800_v44 }
 0xdc8   : > { %10166 = vmatpush1.bf16.msra.mxu0 %v15664_v46  ;;  %v8720_v46 = vld [vmem:[%s24251_s11 + $0x5a0] sm:$0xff] }
 0xdc9   : > { %10167 = vmatprep.subr.bf16.mxu0 %v15673_v49  ;;  %v15713_v8 = vcombine.high %v8716_v40, %v8720_v46  ;;  %v15712_v14 = vcombine.low %v8716_v40, %v8720_v46  ;;  %v15785_v49 = vcombine.high %v8788_v41, %v8792_v28 }
 0xdcc   : > { %10168 = vmatpush1.bf16.msra.mxu0 %v15672_v6 }
 0xdcd   : > { %10169 = vmatprep.subr.bf16.mxu0 %v15681_v45  ;;  %v15784_v45 = vcombine.low %v8788_v41, %v8792_v28 }
 0xdd0   : > { %10170 = vmatpush1.bf16.msra.mxu0 %v15680_v15 }
 0xdd1   : > { %10171 = vmatprep.subr.bf16.mxu0 %v15689_v20  ;;  %v8549_v20 = vld [vmem:[%s24251_s11 + $0x48] sm:$0xff] }
 0xdd2   : > { %v15547_v21 = vcombine.high %v8549_v20, %v8553_v32  ;;  %v15546_v40 = vcombine.low %v8549_v20, %v8553_v32  ;;  %v8657_v20 = vld [vmem:[%s24251_s11 + $0x3a8] sm:$0xff] }
 0xdd4   : > { %10172 = vmatpush1.bf16.msra.mxu0 %v15688_v26 }
 0xdd5   : > { %10173 = vmatprep.subr.bf16.mxu0 %v15697_v10 }
 0xdd8   : > { %10174 = vmatpush1.bf16.msra.mxu0 %v15696_v19  ;;  %v8557_v19 = vld [vmem:[%s24251_s11 + $0x88] sm:$0xff] }
 0xdd9   : > { %10175 = vmatprep.subr.bf16.mxu0 %v15705_v23  ;;  %v8561_v23 = vld [vmem:[%s24251_s11 + $0xa8] sm:$0xff] }
 0xdda   : > { %v15555_v46 = vcombine.high %v8557_v19, %v8561_v23  ;;  %v15554_v57 = vcombine.low %v8557_v19, %v8561_v23 }
 0xddc   : > { %10176 = vmatpush1.bf16.msra.mxu0 %v15704_v33  ;;  %v8565_v33 = vld [vmem:[%s24251_s11 + $0xc8] sm:$0xff] }
 0xddd   : > { %10177 = vmatprep.subr.bf16.mxu0 %v15713_v8  ;;  %v8569_v8 = vld [vmem:[%s24251_s11 + $0xe8] sm:$0xff] }
 0xdde   : > { %v15563_v16 = vcombine.high %v8565_v33, %v8569_v8  ;;  %v15562_v39 = vcombine.low %v8565_v33, %v8569_v8 }
 0xde0   : > { %10178 = vmatpush1.bf16.msra.mxu0 %v15712_v14  ;;  %v8573_v14 = vld [vmem:[%s24251_s11 + $0x108] sm:$0xff] }
 0xde1   : > { %10179 = vmatprep.subr.bf16.mxu0 %v15721_v31  ;;  %v8577_v31 = vld [vmem:[%s24251_s11 + $0x128] sm:$0xff] }
 0xde2   : > { %v15571_v11 = vcombine.high %v8573_v14, %v8577_v31  ;;  %v15570_v27 = vcombine.low %v8573_v14, %v8577_v31 }
 0xde4   : > { %10180 = vmatpush1.bf16.msra.mxu0 %v15720_v37  ;;  %v8581_v37 = vld [vmem:[%s24251_s11 + $0x148] sm:$0xff] }
 0xde5   : > { %10181 = vmatprep.subr.bf16.mxu0 %v15729_v29  ;;  %v8585_v29 = vld [vmem:[%s24251_s11 + $0x168] sm:$0xff] }
 0xde6   : > { %v15579_v56 = vcombine.high %v8581_v37, %v8585_v29  ;;  %v15578_v47 = vcombine.low %v8581_v37, %v8585_v29 }
 0xde8   : > { %10182 = vmatpush1.bf16.msra.mxu0 %v15728_v52  ;;  %v8589_v52 = vld [vmem:[%s24251_s11 + $0x188] sm:$0xff] }
 0xde9   : > { %10183 = vmatprep.subr.bf16.mxu0 %v15737_v54  ;;  %v8593_v54 = vld [vmem:[%s24251_s11 + $0x1a8] sm:$0xff] }
 0xdea   : > { %v15587_v18 = vcombine.high %v8589_v52, %v8593_v54  ;;  %v15586_v61 = vcombine.low %v8589_v52, %v8593_v54 }
 0xdec   : > { %10184 = vmatpush1.bf16.msra.mxu0 %v15736_v42  ;;  %v8597_v42 = vld [vmem:[%s24251_s11 + $0x1c8] sm:$0xff] }
 0xded   : > { %10185 = vmatprep.subr.bf16.mxu0 %v15745_v22  ;;  %v8601_v22 = vld [vmem:[%s24251_s11 + $0x1e8] sm:$0xff] }
 0xdee   : > { %v15595_v55 = vcombine.high %v8597_v42, %v8601_v22  ;;  %v15594_v17 = vcombine.low %v8597_v42, %v8601_v22 }
 0xdf0   : > { %10186 = vmatpush1.bf16.msra.mxu0 %v15744_v50  ;;  %v8605_v50 = vld [vmem:[%s24251_s11 + $0x208] sm:$0xff] }
 0xdf1   : > { %10187 = vmatprep.subr.bf16.mxu0 %v15753_v4  ;;  %v8609_v4 = vld [vmem:[%s24251_s11 + $0x228] sm:$0xff] }
 0xdf2   : > { %v15603_v5 = vcombine.high %v8605_v50, %v8609_v4  ;;  %v15602_v48 = vcombine.low %v8605_v50, %v8609_v4 }
 0xdf4   : > { %10188 = vmatpush1.bf16.msra.mxu0 %v15752_v35  ;;  %v8613_v35 = vld [vmem:[%s24251_s11 + $0x248] sm:$0xff] }
 0xdf5   : > { %10189 = vmatprep.subr.bf16.mxu0 %v15761_v62  ;;  %v8617_v62 = vld [vmem:[%s24251_s11 + $0x268] sm:$0xff] }
 0xdf6   : > { %v15611_v60 = vcombine.high %v8613_v35, %v8617_v62  ;;  %v15610_v24 = vcombine.low %v8613_v35, %v8617_v62 }
 0xdf8   : > { %10190 = vmatpush1.bf16.msra.mxu0 %v15760_v0  ;;  %v8621_v0 = vld [vmem:[%s24251_s11 + $0x288] sm:$0xff] }
 0xdf9   : > { %10191 = vmatprep.subr.bf16.mxu0 %v15769_v58  ;;  %v8625_v58 = vld [vmem:[%s24251_s11 + $0x2a8] sm:$0xff] }
 0xdfa   : > { %v15619_v43 = vcombine.high %v8621_v0, %v8625_v58  ;;  %v15618_v41 = vcombine.low %v8621_v0, %v8625_v58 }
 0xdfc   : > { %10192 = vmatpush1.bf16.msra.mxu0 %v15768_v9  ;;  %v8629_v9 = vld [vmem:[%s24251_s11 + $0x2c8] sm:$0xff] }
 0xdfd   : > { %10193 = vmatprep.subr.bf16.mxu0 %v15777_v38  ;;  %v8633_v38 = vld [vmem:[%s24251_s11 + $0x2e8] sm:$0xff] }
 0xdfe   : > { %v15627_v28 = vcombine.high %v8629_v9, %v8633_v38  ;;  %v15626_v12 = vcombine.low %v8629_v9, %v8633_v38 }
 0xe00   : > { %v8523_v6 = vpop.f32.mrb[156].mxu0  ;;  %10194 = vmatpush1.bf16.msra.mxu0 %v15776_v51  ;;  %v8637_v51 = vld [vmem:[%s24251_s11 + $0x308] sm:$0xff] }
 0xe01   : > { %8534 = vst [vmem:[%s21789_s25 + $0x10] sm:$0xff] %v8523_v6  ;;  %v8525_v63 = vpop.f32.mrb[157].mxu0  ;;  %10195 = vmatprep.subr.bf16.mxu0 %v15785_v49  ;;  %v8641_v49 = vld [vmem:[%s24251_s11 + $0x328] sm:$0xff] }
 0xe02   : > { %8535 = vst [vmem:[%s21789_s25 + $0x18] sm:$0xff] %v8525_v63  ;;  %v8527_v15 = vpop.f32.mrb[158].mxu0  ;;  %v15635_v1 = vcombine.high %v8637_v51, %v8641_v49 }
 0xe03   : > { %8538 = vst [vmem:[%s21789_s25 + $0x30] sm:$0xff] %v8527_v15  ;;  %v21909_v59 = vpack.c.bf16 %v8527_v15, %v8523_v6  ;;  %v8529_v26 = vpop.f32.mrb[159].mxu0  ;;  %v8645_v6 = vld [vmem:[%s24251_s11 + $0x348] sm:$0xff] }
 0xe04   : > { %8539 = vst [vmem:[%s21789_s25 + $0x38] sm:$0xff] %v8529_v26  ;;  %v21912_v10 = vpack.c.bf16 %v8529_v26, %v8525_v63  ;;  %10196 = vmatpush1.bf16.msra.mxu0 %v15784_v45  ;;  %v8649_v45 = vld [vmem:[%s24251_s11 + $0x368] sm:$0xff]  ;;  %v15634_v63 = vcombine.low %v8637_v51, %v8641_v49 }
 0xe05   : > { %10208 = vmatprep.subr.bf16.mxu0 %v15539_v2  ;;  %v15643_v2 = vcombine.high %v8645_v6, %v8649_v45  ;;  %v8653_v15 = vld [vmem:[%s24251_s11 + $0x388] sm:$0xff]  ;;  %v15642_v32 = vcombine.low %v8645_v6, %v8649_v45 }
 0xe06   : > { %10197 = vmatprep.mubr.bf16.mxu0 %v21912_v10  ;;  %v15651_v26 = vcombine.high %v8653_v15, %v8657_v20  ;;  %v15650_v19 = vcombine.low %v8653_v15, %v8657_v20 }
 0xe07   : > { %10198 = vmatmul.mubr.bf16.vlgmr.msra.gmra.mrb[160].mxu0 %v21909_v59 }
 0xe08   : > { %10209 = vmatpush1.bf16.msra.mxu0 %v15538_v53  ;;  %10240 = vmatprep.mubr.bf16.mxu0 %v21803_v30  ;;  %v8661_v53 = vld [vmem:[%s24251_s11 + $0x3c8] sm:$0xff] }
 0xe09   : > { %10210 = vmatprep.subr.bf16.mxu0 %v15547_v21  ;;  %v8665_v21 = vld [vmem:[%s24251_s11 + $0x3e8] sm:$0xff] }
 0xe0a   : > { %v15659_v23 = vcombine.high %v8661_v53, %v8665_v21  ;;  %v15658_v33 = vcombine.low %v8661_v53, %v8665_v21 }
 0xe0c   : > { %10211 = vmatpush1.bf16.msra.mxu0 %v15546_v40  ;;  %v8669_v40 = vld [vmem:[%s24251_s11 + $0x408] sm:$0xff] }
 0xe0d   : > { %10212 = vmatprep.subr.bf16.mxu0 %v15555_v46  ;;  %v8673_v46 = vld [vmem:[%s24251_s11 + $0x428] sm:$0xff] }
 0xe0e   : > { %v15667_v8 = vcombine.high %v8669_v40, %v8673_v46  ;;  %v15666_v14 = vcombine.low %v8669_v40, %v8673_v46 }
 0xe10   : > { %10213 = vmatpush1.bf16.msra.mxu0 %v15554_v57  ;;  %v8677_v57 = vld [vmem:[%s24251_s11 + $0x448] sm:$0xff] }
 0xe11   : > { %10214 = vmatprep.subr.bf16.mxu0 %v15563_v16  ;;  %v8681_v16 = vld [vmem:[%s24251_s11 + $0x468] sm:$0xff] }
 0xe12   : > { %v15675_v31 = vcombine.high %v8677_v57, %v8681_v16  ;;  %v15674_v37 = vcombine.low %v8677_v57, %v8681_v16 }
 0xe14   : > { %10215 = vmatpush1.bf16.msra.mxu0 %v15562_v39  ;;  %v8685_v39 = vld [vmem:[%s24251_s11 + $0x488] sm:$0xff] }
 0xe15   : > { %10216 = vmatprep.subr.bf16.mxu0 %v15571_v11  ;;  %v8689_v11 = vld [vmem:[%s24251_s11 + $0x4a8] sm:$0xff] }
 0xe16   : > { %v15683_v29 = vcombine.high %v8685_v39, %v8689_v11  ;;  %v15682_v52 = vcombine.low %v8685_v39, %v8689_v11 }
 0xe18   : > { %10217 = vmatpush1.bf16.msra.mxu0 %v15570_v27  ;;  %v8693_v27 = vld [vmem:[%s24251_s11 + $0x4c8] sm:$0xff] }
 0xe19   : > { %10218 = vmatprep.subr.bf16.mxu0 %v15579_v56  ;;  %v8697_v56 = vld [vmem:[%s24251_s11 + $0x4e8] sm:$0xff] }
 0xe1a   : > { %v15691_v54 = vcombine.high %v8693_v27, %v8697_v56  ;;  %v15690_v42 = vcombine.low %v8693_v27, %v8697_v56 }
 0xe1c   : > { %10219 = vmatpush1.bf16.msra.mxu0 %v15578_v47  ;;  %v8701_v47 = vld [vmem:[%s24251_s11 + $0x508] sm:$0xff] }
 0xe1d   : > { %10220 = vmatprep.subr.bf16.mxu0 %v15587_v18  ;;  %v8705_v18 = vld [vmem:[%s24251_s11 + $0x528] sm:$0xff] }
 0xe1e   : > { %v15699_v22 = vcombine.high %v8701_v47, %v8705_v18  ;;  %v15698_v50 = vcombine.low %v8701_v47, %v8705_v18 }
 0xe20   : > { %10221 = vmatpush1.bf16.msra.mxu0 %v15586_v61  ;;  %v8709_v61 = vld [vmem:[%s24251_s11 + $0x548] sm:$0xff] }
 0xe21   : > { %10222 = vmatprep.subr.bf16.mxu0 %v15595_v55  ;;  %v8713_v55 = vld [vmem:[%s24251_s11 + $0x568] sm:$0xff] }
 0xe22   : > { %v15707_v4 = vcombine.high %v8709_v61, %v8713_v55  ;;  %v15706_v35 = vcombine.low %v8709_v61, %v8713_v55 }
 0xe24   : > { %10223 = vmatpush1.bf16.msra.mxu0 %v15594_v17  ;;  %v8717_v17 = vld [vmem:[%s24251_s11 + $0x588] sm:$0xff] }
 0xe25   : > { %10224 = vmatprep.subr.bf16.mxu0 %v15603_v5  ;;  %v8721_v5 = vld [vmem:[%s24251_s11 + $0x5a8] sm:$0xff] }
 0xe26   : > { %v15715_v62 = vcombine.high %v8717_v17, %v8721_v5  ;;  %v15714_v0 = vcombine.low %v8717_v17, %v8721_v5 }
 0xe28   : > { %10225 = vmatpush1.bf16.msra.mxu0 %v15602_v48  ;;  %v8725_v48 = vld [vmem:[%s24251_s11 + $0x5c8] sm:$0xff] }
 0xe29   : > { %10226 = vmatprep.subr.bf16.mxu0 %v15611_v60  ;;  %v8729_v60 = vld [vmem:[%s24251_s11 + $0x5e8] sm:$0xff] }
 0xe2a   : > { %v15723_v58 = vcombine.high %v8725_v48, %v8729_v60  ;;  %v15722_v9 = vcombine.low %v8725_v48, %v8729_v60 }
 0xe2c   : > { %10227 = vmatpush1.bf16.msra.mxu0 %v15610_v24  ;;  %v8733_v24 = vld [vmem:[%s24251_s11 + $0x608] sm:$0xff] }
 0xe2d   : > { %10228 = vmatprep.subr.bf16.mxu0 %v15619_v43  ;;  %v8737_v43 = vld [vmem:[%s24251_s11 + $0x628] sm:$0xff] }
 0xe2e   : > { %v15731_v38 = vcombine.high %v8733_v24, %v8737_v43  ;;  %v15730_v51 = vcombine.low %v8733_v24, %v8737_v43 }
 0xe30   : > { %10229 = vmatpush1.bf16.msra.mxu0 %v15618_v41  ;;  %v8741_v41 = vld [vmem:[%s24251_s11 + $0x648] sm:$0xff] }
 0xe31   : > { %10230 = vmatprep.subr.bf16.mxu0 %v15627_v28  ;;  %v8745_v28 = vld [vmem:[%s24251_s11 + $0x668] sm:$0xff] }
 0xe32   : > { %v15739_v49 = vcombine.high %v8741_v41, %v8745_v28  ;;  %v15738_v6 = vcombine.low %v8741_v41, %v8745_v28 }
 0xe34   : > { %10231 = vmatpush1.bf16.msra.mxu0 %v15626_v12  ;;  %v8749_v12 = vld [vmem:[%s24251_s11 + $0x688] sm:$0xff] }
 0xe35   : > { %10232 = vmatprep.subr.bf16.mxu0 %v15635_v1  ;;  %v8753_v1 = vld [vmem:[%s24251_s11 + $0x6a8] sm:$0xff] }
 0xe36   : > { %v15747_v45 = vcombine.high %v8749_v12, %v8753_v1  ;;  %v15746_v15 = vcombine.low %v8749_v12, %v8753_v1 }
 0xe38   : > { %10233 = vmatpush1.bf16.msra.mxu0 %v15634_v63  ;;  %v8757_v63 = vld [vmem:[%s24251_s11 + $0x6c8] sm:$0xff] }
 0xe39   : > { %10234 = vmatprep.subr.bf16.mxu0 %v15643_v2  ;;  %v8761_v2 = vld [vmem:[%s24251_s11 + $0x6e8] sm:$0xff] }
 0xe3a   : > { %v15755_v20 = vcombine.high %v8757_v63, %v8761_v2  ;;  %v15754_v53 = vcombine.low %v8757_v63, %v8761_v2 }
 0xe3c   : > { %10235 = vmatpush1.bf16.msra.mxu0 %v15642_v32  ;;  %v8765_v32 = vld [vmem:[%s24251_s11 + $0x708] sm:$0xff] }
 0xe3d   : > { %10236 = vmatprep.subr.bf16.mxu0 %v15651_v26  ;;  %v8769_v26 = vld [vmem:[%s24251_s11 + $0x728] sm:$0xff] }
 0xe3e   : > { %v15763_v21 = vcombine.high %v8765_v32, %v8769_v26  ;;  %v15762_v40 = vcombine.low %v8765_v32, %v8769_v26 }
 0xe40   : > { %10237 = vmatpush1.bf16.msra.mxu0 %v15650_v19  ;;  %v8773_v19 = vld [vmem:[%s24251_s11 + $0x748] sm:$0xff] }
 0xe41   : > { %10238 = vmatprep.subr.bf16.mxu0 %v15659_v23  ;;  %v8777_v23 = vld [vmem:[%s24251_s11 + $0x768] sm:$0xff] }
 0xe42   : > { %v15771_v46 = vcombine.high %v8773_v19, %v8777_v23  ;;  %v15770_v57 = vcombine.low %v8773_v19, %v8777_v23 }
 0xe44   : > { %10239 = vmatpush1.bf16.msra.mxu0 %v15658_v33  ;;  %v8781_v33 = vld [vmem:[%s24251_s11 + $0x788] sm:$0xff] }
 0xe45   : > { %10251 = vmatprep.subr.bf16.mxu0 %v15667_v8  ;;  %v8785_v8 = vld [vmem:[%s24251_s11 + $0x7a8] sm:$0xff] }
 0xe46   : > { %v15779_v16 = vcombine.high %v8781_v33, %v8785_v8  ;;  %v15778_v39 = vcombine.low %v8781_v33, %v8785_v8 }
 0xe47   : > { %10241 = vmatmul.mubr.bf16.vlgmr.msra.gmra.mrb[164].mxu0 %v21800_v44 }
 0xe48   : > { %10252 = vmatpush1.bf16.msra.mxu0 %v15666_v14  ;;  %10283 = vmatprep.mubr.bf16.mxu0 %v21912_v10  ;;  %v8789_v14 = vld [vmem:[%s24251_s11 + $0x7c8] sm:$0xff] }
 0xe49   : > { %10253 = vmatprep.subr.bf16.mxu0 %v15675_v31  ;;  %v8793_v31 = vld [vmem:[%s24251_s11 + $0x7e8] sm:$0xff] }
 0xe4a   : > { %v15787_v11 = vcombine.high %v8789_v14, %v8793_v31  ;;  %v15786_v27 = vcombine.low %v8789_v14, %v8793_v31 }
 0xe4c   : > { %10254 = vmatpush1.bf16.msra.mxu0 %v15674_v37  ;;  %v8542_v37 = vld [vmem:[%s24251_s11 + $0x10] sm:$0xff] }
 0xe4d   : > { %10255 = vmatprep.subr.bf16.mxu0 %v15683_v29  ;;  %v8546_v29 = vld [vmem:[%s24251_s11 + $0x30] sm:$0xff] }
 0xe4e   : > { %v15541_v56 = vcombine.high %v8542_v37, %v8546_v29  ;;  %v15540_v47 = vcombine.low %v8542_v37, %v8546_v29  ;;  %v10676_v29 = vld [vmem:[%s24254_s14 + $0x8] sm:$0xff] }
 0xe50   : > { %10256 = vmatpush1.bf16.msra.mxu0 %v15682_v52  ;;  %v8550_v52 = vld [vmem:[%s24251_s11 + $0x50] sm:$0xff] }
 0xe51   : > { %10257 = vmatprep.subr.bf16.mxu0 %v15691_v54  ;;  %v8554_v54 = vld [vmem:[%s24251_s11 + $0x70] sm:$0xff] }
 0xe52   : > { %v15549_v18 = vcombine.high %v8550_v52, %v8554_v54  ;;  %v15548_v61 = vcombine.low %v8550_v52, %v8554_v54 }
 0xe54   : > { %10258 = vmatpush1.bf16.msra.mxu0 %v15690_v42  ;;  %v8558_v42 = vld [vmem:[%s24251_s11 + $0x90] sm:$0xff] }
 0xe55   : > { %10259 = vmatprep.subr.bf16.mxu0 %v15699_v22  ;;  %v8562_v22 = vld [vmem:[%s24251_s11 + $0xb0] sm:$0xff] }
 0xe56   : > { %v15557_v55 = vcombine.high %v8558_v42, %v8562_v22  ;;  %v15556_v17 = vcombine.low %v8558_v42, %v8562_v22 }
 0xe58   : > { %10260 = vmatpush1.bf16.msra.mxu0 %v15698_v50  ;;  %v8566_v50 = vld [vmem:[%s24251_s11 + $0xd0] sm:$0xff] }
 0xe59   : > { %10261 = vmatprep.subr.bf16.mxu0 %v15707_v4  ;;  %v8570_v4 = vld [vmem:[%s24251_s11 + $0xf0] sm:$0xff] }
 0xe5a   : > { %v15565_v5 = vcombine.high %v8566_v50, %v8570_v4  ;;  %v15564_v48 = vcombine.low %v8566_v50, %v8570_v4 }
 0xe5c   : > { %10262 = vmatpush1.bf16.msra.mxu0 %v15706_v35  ;;  %v8574_v35 = vld [vmem:[%s24251_s11 + $0x110] sm:$0xff] }
 0xe5d   : > { %10263 = vmatprep.subr.bf16.mxu0 %v15715_v62  ;;  %v8578_v62 = vld [vmem:[%s24251_s11 + $0x130] sm:$0xff] }
 0xe5e   : > { %v15573_v60 = vcombine.high %v8574_v35, %v8578_v62  ;;  %v15572_v24 = vcombine.low %v8574_v35, %v8578_v62 }
 0xe60   : > { %10264 = vmatpush1.bf16.msra.mxu0 %v15714_v0  ;;  %v8582_v0 = vld [vmem:[%s24251_s11 + $0x150] sm:$0xff] }
 0xe61   : > { %10265 = vmatprep.subr.bf16.mxu0 %v15723_v58  ;;  %v8586_v58 = vld [vmem:[%s24251_s11 + $0x170] sm:$0xff] }
 0xe62   : > { %v15581_v43 = vcombine.high %v8582_v0, %v8586_v58  ;;  %v15580_v41 = vcombine.low %v8582_v0, %v8586_v58 }
 0xe64   : > { %10266 = vmatpush1.bf16.msra.mxu0 %v15722_v9  ;;  %v8590_v9 = vld [vmem:[%s24251_s11 + $0x190] sm:$0xff] }
 0xe65   : > { %10267 = vmatprep.subr.bf16.mxu0 %v15731_v38  ;;  %v8594_v38 = vld [vmem:[%s24251_s11 + $0x1b0] sm:$0xff] }
 0xe66   : > { %v15589_v28 = vcombine.high %v8590_v9, %v8594_v38  ;;  %v15588_v12 = vcombine.low %v8590_v9, %v8594_v38 }
 0xe68   : > { %10268 = vmatpush1.bf16.msra.mxu0 %v15730_v51  ;;  %v8598_v51 = vld [vmem:[%s24251_s11 + $0x1d0] sm:$0xff] }
 0xe69   : > { %10269 = vmatprep.subr.bf16.mxu0 %v15739_v49  ;;  %v8602_v49 = vld [vmem:[%s24251_s11 + $0x1f0] sm:$0xff] }
 0xe6a   : > { %v15597_v1 = vcombine.high %v8598_v51, %v8602_v49  ;;  %v15596_v63 = vcombine.low %v8598_v51, %v8602_v49  ;;  %v10684_v49 = vld [vmem:[%s24254_s14 + $0x48] sm:$0xff] }
 0xe6c   : > { %10270 = vmatpush1.bf16.msra.mxu0 %v15738_v6  ;;  %v8606_v6 = vld [vmem:[%s24251_s11 + $0x210] sm:$0xff] }
 0xe6d   : > { %10271 = vmatprep.subr.bf16.mxu0 %v15747_v45  ;;  %v8610_v45 = vld [vmem:[%s24251_s11 + $0x230] sm:$0xff] }
 0xe6e   : > { %v15605_v2 = vcombine.high %v8606_v6, %v8610_v45  ;;  %v15604_v32 = vcombine.low %v8606_v6, %v8610_v45 }
 0xe70   : > { %10272 = vmatpush1.bf16.msra.mxu0 %v15746_v15  ;;  %v8614_v15 = vld [vmem:[%s24251_s11 + $0x250] sm:$0xff] }
 0xe71   : > { %10273 = vmatprep.subr.bf16.mxu0 %v15755_v20  ;;  %v8618_v20 = vld [vmem:[%s24251_s11 + $0x270] sm:$0xff] }
 0xe72   : > { %v15613_v26 = vcombine.high %v8614_v15, %v8618_v20  ;;  %v15612_v19 = vcombine.low %v8614_v15, %v8618_v20 }
 0xe74   : > { %10274 = vmatpush1.bf16.msra.mxu0 %v15754_v53  ;;  %v8622_v53 = vld [vmem:[%s24251_s11 + $0x290] sm:$0xff] }
 0xe75   : > { %10275 = vmatprep.subr.bf16.mxu0 %v15763_v21  ;;  %v8626_v21 = vld [vmem:[%s24251_s11 + $0x2b0] sm:$0xff] }
 0xe76   : > { %v15621_v23 = vcombine.high %v8622_v53, %v8626_v21  ;;  %v15620_v33 = vcombine.low %v8622_v53, %v8626_v21  ;;  %v22250_v21 = vld [vmem:[%s24252_s12] sm:$0xff] }
 0xe78   : > { %10276 = vmatpush1.bf16.msra.mxu0 %v15762_v40  ;;  %v8630_v40 = vld [vmem:[%s24251_s11 + $0x2d0] sm:$0xff] }
 0xe79   : > { %10277 = vmatprep.subr.bf16.mxu0 %v15771_v46  ;;  %v8634_v46 = vld [vmem:[%s24251_s11 + $0x2f0] sm:$0xff] }
 0xe7a   : > { %v15629_v8 = vcombine.high %v8630_v40, %v8634_v46  ;;  %v15628_v14 = vcombine.low %v8630_v40, %v8634_v46  ;;  %v8722_v40 = vld [vmem:[%s24251_s11 + $0x5b0] sm:$0xff]  ;;  %v8805_v46 = vrot.slane %v22250_v21, %v21213_v3 }
 0xe7c   : > { %10278 = vmatpush1.bf16.msra.mxu0 %v15770_v57  ;;  %v8638_v57 = vld [vmem:[%s24251_s11 + $0x310] sm:$0xff] }
 0xe7d   : > { %10279 = vmatprep.subr.bf16.mxu0 %v15779_v16  ;;  %v8642_v16 = vld [vmem:[%s24251_s11 + $0x330] sm:$0xff] }
 0xe7e   : > { %v15637_v31 = vcombine.high %v8638_v57, %v8642_v16  ;;  %v15636_v37 = vcombine.low %v8638_v57, %v8642_v16 }
 0xe80   : > { %10280 = vmatpush1.bf16.msra.mxu0 %v15778_v39  ;;  %v8646_v39 = vld [vmem:[%s24251_s11 + $0x350] sm:$0xff] }
 0xe81   : > { %10281 = vmatprep.subr.bf16.mxu0 %v15787_v11  ;;  %v8650_v11 = vld [vmem:[%s24251_s11 + $0x370] sm:$0xff] }
 0xe82   : > { %v15644_v42 = vcombine.low %v8646_v39, %v8650_v11 }
 0xe84   : > { %10282 = vmatpush1.bf16.msra.mxu0 %v15786_v27  ;;  %v10680_v27 = vld [vmem:[%s24254_s14 + $0x28] sm:$0xff] }
 0xe85   : > { %10294 = vmatprep.subr.bf16.mxu0 %v15541_v56  ;;  %v15645_v56 = vcombine.high %v8646_v39, %v8650_v11  ;;  %v15798_v52 = vcombine.low %v10676_v29, %v10680_v27  ;;  %v15799_v54 = vcombine.high %v10676_v29, %v10680_v27 }
 0xe87   : > { %10284 = vmatmul.mubr.bf16.vlgmr.msra.gmra.mrb[164].mxu0 %v21909_v59  ;;  %13961 = vmatprep.subr.bf16.mxu1 %v15799_v54 }
 0xe88   : > { %10295 = vmatpush1.bf16.msra.mxu0 %v15540_v47  ;;  %10326 = vmatprep.mubr.bf16.mxu0 %v21803_v30  ;;  %v8654_v47 = vld [vmem:[%s24251_s11 + $0x390] sm:$0xff] }
 0xe89   : > { %10296 = vmatprep.subr.bf16.mxu0 %v15549_v18  ;;  %v8658_v18 = vld [vmem:[%s24251_s11 + $0x3b0] sm:$0xff]  ;;  %13962 = vmatpush1.bf16.msra.mxu1 %v15798_v52 }
 0xe8a   : > { %v15653_v22 = vcombine.high %v8654_v47, %v8658_v18  ;;  %v15652_v50 = vcombine.low %v8654_v47, %v8658_v18 }
 0xe8c   : > { %10297 = vmatpush1.bf16.msra.mxu0 %v15548_v61  ;;  %v8662_v61 = vld [vmem:[%s24251_s11 + $0x3d0] sm:$0xff] }
 0xe8d   : > { %10298 = vmatprep.subr.bf16.mxu0 %v15557_v55  ;;  %v8666_v55 = vld [vmem:[%s24251_s11 + $0x3f0] sm:$0xff] }
 0xe8e   : > { %v15661_v4 = vcombine.high %v8662_v61, %v8666_v55  ;;  %v15660_v35 = vcombine.low %v8662_v61, %v8666_v55  ;;  %v8738_v61 = vld [vmem:[%s24251_s11 + $0x630] sm:$0xff] }
 0xe90   : > { %10299 = vmatpush1.bf16.msra.mxu0 %v15556_v17  ;;  %v8670_v17 = vld [vmem:[%s24251_s11 + $0x410] sm:$0xff] }
 0xe91   : > { %10300 = vmatprep.subr.bf16.mxu0 %v15565_v5  ;;  %v8674_v5 = vld [vmem:[%s24251_s11 + $0x430] sm:$0xff] }
 0xe92   : > { %v15669_v62 = vcombine.high %v8670_v17, %v8674_v5  ;;  %v15668_v0 = vcombine.low %v8670_v17, %v8674_v5 }
 0xe94   : > { %10301 = vmatpush1.bf16.msra.mxu0 %v15564_v48  ;;  %v8678_v48 = vld [vmem:[%s24251_s11 + $0x450] sm:$0xff] }
 0xe95   : > { %10302 = vmatprep.subr.bf16.mxu0 %v15573_v60  ;;  %v8682_v60 = vld [vmem:[%s24251_s11 + $0x470] sm:$0xff] }
 0xe96   : > { %v15677_v58 = vcombine.high %v8678_v48, %v8682_v60  ;;  %v15676_v9 = vcombine.low %v8678_v48, %v8682_v60  ;;  %v8746_v48 = vld [vmem:[%s24251_s11 + $0x670] sm:$0xff] }
 0xe98   : > { %10303 = vmatpush1.bf16.msra.mxu0 %v15572_v24  ;;  %v8686_v24 = vld [vmem:[%s24251_s11 + $0x490] sm:$0xff] }
 0xe99   : > { %10304 = vmatprep.subr.bf16.mxu0 %v15581_v43  ;;  %v8690_v43 = vld [vmem:[%s24251_s11 + $0x4b0] sm:$0xff] }
 0xe9a   : > { %v15685_v38 = vcombine.high %v8686_v24, %v8690_v43  ;;  %v15684_v51 = vcombine.low %v8686_v24, %v8690_v43 }
 0xe9c   : > { %10305 = vmatpush1.bf16.msra.mxu0 %v15580_v41  ;;  %v8694_v41 = vld [vmem:[%s24251_s11 + $0x4d0] sm:$0xff] }
 0xe9d   : > { %10306 = vmatprep.subr.bf16.mxu0 %v15589_v28  ;;  %v8698_v28 = vld [vmem:[%s24251_s11 + $0x4f0] sm:$0xff] }
 0xe9e   : > { %v15692_v15 = vcombine.low %v8694_v41, %v8698_v28 }
 0xea0   : > { %10307 = vmatpush1.bf16.msra.mxu0 %v15588_v12  ;;  %v10688_v12 = vld [vmem:[%s24254_s14 + $0x68] sm:$0xff] }
 0xea1   : > { %10308 = vmatprep.subr.bf16.mxu0 %v15597_v1  ;;  %v15693_v1 = vcombine.high %v8694_v41, %v8698_v28  ;;  %v15806_v6 = vcombine.low %v10684_v49, %v10688_v12  ;;  %v15807_v45 = vcombine.high %v10684_v49, %v10688_v12  ;;  %v8754_v41 = vld [vmem:[%s24251_s11 + $0x6b0] sm:$0xff] }
 0xea2   : > { %v8758_v49 = vld [vmem:[%s24251_s11 + $0x6d0] sm:$0xff] }
 0xea3   : > { %13963 = vmatprep.subr.bf16.mxu1 %v15807_v45  ;;  %v8762_v12 = vld [vmem:[%s24251_s11 + $0x6f0] sm:$0xff] }
 0xea4   : > { %10309 = vmatpush1.bf16.msra.mxu0 %v15596_v63  ;;  %v8702_v63 = vld [vmem:[%s24251_s11 + $0x510] sm:$0xff]  ;;  %13964 = vmatpush1.bf16.msra.mxu1 %v15806_v6  ;;  %v15757_v6 = vcombine.high %v8758_v49, %v8762_v12 }
 0xea5   : > { %10310 = vmatprep.subr.bf16.mxu0 %v15605_v2  ;;  %v8706_v2 = vld [vmem:[%s24251_s11 + $0x530] sm:$0xff] }
 0xea6   : > { %v15701_v20 = vcombine.high %v8702_v63, %v8706_v2  ;;  %v15700_v53 = vcombine.low %v8702_v63, %v8706_v2  ;;  %v8766_v45 = vld [vmem:[%s24251_s11 + $0x710] sm:$0xff]  ;;  %v15756_v2 = vcombine.low %v8758_v49, %v8762_v12  ;;  %v10724_v12 = vld [vmem:[%s24254_s14 + $0x188] sm:$0xff] }
 0xea7   : > { %v8770_v63 = vld [vmem:[%s24251_s11 + $0x730] sm:$0xff] }
 0xea8   : > { %10311 = vmatpush1.bf16.msra.mxu0 %v15604_v32  ;;  %v8710_v32 = vld [vmem:[%s24251_s11 + $0x550] sm:$0xff] }
 0xea9   : > { %10312 = vmatprep.subr.bf16.mxu0 %v15613_v26  ;;  %v8714_v26 = vld [vmem:[%s24251_s11 + $0x570] sm:$0xff] }
 0xeac   : > { %10313 = vmatpush1.bf16.msra.mxu0 %v15612_v19  ;;  %v15709_v19 = vcombine.high %v8710_v32, %v8714_v26 }
 0xead   : > { %10314 = vmatprep.subr.bf16.mxu0 %v15621_v23  ;;  %v8718_v23 = vld [vmem:[%s24251_s11 + $0x590] sm:$0xff] }
 0xeae   : > { %v15717_v57 = vcombine.high %v8718_v23, %v8722_v40  ;;  %v15716_v27 = vcombine.low %v8718_v23, %v8722_v40  ;;  %v8786_v23 = vld [vmem:[%s24251_s11 + $0x7b0] sm:$0xff] }
 0xeb0   : > { %10315 = vmatpush1.bf16.msra.mxu0 %v15620_v33  ;;  %v8809_v33 = vrot.slane %v22250_v21, %v21219_v7 }
 0xeb1   : > { %10316 = vmatprep.subr.bf16.mxu0 %v15629_v8  ;;  %v15708_v8 = vcombine.low %v8710_v32, %v8714_v26  ;;  %v8778_v32 = vld [vmem:[%s24251_s11 + $0x770] sm:$0xff]  ;;  %v15764_v26 = vcombine.low %v8766_v45, %v8770_v63 }
 0xeb4   : > { %10317 = vmatpush1.bf16.msra.mxu0 %v15628_v14  ;;  %v8726_v14 = vld [vmem:[%s24251_s11 + $0x5d0] sm:$0xff] }
 0xeb5   : > { %10318 = vmatprep.subr.bf16.mxu0 %v15637_v31  ;;  %v8730_v31 = vld [vmem:[%s24251_s11 + $0x5f0] sm:$0xff] }
 0xeb6   : > { %v15725_v47 = vcombine.high %v8726_v14, %v8730_v31 }
 0xeb8   : > { %10319 = vmatpush1.bf16.msra.mxu0 %v15636_v37 }
 0xeb9   : > { %10320 = vmatprep.subr.bf16.mxu0 %v15645_v56 }
 0xebc   : > { %10321 = vmatpush1.bf16.msra.mxu0 %v15644_v42 }
 0xebd   : > { %10322 = vmatprep.subr.bf16.mxu0 %v15653_v22  ;;  %v8734_v22 = vld [vmem:[%s24251_s11 + $0x610] sm:$0xff] }
 0xebe   : > { %v15733_v5 = vcombine.high %v8734_v22, %v8738_v61  ;;  %v15732_v60 = vcombine.low %v8734_v22, %v8738_v61  ;;  %v8563_v22 = vld [vmem:[%s24251_s11 + $0xb8] sm:$0xff] }
 0xec0   : > { %10323 = vmatpush1.bf16.msra.mxu0 %v15652_v50 }
 0xec1   : > { %10324 = vmatprep.subr.bf16.mxu0 %v15661_v4  ;;  %v15724_v4 = vcombine.low %v8726_v14, %v8730_v31  ;;  %v10704_v14 = vld [vmem:[%s24254_s14 + $0xe8] sm:$0xff] }
 0xec4   : > { %10325 = vmatpush1.bf16.msra.mxu0 %v15660_v35 }
 0xec5   : > { %10337 = vmatprep.subr.bf16.mxu0 %v15669_v62  ;;  %v8742_v62 = vld [vmem:[%s24251_s11 + $0x650] sm:$0xff] }
 0xec6   : > { %v15741_v24 = vcombine.high %v8742_v62, %v8746_v48  ;;  %v15740_v28 = vcombine.low %v8742_v62, %v8746_v48  ;;  %v8575_v48 = vld [vmem:[%s24251_s11 + $0x118] sm:$0xff] }
 0xec7   : > { %10327 = vmatmul.mubr.bf16.vlgmr.msra.gmra.mrb[168].mxu0 %v21800_v44 }
 0xec8   : > { %10338 = vmatpush1.bf16.msra.mxu0 %v15668_v0  ;;  %10369 = vmatprep.mubr.bf16.mxu0 %v21912_v10  ;;  %v10692_v0 = vld [vmem:[%s24254_s14 + $0x88] sm:$0xff] }
 0xec9   : > { %10339 = vmatprep.subr.bf16.mxu0 %v15677_v58  ;;  %v10696_v58 = vld [vmem:[%s24254_s14 + $0xa8] sm:$0xff] }
 0xeca   : > { %v15814_v43 = vcombine.low %v10692_v0, %v10696_v58 }
 0xecc   : > { %10340 = vmatpush1.bf16.msra.mxu0 %v15676_v9  ;;  %v15815_v9 = vcombine.high %v10692_v0, %v10696_v58  ;;  %v10708_v0 = vld [vmem:[%s24254_s14 + $0x108] sm:$0xff] }
 0xecd   : > { %10341 = vmatprep.subr.bf16.mxu0 %v15685_v38  ;;  %v8750_v38 = vld [vmem:[%s24251_s11 + $0x690] sm:$0xff]  ;;  %v10712_v58 = vld [vmem:[%s24254_s14 + $0x128] sm:$0xff] }
 0xece   : > { %13965 = vmatprep.subr.bf16.mxu1 %v15815_v9  ;;  %v8583_v9 = vld [vmem:[%s24251_s11 + $0x158] sm:$0xff] }
 0xecf   : > { %13966 = vmatpush1.bf16.msra.mxu1 %v15814_v43 }
 0xed0   : > { %10342 = vmatpush1.bf16.msra.mxu0 %v15684_v51  ;;  %v15749_v51 = vcombine.high %v8750_v38, %v8754_v41 }
 0xed1   : > { %10343 = vmatprep.subr.bf16.mxu0 %v15693_v1  ;;  %v15748_v1 = vcombine.low %v8750_v38, %v8754_v41  ;;  %v15830_v38 = vcombine.low %v10708_v0, %v10712_v58  ;;  %v15831_v41 = vcombine.high %v10708_v0, %v10712_v58  ;;  %v8663_v58 = vld [vmem:[%s24251_s11 + $0x3d8] sm:$0xff] }
 0xed4   : > { %10344 = vmatpush1.bf16.msra.mxu0 %v15692_v15  ;;  %v15765_v15 = vcombine.high %v8766_v45, %v8770_v63 }
 0xed5   : > { %10345 = vmatprep.subr.bf16.mxu0 %v15701_v20  ;;  %v8774_v20 = vld [vmem:[%s24251_s11 + $0x750] sm:$0xff] }
 0xed6   : > { %v15772_v40 = vcombine.low %v8774_v20, %v8778_v32 }
 0xed8   : > { %10346 = vmatpush1.bf16.msra.mxu0 %v15700_v53  ;;  %v15773_v53 = vcombine.high %v8774_v20, %v8778_v32  ;;  %v8595_v20 = vld [vmem:[%s24251_s11 + $0x1b8] sm:$0xff] }
 0xed9   : > { %10347 = vmatprep.subr.bf16.mxu0 %v15709_v19  ;;  %v8782_v19 = vld [vmem:[%s24251_s11 + $0x790] sm:$0xff] }
 0xeda   : > { %v10199_v16 = vpop.f32.mrb[160].mxu0 }
 0xedb   : > { %v16463_v39 = vadd.f32 %v10199_v16, %v8805_v46  ;;  %v10201_v11 = vpop.f32.mrb[161].mxu0  ;;  %v10700_v16 = vld [vmem:[%s24254_s14 + $0xc8] sm:$0xff] }
 0xedc   : > { %v16464_v37 = vadd.f32 %v10201_v11, %v8809_v33  ;;  %v10203_v29 = vpop.f32.mrb[162].mxu0  ;;  %10348 = vmatpush1.bf16.msra.mxu0 %v15708_v8  ;;  %v8794_v8 = vld [vmem:[%s24251_s11 + $0x7f0] sm:$0xff]  ;;  %v15823_v11 = vcombine.high %v10700_v16, %v10704_v14 }
 0xedd   : > { %v10466_v56 = vmax.f32 %v16463_v39, 0.0  ;;  %v16465_v52 = vadd.f32 %v10203_v29, %v8805_v46  ;;  %v10205_v54 = vpop.f32.mrb[163].mxu0  ;;  %10349 = vmatprep.subr.bf16.mxu0 %v15717_v57  ;;  %v15781_v46 = vcombine.high %v8782_v19, %v8786_v23  ;;  %v15780_v57 = vcombine.low %v8782_v19, %v8786_v23  ;;  %v8547_v29 = vld [vmem:[%s24251_s11 + $0x38] sm:$0xff] }
 0xede   : > { %v10467_v18 = vmax.f32 %v16464_v37, 0.0  ;;  %v16466_v42 = vadd.f32 %v10205_v54, %v8809_v33  ;;  %v8790_v33 = vld [vmem:[%s24251_s11 + $0x7d0] sm:$0xff]  ;;  %v15822_v39 = vcombine.low %v10700_v16, %v10704_v14  ;;  %v8543_v37 = vld [vmem:[%s24251_s11 + $0x18] sm:$0xff]  ;;  %13967 = vmatprep.subr.bf16.mxu1 %v15823_v11 }
 0xedf   : > { %10482 = vst [vmem:[%s22274_s1] sm:$0xff] %v10466_v56  ;;  %v10474_v55 = vmax.f32 %v16465_v52, 0.0  ;;  %v15789_v31 = vcombine.high %v8790_v33, %v8794_v8  ;;  %v8551_v52 = vld [vmem:[%s24251_s11 + $0x58] sm:$0xff] }
 0xee0   : > { %10483 = vst [vmem:[%s22274_s1 + $0x8] sm:$0xff] %v10467_v18  ;;  %v10475_v50 = vmax.f32 %v16466_v42, 0.0  ;;  %10350 = vmatpush1.bf16.msra.mxu0 %v15716_v27  ;;  %v15788_v27 = vcombine.low %v8790_v33, %v8794_v8  ;;  %13968 = vmatpush1.bf16.msra.mxu1 %v15822_v39  ;;  %v8555_v54 = vld [vmem:[%s24251_s11 + $0x78] sm:$0xff] }
 0xee1   : > { %10490 = vst [vmem:[%s22274_s1 + $0x40] sm:$0xff] %v10474_v55  ;;  %v22285_v17 = vpack.c.bf16 %v10474_v55, %v10466_v56  ;;  %10351 = vmatprep.subr.bf16.mxu0 %v15725_v47  ;;  %v15543_v56 = vcombine.high %v8543_v37, %v8547_v29  ;;  %v15542_v47 = vcombine.low %v8543_v37, %v8547_v29  ;;  %v8559_v42 = vld [vmem:[%s24251_s11 + $0x98] sm:$0xff] }
 0xee2   : > { %10491 = vst [vmem:[%s22274_s1 + $0x48] sm:$0xff] %v10475_v50  ;;  %v22288_v35 = vpack.c.bf16 %v10475_v50, %v10467_v18  ;;  %v15551_v18 = vcombine.high %v8551_v52, %v8555_v54  ;;  %v15550_v61 = vcombine.low %v8551_v52, %v8555_v54  ;;  %v15559_v55 = vcombine.high %v8559_v42, %v8563_v22  ;;  %v8567_v50 = vld [vmem:[%s24251_s11 + $0xd8] sm:$0xff] }
 0xee3   : > { %13969 = vmatprep.subr.bf16.mxu1 %v15831_v41  ;;  %v8599_v19 = vld [vmem:[%s24251_s11 + $0x1d8] sm:$0xff] }
 0xee4   : > { %10352 = vmatpush1.bf16.msra.mxu0 %v15724_v4  ;;  %v8571_v4 = vld [vmem:[%s24251_s11 + $0xf8] sm:$0xff]  ;;  %13970 = vmatpush1.bf16.msra.mxu1 %v15830_v38 }
 0xee5   : > { %10353 = vmatprep.subr.bf16.mxu0 %v15733_v5  ;;  %v15558_v5 = vcombine.low %v8559_v42, %v8563_v22  ;;  %v15567_v62 = vcombine.high %v8567_v50, %v8571_v4  ;;  %v8603_v23 = vld [vmem:[%s24251_s11 + $0x1f8] sm:$0xff] }
 0xee6   : > { %v8607_v33 = vld [vmem:[%s24251_s11 + $0x218] sm:$0xff] }
 0xee7   : > { %v8611_v8 = vld [vmem:[%s24251_s11 + $0x238] sm:$0xff] }
 0xee8   : > { %10354 = vmatpush1.bf16.msra.mxu0 %v15732_v60  ;;  %v15566_v60 = vcombine.low %v8567_v50, %v8571_v4  ;;  %v15607_v16 = vcombine.high %v8607_v33, %v8611_v8  ;;  %v8615_v14 = vld [vmem:[%s24251_s11 + $0x258] sm:$0xff]  ;;  %v15606_v39 = vcombine.low %v8607_v33, %v8611_v8 }
 0xee9   : > { %10355 = vmatprep.subr.bf16.mxu0 %v15741_v24  ;;  %v10716_v24 = vld [vmem:[%s24254_s14 + $0x148] sm:$0xff]  ;;  %v8623_v37 = vld [vmem:[%s24251_s11 + $0x298] sm:$0xff] }
 0xeea   : > { %v8627_v29 = vld [vmem:[%s24251_s11 + $0x2b8] sm:$0xff] }
 0xeeb   : > { %v8631_v52 = vld [vmem:[%s24251_s11 + $0x2d8] sm:$0xff] }
 0xeec   : > { %10356 = vmatpush1.bf16.msra.mxu0 %v15740_v28  ;;  %v10720_v28 = vld [vmem:[%s24254_s14 + $0x168] sm:$0xff]  ;;  %v8635_v54 = vld [vmem:[%s24251_s11 + $0x2f8] sm:$0xff] }
 0xeed   : > { %10357 = vmatprep.subr.bf16.mxu0 %v15749_v51  ;;  %v8587_v51 = vld [vmem:[%s24251_s11 + $0x178] sm:$0xff]  ;;  %v15839_v49 = vcombine.high %v10716_v24, %v10720_v28  ;;  %v15838_v45 = vcombine.low %v10716_v24, %v10720_v28 }
 0xeee   : > { %v15583_v63 = vcombine.high %v8583_v9, %v8587_v51  ;;  %v15582_v32 = vcombine.low %v8583_v9, %v8587_v51  ;;  %v8639_v42 = vld [vmem:[%s24251_s11 + $0x318] sm:$0xff] }
 0xeef   : > { %13971 = vmatprep.subr.bf16.mxu1 %v15839_v49  ;;  %v8643_v22 = vld [vmem:[%s24251_s11 + $0x338] sm:$0xff] }
 0xef0   : > { %10358 = vmatpush1.bf16.msra.mxu0 %v15748_v1  ;;  %v10728_v1 = vld [vmem:[%s24254_s14 + $0x1a8] sm:$0xff]  ;;  %13972 = vmatpush1.bf16.msra.mxu1 %v15838_v45  ;;  %v8647_v50 = vld [vmem:[%s24251_s11 + $0x358] sm:$0xff] }
 0xef1   : > { %10359 = vmatprep.subr.bf16.mxu0 %v15757_v6  ;;  %v8651_v4 = vld [vmem:[%s24251_s11 + $0x378] sm:$0xff] }
 0xef2   : > { %v8667_v24 = vld [vmem:[%s24251_s11 + $0x3f8] sm:$0xff] }
 0xef3   : > { %v15663_v9 = vcombine.high %v8663_v58, %v8667_v24  ;;  %v8671_v38 = vld [vmem:[%s24251_s11 + $0x418] sm:$0xff]  ;;  %v15662_v28 = vcombine.low %v8663_v58, %v8667_v24 }
 0xef4   : > { %10360 = vmatpush1.bf16.msra.mxu0 %v15756_v2  ;;  %v15847_v2 = vcombine.high %v10724_v12, %v10728_v1  ;;  %v8675_v41 = vld [vmem:[%s24251_s11 + $0x438] sm:$0xff] }
 0xef5   : > { %10361 = vmatprep.subr.bf16.mxu0 %v15765_v15  ;;  %v8591_v15 = vld [vmem:[%s24251_s11 + $0x198] sm:$0xff]  ;;  %v15671_v51 = vcombine.high %v8671_v38, %v8675_v41 }
 0xef6   : > { %13973 = vmatprep.subr.bf16.mxu1 %v15847_v2  ;;  %v8679_v49 = vld [vmem:[%s24251_s11 + $0x458] sm:$0xff] }
 0xef7   : > { %v8687_v45 = vld [vmem:[%s24251_s11 + $0x498] sm:$0xff] }
 0xef8   : > { %10362 = vmatpush1.bf16.msra.mxu0 %v15764_v26  ;;  %v15846_v26 = vcombine.low %v10724_v12, %v10728_v1  ;;  %v8683_v12 = vld [vmem:[%s24251_s11 + $0x478] sm:$0xff]  ;;  %v15670_v1 = vcombine.low %v8671_v38, %v8675_v41  ;;  %v10732_v38 = vld [vmem:[%s24254_s14 + $0x1c8] sm:$0xff] }
 0xef9   : > { %10363 = vmatprep.subr.bf16.mxu0 %v15773_v53  ;;  %v15591_v53 = vcombine.high %v8591_v15, %v8595_v20  ;;  %v15678_v2 = vcombine.low %v8679_v49, %v8683_v12  ;;  %v8743_v24 = vld [vmem:[%s24251_s11 + $0x658] sm:$0xff]  ;;  %v10736_v41 = vld [vmem:[%s24254_s14 + $0x1e8] sm:$0xff] }
 0xefa   : > { %13974 = vmatpush1.bf16.msra.mxu1 %v15846_v26 }
 0xefc   : > { %10364 = vmatpush1.bf16.msra.mxu0 %v15772_v40  ;;  %v15590_v40 = vcombine.low %v8591_v15, %v8595_v20  ;;  %v8695_v20 = vld [vmem:[%s24251_s11 + $0x4d8] sm:$0xff] }
 0xefd   : > { %10365 = vmatprep.subr.bf16.mxu0 %v15781_v46  ;;  %v15599_v46 = vcombine.high %v8599_v19, %v8603_v23 }
 0xf00   : > { %10366 = vmatpush1.bf16.msra.mxu0 %v15780_v57  ;;  %v15598_v57 = vcombine.low %v8599_v19, %v8603_v23 }
 0xf01   : > { %10367 = vmatprep.subr.bf16.mxu0 %v15789_v31  ;;  %v8619_v31 = vld [vmem:[%s24251_s11 + $0x278] sm:$0xff] }
 0xf02   : > { %v15615_v11 = vcombine.high %v8615_v14, %v8619_v31 }
 0xf04   : > { %10368 = vmatpush1.bf16.msra.mxu0 %v15788_v27  ;;  %v15614_v27 = vcombine.low %v8615_v14, %v8619_v31  ;;  %v8813_v14 = vrot.slane %v22250_v21, %v21664_v25  ;;  %v8817_v31 = vrot.slane %v22250_v21, %v21667_v36 }
 0xf05   : > { %10380 = vmatprep.subr.bf16.mxu0 %v15543_v56  ;;  %v15623_v56 = vcombine.high %v8623_v37, %v8627_v29 }
 0xf07   : > { %10370 = vmatmul.mubr.bf16.vlgmr.msra.gmra.mrb[168].mxu0 %v21909_v59 }
 0xf08   : > { %10381 = vmatpush1.bf16.msra.mxu0 %v15542_v47  ;;  %10412 = vmatprep.mubr.bf16.mxu0 %v21803_v30  ;;  %v8579_v30 = vld [vmem:[%s24251_s11 + $0x138] sm:$0xff]  ;;  %v15622_v47 = vcombine.low %v8623_v37, %v8627_v29 }
 0xf09   : > { %10382 = vmatprep.subr.bf16.mxu0 %v15551_v18  ;;  %v15575_v43 = vcombine.high %v8575_v48, %v8579_v30  ;;  %v15574_v6 = vcombine.low %v8575_v48, %v8579_v30  ;;  %v15631_v18 = vcombine.high %v8631_v52, %v8635_v54  ;;  %v8655_v48 = vld [vmem:[%s24251_s11 + $0x398] sm:$0xff] }
 0xf0a   : > { %v8659_v30 = vld [vmem:[%s24251_s11 + $0x3b8] sm:$0xff] }
 0xf0b   : > { %v15655_v0 = vcombine.high %v8655_v48, %v8659_v30  ;;  %v8727_v29 = vld [vmem:[%s24251_s11 + $0x5d8] sm:$0xff] }
 0xf0c   : > { %10383 = vmatpush1.bf16.msra.mxu0 %v15550_v61  ;;  %v15630_v61 = vcombine.low %v8631_v52, %v8635_v54 }
 0xf0d   : > { %10384 = vmatprep.subr.bf16.mxu0 %v15559_v55  ;;  %v15639_v55 = vcombine.high %v8639_v42, %v8643_v22 }
 0xf10   : > { %10385 = vmatpush1.bf16.msra.mxu0 %v15558_v5  ;;  %v15638_v5 = vcombine.low %v8639_v42, %v8643_v22 }
 0xf11   : > { %10386 = vmatprep.subr.bf16.mxu0 %v15567_v62  ;;  %v15647_v62 = vcombine.high %v8647_v50, %v8651_v4 }
 0xf14   : > { %10387 = vmatpush1.bf16.msra.mxu0 %v15566_v60  ;;  %v15646_v60 = vcombine.low %v8647_v50, %v8651_v4 }
 0xf15   : > { %10388 = vmatprep.subr.bf16.mxu0 %v15575_v43  ;;  %v15654_v43 = vcombine.low %v8655_v48, %v8659_v30 }
 0xf18   : > { %10389 = vmatpush1.bf16.msra.mxu0 %v15574_v6  ;;  %v15679_v6 = vcombine.high %v8679_v49, %v8683_v12 }
 0xf19   : > { %10390 = vmatprep.subr.bf16.mxu0 %v15583_v63  ;;  %v8691_v63 = vld [vmem:[%s24251_s11 + $0x4b8] sm:$0xff] }
 0xf1a   : > { %v15687_v15 = vcombine.high %v8687_v45, %v8691_v63  ;;  %v15686_v26 = vcombine.low %v8687_v45, %v8691_v63  ;;  %v10748_v45 = vld [vmem:[%s24254_s14 + $0x248] sm:$0xff]  ;;  %v8751_v63 = vld [vmem:[%s24251_s11 + $0x698] sm:$0xff] }
 0xf1c   : > { %10391 = vmatpush1.bf16.msra.mxu0 %v15582_v32  ;;  %v8699_v32 = vld [vmem:[%s24251_s11 + $0x4f8] sm:$0xff] }
 0xf1d   : > { %10392 = vmatprep.subr.bf16.mxu0 %v15591_v53  ;;  %v15695_v53 = vcombine.high %v8695_v20, %v8699_v32  ;;  %v15694_v19 = vcombine.low %v8695_v20, %v8699_v32  ;;  %v10752_v32 = vld [vmem:[%s24254_s14 + $0x268] sm:$0xff] }
 0xf20   : > { %10393 = vmatpush1.bf16.msra.mxu0 %v15590_v40  ;;  %v8711_v40 = vld [vmem:[%s24251_s11 + $0x558] sm:$0xff] }
 0xf21   : > { %10394 = vmatprep.subr.bf16.mxu0 %v15599_v46  ;;  %v8715_v46 = vld [vmem:[%s24251_s11 + $0x578] sm:$0xff] }
 0xf22   : > { %v15711_v8 = vcombine.high %v8711_v40, %v8715_v46 }
 0xf24   : > { %10395 = vmatpush1.bf16.msra.mxu0 %v15598_v57  ;;  %v8719_v57 = vld [vmem:[%s24251_s11 + $0x598] sm:$0xff] }
 0xf25   : > { %10396 = vmatprep.subr.bf16.mxu0 %v15607_v16  ;;  %v8723_v16 = vld [vmem:[%s24251_s11 + $0x5b8] sm:$0xff] }
 0xf28   : > { %10397 = vmatpush1.bf16.msra.mxu0 %v15606_v39  ;;  %v15710_v39 = vcombine.low %v8711_v40, %v8715_v46  ;;  %v8763_v40 = vld [vmem:[%s24251_s11 + $0x6f8] sm:$0xff]  ;;  %v15870_v46 = vcombine.low %v10748_v45, %v10752_v32 }
 0xf29   : > { %10398 = vmatprep.subr.bf16.mxu0 %v15615_v11  ;;  %v15719_v11 = vcombine.high %v8719_v57, %v8723_v16 }
 0xf2c   : > { %10399 = vmatpush1.bf16.msra.mxu0 %v15614_v27  ;;  %v8731_v27 = vld [vmem:[%s24251_s11 + $0x5f8] sm:$0xff] }
 0xf2d   : > { %10400 = vmatprep.subr.bf16.mxu0 %v15623_v56 }
 0xf30   : > { %10401 = vmatpush1.bf16.msra.mxu0 %v15622_v47 }
 0xf31   : > { %10402 = vmatprep.subr.bf16.mxu0 %v15631_v18  ;;  %v15718_v18 = vcombine.low %v8719_v57, %v8723_v16  ;;  %v10764_v57 = vld [vmem:[%s24254_s14 + $0x2c8] sm:$0xff] }
 0xf32   : > { %v10768_v16 = vld [vmem:[%s24254_s14 + $0x2e8] sm:$0xff] }
 0xf34   : > { %10403 = vmatpush1.bf16.msra.mxu0 %v15630_v61 }
 0xf35   : > { %10404 = vmatprep.subr.bf16.mxu0 %v15639_v55  ;;  %v15727_v55 = vcombine.high %v8727_v29, %v8731_v27 }
 0xf38   : > { %10405 = vmatpush1.bf16.msra.mxu0 %v15638_v5  ;;  %v8735_v5 = vld [vmem:[%s24251_s11 + $0x618] sm:$0xff] }
 0xf39   : > { %10406 = vmatprep.subr.bf16.mxu0 %v15647_v62  ;;  %v8739_v62 = vld [vmem:[%s24251_s11 + $0x638] sm:$0xff] }
 0xf3a   : > { %v15735_v58 = vcombine.high %v8735_v5, %v8739_v62  ;;  %v15734_v49 = vcombine.low %v8735_v5, %v8739_v62 }
 0xf3c   : > { %10407 = vmatpush1.bf16.msra.mxu0 %v15646_v60  ;;  %v15726_v60 = vcombine.low %v8727_v29, %v8731_v27  ;;  %v10772_v27 = vld [vmem:[%s24254_s14 + $0x308] sm:$0xff] }
 0xf3d   : > { %10408 = vmatprep.subr.bf16.mxu0 %v15655_v0 }
 0xf40   : > { %10409 = vmatpush1.bf16.msra.mxu0 %v15654_v43 }
 0xf41   : > { %10410 = vmatprep.subr.bf16.mxu0 %v15663_v9  ;;  %v8747_v9 = vld [vmem:[%s24251_s11 + $0x678] sm:$0xff] }
 0xf42   : > { %v15743_v12 = vcombine.high %v8743_v24, %v8747_v9 }
 0xf44   : > { %10411 = vmatpush1.bf16.msra.mxu0 %v15662_v28  ;;  %v15854_v28 = vcombine.low %v10732_v38, %v10736_v41 }
 0xf45   : > { %10423 = vmatprep.subr.bf16.mxu0 %v15671_v51  ;;  %v15855_v51 = vcombine.high %v10732_v38, %v10736_v41 }
 0xf47   : > { %10413 = vmatmul.mubr.bf16.vlgmr.msra.gmra.mrb[172].mxu0 %v21800_v44  ;;  %v8703_v44 = vld [vmem:[%s24251_s11 + $0x518] sm:$0xff]  ;;  %13975 = vmatprep.subr.bf16.mxu1 %v15855_v51 }
 0xf48   : > { %10424 = vmatpush1.bf16.msra.mxu0 %v15670_v1  ;;  %10455 = vmatprep.mubr.bf16.mxu0 %v21912_v10  ;;  %v8707_v10 = vld [vmem:[%s24251_s11 + $0x538] sm:$0xff]  ;;  %v10740_v1 = vld [vmem:[%s24254_s14 + $0x208] sm:$0xff] }
 0xf49   : > { %10425 = vmatprep.subr.bf16.mxu0 %v15679_v6  ;;  %v15703_v23 = vcombine.high %v8703_v44, %v8707_v10  ;;  %v15702_v33 = vcombine.low %v8703_v44, %v8707_v10  ;;  %v10744_v6 = vld [vmem:[%s24254_s14 + $0x228] sm:$0xff]  ;;  %13976 = vmatpush1.bf16.msra.mxu1 %v15854_v28 }
 0xf4a   : > { %v15863_v20 = vcombine.high %v10740_v1, %v10744_v6  ;;  %v10756_v44 = vld [vmem:[%s24254_s14 + $0x288] sm:$0xff] }
 0xf4b   : > { %v10760_v10 = vld [vmem:[%s24254_s14 + $0x2a8] sm:$0xff] }
 0xf4c   : > { %10426 = vmatpush1.bf16.msra.mxu0 %v15678_v2  ;;  %v8755_v2 = vld [vmem:[%s24251_s11 + $0x6b8] sm:$0xff]  ;;  %13977 = vmatprep.subr.bf16.mxu1 %v15863_v20 }
 0xf4d   : > { %10427 = vmatprep.subr.bf16.mxu0 %v15687_v15  ;;  %v15862_v15 = vcombine.low %v10740_v1, %v10744_v6 }
 0xf4f   : > { %13978 = vmatpush1.bf16.msra.mxu1 %v15862_v15 }
 0xf50   : > { %10428 = vmatpush1.bf16.msra.mxu0 %v15686_v26  ;;  %v15871_v26 = vcombine.high %v10748_v45, %v10752_v32  ;;  %v10780_v32 = vld [vmem:[%s24254_s14 + $0x348] sm:$0xff] }
 0xf51   : > { %10429 = vmatprep.subr.bf16.mxu0 %v15695_v53  ;;  %v15742_v53 = vcombine.low %v8743_v24, %v8747_v9  ;;  %v22614_v9 = vld [vmem:[%s24253_s13] sm:$0x3] }
 0xf52   : > { %13979 = vmatprep.subr.bf16.mxu1 %v15871_v26  ;;  %v10784_v26 = vld [vmem:[%s24254_s14 + $0x368] sm:$0xff] }
 0xf53   : > { %13980 = vmatpush1.bf16.msra.mxu1 %v15870_v46  ;;  %v10796_v46 = vld [vmem:[%s24254_s14 + $0x3c8] sm:$0xff] }
 0xf54   : > { %10430 = vmatpush1.bf16.msra.mxu0 %v15694_v19  ;;  %v15751_v19 = vcombine.high %v8751_v63, %v8755_v2 }
 0xf55   : > { %10431 = vmatprep.subr.bf16.mxu0 %v15703_v23  ;;  %v8759_v23 = vld [vmem:[%s24251_s11 + $0x6d8] sm:$0xff] }
 0xf56   : > { %v15758_v29 = vcombine.low %v8759_v23, %v8763_v40 }
 0xf58   : > { %10432 = vmatpush1.bf16.msra.mxu0 %v15702_v33  ;;  %v15879_v33 = vcombine.high %v10756_v44, %v10760_v10 }
 0xf59   : > { %10433 = vmatprep.subr.bf16.mxu0 %v15711_v8  ;;  %v15750_v8 = vcombine.low %v8751_v63, %v8755_v2 }
 0xf5a   : > { %v10285_v37 = vpop.f32.mrb[164].mxu0  ;;  %13981 = vmatprep.subr.bf16.mxu1 %v15879_v33  ;;  %v10800_v33 = vld [vmem:[%s24254_s14 + $0x3e8] sm:$0xff] }
 0xf5b   : > { %v16467_v56 = vadd.f32 %v10285_v37, %v8813_v14  ;;  %v10287_v52 = vpop.f32.mrb[165].mxu0  ;;  %v15887_v37 = vcombine.high %v10764_v57, %v10768_v16 }
 0xf5c   : > { %v16468_v54 = vadd.f32 %v10287_v52, %v8817_v31  ;;  %v10289_v47 = vpop.f32.mrb[166].mxu0  ;;  %10434 = vmatpush1.bf16.msra.mxu0 %v15710_v39  ;;  %v8771_v39 = vld [vmem:[%s24251_s11 + $0x738] sm:$0xff] }
 0xf5d   : > { %v10468_v42 = vmax.f32 %v16467_v56, 0.0  ;;  %v16469_v22 = vadd.f32 %v10289_v47, %v8813_v14  ;;  %v10291_v61 = vpop.f32.mrb[167].mxu0  ;;  %10435 = vmatprep.subr.bf16.mxu0 %v15719_v11  ;;  %v15759_v14 = vcombine.high %v8759_v23, %v8763_v40  ;;  %v15878_v11 = vcombine.low %v10756_v44, %v10760_v10  ;;  %v10776_v56 = vld [vmem:[%s24254_s14 + $0x328] sm:$0xff]  ;;  %v8779_v47 = vld [vmem:[%s24251_s11 + $0x778] sm:$0xff] }
 0xf5e   : > { %v10469_v50 = vmax.f32 %v16468_v54, 0.0  ;;  %v16470_v4 = vadd.f32 %v10291_v61, %v8817_v31  ;;  %v8767_v31 = vld [vmem:[%s24251_s11 + $0x718] sm:$0xff]  ;;  %v15903_v44 = vcombine.high %v10780_v32, %v10784_v26  ;;  %v10788_v10 = vld [vmem:[%s24254_s14 + $0x388] sm:$0xff] }
 0xf5f   : > { %10484 = vst [vmem:[%s22274_s1 + $0x10] sm:$0xff] %v10468_v42  ;;  %v10476_v48 = vmax.f32 %v16469_v22, 0.0  ;;  %v15767_v52 = vcombine.high %v8767_v31, %v8771_v39  ;;  %v8775_v54 = vld [vmem:[%s24251_s11 + $0x758] sm:$0xff]  ;;  %13982 = vmatpush1.bf16.msra.mxu1 %v15878_v11  ;;  %v15766_v22 = vcombine.low %v8767_v31, %v8771_v39  ;;  %v8828_v11 = vsub.s32 6, %v21210_v13 }
 0xf60   : > { %10485 = vst [vmem:[%s22274_s1 + $0x18] sm:$0xff] %v10469_v50  ;;  %v10477_v30 = vmax.f32 %v16470_v4, 0.0  ;;  %10436 = vmatpush1.bf16.msra.mxu0 %v15718_v18  ;;  %v15886_v18 = vcombine.low %v10764_v57, %v10768_v16  ;;  %13983 = vmatprep.subr.bf16.mxu1 %v15887_v37  ;;  %v15775_v61 = vcombine.high %v8775_v54, %v8779_v47  ;;  %v10804_v16 = vld [vmem:[%s24254_s14 + $0x408] sm:$0xff]  ;;  %v8832_v37 = vsub.s32 7, %v21210_v13 }
 0xf61   : > { %10492 = vst [vmem:[%s22274_s1 + $0x50] sm:$0xff] %v10476_v48  ;;  %v22523_v0 = vpack.c.bf16 %v10476_v48, %v10468_v42  ;;  %10437 = vmatprep.subr.bf16.mxu0 %v15727_v55  ;;  %v15895_v42 = vcombine.high %v10772_v27, %v10776_v56  ;;  %v8783_v55 = vld [vmem:[%s24251_s11 + $0x798] sm:$0xff]  ;;  %v15894_v4 = vcombine.low %v10772_v27, %v10776_v56 }
 0xf62   : > { %10493 = vst [vmem:[%s22274_s1 + $0x58] sm:$0xff] %v10477_v30  ;;  %v22529_v43 = vpack.c.bf16 %v10477_v30, %v10469_v50  ;;  %v8787_v50 = vld [vmem:[%s24251_s11 + $0x7b8] sm:$0xff]  ;;  %v15774_v5 = vcombine.low %v8775_v54, %v8779_v47  ;;  %v15919_v57 = vcombine.high %v10796_v46, %v10800_v33  ;;  %v8833_v27 = vrot.slane %v22250_v21, %v8832_v37 }
 0xf63   : > { %13984 = vmatpush1.bf16.msra.mxu1 %v15886_v18  ;;  %v15783_v62 = vcombine.high %v8783_v55, %v8787_v50  ;;  %v8791_v48 = vld [vmem:[%s24251_s11 + $0x7d8] sm:$0xff] }
 0xf64   : > { %10438 = vmatpush1.bf16.msra.mxu0 %v15726_v60  ;;  %13985 = vmatprep.subr.bf16.mxu1 %v15895_v42  ;;  %v8795_v30 = vld [vmem:[%s24251_s11 + $0x7f8] sm:$0xff]  ;;  %v15782_v60 = vcombine.low %v8783_v55, %v8787_v50 }
 0xf65   : > { %10439 = vmatprep.subr.bf16.mxu0 %v15735_v58  ;;  %v15791_v58 = vcombine.high %v8791_v48, %v8795_v30  ;;  %v15790_v24 = vcombine.low %v8791_v48, %v8795_v30 }
 0xf67   : > { %13986 = vmatpush1.bf16.msra.mxu1 %v15894_v4 }
 0xf68   : > { %10440 = vmatpush1.bf16.msra.mxu0 %v15734_v49  ;;  %13987 = vmatprep.subr.bf16.mxu1 %v15903_v44  ;;  %v10828_v44 = vld [vmem:[%s24254_s14 + $0x4c8] sm:$0xff] }
 0xf69   : > { %10441 = vmatprep.subr.bf16.mxu0 %v15743_v12 }
 0xf6c   : > { %10442 = vmatpush1.bf16.msra.mxu0 %v15742_v53  ;;  %v15902_v53 = vcombine.low %v10780_v32, %v10784_v26 }
 0xf6d   : > { %10443 = vmatprep.subr.bf16.mxu0 %v15751_v19  ;;  %v10792_v19 = vld [vmem:[%s24254_s14 + $0x3a8] sm:$0xff] }
 0xf6e   : > { %13988 = vmatpush1.bf16.msra.mxu1 %v15902_v53  ;;  %v15910_v23 = vcombine.low %v10788_v10, %v10792_v19  ;;  %v15911_v40 = vcombine.high %v10788_v10, %v10792_v19  ;;  %v10832_v10 = vld [vmem:[%s24254_s14 + $0x4e8] sm:$0xff] }
 0xf70   : > { %10444 = vmatpush1.bf16.msra.mxu0 %v15750_v8  ;;  %13989 = vmatprep.subr.bf16.mxu1 %v15911_v40  ;;  %v15918_v8 = vcombine.low %v10796_v46, %v10800_v33 }
 0xf71   : > { %10445 = vmatprep.subr.bf16.mxu0 %v15759_v14  ;;  %v10808_v14 = vld [vmem:[%s24254_s14 + $0x428] sm:$0xff] }
 0xf72   : > { %13990 = vmatpush1.bf16.msra.mxu1 %v15910_v23  ;;  %v15926_v31 = vcombine.low %v10804_v16, %v10808_v14  ;;  %v15927_v39 = vcombine.high %v10804_v16, %v10808_v14  ;;  %v10703_v23 = vld [vmem:[%s24254_s14 + $0xe0] sm:$0xff]  ;;  %v15951_v16 = vcombine.high %v10828_v44, %v10832_v10 }
 0xf73   : > { %13991 = vmatprep.subr.bf16.mxu1 %v15919_v57 }
 0xf74   : > { %10446 = vmatpush1.bf16.msra.mxu0 %v15758_v29  ;;  %v8829_v29 = vrot.slane %v22250_v21, %v8828_v11 }
 0xf75   : > { %10447 = vmatprep.subr.bf16.mxu0 %v15767_v52 }
 0xf76   : > { %13992 = vmatpush1.bf16.msra.mxu1 %v15918_v8 }
 0xf77   : > { %14002 = vmatprep.subr.bf16.mxu1 %v15927_v39  ;;  %v10836_v39 = vld [vmem:[%s24254_s14 + $0x508] sm:$0xff] }
 0xf78   : > { %10448 = vmatpush1.bf16.msra.mxu0 %v15766_v22 }
 0xf79   : > { %10449 = vmatprep.subr.bf16.mxu0 %v15775_v61 }
 0xf7c   : > { %10450 = vmatpush1.bf16.msra.mxu0 %v15774_v5  ;;  %v10675_v5 = vld [vmem:[%s24254_s14] sm:$0xff] }
 0xf7d   : > { %10451 = vmatprep.subr.bf16.mxu0 %v15783_v62 }
 0xf80   : > { %10452 = vmatpush1.bf16.msra.mxu0 %v15782_v60 }
 0xf81   : > { %10453 = vmatprep.subr.bf16.mxu0 %v15791_v58 }
 0xf84   : > { %10454 = vmatpush1.bf16.msra.mxu0 %v15790_v24  ;;  %v10812_v24 = vld [vmem:[%s24254_s14 + $0x448] sm:$0xff] }
 0xf85   : > { %10511 = vmatprep.subr.bf16.mxu0 %v22288_v35 }
 0xf87   : > { %10456 = vmatmul.mubr.bf16.vlgmr.msra.gmra.mrb[172].mxu0 %v21909_v59  ;;  %v8820_v59 = vsub.s32 4, %v21210_v13 }
 0xf88   : > { %10512 = vmatpush1.bf16.msra.mxu0 %v22285_v17  ;;  %10543 = vmatprep.mubr.bf16.mxu0 %v24483_v34  ;;  %v8824_v17 = vsub.s32 5, %v21210_v13 }
 0xf89   : > { %10552 = vmatprep.subr.bf16.mxu0 %v22529_v43  ;;  %v8821_v35 = vrot.slane %v22250_v21, %v8820_v59 }
 0xf8f   : > { %15792 = vmatmul.mubr.msk.bf16.vlgmr.msra.gmra.mrb[176].mxu0 %vm10507_vm1, %v22614_v9 }
 0xf90   : > { %10553 = vmatpush1.bf16.msra.mxu0 %v22523_v0  ;;  %10584 = vmatprep.mubr.bf16.mxu0 %v24483_v34  ;;  %v8825_v0 = vrot.slane %v22250_v21, %v8824_v17  ;;  %v10679_v21 = vld [vmem:[%s24254_s14 + $0x20] sm:$0xff] }
 0xf91   : > { %v15797_v60 = vcombine.high %v10675_v5, %v10679_v21 }
 0xf97   : > { %15793 = vmatmul.mubr.msk.bf16.vlgmr.msra.gmra.mrb[180].mxu0 %vm10507_vm1, %v22614_v9 }
 0xf98   : > { %10625 = vmatprep.mubr.bf16.mxu0 %v24483_v34 }
 0xfda   : > { %v10371_v43 = vpop.f32.mrb[168].mxu0 }
 0xfdb   : > { %v16471_v38 = vadd.f32 %v10371_v43, %v8821_v35  ;;  %v10373_v41 = vpop.f32.mrb[169].mxu0  ;;  %v10687_v43 = vld [vmem:[%s24254_s14 + $0x60] sm:$0xff] }
 0xfdc   : > { %v16472_v28 = vadd.f32 %v10373_v41, %v8825_v0  ;;  %v10375_v51 = vpop.f32.mrb[170].mxu0 }
 0xfdd   : > { %v10470_v49 = vmax.f32 %v16471_v38, 0.0  ;;  %v16473_v12 = vadd.f32 %v10375_v51, %v8821_v35  ;;  %v10377_v1 = vpop.f32.mrb[171].mxu0  ;;  %v10816_v35 = vld [vmem:[%s24254_s14 + $0x468] sm:$0xff] }
 0xfde   : > { %v10471_v6 = vmax.f32 %v16472_v28, 0.0  ;;  %v16474_v45 = vadd.f32 %v10377_v1, %v8825_v0  ;;  %v10683_v0 = vld [vmem:[%s24254_s14 + $0x40] sm:$0xff] }
 0xfdf   : > { %10486 = vst [vmem:[%s22274_s1 + $0x20] sm:$0xff] %v10470_v49  ;;  %v10478_v63 = vmax.f32 %v16473_v12, 0.0  ;;  %v15935_v12 = vcombine.high %v10812_v24, %v10816_v35  ;;  %v15804_v32 = vcombine.low %v10683_v0, %v10687_v43 }
 0xfe0   : > { %10487 = vst [vmem:[%s22274_s1 + $0x28] sm:$0xff] %v10471_v6  ;;  %v10479_v2 = vmax.f32 %v16474_v45, 0.0  ;;  %v10820_v45 = vld [vmem:[%s24254_s14 + $0x488] sm:$0xff] }
 0xfe1   : > { %10494 = vst [vmem:[%s22274_s1 + $0x60] sm:$0xff] %v10478_v63  ;;  %v10503_v15 = vpack.c.bf16 %v10478_v63, %v10470_v49  ;;  %v15796_v49 = vcombine.low %v10675_v5, %v10679_v21  ;;  %v10824_v63 = vld [vmem:[%s24254_s14 + $0x4a8] sm:$0xff] }
 0xfe2   : > { %10495 = vst [vmem:[%s22274_s1 + $0x68] sm:$0xff] %v10479_v2  ;;  %v10504_v20 = vpack.c.bf16 %v10479_v2, %v10471_v6  ;;  %v15805_v6 = vcombine.high %v10683_v0, %v10687_v43  ;;  %v10691_v2 = vld [vmem:[%s24254_s14 + $0x80] sm:$0xff]  ;;  %v15943_v26 = vcombine.high %v10820_v45, %v10824_v63  ;;  %v15942_v46 = vcombine.low %v10820_v45, %v10824_v63  ;;  %v10860_v43 = vld [vmem:[%s24254_s14 + $0x5c8] sm:$0xff] }
 0xfe3   : > { %v10868_v63 = vld [vmem:[%s24254_s14 + $0x608] sm:$0xff] }
 0xfe4   : > { %10593 = vmatprep.subr.bf16.mxu0 %v10504_v20  ;;  %v15934_v20 = vcombine.low %v10812_v24, %v10816_v35 }
 0xfe5   : > { %10594 = vmatpush1.bf16.msra.mxu0 %v10503_v15  ;;  %v10695_v15 = vld [vmem:[%s24254_s14 + $0xa0] sm:$0xff] }
 0xfe6   : > { %v15813_v53 = vcombine.high %v10691_v2, %v10695_v15  ;;  %v15812_v57 = vcombine.low %v10691_v2, %v10695_v15  ;;  %v10872_v2 = vld [vmem:[%s24254_s14 + $0x628] sm:$0xff]  ;;  %v10739_v15 = vld [vmem:[%s24254_s14 + $0x200] sm:$0xff] }
 0xfe8   : > { %15794 = vmatmul.mubr.msk.bf16.vlgmr.msra.gmra.mrb[184].mxu0 %vm10507_vm1, %v22614_v9 }
 0xfe9   : > { %10666 = vmatprep.mubr.bf16.mxu0 %v24483_v34 }
0x105a   : > { %v10457_v56 = vpop.f32.mrb[172].mxu0 }
0x105b   : > { %v16475_v52 = vadd.f32 %v10457_v56, %v8829_v29  ;;  %v10459_v54 = vpop.f32.mrb[173].mxu0  ;;  %v10711_v56 = vld [vmem:[%s24254_s14 + $0x120] sm:$0xff] }
0x105c   : > { %v16476_v47 = vadd.f32 %v10459_v54, %v8833_v27  ;;  %v10461_v18 = vpop.f32.mrb[174].mxu0 }
0x105d   : > { %v10472_v42 = vmax.f32 %v16475_v52, 0.0  ;;  %v16477_v22 = vadd.f32 %v10461_v18, %v8829_v29  ;;  %v10463_v61 = vpop.f32.mrb[175].mxu0  ;;  %v10840_v29 = vld [vmem:[%s24254_s14 + $0x528] sm:$0xff]  ;;  %v15950_v52 = vcombine.low %v10828_v44, %v10832_v10 }
0x105e   : > { %v10473_v55 = vmax.f32 %v16476_v47, 0.0  ;;  %v16478_v50 = vadd.f32 %v10463_v61, %v8833_v27  ;;  %v10707_v27 = vld [vmem:[%s24254_s14 + $0x100] sm:$0xff]  ;;  %v15959_v47 = vcombine.high %v10836_v39, %v10840_v29  ;;  %v10876_v10 = vld [vmem:[%s24254_s14 + $0x648] sm:$0xff] }
0x105f   : > { %10488 = vst [vmem:[%s22274_s1 + $0x30] sm:$0xff] %v10472_v42  ;;  %v10480_v4 = vmax.f32 %v16477_v22, 0.0  ;;  %v15829_v18 = vcombine.high %v10707_v27, %v10711_v56  ;;  %v10848_v22 = vld [vmem:[%s24254_s14 + $0x568] sm:$0xff]  ;;  %v10715_v61 = vld [vmem:[%s24254_s14 + $0x140] sm:$0xff] }
0x1060   : > { %10489 = vst [vmem:[%s22274_s1 + $0x38] sm:$0xff] %v10473_v55  ;;  %v10481_v62 = vmax.f32 %v16478_v50, 0.0  ;;  %v15958_v50 = vcombine.low %v10836_v39, %v10840_v29  ;;  %v10755_v39 = vld [vmem:[%s24254_s14 + $0x280] sm:$0xff] }
0x1061   : > { %10496 = vst [vmem:[%s22274_s1 + $0x70] sm:$0xff] %v10480_v4  ;;  %v10505_v48 = vpack.c.bf16 %v10480_v4, %v10472_v42  ;;  %v10844_v42 = vld [vmem:[%s24254_s14 + $0x548] sm:$0xff]  ;;  %v15828_v4 = vcombine.low %v10707_v27, %v10711_v56  ;;  %v10759_v29 = vld [vmem:[%s24254_s14 + $0x2a0] sm:$0xff] }
0x1062   : > { %10497 = vst [vmem:[%s22274_s1 + $0x78] sm:$0xff] %v10481_v62  ;;  %v10506_v30 = vpack.c.bf16 %v10481_v62, %v10473_v55  ;;  %v10545_v58 = vpop.f32.mrb[176].mxu0  ;;  %v10719_v55 = vld [vmem:[%s24254_s14 + $0x160] sm:$0xff]  ;;  %v15967_v5 = vcombine.high %v10844_v42, %v10848_v22  ;;  %v10852_v62 = vld [vmem:[%s24254_s14 + $0x588] sm:$0xff] }
0x1063   : > { %v22692_v38 = vpack.c.bf16 %v10545_v58, %v10545_v58  ;;  %v10547_v41 = vpop.f32.mrb[177].mxu0  ;;  %v15837_v21 = vcombine.high %v10715_v61, %v10719_v55  ;;  %v15966_v58 = vcombine.low %v10844_v42, %v10848_v22  ;;  %v15836_v24 = vcombine.low %v10715_v61, %v10719_v55  ;;  %v10763_v42 = vld [vmem:[%s24254_s14 + $0x2c0] sm:$0xff] }
0x1064   : > { %10634 = vmatprep.subr.bf16.mxu0 %v10506_v30  ;;  %v22694_v28 = vpack.c.bf16 %v10547_v41, %v10547_v41  ;;  %v10549_v51 = vpop.f32.mrb[178].mxu0  ;;  %v10723_v30 = vld [vmem:[%s24254_s14 + $0x180] sm:$0xff]  ;;  %v10864_v41 = vld [vmem:[%s24254_s14 + $0x5e8] sm:$0xff]  ;;  %v15876_v55 = vcombine.low %v10755_v39, %v10759_v29 }
0x1065   : > { %10635 = vmatpush1.bf16.msra.mxu0 %v10505_v48  ;;  %v10550_v1 = vpop.f32.mrb[179].mxu0  ;;  %v10856_v48 = vld [vmem:[%s24254_s14 + $0x5a8] sm:$0xff]  ;;  %v10731_v51 = vld [vmem:[%s24254_s14 + $0x1c0] sm:$0xff] }
0x1066   : > { %13797 = vmatprep.subr.bf16.mxu0 %v15797_v60  ;;  %13993 = vmatprep.mubr.bf16.mxu1 %v22694_v28  ;;  %v10727_v60 = vld [vmem:[%s24254_s14 + $0x1a0] sm:$0xff]  ;;  %v15975_v35 = vcombine.high %v10852_v62, %v10856_v48 }
0x1067   : > { %13994 = vmatmul.mubr.bf16.vlgmr.msra.gmra.mrb[208].mxu1 %v22692_v38  ;;  %v15845_v0 = vcombine.high %v10723_v30, %v10727_v60  ;;  %v15844_v1 = vcombine.low %v10723_v30, %v10727_v60  ;;  %v10767_v22 = vld [vmem:[%s24254_s14 + $0x2e0] sm:$0xff] }
0x1068   : > { %15795 = vmatmul.mubr.msk.bf16.vlgmr.msra.gmra.mrb[188].mxu0 %vm10507_vm1, %v22614_v9  ;;  %14003 = vmatpush1.bf16.msra.mxu1 %v15926_v31  ;;  %v10699_v9 = vld [vmem:[%s24254_s14 + $0xc0] sm:$0xff]  ;;  %v15884_v60 = vcombine.low %v10763_v42, %v10767_v22 }
0x1069   : > { %13798 = vmatpush1.bf16.msra.mxu0 %v15796_v49  ;;  %14004 = vmatprep.subr.bf16.mxu1 %v15935_v12  ;;  %v15821_v31 = vcombine.high %v10699_v9, %v10703_v23  ;;  %v15820_v54 = vcombine.low %v10699_v9, %v10703_v23  ;;  %v10735_v49 = vld [vmem:[%s24254_s14 + $0x1e0] sm:$0xff]  ;;  %v15974_v12 = vcombine.low %v10852_v62, %v10856_v48  ;;  %v10880_v9 = vld [vmem:[%s24254_s14 + $0x668] sm:$0xff] }
0x106a   : > { %13799 = vmatprep.subr.bf16.mxu0 %v15805_v6  ;;  %13829 = vmatprep.mubr.bf16.mxu0 %v22694_v28  ;;  %v22719_v19 = vpop.f32.mrb[180].mxu0  ;;  %v15983_v6 = vcombine.high %v10860_v43, %v10864_v41  ;;  %v15853_v45 = vcombine.high %v10731_v51, %v10735_v49  ;;  %v10747_v23 = vld [vmem:[%s24254_s14 + $0x240] sm:$0xff]  ;;  %v15998_v27 = vcombine.low %v10876_v10, %v10880_v9 }
0x106b   : > { %v10588_v40 = vpop.f32.mrb[181].mxu0  ;;  %v10771_v62 = vld [vmem:[%s24254_s14 + $0x300] sm:$0xff] }
0x106c   : > { %14005 = vmatpush1.bf16.msra.mxu1 %v15934_v20  ;;  %v22727_v33 = vpack.c.bf16 %v10588_v40, %v10588_v40  ;;  %v10590_v8 = vpop.f32.mrb[182].mxu0  ;;  %v10743_v20 = vld [vmem:[%s24254_s14 + $0x220] sm:$0xff] }
0x106d   : > { %13800 = vmatpush1.bf16.msra.mxu0 %v15804_v32  ;;  %14006 = vmatprep.subr.bf16.mxu1 %v15943_v26  ;;  %v10591_v14 = vpop.f32.mrb[183].mxu0  ;;  %v15982_v32 = vcombine.low %v10860_v43, %v10864_v41  ;;  %v15852_v26 = vcombine.low %v10731_v51, %v10735_v49  ;;  %v15861_v44 = vcombine.high %v10739_v15, %v10743_v20  ;;  %v10751_v40 = vld [vmem:[%s24254_s14 + $0x260] sm:$0xff] }
0x106e   : > { %13801 = vmatprep.subr.bf16.mxu0 %v15813_v53  ;;  %14034 = vmatprep.mubr.bf16.mxu1 %v22727_v33  ;;  %v15991_v53 = vcombine.high %v10868_v63, %v10872_v2  ;;  %v15860_v8 = vcombine.low %v10739_v15, %v10743_v20  ;;  %v10884_v14 = vld [vmem:[%s24254_s14 + $0x688] sm:$0xff]  ;;  %v15868_v56 = vcombine.low %v10747_v23, %v10751_v40  ;;  %v10775_v48 = vld [vmem:[%s24254_s14 + $0x320] sm:$0xff] }
0x106f   : > { %v10779_v43 = vld [vmem:[%s24254_s14 + $0x340] sm:$0xff]  ;;  %v15892_v49 = vcombine.low %v10771_v62, %v10775_v48 }
0x1070   : > { %14007 = vmatpush1.bf16.msra.mxu1 %v15942_v46  ;;  %v15990_v46 = vcombine.low %v10868_v63, %v10872_v2  ;;  %v10783_v41 = vld [vmem:[%s24254_s14 + $0x360] sm:$0xff] }
0x1071   : > { %13802 = vmatpush1.bf16.msra.mxu0 %v15812_v57  ;;  %14008 = vmatprep.subr.bf16.mxu1 %v15951_v16  ;;  %v15999_v57 = vcombine.high %v10876_v10, %v10880_v9  ;;  %v15869_v16 = vcombine.high %v10747_v23, %v10751_v40  ;;  %v10787_v63 = vld [vmem:[%s24254_s14 + $0x380] sm:$0xff]  ;;  %v15900_v20 = vcombine.low %v10779_v43, %v10783_v41 }
0x1072   : > { %13803 = vmatprep.subr.bf16.mxu0 %v15821_v31  ;;  %v10888_v31 = vld [vmem:[%s24254_s14 + $0x6a8] sm:$0xff]  ;;  %v10791_v2 = vld [vmem:[%s24254_s14 + $0x3a0] sm:$0xff] }
0x1073   : > { %v16006_v61 = vcombine.low %v10884_v14, %v10888_v31  ;;  %v10795_v10 = vld [vmem:[%s24254_s14 + $0x3c0] sm:$0xff]  ;;  %v15908_v40 = vcombine.low %v10787_v63, %v10791_v2 }
0x1074   : > { %14009 = vmatpush1.bf16.msra.mxu1 %v15950_v52  ;;  %v16007_v52 = vcombine.high %v10884_v14, %v10888_v31  ;;  %v10799_v9 = vld [vmem:[%s24254_s14 + $0x3e0] sm:$0xff] }
0x1075   : > { %13804 = vmatpush1.bf16.msra.mxu0 %v15820_v54  ;;  %14010 = vmatprep.subr.bf16.mxu1 %v15959_v47  ;;  %v15877_v54 = vcombine.high %v10755_v39, %v10759_v29  ;;  %v10892_v47 = vld [vmem:[%s24254_s14 + $0x6c8] sm:$0xff]  ;;  %v10803_v14 = vld [vmem:[%s24254_s14 + $0x400] sm:$0xff]  ;;  %v15916_v29 = vcombine.low %v10795_v10, %v10799_v9 }
0x1076   : > { %13805 = vmatprep.subr.bf16.mxu0 %v15829_v18  ;;  %v10896_v18 = vld [vmem:[%s24254_s14 + $0x6e8] sm:$0xff]  ;;  %v10807_v31 = vld [vmem:[%s24254_s14 + $0x420] sm:$0xff] }
0x1077   : > { %v16014_v30 = vcombine.low %v10892_v47, %v10896_v18 }
0x1078   : > { %14011 = vmatpush1.bf16.msra.mxu1 %v15958_v50  ;;  %v16015_v50 = vcombine.high %v10892_v47, %v10896_v18  ;;  %v10811_v47 = vld [vmem:[%s24254_s14 + $0x440] sm:$0xff] }
0x1079   : > { %13806 = vmatpush1.bf16.msra.mxu0 %v15828_v4  ;;  %14012 = vmatprep.subr.bf16.mxu1 %v15967_v5  ;;  %v15885_v4 = vcombine.high %v10763_v42, %v10767_v22  ;;  %v10900_v5 = vld [vmem:[%s24254_s14 + $0x708] sm:$0xff]  ;;  %v10815_v18 = vld [vmem:[%s24254_s14 + $0x460] sm:$0xff]  ;;  %v22900_v42 = vpack.c.bf16 %v22719_v19, %v22719_v19 }
0x107a   : > { %13807 = vmatprep.subr.bf16.mxu0 %v15837_v21  ;;  %v10904_v21 = vld [vmem:[%s24254_s14 + $0x728] sm:$0xff]  ;;  %v10819_v19 = vld [vmem:[%s24254_s14 + $0x480] sm:$0xff] }
0x107b   : > { %v16022_v51 = vcombine.low %v10900_v5, %v10904_v21 }
0x107c   : > { %14013 = vmatpush1.bf16.msra.mxu1 %v15966_v58  ;;  %v16023_v58 = vcombine.high %v10900_v5, %v10904_v21  ;;  %v10952_v5 = vld [vmem:[%s24254_s14 + $0x8a8] sm:$0xff]  ;;  %v10823_v21 = vld [vmem:[%s24254_s14 + $0x4a0] sm:$0xff] }
0x107d   : > { %13808 = vmatpush1.bf16.msra.mxu0 %v15836_v24  ;;  %14014 = vmatprep.subr.bf16.mxu1 %v15975_v35  ;;  %v15893_v24 = vcombine.high %v10771_v62, %v10775_v48  ;;  %v10908_v35 = vld [vmem:[%s24254_s14 + $0x748] sm:$0xff]  ;;  %v15932_v48 = vcombine.low %v10811_v47, %v10815_v18 }
0x107e   : > { %13809 = vmatprep.subr.bf16.mxu0 %v15845_v0  ;;  %v10912_v0 = vld [vmem:[%s24254_s14 + $0x768] sm:$0xff] }
0x107f   : > { %v16030_v15 = vcombine.low %v10908_v35, %v10912_v0 }
0x1080   : > { %14015 = vmatpush1.bf16.msra.mxu1 %v15974_v12  ;;  %v16031_v12 = vcombine.high %v10908_v35, %v10912_v0  ;;  %v10827_v35 = vld [vmem:[%s24254_s14 + $0x4c0] sm:$0xff] }
0x1081   : > { %13810 = vmatpush1.bf16.msra.mxu0 %v15844_v1  ;;  %14016 = vmatprep.subr.bf16.mxu1 %v15983_v6  ;;  %v15901_v1 = vcombine.high %v10779_v43, %v10783_v41  ;;  %v10916_v6 = vld [vmem:[%s24254_s14 + $0x788] sm:$0xff]  ;;  %v10831_v0 = vld [vmem:[%s24254_s14 + $0x4e0] sm:$0xff]  ;;  %v15940_v41 = vcombine.low %v10819_v19, %v10823_v21 }
0x1082   : > { %13811 = vmatprep.subr.bf16.mxu0 %v15853_v45  ;;  %v10920_v45 = vld [vmem:[%s24254_s14 + $0x7a8] sm:$0xff] }
0x1083   : > { %v16038_v23 = vcombine.low %v10916_v6, %v10920_v45 }
0x1084   : > { %14017 = vmatpush1.bf16.msra.mxu1 %v15982_v32  ;;  %v16039_v32 = vcombine.high %v10916_v6, %v10920_v45  ;;  %v10835_v6 = vld [vmem:[%s24254_s14 + $0x500] sm:$0xff] }
0x1085   : > { %13812 = vmatpush1.bf16.msra.mxu0 %v15852_v26  ;;  %14018 = vmatprep.subr.bf16.mxu1 %v15991_v53  ;;  %v15909_v26 = vcombine.high %v10787_v63, %v10791_v2  ;;  %v10924_v53 = vld [vmem:[%s24254_s14 + $0x7c8] sm:$0xff]  ;;  %v10839_v45 = vld [vmem:[%s24254_s14 + $0x520] sm:$0xff]  ;;  %v15948_v2 = vcombine.low %v10827_v35, %v10831_v0 }
0x1086   : > { %13813 = vmatprep.subr.bf16.mxu0 %v15861_v44  ;;  %v10928_v44 = vld [vmem:[%s24254_s14 + $0x7e8] sm:$0xff] }
0x1087   : > { %v16046_v39 = vcombine.low %v10924_v53, %v10928_v44 }
0x1088   : > { %14019 = vmatpush1.bf16.msra.mxu1 %v15990_v46  ;;  %v16047_v46 = vcombine.high %v10924_v53, %v10928_v44  ;;  %v10843_v53 = vld [vmem:[%s24254_s14 + $0x540] sm:$0xff] }
0x1089   : > { %13814 = vmatpush1.bf16.msra.mxu0 %v15860_v8  ;;  %14020 = vmatprep.subr.bf16.mxu1 %v15999_v57  ;;  %v15917_v8 = vcombine.high %v10795_v10, %v10799_v9  ;;  %v10932_v57 = vld [vmem:[%s24254_s14 + $0x808] sm:$0xff]  ;;  %v10847_v44 = vld [vmem:[%s24254_s14 + $0x560] sm:$0xff]  ;;  %v15956_v9 = vcombine.low %v10835_v6, %v10839_v45 }
0x108a   : > { %13815 = vmatprep.subr.bf16.mxu0 %v15869_v16  ;;  %v10936_v16 = vld [vmem:[%s24254_s14 + $0x828] sm:$0xff] }
0x108b   : > { %v16054_v22 = vcombine.low %v10932_v57, %v10936_v16 }
0x108c   : > { %14021 = vmatpush1.bf16.msra.mxu1 %v15998_v27  ;;  %v16055_v27 = vcombine.high %v10932_v57, %v10936_v16  ;;  %v10851_v57 = vld [vmem:[%s24254_s14 + $0x580] sm:$0xff] }
0x108d   : > { %13816 = vmatpush1.bf16.msra.mxu0 %v15868_v56  ;;  %14022 = vmatprep.subr.bf16.mxu1 %v16007_v52  ;;  %v15925_v56 = vcombine.high %v10803_v14, %v10807_v31  ;;  %v10940_v52 = vld [vmem:[%s24254_s14 + $0x848] sm:$0xff]  ;;  %v10855_v16 = vld [vmem:[%s24254_s14 + $0x5a0] sm:$0xff] }
0x108e   : > { %13817 = vmatprep.subr.bf16.mxu0 %v15877_v54  ;;  %v10944_v54 = vld [vmem:[%s24254_s14 + $0x868] sm:$0xff] }
0x108f   : > { %v16062_v62 = vcombine.low %v10940_v52, %v10944_v54 }
0x1090   : > { %14023 = vmatpush1.bf16.msra.mxu1 %v16006_v61  ;;  %v15924_v61 = vcombine.low %v10803_v14, %v10807_v31  ;;  %v15964_v31 = vcombine.low %v10843_v53, %v10847_v44 }
0x1091   : > { %13818 = vmatpush1.bf16.msra.mxu0 %v15876_v55  ;;  %14024 = vmatprep.subr.bf16.mxu1 %v16015_v50  ;;  %v16063_v55 = vcombine.high %v10940_v52, %v10944_v54  ;;  %v15933_v50 = vcombine.high %v10811_v47, %v10815_v18  ;;  %v10859_v52 = vld [vmem:[%s24254_s14 + $0x5c0] sm:$0xff] }
0x1092   : > { %13819 = vmatprep.subr.bf16.mxu0 %v15885_v4  ;;  %v10948_v4 = vld [vmem:[%s24254_s14 + $0x888] sm:$0xff]  ;;  %v10863_v54 = vld [vmem:[%s24254_s14 + $0x5e0] sm:$0xff] }
0x1093   : > { %v16070_v43 = vcombine.low %v10948_v4, %v10952_v5 }
0x1094   : > { %14025 = vmatpush1.bf16.msra.mxu1 %v16014_v30  ;;  %v16071_v30 = vcombine.high %v10948_v4, %v10952_v5  ;;  %v15981_v5 = vcombine.high %v10859_v52, %v10863_v54 }
0x1095   : > { %13820 = vmatpush1.bf16.msra.mxu0 %v15884_v60  ;;  %14026 = vmatprep.subr.bf16.mxu1 %v16023_v58  ;;  %v15941_v60 = vcombine.high %v10819_v19, %v10823_v21  ;;  %v10956_v58 = vld [vmem:[%s24254_s14 + $0x8c8] sm:$0xff] }
0x1096   : > { %13821 = vmatprep.subr.bf16.mxu0 %v15893_v24  ;;  %v10960_v24 = vld [vmem:[%s24254_s14 + $0x8e8] sm:$0xff] }
0x1097   : > { %v16078_v63 = vcombine.low %v10956_v58, %v10960_v24  ;;  %v10996_v19 = vld [vmem:[%s24254_s14 + $0xa08] sm:$0xff] }
0x1098   : > { %14027 = vmatpush1.bf16.msra.mxu1 %v16022_v51  ;;  %v16079_v51 = vcombine.high %v10956_v58, %v10960_v24  ;;  %v11000_v21 = vld [vmem:[%s24254_s14 + $0xa28] sm:$0xff]  ;;  %v15980_v58 = vcombine.low %v10859_v52, %v10863_v54 }
0x1099   : > { %13822 = vmatpush1.bf16.msra.mxu0 %v15892_v49  ;;  %14028 = vmatprep.subr.bf16.mxu1 %v16031_v12  ;;  %v15949_v49 = vcombine.high %v10827_v35, %v10831_v0  ;;  %v10964_v12 = vld [vmem:[%s24254_s14 + $0x908] sm:$0xff]  ;;  %v16119_v24 = vcombine.high %v10996_v19, %v11000_v21 }
0x109a   : > { %13823 = vmatprep.subr.bf16.mxu0 %v15901_v1  ;;  %v10968_v1 = vld [vmem:[%s24254_s14 + $0x928] sm:$0xff] }
0x109b   : > { %v16086_v10 = vcombine.low %v10964_v12, %v10968_v1  ;;  %v11004_v0 = vld [vmem:[%s24254_s14 + $0xa48] sm:$0xff] }
0x109c   : > { %14029 = vmatpush1.bf16.msra.mxu1 %v16030_v15  ;;  %v16087_v15 = vcombine.high %v10964_v12, %v10968_v1  ;;  %v11036_v54 = vld [vmem:[%s24254_s14 + $0xb48] sm:$0xff] }
0x109d   : > { %13824 = vmatpush1.bf16.msra.mxu0 %v15900_v20  ;;  %14030 = vmatprep.subr.bf16.mxu1 %v16039_v32  ;;  %v15957_v20 = vcombine.high %v10835_v6, %v10839_v45  ;;  %v10972_v32 = vld [vmem:[%s24254_s14 + $0x948] sm:$0xff] }
0x109e   : > { %13825 = vmatprep.subr.bf16.mxu0 %v15909_v26  ;;  %v10976_v26 = vld [vmem:[%s24254_s14 + $0x968] sm:$0xff] }
0x109f   : > { %v16094_v14 = vcombine.low %v10972_v32, %v10976_v26  ;;  %v11012_v45 = vld [vmem:[%s24254_s14 + $0xa88] sm:$0xff] }
0x10a0   : > { %14031 = vmatpush1.bf16.msra.mxu1 %v16038_v23  ;;  %v16095_v23 = vcombine.high %v10972_v32, %v10976_v26 }
0x10a1   : > { %13826 = vmatpush1.bf16.msra.mxu0 %v15908_v40  ;;  %14032 = vmatprep.subr.bf16.mxu1 %v16047_v46  ;;  %v15965_v40 = vcombine.high %v10843_v53, %v10847_v44  ;;  %v10980_v46 = vld [vmem:[%s24254_s14 + $0x988] sm:$0xff] }
0x10a2   : > { %13827 = vmatprep.subr.bf16.mxu0 %v15917_v8  ;;  %v10984_v8 = vld [vmem:[%s24254_s14 + $0x9a8] sm:$0xff] }
0x10a3   : > { %v16102_v18 = vcombine.low %v10980_v46, %v10984_v8  ;;  %v11020_v44 = vld [vmem:[%s24254_s14 + $0xac8] sm:$0xff] }
0x10a4   : > { %14033 = vmatpush1.bf16.msra.mxu1 %v16046_v39  ;;  %v16103_v39 = vcombine.high %v10980_v46, %v10984_v8 }
0x10a5   : > { %13828 = vmatpush1.bf16.msra.mxu0 %v15916_v29  ;;  %14043 = vmatprep.subr.bf16.mxu1 %v16055_v27  ;;  %v15973_v29 = vcombine.high %v10851_v57, %v10855_v16  ;;  %v10988_v27 = vld [vmem:[%s24254_s14 + $0x9c8] sm:$0xff] }
0x10a6   : > { %13838 = vmatprep.subr.bf16.mxu0 %v15925_v56  ;;  %v10992_v56 = vld [vmem:[%s24254_s14 + $0x9e8] sm:$0xff] }
0x10a7   : > { %14035 = vmatmul.mubr.bf16.vlgmr.msra.gmra.mrb[208].mxu1 %v22900_v42 }
0x10a8   : > { %13830 = vmatmul.mubr.bf16.vlgmr.msra.gmra.mrb[192].mxu0 %v22692_v38  ;;  %14044 = vmatpush1.bf16.msra.mxu1 %v16054_v22 }
0x10a9   : > { %13839 = vmatpush1.bf16.msra.mxu0 %v15924_v61  ;;  %14045 = vmatprep.subr.bf16.mxu1 %v16063_v55  ;;  %v15972_v61 = vcombine.low %v10851_v57, %v10855_v16  ;;  %v16111_v55 = vcombine.high %v10988_v27, %v10992_v56  ;;  %v11028_v16 = vld [vmem:[%s24254_s14 + $0xb08] sm:$0xff] }
0x10aa   : > { %13840 = vmatprep.subr.bf16.mxu0 %v15933_v50  ;;  %13870 = vmatprep.mubr.bf16.mxu0 %v22727_v33 }
0x10ac   : > { %14046 = vmatpush1.bf16.msra.mxu1 %v16062_v62 }
0x10ad   : > { %13841 = vmatpush1.bf16.msra.mxu0 %v15932_v48  ;;  %14047 = vmatprep.subr.bf16.mxu1 %v16071_v30  ;;  %v10867_v48 = vld [vmem:[%s24254_s14 + $0x600] sm:$0xff] }
0x10ae   : > { %13842 = vmatprep.subr.bf16.mxu0 %v15941_v60  ;;  %v10871_v30 = vld [vmem:[%s24254_s14 + $0x620] sm:$0xff]  ;;  %v16110_v60 = vcombine.low %v10988_v27, %v10992_v56 }
0x10af   : > { %v15989_v35 = vcombine.high %v10867_v48, %v10871_v30  ;;  %v15988_v12 = vcombine.low %v10867_v48, %v10871_v30  ;;  %v10915_v48 = vld [vmem:[%s24254_s14 + $0x780] sm:$0xff] }
0x10b0   : > { %14048 = vmatpush1.bf16.msra.mxu1 %v16070_v43  ;;  %v11008_v43 = vld [vmem:[%s24254_s14 + $0xa68] sm:$0xff]  ;;  %v10919_v30 = vld [vmem:[%s24254_s14 + $0x7a0] sm:$0xff] }
0x10b1   : > { %13843 = vmatpush1.bf16.msra.mxu0 %v15940_v41  ;;  %14049 = vmatprep.subr.bf16.mxu1 %v16079_v51  ;;  %v10875_v41 = vld [vmem:[%s24254_s14 + $0x640] sm:$0xff]  ;;  %v16127_v1 = vcombine.high %v11004_v0, %v11008_v43 }
0x10b2   : > { %13844 = vmatprep.subr.bf16.mxu0 %v15949_v49  ;;  %v10879_v51 = vld [vmem:[%s24254_s14 + $0x660] sm:$0xff]  ;;  %v16118_v49 = vcombine.low %v10996_v19, %v11000_v21  ;;  %v11044_v21 = vld [vmem:[%s24254_s14 + $0xb88] sm:$0xff] }
0x10b3   : > { %v15997_v6 = vcombine.high %v10875_v41, %v10879_v51  ;;  %v15996_v32 = vcombine.low %v10875_v41, %v10879_v51  ;;  %v10923_v41 = vld [vmem:[%s24254_s14 + $0x7c0] sm:$0xff] }
0x10b4   : > { %14050 = vmatpush1.bf16.msra.mxu1 %v16078_v63  ;;  %v11016_v63 = vld [vmem:[%s24254_s14 + $0xaa8] sm:$0xff]  ;;  %v10927_v51 = vld [vmem:[%s24254_s14 + $0x7e0] sm:$0xff] }
0x10b5   : > { %13845 = vmatpush1.bf16.msra.mxu0 %v15948_v2  ;;  %14051 = vmatprep.subr.bf16.mxu1 %v16087_v15  ;;  %v10883_v2 = vld [vmem:[%s24254_s14 + $0x680] sm:$0xff]  ;;  %v16135_v26 = vcombine.high %v11012_v45, %v11016_v63 }
0x10b6   : > { %13846 = vmatprep.subr.bf16.mxu0 %v15957_v20  ;;  %v10887_v15 = vld [vmem:[%s24254_s14 + $0x6a0] sm:$0xff]  ;;  %v16126_v20 = vcombine.low %v11004_v0, %v11008_v43  ;;  %v11052_v0 = vld [vmem:[%s24254_s14 + $0xbc8] sm:$0xff] }
0x10b7   : > { %v16005_v53 = vcombine.high %v10883_v2, %v10887_v15  ;;  %v16004_v46 = vcombine.low %v10883_v2, %v10887_v15  ;;  %v11056_v43 = vld [vmem:[%s24254_s14 + $0xbe8] sm:$0xff]  ;;  %v10931_v2 = vld [vmem:[%s24254_s14 + $0x800] sm:$0xff] }
0x10b8   : > { %14052 = vmatpush1.bf16.msra.mxu1 %v16086_v10  ;;  %v11024_v10 = vld [vmem:[%s24254_s14 + $0xae8] sm:$0xff]  ;;  %v10935_v15 = vld [vmem:[%s24254_s14 + $0x820] sm:$0xff] }
0x10b9   : > { %13847 = vmatpush1.bf16.msra.mxu0 %v15956_v9  ;;  %14053 = vmatprep.subr.bf16.mxu1 %v16095_v23  ;;  %v10891_v9 = vld [vmem:[%s24254_s14 + $0x6c0] sm:$0xff]  ;;  %v16143_v8 = vcombine.high %v11020_v44, %v11024_v10 }
0x10ba   : > { %13848 = vmatprep.subr.bf16.mxu0 %v15965_v40  ;;  %v10895_v23 = vld [vmem:[%s24254_s14 + $0x6e0] sm:$0xff]  ;;  %v16134_v40 = vcombine.low %v11012_v45, %v11016_v63  ;;  %v11060_v45 = vld [vmem:[%s24254_s14 + $0xc08] sm:$0xff] }
0x10bb   : > { %v22977_v47 = vpop.f32.mrb[184].mxu0  ;;  %v16013_v57 = vcombine.high %v10891_v9, %v10895_v23  ;;  %v16012_v27 = vcombine.low %v10891_v9, %v10895_v23  ;;  %v11064_v63 = vld [vmem:[%s24254_s14 + $0xc28] sm:$0xff]  ;;  %v10939_v9 = vld [vmem:[%s24254_s14 + $0x840] sm:$0xff] }
0x10bc   : > { %14054 = vmatpush1.bf16.msra.mxu1 %v16094_v14  ;;  %v10629_v22 = vpop.f32.mrb[185].mxu0  ;;  %v11032_v14 = vld [vmem:[%s24254_s14 + $0xb28] sm:$0xff]  ;;  %v10943_v23 = vld [vmem:[%s24254_s14 + $0x860] sm:$0xff] }
0x10bd   : > { %13849 = vmatpush1.bf16.msra.mxu0 %v15964_v31  ;;  %14055 = vmatprep.subr.bf16.mxu1 %v16103_v39  ;;  %v22979_v50 = vpack.c.bf16 %v10629_v22, %v10629_v22  ;;  %v10631_v4 = vpop.f32.mrb[186].mxu0  ;;  %v10899_v31 = vld [vmem:[%s24254_s14 + $0x700] sm:$0xff]  ;;  %v16151_v56 = vcombine.high %v11028_v16, %v11032_v14 }
0x10be   : > { %13850 = vmatprep.subr.bf16.mxu0 %v15973_v29  ;;  %v10632_v62 = vpop.f32.mrb[187].mxu0  ;;  %v10903_v39 = vld [vmem:[%s24254_s14 + $0x720] sm:$0xff]  ;;  %v16142_v29 = vcombine.low %v11020_v44, %v11024_v10  ;;  %v11068_v44 = vld [vmem:[%s24254_s14 + $0xc48] sm:$0xff] }
0x10bf   : > { %14075 = vmatprep.mubr.bf16.mxu1 %v22979_v50  ;;  %v16021_v52 = vcombine.high %v10899_v31, %v10903_v39  ;;  %v10907_v22 = vld [vmem:[%s24254_s14 + $0x740] sm:$0xff]  ;;  %v16020_v4 = vcombine.low %v10899_v31, %v10903_v39  ;;  %v11048_v62 = vld [vmem:[%s24254_s14 + $0xba8] sm:$0xff] }
0x10c0   : > { %14056 = vmatpush1.bf16.msra.mxu1 %v16102_v18  ;;  %v11040_v18 = vld [vmem:[%s24254_s14 + $0xb68] sm:$0xff]  ;;  %v10951_v39 = vld [vmem:[%s24254_s14 + $0x8a0] sm:$0xff] }
0x10c1   : > { %13851 = vmatpush1.bf16.msra.mxu0 %v15972_v61  ;;  %14057 = vmatprep.subr.bf16.mxu1 %v16111_v55  ;;  %v10911_v61 = vld [vmem:[%s24254_s14 + $0x760] sm:$0xff]  ;;  %v16150_v55 = vcombine.low %v11028_v16, %v11032_v14  ;;  %v11072_v10 = vld [vmem:[%s24254_s14 + $0xc68] sm:$0xff]  ;;  %v16061_v16 = vcombine.high %v10939_v9, %v10943_v23 }
0x10c2   : > { %13852 = vmatprep.subr.bf16.mxu0 %v15981_v5  ;;  %v16159_v5 = vcombine.high %v11036_v54, %v11040_v18  ;;  %v16029_v19 = vcombine.high %v10907_v22, %v10911_v61  ;;  %v11076_v14 = vld [vmem:[%s24254_s14 + $0xc88] sm:$0xff] }
0x10c3   : > { %v11080_v31 = vld [vmem:[%s24254_s14 + $0xca8] sm:$0xff] }
0x10c4   : > { %14058 = vmatpush1.bf16.msra.mxu1 %v16110_v60  ;;  %v16158_v60 = vcombine.low %v11036_v54, %v11040_v18  ;;  %v11084_v54 = vld [vmem:[%s24254_s14 + $0xcc8] sm:$0xff] }
0x10c5   : > { %13853 = vmatpush1.bf16.msra.mxu0 %v15980_v58  ;;  %14059 = vmatprep.subr.bf16.mxu1 %v16119_v24  ;;  %v16028_v58 = vcombine.low %v10907_v22, %v10911_v61  ;;  %v16167_v24 = vcombine.high %v11044_v21, %v11048_v62  ;;  %v11088_v18 = vld [vmem:[%s24254_s14 + $0xce8] sm:$0xff]  ;;  %v10955_v22 = vld [vmem:[%s24254_s14 + $0x8c0] sm:$0xff] }
0x10c6   : > { %13854 = vmatprep.subr.bf16.mxu0 %v15989_v35  ;;  %v16037_v35 = vcombine.high %v10915_v48, %v10919_v30  ;;  %v10959_v61 = vld [vmem:[%s24254_s14 + $0x8e0] sm:$0xff] }
0x10c8   : > { %14060 = vmatpush1.bf16.msra.mxu1 %v16118_v49  ;;  %v16166_v49 = vcombine.low %v11044_v21, %v11048_v62  ;;  %v11092_v21 = vld [vmem:[%s24254_s14 + $0xd08] sm:$0xff] }
0x10c9   : > { %13855 = vmatpush1.bf16.msra.mxu0 %v15988_v12  ;;  %14061 = vmatprep.subr.bf16.mxu1 %v16127_v1  ;;  %v16036_v12 = vcombine.low %v10915_v48, %v10919_v30  ;;  %v16175_v1 = vcombine.high %v11052_v0, %v11056_v43  ;;  %v11096_v62 = vld [vmem:[%s24254_s14 + $0xd28] sm:$0xff]  ;;  %v10963_v48 = vld [vmem:[%s24254_s14 + $0x900] sm:$0xff] }
0x10ca   : > { %13856 = vmatprep.subr.bf16.mxu0 %v15997_v6  ;;  %v16045_v6 = vcombine.high %v10923_v41, %v10927_v51  ;;  %v10967_v30 = vld [vmem:[%s24254_s14 + $0x920] sm:$0xff] }
0x10cc   : > { %14062 = vmatpush1.bf16.msra.mxu1 %v16126_v20  ;;  %v16174_v20 = vcombine.low %v11052_v0, %v11056_v43  ;;  %v11100_v0 = vld [vmem:[%s24254_s14 + $0xd48] sm:$0xff] }
0x10cd   : > { %13857 = vmatpush1.bf16.msra.mxu0 %v15996_v32  ;;  %14063 = vmatprep.subr.bf16.mxu1 %v16135_v26  ;;  %v16044_v32 = vcombine.low %v10923_v41, %v10927_v51  ;;  %v16183_v26 = vcombine.high %v11060_v45, %v11064_v63  ;;  %v11104_v43 = vld [vmem:[%s24254_s14 + $0xd68] sm:$0xff]  ;;  %v10971_v41 = vld [vmem:[%s24254_s14 + $0x940] sm:$0xff] }
0x10ce   : > { %13858 = vmatprep.subr.bf16.mxu0 %v16005_v53  ;;  %v16053_v53 = vcombine.high %v10931_v2, %v10935_v15  ;;  %v10975_v51 = vld [vmem:[%s24254_s14 + $0x960] sm:$0xff] }
0x10d0   : > { %14064 = vmatpush1.bf16.msra.mxu1 %v16134_v40  ;;  %v23104_v40 = vpack.c.bf16 %v22977_v47, %v22977_v47  ;;  %v10947_v47 = vld [vmem:[%s24254_s14 + $0x880] sm:$0xff] }
0x10d1   : > { %13859 = vmatpush1.bf16.msra.mxu0 %v16004_v46  ;;  %14065 = vmatprep.subr.bf16.mxu1 %v16143_v8  ;;  %v16182_v46 = vcombine.low %v11060_v45, %v11064_v63  ;;  %v16052_v8 = vcombine.low %v10931_v2, %v10935_v15  ;;  %v11108_v45 = vld [vmem:[%s24254_s14 + $0xd88] sm:$0xff]  ;;  %v10979_v2 = vld [vmem:[%s24254_s14 + $0x980] sm:$0xff] }
0x10d2   : > { %13860 = vmatprep.subr.bf16.mxu0 %v16013_v57  ;;  %v16191_v57 = vcombine.high %v11068_v44, %v11072_v10  ;;  %v11112_v63 = vld [vmem:[%s24254_s14 + $0xda8] sm:$0xff]  ;;  %v10983_v15 = vld [vmem:[%s24254_s14 + $0x9a0] sm:$0xff] }
0x10d4   : > { %14066 = vmatpush1.bf16.msra.mxu1 %v16142_v29  ;;  %v16190_v29 = vcombine.low %v11068_v44, %v11072_v10  ;;  %v11116_v44 = vld [vmem:[%s24254_s14 + $0xdc8] sm:$0xff] }
0x10d5   : > { %13861 = vmatpush1.bf16.msra.mxu0 %v16012_v27  ;;  %14067 = vmatprep.subr.bf16.mxu1 %v16151_v56  ;;  %v16060_v27 = vcombine.low %v10939_v9, %v10943_v23  ;;  %v16199_v56 = vcombine.high %v11076_v14, %v11080_v31  ;;  %v11120_v10 = vld [vmem:[%s24254_s14 + $0xde8] sm:$0xff]  ;;  %v10987_v9 = vld [vmem:[%s24254_s14 + $0x9c0] sm:$0xff] }
0x10d6   : > { %13862 = vmatprep.subr.bf16.mxu0 %v16021_v52  ;;  %v16069_v52 = vcombine.high %v10947_v47, %v10951_v39  ;;  %v10991_v23 = vld [vmem:[%s24254_s14 + $0x9e0] sm:$0xff] }
0x10d8   : > { %14068 = vmatpush1.bf16.msra.mxu1 %v16150_v55  ;;  %v16198_v55 = vcombine.low %v11076_v14, %v11080_v31  ;;  %v11124_v14 = vld [vmem:[%s24254_s14 + $0xe08] sm:$0xff] }
0x10d9   : > { %13863 = vmatpush1.bf16.msra.mxu0 %v16020_v4  ;;  %14069 = vmatprep.subr.bf16.mxu1 %v16159_v5  ;;  %v16068_v4 = vcombine.low %v10947_v47, %v10951_v39  ;;  %v16207_v5 = vcombine.high %v11084_v54, %v11088_v18  ;;  %v11128_v31 = vld [vmem:[%s24254_s14 + $0xe28] sm:$0xff]  ;;  %v10995_v47 = vld [vmem:[%s24254_s14 + $0xa00] sm:$0xff] }
0x10da   : > { %13864 = vmatprep.subr.bf16.mxu0 %v16029_v19  ;;  %v16077_v19 = vcombine.high %v10955_v22, %v10959_v61  ;;  %v10999_v39 = vld [vmem:[%s24254_s14 + $0xa20] sm:$0xff] }
0x10dc   : > { %14070 = vmatpush1.bf16.msra.mxu1 %v16158_v60  ;;  %v16206_v60 = vcombine.low %v11084_v54, %v11088_v18  ;;  %v11132_v54 = vld [vmem:[%s24254_s14 + $0xe48] sm:$0xff] }
0x10dd   : > { %13865 = vmatpush1.bf16.msra.mxu0 %v16028_v58  ;;  %14071 = vmatprep.subr.bf16.mxu1 %v16167_v24  ;;  %v16076_v58 = vcombine.low %v10955_v22, %v10959_v61  ;;  %v16215_v24 = vcombine.high %v11092_v21, %v11096_v62  ;;  %v11136_v18 = vld [vmem:[%s24254_s14 + $0xe68] sm:$0xff]  ;;  %v11003_v22 = vld [vmem:[%s24254_s14 + $0xa40] sm:$0xff] }
0x10de   : > { %13866 = vmatprep.subr.bf16.mxu0 %v16037_v35  ;;  %v16085_v35 = vcombine.high %v10963_v48, %v10967_v30  ;;  %v11007_v61 = vld [vmem:[%s24254_s14 + $0xa60] sm:$0xff] }
0x10e0   : > { %14072 = vmatpush1.bf16.msra.mxu1 %v16166_v49  ;;  %v16214_v49 = vcombine.low %v11092_v21, %v11096_v62  ;;  %v11140_v21 = vld [vmem:[%s24254_s14 + $0xe88] sm:$0xff] }
0x10e1   : > { %13867 = vmatpush1.bf16.msra.mxu0 %v16036_v12  ;;  %14073 = vmatprep.subr.bf16.mxu1 %v16175_v1  ;;  %v16084_v12 = vcombine.low %v10963_v48, %v10967_v30  ;;  %v16223_v1 = vcombine.high %v11100_v0, %v11104_v43  ;;  %v11144_v62 = vld [vmem:[%s24254_s14 + $0xea8] sm:$0xff]  ;;  %v11011_v48 = vld [vmem:[%s24254_s14 + $0xa80] sm:$0xff] }
0x10e2   : > { %13868 = vmatprep.subr.bf16.mxu0 %v16045_v6  ;;  %v16093_v6 = vcombine.high %v10971_v41, %v10975_v51  ;;  %v11015_v30 = vld [vmem:[%s24254_s14 + $0xaa0] sm:$0xff] }
0x10e4   : > { %14074 = vmatpush1.bf16.msra.mxu1 %v16174_v20  ;;  %v16222_v20 = vcombine.low %v11100_v0, %v11104_v43  ;;  %v11148_v0 = vld [vmem:[%s24254_s14 + $0xec8] sm:$0xff] }
0x10e5   : > { %13869 = vmatpush1.bf16.msra.mxu0 %v16044_v32  ;;  %14084 = vmatprep.subr.bf16.mxu1 %v16183_v26  ;;  %v16092_v32 = vcombine.low %v10971_v41, %v10975_v51  ;;  %v16231_v26 = vcombine.high %v11108_v45, %v11112_v63  ;;  %v11152_v43 = vld [vmem:[%s24254_s14 + $0xee8] sm:$0xff]  ;;  %v11019_v41 = vld [vmem:[%s24254_s14 + $0xac0] sm:$0xff] }
0x10e6   : > { %13879 = vmatprep.subr.bf16.mxu0 %v16053_v53  ;;  %v16101_v53 = vcombine.high %v10979_v2, %v10983_v15  ;;  %v11023_v51 = vld [vmem:[%s24254_s14 + $0xae0] sm:$0xff] }
0x10e7   : > { %14076 = vmatmul.mubr.bf16.vlgmr.msra.gmra.mrb[208].mxu1 %v23104_v40 }
0x10e8   : > { %13871 = vmatmul.mubr.bf16.vlgmr.msra.gmra.mrb[192].mxu0 %v22900_v42  ;;  %14085 = vmatpush1.bf16.msra.mxu1 %v16182_v46  ;;  %v16230_v46 = vcombine.low %v11108_v45, %v11112_v63  ;;  %v11156_v45 = vld [vmem:[%s24254_s14 + $0xf08] sm:$0xff] }
0x10e9   : > { %13880 = vmatpush1.bf16.msra.mxu0 %v16052_v8  ;;  %14086 = vmatprep.subr.bf16.mxu1 %v16191_v57  ;;  %v16100_v8 = vcombine.low %v10979_v2, %v10983_v15  ;;  %v16239_v57 = vcombine.high %v11116_v44, %v11120_v10  ;;  %v11160_v63 = vld [vmem:[%s24254_s14 + $0xf28] sm:$0xff]  ;;  %v11027_v2 = vld [vmem:[%s24254_s14 + $0xb00] sm:$0xff] }
0x10ea   : > { %13881 = vmatprep.subr.bf16.mxu0 %v16061_v16  ;;  %13911 = vmatprep.mubr.bf16.mxu0 %v22979_v50  ;;  %v16109_v16 = vcombine.high %v10987_v9, %v10991_v23  ;;  %v11031_v15 = vld [vmem:[%s24254_s14 + $0xb20] sm:$0xff] }
0x10ec   : > { %14087 = vmatpush1.bf16.msra.mxu1 %v16190_v29  ;;  %v16238_v29 = vcombine.low %v11116_v44, %v11120_v10  ;;  %v11164_v44 = vld [vmem:[%s24254_s14 + $0xf48] sm:$0xff] }
0x10ed   : > { %13882 = vmatpush1.bf16.msra.mxu0 %v16060_v27  ;;  %14088 = vmatprep.subr.bf16.mxu1 %v16199_v56  ;;  %v16108_v27 = vcombine.low %v10987_v9, %v10991_v23  ;;  %v16247_v56 = vcombine.high %v11124_v14, %v11128_v31  ;;  %v11168_v10 = vld [vmem:[%s24254_s14 + $0xf68] sm:$0xff]  ;;  %v11035_v9 = vld [vmem:[%s24254_s14 + $0xb40] sm:$0xff] }
0x10ee   : > { %13883 = vmatprep.subr.bf16.mxu0 %v16069_v52  ;;  %v16117_v52 = vcombine.high %v10995_v47, %v10999_v39  ;;  %v11039_v23 = vld [vmem:[%s24254_s14 + $0xb60] sm:$0xff] }
0x10f0   : > { %14089 = vmatpush1.bf16.msra.mxu1 %v16198_v55  ;;  %v16246_v55 = vcombine.low %v11124_v14, %v11128_v31  ;;  %v11172_v14 = vld [vmem:[%s24254_s14 + $0xf88] sm:$0xff] }
0x10f1   : > { %13884 = vmatpush1.bf16.msra.mxu0 %v16068_v4  ;;  %14090 = vmatprep.subr.bf16.mxu1 %v16207_v5  ;;  %v16116_v4 = vcombine.low %v10995_v47, %v10999_v39  ;;  %v16255_v5 = vcombine.high %v11132_v54, %v11136_v18  ;;  %v11176_v31 = vld [vmem:[%s24254_s14 + $0xfa8] sm:$0xff]  ;;  %v11043_v47 = vld [vmem:[%s24254_s14 + $0xb80] sm:$0xff] }
0x10f2   : > { %13885 = vmatprep.subr.bf16.mxu0 %v16077_v19  ;;  %v16125_v19 = vcombine.high %v11003_v22, %v11007_v61  ;;  %v11047_v39 = vld [vmem:[%s24254_s14 + $0xba0] sm:$0xff] }
0x10f4   : > { %14091 = vmatpush1.bf16.msra.mxu1 %v16206_v60  ;;  %v16254_v60 = vcombine.low %v11132_v54, %v11136_v18  ;;  %v11180_v54 = vld [vmem:[%s24254_s14 + $0xfc8] sm:$0xff] }
0x10f5   : > { %13886 = vmatpush1.bf16.msra.mxu0 %v16076_v58  ;;  %14092 = vmatprep.subr.bf16.mxu1 %v16215_v24  ;;  %v16124_v58 = vcombine.low %v11003_v22, %v11007_v61  ;;  %v16263_v24 = vcombine.high %v11140_v21, %v11144_v62  ;;  %v11184_v18 = vld [vmem:[%s24254_s14 + $0xfe8] sm:$0xff]  ;;  %v11051_v22 = vld [vmem:[%s24254_s14 + $0xbc0] sm:$0xff] }
0x10f6   : > { %13887 = vmatprep.subr.bf16.mxu0 %v16085_v35  ;;  %v16133_v35 = vcombine.high %v11011_v48, %v11015_v30  ;;  %v11055_v61 = vld [vmem:[%s24254_s14 + $0xbe0] sm:$0xff] }
0x10f8   : > { %14093 = vmatpush1.bf16.msra.mxu1 %v16214_v49  ;;  %v16262_v49 = vcombine.low %v11140_v21, %v11144_v62  ;;  %v23280_v21 = vld [vmem:[%s24254_s14 + $0x18] sm:$0xff] }
0x10f9   : > { %13888 = vmatpush1.bf16.msra.mxu0 %v16084_v12  ;;  %14094 = vmatprep.subr.bf16.mxu1 %v16223_v1  ;;  %v16132_v12 = vcombine.low %v11011_v48, %v11015_v30  ;;  %v16271_v1 = vcombine.high %v11148_v0, %v11152_v43  ;;  %v23285_v62 = vld [vmem:[%s24254_s14 + $0x38] sm:$0xff]  ;;  %v11059_v48 = vld [vmem:[%s24254_s14 + $0xc00] sm:$0xff] }
0x10fa   : > { %13889 = vmatprep.subr.bf16.mxu0 %v16093_v6  ;;  %v16141_v6 = vcombine.high %v11019_v41, %v11023_v51  ;;  %v11063_v30 = vld [vmem:[%s24254_s14 + $0xc20] sm:$0xff] }
0x10fc   : > { %14095 = vmatpush1.bf16.msra.mxu1 %v16222_v20  ;;  %v16270_v20 = vcombine.low %v11148_v0, %v11152_v43  ;;  %v11067_v0 = vld [vmem:[%s24254_s14 + $0xc40] sm:$0xff] }
0x10fd   : > { %13890 = vmatpush1.bf16.msra.mxu0 %v16092_v32  ;;  %14096 = vmatprep.subr.bf16.mxu1 %v16231_v26  ;;  %v16140_v32 = vcombine.low %v11019_v41, %v11023_v51  ;;  %v16279_v26 = vcombine.high %v11156_v45, %v11160_v63  ;;  %v11071_v43 = vld [vmem:[%s24254_s14 + $0xc60] sm:$0xff]  ;;  %v16180_v41 = vcombine.low %v11059_v48, %v11063_v30 }
0x10fe   : > { %13891 = vmatprep.subr.bf16.mxu0 %v16101_v53  ;;  %v16149_v53 = vcombine.high %v11027_v2, %v11031_v15  ;;  %v16189_v51 = vcombine.high %v11067_v0, %v11071_v43 }
0x1100   : > { %14097 = vmatpush1.bf16.msra.mxu1 %v16230_v46  ;;  %v16278_v46 = vcombine.low %v11156_v45, %v11160_v63  ;;  %v11083_v45 = vld [vmem:[%s24254_s14 + $0xcc0] sm:$0xff] }
0x1101   : > { %13892 = vmatpush1.bf16.msra.mxu0 %v16100_v8  ;;  %14098 = vmatprep.subr.bf16.mxu1 %v16239_v57  ;;  %v16148_v8 = vcombine.low %v11027_v2, %v11031_v15  ;;  %v16287_v57 = vcombine.high %v11164_v44, %v11168_v10  ;;  %v11087_v63 = vld [vmem:[%s24254_s14 + $0xce0] sm:$0xff] }
0x1102   : > { %13893 = vmatprep.subr.bf16.mxu0 %v16109_v16  ;;  %v16157_v16 = vcombine.high %v11035_v9, %v11039_v23  ;;  %v16205_v15 = vcombine.high %v11083_v45, %v11087_v63 }
0x1104   : > { %14099 = vmatpush1.bf16.msra.mxu1 %v16238_v29  ;;  %v16286_v29 = vcombine.low %v11164_v44, %v11168_v10  ;;  %v11099_v44 = vld [vmem:[%s24254_s14 + $0xd40] sm:$0xff] }
0x1105   : > { %13894 = vmatpush1.bf16.msra.mxu0 %v16108_v27  ;;  %14100 = vmatprep.subr.bf16.mxu1 %v16247_v56  ;;  %v16156_v27 = vcombine.low %v11035_v9, %v11039_v23  ;;  %v16295_v56 = vcombine.high %v11172_v14, %v11176_v31  ;;  %v11103_v10 = vld [vmem:[%s24254_s14 + $0xd60] sm:$0xff] }
0x1106   : > { %13895 = vmatprep.subr.bf16.mxu0 %v16117_v52  ;;  %v16165_v52 = vcombine.high %v11043_v47, %v11047_v39  ;;  %v16221_v23 = vcombine.high %v11099_v44, %v11103_v10 }
0x1108   : > { %14101 = vmatpush1.bf16.msra.mxu1 %v16246_v55  ;;  %v16294_v55 = vcombine.low %v11172_v14, %v11176_v31  ;;  %v10686_v31 = vld [vmem:[%s24254_s14 + $0x58] sm:$0xff] }
0x1109   : > { %13896 = vmatpush1.bf16.msra.mxu0 %v16116_v4  ;;  %14102 = vmatprep.subr.bf16.mxu1 %v16255_v5  ;;  %v16164_v4 = vcombine.low %v11043_v47, %v11047_v39  ;;  %v16303_v5 = vcombine.high %v11180_v54, %v11184_v18  ;;  %v10690_v47 = vld [vmem:[%s24254_s14 + $0x78] sm:$0xff] }
0x110a   : > { %13897 = vmatprep.subr.bf16.mxu0 %v16125_v19  ;;  %v16173_v19 = vcombine.high %v11051_v22, %v11055_v61 }
0x110c   : > { %14103 = vmatpush1.bf16.msra.mxu1 %v16254_v60  ;;  %v16302_v60 = vcombine.low %v11180_v54, %v11184_v18  ;;  %v15802_v18 = vcombine.low %v23280_v21, %v23285_v62 }
0x110d   : > { %13898 = vmatpush1.bf16.msra.mxu0 %v16124_v58  ;;  %14104 = vmatprep.subr.bf16.mxu1 %v16263_v24  ;;  %v16172_v58 = vcombine.low %v11051_v22, %v11055_v61  ;;  %v15803_v24 = vcombine.high %v23280_v21, %v23285_v62  ;;  %v11123_v21 = vld [vmem:[%s24254_s14 + $0xe00] sm:$0xff] }
0x110e   : > { %13899 = vmatprep.subr.bf16.mxu0 %v16133_v35  ;;  %v16181_v35 = vcombine.high %v11059_v48, %v11063_v30  ;;  %v11127_v62 = vld [vmem:[%s24254_s14 + $0xe20] sm:$0xff]  ;;  %v15810_v48 = vcombine.low %v10686_v31, %v10690_v47 }
0x1110   : > { %14105 = vmatpush1.bf16.msra.mxu1 %v16262_v49  ;;  %v11075_v49 = vld [vmem:[%s24254_s14 + $0xc80] sm:$0xff] }
0x1111   : > { %13900 = vmatpush1.bf16.msra.mxu0 %v16132_v12  ;;  %14106 = vmatprep.subr.bf16.mxu1 %v16271_v1  ;;  %v11079_v12 = vld [vmem:[%s24254_s14 + $0xca0] sm:$0xff]  ;;  %v16188_v1 = vcombine.low %v11067_v0, %v11071_v43 }
0x1112   : > { %13901 = vmatprep.subr.bf16.mxu0 %v16141_v6  ;;  %v16197_v6 = vcombine.high %v11075_v49, %v11079_v12  ;;  %v16196_v2 = vcombine.low %v11075_v49, %v11079_v12  ;;  %v11131_v0 = vld [vmem:[%s24254_s14 + $0xe40] sm:$0xff] }
0x1113   : > { %v11135_v43 = vld [vmem:[%s24254_s14 + $0xe60] sm:$0xff] }
0x1114   : > { %14107 = vmatpush1.bf16.msra.mxu1 %v16270_v20  ;;  %v11091_v20 = vld [vmem:[%s24254_s14 + $0xd00] sm:$0xff]  ;;  %v16253_v12 = vcombine.high %v11131_v0, %v11135_v43 }
0x1115   : > { %13902 = vmatpush1.bf16.msra.mxu0 %v16140_v32  ;;  %14108 = vmatprep.subr.bf16.mxu1 %v16279_v26  ;;  %v11095_v32 = vld [vmem:[%s24254_s14 + $0xd20] sm:$0xff]  ;;  %v16204_v26 = vcombine.low %v11083_v45, %v11087_v63 }
0x1116   : > { %13903 = vmatprep.subr.bf16.mxu0 %v16149_v53  ;;  %v16213_v53 = vcombine.high %v11091_v20, %v11095_v32  ;;  %v16212_v9 = vcombine.low %v11091_v20, %v11095_v32  ;;  %v11139_v45 = vld [vmem:[%s24254_s14 + $0xe80] sm:$0xff] }
0x1117   : > { %v11143_v63 = vld [vmem:[%s24254_s14 + $0xea0] sm:$0xff] }
0x1118   : > { %14109 = vmatpush1.bf16.msra.mxu1 %v16278_v46  ;;  %v11107_v46 = vld [vmem:[%s24254_s14 + $0xd80] sm:$0xff]  ;;  %v16261_v32 = vcombine.high %v11139_v45, %v11143_v63 }
0x1119   : > { %13904 = vmatpush1.bf16.msra.mxu0 %v16148_v8  ;;  %14110 = vmatprep.subr.bf16.mxu1 %v16287_v57  ;;  %v11111_v8 = vld [vmem:[%s24254_s14 + $0xda0] sm:$0xff]  ;;  %v16220_v57 = vcombine.low %v11099_v44, %v11103_v10 }
0x111a   : > { %13905 = vmatprep.subr.bf16.mxu0 %v16157_v16  ;;  %v16229_v16 = vcombine.high %v11107_v46, %v11111_v8  ;;  %v16228_v22 = vcombine.low %v11107_v46, %v11111_v8  ;;  %v11147_v44 = vld [vmem:[%s24254_s14 + $0xec0] sm:$0xff] }
0x111b   : > { %v11151_v10 = vld [vmem:[%s24254_s14 + $0xee0] sm:$0xff] }
0x111c   : > { %14111 = vmatpush1.bf16.msra.mxu1 %v16286_v29  ;;  %v16269_v8 = vcombine.high %v11147_v44, %v11151_v10 }
0x111d   : > { %13906 = vmatpush1.bf16.msra.mxu0 %v16156_v27  ;;  %14112 = vmatprep.subr.bf16.mxu1 %v16295_v56  ;;  %v11115_v27 = vld [vmem:[%s24254_s14 + $0xdc0] sm:$0xff] }
0x111e   : > { %13907 = vmatprep.subr.bf16.mxu0 %v16165_v52  ;;  %v11119_v56 = vld [vmem:[%s24254_s14 + $0xde0] sm:$0xff] }
0x111f   : > { %v16236_v30 = vcombine.low %v11115_v27, %v11119_v56 }
0x1120   : > { %14113 = vmatpush1.bf16.msra.mxu1 %v16294_v55  ;;  %v15811_v55 = vcombine.high %v10686_v31, %v10690_v47  ;;  %v11159_v31 = vld [vmem:[%s24254_s14 + $0xf20] sm:$0xff] }
0x1121   : > { %13908 = vmatpush1.bf16.msra.mxu0 %v16164_v4  ;;  %14114 = vmatprep.subr.bf16.mxu1 %v16303_v5  ;;  %v10694_v4 = vld [vmem:[%s24254_s14 + $0x98] sm:$0xff]  ;;  %v16237_v5 = vcombine.high %v11115_v27, %v11119_v56 }
0x1122   : > { %13909 = vmatprep.subr.bf16.mxu0 %v16173_v19  ;;  %v10698_v19 = vld [vmem:[%s24254_s14 + $0xb8] sm:$0xff] }
0x1124   : > { %14115 = vmatpush1.bf16.msra.mxu1 %v16302_v60  ;;  %v15819_v60 = vcombine.high %v10694_v4, %v10698_v19 }
0x1125   : > { %13910 = vmatpush1.bf16.msra.mxu0 %v16172_v58  ;;  %14289 = vmatprep.subr.bf16.mxu1 %v15803_v24  ;;  %v16245_v58 = vcombine.high %v11123_v21, %v11127_v62  ;;  %v10702_v24 = vld [vmem:[%s24254_s14 + $0xd8] sm:$0xff] }
0x1126   : > { %13920 = vmatprep.subr.bf16.mxu0 %v16181_v35  ;;  %v10706_v35 = vld [vmem:[%s24254_s14 + $0xf8] sm:$0xff] }
0x1127   : > { %v15827_v49 = vcombine.high %v10702_v24, %v10706_v35 }
0x1128   : > { %13912 = vmatmul.mubr.bf16.vlgmr.msra.gmra.mrb[192].mxu0 %v23104_v40 }
0x1129   : > { %13921 = vmatpush1.bf16.msra.mxu0 %v16180_v41  ;;  %v15818_v41 = vcombine.low %v10694_v4, %v10698_v19 }
0x112a   : > { %13922 = vmatprep.subr.bf16.mxu0 %v16189_v51  ;;  %v16244_v51 = vcombine.low %v11123_v21, %v11127_v62  ;;  %v10742_v21 = vld [vmem:[%s24254_s14 + $0x218] sm:$0xff] }
0x112b   : > { %v10746_v62 = vld [vmem:[%s24254_s14 + $0x238] sm:$0xff] }
0x112d   : > { %13923 = vmatpush1.bf16.msra.mxu0 %v16188_v1  ;;  %v10710_v1 = vld [vmem:[%s24254_s14 + $0x118] sm:$0xff] }
0x112e   : > { %13924 = vmatprep.subr.bf16.mxu0 %v16197_v6  ;;  %v10714_v6 = vld [vmem:[%s24254_s14 + $0x138] sm:$0xff] }
0x112f   : > { %v15835_v20 = vcombine.high %v10710_v1, %v10714_v6 }
0x1131   : > { %13925 = vmatpush1.bf16.msra.mxu0 %v16196_v2  ;;  %v15826_v2 = vcombine.low %v10702_v24, %v10706_v35  ;;  %v15867_v24 = vcombine.high %v10742_v21, %v10746_v62 }
0x1132   : > { %13926 = vmatprep.subr.bf16.mxu0 %v16205_v15  ;;  %v16252_v15 = vcombine.low %v11131_v0, %v11135_v43  ;;  %v10750_v0 = vld [vmem:[%s24254_s14 + $0x258] sm:$0xff] }
0x1133   : > { %v10754_v43 = vld [vmem:[%s24254_s14 + $0x278] sm:$0xff] }
0x1135   : > { %13927 = vmatpush1.bf16.msra.mxu0 %v16204_v26  ;;  %v10718_v26 = vld [vmem:[%s24254_s14 + $0x158] sm:$0xff] }
0x1136   : > { %13928 = vmatprep.subr.bf16.mxu0 %v16213_v53  ;;  %v10722_v53 = vld [vmem:[%s24254_s14 + $0x178] sm:$0xff] }
0x1137   : > { %v15843_v46 = vcombine.high %v10718_v26, %v10722_v53  ;;  %v15842_v47 = vcombine.low %v10718_v26, %v10722_v53 }
0x1139   : > { %13929 = vmatpush1.bf16.msra.mxu0 %v16212_v9  ;;  %v15834_v9 = vcombine.low %v10710_v1, %v10714_v6  ;;  %v15875_v1 = vcombine.high %v10750_v0, %v10754_v43 }
0x113a   : > { %13930 = vmatprep.subr.bf16.mxu0 %v16221_v23  ;;  %v16260_v23 = vcombine.low %v11139_v45, %v11143_v63  ;;  %v10758_v45 = vld [vmem:[%s24254_s14 + $0x298] sm:$0xff] }
0x113b   : > { %v10668_v14 = vpop.f32.mrb[188].mxu0  ;;  %v10762_v63 = vld [vmem:[%s24254_s14 + $0x2b8] sm:$0xff] }
0x113c   : > { %v23338_v39 = vpack.c.bf16 %v10668_v14, %v10668_v14  ;;  %v10670_v29 = vpop.f32.mrb[189].mxu0  ;;  %v11155_v14 = vld [vmem:[%s24254_s14 + $0xf00] sm:$0xff]  ;;  %v15883_v26 = vcombine.high %v10758_v45, %v10762_v63 }
0x113d   : > { %v23346_v52 = vpack.c.bf16 %v10670_v29, %v10670_v29  ;;  %v10672_v54 = vpop.f32.mrb[190].mxu0  ;;  %13931 = vmatpush1.bf16.msra.mxu0 %v16220_v57  ;;  %v10726_v57 = vld [vmem:[%s24254_s14 + $0x198] sm:$0xff]  ;;  %v16268_v29 = vcombine.low %v11147_v44, %v11151_v10  ;;  %v16277_v56 = vcombine.high %v11155_v14, %v11159_v31  ;;  %v16276_v4 = vcombine.low %v11155_v14, %v11159_v31 }
0x113e   : > { %v10673_v61 = vpop.f32.mrb[191].mxu0  ;;  %13932 = vmatprep.subr.bf16.mxu0 %v16229_v16  ;;  %v10730_v16 = vld [vmem:[%s24254_s14 + $0x1b8] sm:$0xff] }
0x113f   : > { %13952 = vmatprep.mubr.bf16.mxu0 %v23346_v52  ;;  %14116 = vmatprep.mubr.bf16.mxu1 %v23346_v52  ;;  %v15851_v27 = vcombine.high %v10726_v57, %v10730_v16  ;;  %v10734_v54 = vld [vmem:[%s24254_s14 + $0x1d8] sm:$0xff]  ;;  %v11167_v61 = vld [vmem:[%s24254_s14 + $0xf60] sm:$0xff] }
0x1140   : > { %14117 = vmatmul.mubr.bf16.vlgmr.msra.gmra.mrb[208].mxu1 %v23338_v39  ;;  %v10766_v44 = vld [vmem:[%s24254_s14 + $0x2d8] sm:$0xff] }
0x1141   : > { %14290 = vmatpush1.bf16.msra.mxu1 %v15802_v18  ;;  %13933 = vmatpush1.bf16.msra.mxu0 %v16228_v22  ;;  %v10738_v18 = vld [vmem:[%s24254_s14 + $0x1f8] sm:$0xff]  ;;  %v11163_v22 = vld [vmem:[%s24254_s14 + $0xf40] sm:$0xff] }
0x1142   : > { %14321 = vmatprep.mubr.bf16.mxu1 %v22694_v28  ;;  %14291 = vmatprep.subr.bf16.mxu1 %v15811_v55  ;;  %v15850_v55 = vcombine.low %v10726_v57, %v10730_v16  ;;  %v16285_v19 = vcombine.high %v11163_v22, %v11167_v61  ;;  %v10770_v10 = vld [vmem:[%s24254_s14 + $0x2f8] sm:$0xff] }
0x1143   : > { %13934 = vmatprep.subr.bf16.mxu0 %v16237_v5  ;;  %v15859_v5 = vcombine.high %v10734_v54, %v10738_v18  ;;  %v15891_v57 = vcombine.high %v10766_v44, %v10770_v10  ;;  %v10774_v16 = vld [vmem:[%s24254_s14 + $0x318] sm:$0xff] }
0x1144   : > { %v10778_v31 = vld [vmem:[%s24254_s14 + $0x338] sm:$0xff] }
0x1145   : > { %14292 = vmatpush1.bf16.msra.mxu1 %v15810_v48  ;;  %13935 = vmatpush1.bf16.msra.mxu0 %v16236_v30  ;;  %v11171_v48 = vld [vmem:[%s24254_s14 + $0xf80] sm:$0xff] }
0x1146   : > { %14293 = vmatprep.subr.bf16.mxu1 %v15819_v60  ;;  %13936 = vmatprep.subr.bf16.mxu0 %v16245_v58  ;;  %v11175_v30 = vld [vmem:[%s24254_s14 + $0xfa0] sm:$0xff]  ;;  %v15858_v60 = vcombine.low %v10734_v54, %v10738_v18  ;;  %v16284_v58 = vcombine.low %v11163_v22, %v11167_v61  ;;  %v15899_v54 = vcombine.high %v10774_v16, %v10778_v31  ;;  %v10782_v22 = vld [vmem:[%s24254_s14 + $0x358] sm:$0xff] }
0x1147   : > { %v16293_v35 = vcombine.high %v11171_v48, %v11175_v30  ;;  %v10786_v61 = vld [vmem:[%s24254_s14 + $0x378] sm:$0xff] }
0x1149   : > { %14294 = vmatpush1.bf16.msra.mxu1 %v15818_v41  ;;  %13937 = vmatpush1.bf16.msra.mxu0 %v16244_v51  ;;  %v11179_v41 = vld [vmem:[%s24254_s14 + $0xfc0] sm:$0xff] }
0x114a   : > { %14295 = vmatprep.subr.bf16.mxu1 %v15827_v49  ;;  %13938 = vmatprep.subr.bf16.mxu0 %v16253_v12  ;;  %v11183_v51 = vld [vmem:[%s24254_s14 + $0xfe0] sm:$0xff]  ;;  %v15866_v49 = vcombine.low %v10742_v21, %v10746_v62  ;;  %v16292_v12 = vcombine.low %v11171_v48, %v11175_v30  ;;  %v10790_v62 = vld [vmem:[%s24254_s14 + $0x398] sm:$0xff]  ;;  %v10709_v30 = vld [vmem:[%s24254_s14 + $0x110] sm:$0xff] }
0x114b   : > { %v16301_v6 = vcombine.high %v11179_v41, %v11183_v51  ;;  %v10794_v48 = vld [vmem:[%s24254_s14 + $0x3b8] sm:$0xff] }
0x114d   : > { %14296 = vmatpush1.bf16.msra.mxu1 %v15826_v2  ;;  %13939 = vmatpush1.bf16.msra.mxu0 %v16252_v15  ;;  %v10677_v2 = vld [vmem:[%s24254_s14 + $0x10] sm:$0xff] }
0x114e   : > { %14297 = vmatprep.subr.bf16.mxu1 %v15835_v20  ;;  %13940 = vmatprep.subr.bf16.mxu0 %v16261_v32  ;;  %v10681_v15 = vld [vmem:[%s24254_s14 + $0x30] sm:$0xff]  ;;  %v15874_v20 = vcombine.low %v10750_v0, %v10754_v43  ;;  %v16300_v32 = vcombine.low %v11179_v41, %v11183_v51  ;;  %v10798_v43 = vld [vmem:[%s24254_s14 + $0x3d8] sm:$0xff] }
0x114f   : > { %v15801_v53 = vcombine.high %v10677_v2, %v10681_v15  ;;  %v10802_v41 = vld [vmem:[%s24254_s14 + $0x3f8] sm:$0xff]  ;;  %v10717_v51 = vld [vmem:[%s24254_s14 + $0x150] sm:$0xff] }
0x1151   : > { %14298 = vmatpush1.bf16.msra.mxu1 %v15834_v9  ;;  %13941 = vmatpush1.bf16.msra.mxu0 %v16260_v23  ;;  %v10685_v9 = vld [vmem:[%s24254_s14 + $0x50] sm:$0xff] }
0x1152   : > { %14299 = vmatprep.subr.bf16.mxu1 %v15843_v46  ;;  %13942 = vmatprep.subr.bf16.mxu0 %v16269_v8  ;;  %v10689_v23 = vld [vmem:[%s24254_s14 + $0x70] sm:$0xff]  ;;  %v15882_v46 = vcombine.low %v10758_v45, %v10762_v63  ;;  %v15800_v8 = vcombine.low %v10677_v2, %v10681_v15  ;;  %v10806_v63 = vld [vmem:[%s24254_s14 + $0x418] sm:$0xff] }
0x1153   : > { %v15809_v14 = vcombine.high %v10685_v9, %v10689_v23  ;;  %v10810_v2 = vld [vmem:[%s24254_s14 + $0x438] sm:$0xff]  ;;  %v10725_v15 = vld [vmem:[%s24254_s14 + $0x190] sm:$0xff] }
0x1155   : > { %14300 = vmatpush1.bf16.msra.mxu1 %v15842_v47  ;;  %13943 = vmatpush1.bf16.msra.mxu0 %v16268_v29  ;;  %v10693_v47 = vld [vmem:[%s24254_s14 + $0x90] sm:$0xff] }
0x1156   : > { %14301 = vmatprep.subr.bf16.mxu1 %v15851_v27  ;;  %13944 = vmatprep.subr.bf16.mxu0 %v16277_v56  ;;  %v10697_v29 = vld [vmem:[%s24254_s14 + $0xb0] sm:$0xff]  ;;  %v15890_v27 = vcombine.low %v10766_v44, %v10770_v10  ;;  %v15808_v56 = vcombine.low %v10685_v9, %v10689_v23  ;;  %v10814_v10 = vld [vmem:[%s24254_s14 + $0x458] sm:$0xff] }
0x1157   : > { %v15817_v18 = vcombine.high %v10693_v47, %v10697_v29  ;;  %v10818_v9 = vld [vmem:[%s24254_s14 + $0x478] sm:$0xff]  ;;  %v10733_v23 = vld [vmem:[%s24254_s14 + $0x1d0] sm:$0xff] }
0x1159   : > { %14302 = vmatpush1.bf16.msra.mxu1 %v15850_v55  ;;  %13945 = vmatpush1.bf16.msra.mxu0 %v16276_v4  ;;  %v10701_v55 = vld [vmem:[%s24254_s14 + $0xd0] sm:$0xff]  ;;  %v15898_v4 = vcombine.low %v10774_v16, %v10778_v31  ;;  %v15939_v16 = vcombine.high %v10814_v10, %v10818_v9  ;;  %v10822_v31 = vld [vmem:[%s24254_s14 + $0x498] sm:$0xff] }
0x115a   : > { %14303 = vmatprep.subr.bf16.mxu1 %v15859_v5  ;;  %13946 = vmatprep.subr.bf16.mxu0 %v16285_v19  ;;  %v15816_v5 = vcombine.low %v10693_v47, %v10697_v29  ;;  %v15907_v19 = vcombine.high %v10782_v22, %v10786_v61  ;;  %v10826_v47 = vld [vmem:[%s24254_s14 + $0x4b8] sm:$0xff]  ;;  %v10741_v29 = vld [vmem:[%s24254_s14 + $0x210] sm:$0xff] }
0x115d   : > { %14304 = vmatpush1.bf16.msra.mxu1 %v15858_v60  ;;  %13947 = vmatpush1.bf16.msra.mxu0 %v16284_v58  ;;  %v10713_v60 = vld [vmem:[%s24254_s14 + $0x130] sm:$0xff]  ;;  %v15906_v58 = vcombine.low %v10782_v22, %v10786_v61  ;;  %v10830_v61 = vld [vmem:[%s24254_s14 + $0x4d8] sm:$0xff] }
0x115e   : > { %14305 = vmatprep.subr.bf16.mxu1 %v15867_v24  ;;  %13948 = vmatprep.subr.bf16.mxu0 %v16293_v35  ;;  %v15915_v35 = vcombine.high %v10790_v62, %v10794_v48  ;;  %v15833_v0 = vcombine.high %v10709_v30, %v10713_v60 }
0x1161   : > { %14306 = vmatpush1.bf16.msra.mxu1 %v15866_v49  ;;  %13949 = vmatpush1.bf16.msra.mxu0 %v16292_v12  ;;  %v10721_v49 = vld [vmem:[%s24254_s14 + $0x170] sm:$0xff]  ;;  %v15914_v12 = vcombine.low %v10790_v62, %v10794_v48  ;;  %v10838_v48 = vld [vmem:[%s24254_s14 + $0x518] sm:$0xff] }
0x1162   : > { %14307 = vmatprep.subr.bf16.mxu1 %v15875_v1  ;;  %13950 = vmatprep.subr.bf16.mxu0 %v16301_v6  ;;  %v15832_v1 = vcombine.low %v10709_v30, %v10713_v60  ;;  %v15923_v6 = vcombine.high %v10798_v43, %v10802_v41  ;;  %v15841_v45 = vcombine.high %v10717_v51, %v10721_v49  ;;  %v10842_v30 = vld [vmem:[%s24254_s14 + $0x538] sm:$0xff]  ;;  %v10757_v60 = vld [vmem:[%s24254_s14 + $0x290] sm:$0xff] }
0x1165   : > { %14308 = vmatpush1.bf16.msra.mxu1 %v15874_v20  ;;  %13951 = vmatpush1.bf16.msra.mxu0 %v16300_v32  ;;  %v10729_v20 = vld [vmem:[%s24254_s14 + $0x1b0] sm:$0xff]  ;;  %v15922_v32 = vcombine.low %v10798_v43, %v10802_v41  ;;  %v10846_v41 = vld [vmem:[%s24254_s14 + $0x558] sm:$0xff] }
0x1166   : > { %14309 = vmatprep.subr.bf16.mxu1 %v15883_v26  ;;  %14125 = vmatprep.subr.bf16.mxu0 %v15801_v53  ;;  %v15840_v26 = vcombine.low %v10717_v51, %v10721_v49  ;;  %v15931_v53 = vcombine.high %v10806_v63, %v10810_v2  ;;  %v15849_v44 = vcombine.high %v10725_v15, %v10729_v20  ;;  %v10850_v51 = vld [vmem:[%s24254_s14 + $0x578] sm:$0xff]  ;;  %v10765_v49 = vld [vmem:[%s24254_s14 + $0x2d0] sm:$0xff] }
0x1168   : > { %13953 = vmatmul.mubr.bf16.vlgmr.msra.gmra.mrb[192].mxu0 %v23338_v39 }
0x1169   : > { %14310 = vmatpush1.bf16.msra.mxu1 %v15882_v46  ;;  %14126 = vmatpush1.bf16.msra.mxu0 %v15800_v8  ;;  %v10737_v46 = vld [vmem:[%s24254_s14 + $0x1f0] sm:$0xff]  ;;  %v15930_v8 = vcombine.low %v10806_v63, %v10810_v2  ;;  %v10854_v2 = vld [vmem:[%s24254_s14 + $0x598] sm:$0xff] }
0x116a   : > { %14157 = vmatprep.mubr.bf16.mxu0 %v22694_v28  ;;  %14311 = vmatprep.subr.bf16.mxu1 %v15891_v57  ;;  %v10705_v28 = vld [vmem:[%s24254_s14 + $0xf0] sm:$0xff]  ;;  %v15848_v57 = vcombine.low %v10725_v15, %v10729_v20  ;;  %v10858_v15 = vld [vmem:[%s24254_s14 + $0x5b8] sm:$0xff] }
0x116b   : > { %14127 = vmatprep.subr.bf16.mxu0 %v15809_v14  ;;  %v15825_v21 = vcombine.high %v10701_v55, %v10705_v28  ;;  %v15824_v24 = vcombine.low %v10701_v55, %v10705_v28  ;;  %v15857_v14 = vcombine.high %v10733_v23, %v10737_v46  ;;  %v10834_v55 = vld [vmem:[%s24254_s14 + $0x4f8] sm:$0xff]  ;;  %v10749_v28 = vld [vmem:[%s24254_s14 + $0x250] sm:$0xff] }
0x116c   : > { %v10773_v20 = vld [vmem:[%s24254_s14 + $0x310] sm:$0xff] }
0x116d   : > { %14312 = vmatpush1.bf16.msra.mxu1 %v15890_v27  ;;  %14128 = vmatpush1.bf16.msra.mxu0 %v15808_v56  ;;  %v10745_v27 = vld [vmem:[%s24254_s14 + $0x230] sm:$0xff]  ;;  %v15938_v56 = vcombine.low %v10814_v10, %v10818_v9  ;;  %v10862_v9 = vld [vmem:[%s24254_s14 + $0x5d8] sm:$0xff] }
0x116e   : > { %14313 = vmatprep.subr.bf16.mxu1 %v15899_v54  ;;  %14129 = vmatprep.subr.bf16.mxu0 %v15817_v18  ;;  %v15856_v54 = vcombine.low %v10733_v23, %v10737_v46  ;;  %v15947_v18 = vcombine.high %v10822_v31, %v10826_v47  ;;  %v15865_v22 = vcombine.high %v10741_v29, %v10745_v27  ;;  %v10866_v23 = vld [vmem:[%s24254_s14 + $0x5f8] sm:$0xff]  ;;  %v10781_v46 = vld [vmem:[%s24254_s14 + $0x350] sm:$0xff] }
0x1171   : > { %14314 = vmatpush1.bf16.msra.mxu1 %v15898_v4  ;;  %14130 = vmatpush1.bf16.msra.mxu0 %v15816_v5  ;;  %v10753_v4 = vld [vmem:[%s24254_s14 + $0x270] sm:$0xff]  ;;  %v15946_v5 = vcombine.low %v10822_v31, %v10826_v47  ;;  %v10870_v47 = vld [vmem:[%s24254_s14 + $0x618] sm:$0xff] }
0x1172   : > { %14315 = vmatprep.subr.bf16.mxu1 %v15907_v19  ;;  %14131 = vmatprep.subr.bf16.mxu0 %v15825_v21  ;;  %v15864_v19 = vcombine.low %v10741_v29, %v10745_v27  ;;  %v15955_v21 = vcombine.high %v10830_v61, %v10834_v55  ;;  %v15873_v62 = vcombine.high %v10749_v28, %v10753_v4  ;;  %v10874_v29 = vld [vmem:[%s24254_s14 + $0x638] sm:$0xff]  ;;  %v10789_v27 = vld [vmem:[%s24254_s14 + $0x390] sm:$0xff] }
0x1175   : > { %14316 = vmatpush1.bf16.msra.mxu1 %v15906_v58  ;;  %14132 = vmatpush1.bf16.msra.mxu0 %v15824_v24  ;;  %v10761_v58 = vld [vmem:[%s24254_s14 + $0x2b0] sm:$0xff]  ;;  %v15954_v24 = vcombine.low %v10830_v61, %v10834_v55  ;;  %v10878_v55 = vld [vmem:[%s24254_s14 + $0x658] sm:$0xff] }
0x1176   : > { %14317 = vmatprep.subr.bf16.mxu1 %v15915_v35  ;;  %14133 = vmatprep.subr.bf16.mxu0 %v15833_v0  ;;  %v15872_v35 = vcombine.low %v10749_v28, %v10753_v4  ;;  %v15963_v0 = vcombine.high %v10838_v48, %v10842_v30  ;;  %v15881_v43 = vcombine.high %v10757_v60, %v10761_v58  ;;  %v10882_v28 = vld [vmem:[%s24254_s14 + $0x678] sm:$0xff]  ;;  %v10797_v4 = vld [vmem:[%s24254_s14 + $0x3d0] sm:$0xff] }
0x1179   : > { %14318 = vmatpush1.bf16.msra.mxu1 %v15914_v12  ;;  %14134 = vmatpush1.bf16.msra.mxu0 %v15832_v1  ;;  %v10769_v12 = vld [vmem:[%s24254_s14 + $0x2f0] sm:$0xff]  ;;  %v15962_v1 = vcombine.low %v10838_v48, %v10842_v30  ;;  %v10886_v30 = vld [vmem:[%s24254_s14 + $0x698] sm:$0xff] }
0x117a   : > { %14319 = vmatprep.subr.bf16.mxu1 %v15923_v6  ;;  %14135 = vmatprep.subr.bf16.mxu0 %v15841_v45  ;;  %v15880_v6 = vcombine.low %v10757_v60, %v10761_v58  ;;  %v15971_v45 = vcombine.high %v10846_v41, %v10850_v51  ;;  %v15889_v63 = vcombine.high %v10765_v49, %v10769_v12  ;;  %v10890_v60 = vld [vmem:[%s24254_s14 + $0x6b8] sm:$0xff]  ;;  %v10805_v58 = vld [vmem:[%s24254_s14 + $0x410] sm:$0xff] }
0x117d   : > { %14320 = vmatpush1.bf16.msra.mxu1 %v15922_v32  ;;  %14136 = vmatpush1.bf16.msra.mxu0 %v15840_v26  ;;  %v10777_v32 = vld [vmem:[%s24254_s14 + $0x330] sm:$0xff]  ;;  %v15970_v26 = vcombine.low %v10846_v41, %v10850_v51  ;;  %v10894_v51 = vld [vmem:[%s24254_s14 + $0x6d8] sm:$0xff] }
0x117e   : > { %14330 = vmatprep.subr.bf16.mxu1 %v15931_v53  ;;  %14137 = vmatprep.subr.bf16.mxu0 %v15849_v44  ;;  %v15888_v53 = vcombine.low %v10765_v49, %v10769_v12  ;;  %v15979_v44 = vcombine.high %v10854_v2, %v10858_v15  ;;  %v15897_v10 = vcombine.high %v10773_v20, %v10777_v32  ;;  %v10898_v49 = vld [vmem:[%s24254_s14 + $0x6f8] sm:$0xff]  ;;  %v10813_v12 = vld [vmem:[%s24254_s14 + $0x450] sm:$0xff] }
0x1180   : > { %14322 = vmatmul.mubr.bf16.vlgmr.msra.gmra.mrb[212].mxu1 %v22692_v38 }
0x1181   : > { %14331 = vmatpush1.bf16.msra.mxu1 %v15930_v8  ;;  %14362 = vmatprep.mubr.bf16.mxu1 %v22727_v33  ;;  %v10785_v8 = vld [vmem:[%s24254_s14 + $0x370] sm:$0xff] }
0x1182   : > { %14138 = vmatpush1.bf16.msra.mxu0 %v15848_v57  ;;  %14332 = vmatprep.subr.bf16.mxu1 %v15939_v16  ;;  %v15978_v57 = vcombine.low %v10854_v2, %v10858_v15  ;;  %v15896_v16 = vcombine.low %v10773_v20, %v10777_v32  ;;  %v15905_v31 = vcombine.high %v10781_v46, %v10785_v8  ;;  %v10902_v15 = vld [vmem:[%s24254_s14 + $0x718] sm:$0xff]  ;;  %v10821_v32 = vld [vmem:[%s24254_s14 + $0x490] sm:$0xff] }
0x1183   : > { %14139 = vmatprep.subr.bf16.mxu0 %v15857_v14  ;;  %v15987_v14 = vcombine.high %v10862_v9, %v10866_v23  ;;  %v10906_v20 = vld [vmem:[%s24254_s14 + $0x738] sm:$0xff] }
0x1185   : > { %14333 = vmatpush1.bf16.msra.mxu1 %v15938_v56  ;;  %v10793_v56 = vld [vmem:[%s24254_s14 + $0x3b0] sm:$0xff] }
0x1186   : > { %14140 = vmatpush1.bf16.msra.mxu0 %v15856_v54  ;;  %14334 = vmatprep.subr.bf16.mxu1 %v15947_v18  ;;  %v15986_v54 = vcombine.low %v10862_v9, %v10866_v23  ;;  %v15904_v18 = vcombine.low %v10781_v46, %v10785_v8  ;;  %v15913_v61 = vcombine.high %v10789_v27, %v10793_v56  ;;  %v10910_v23 = vld [vmem:[%s24254_s14 + $0x758] sm:$0xff] }
0x1187   : > { %14141 = vmatprep.subr.bf16.mxu0 %v15865_v22  ;;  %v15995_v22 = vcombine.high %v10870_v47, %v10874_v29  ;;  %v10914_v46 = vld [vmem:[%s24254_s14 + $0x778] sm:$0xff]  ;;  %v16026_v8 = vcombine.low %v10902_v15, %v10906_v20 }
0x1189   : > { %14335 = vmatpush1.bf16.msra.mxu1 %v15946_v5  ;;  %v10801_v5 = vld [vmem:[%s24254_s14 + $0x3f0] sm:$0xff] }
0x118a   : > { %14142 = vmatpush1.bf16.msra.mxu0 %v15864_v19  ;;  %14336 = vmatprep.subr.bf16.mxu1 %v15955_v21  ;;  %v15994_v19 = vcombine.low %v10870_v47, %v10874_v29  ;;  %v15912_v21 = vcombine.low %v10789_v27, %v10793_v56  ;;  %v15921_v48 = vcombine.high %v10797_v4, %v10801_v5  ;;  %v10922_v47 = vld [vmem:[%s24254_s14 + $0x7b8] sm:$0xff]  ;;  %v10837_v29 = vld [vmem:[%s24254_s14 + $0x510] sm:$0xff] }
0x118b   : > { %14143 = vmatprep.subr.bf16.mxu0 %v15873_v62  ;;  %v16003_v62 = vcombine.high %v10878_v55, %v10882_v28  ;;  %v10841_v27 = vld [vmem:[%s24254_s14 + $0x530] sm:$0xff]  ;;  %v16034_v56 = vcombine.low %v10910_v23, %v10914_v46 }
0x118d   : > { %14337 = vmatpush1.bf16.msra.mxu1 %v15954_v24  ;;  %v10809_v24 = vld [vmem:[%s24254_s14 + $0x430] sm:$0xff] }
0x118e   : > { %14144 = vmatpush1.bf16.msra.mxu0 %v15872_v35  ;;  %14338 = vmatprep.subr.bf16.mxu1 %v15963_v0  ;;  %v16002_v35 = vcombine.low %v10878_v55, %v10882_v28  ;;  %v15920_v0 = vcombine.low %v10797_v4, %v10801_v5  ;;  %v15929_v41 = vcombine.high %v10805_v58, %v10809_v24  ;;  %v10930_v55 = vld [vmem:[%s24254_s14 + $0x7f8] sm:$0xff]  ;;  %v10845_v28 = vld [vmem:[%s24254_s14 + $0x550] sm:$0xff] }
0x118f   : > { %14145 = vmatprep.subr.bf16.mxu0 %v15881_v43  ;;  %v16011_v43 = vcombine.high %v10886_v30, %v10890_v60  ;;  %v10849_v4 = vld [vmem:[%s24254_s14 + $0x570] sm:$0xff] }
0x1191   : > { %14339 = vmatpush1.bf16.msra.mxu1 %v15962_v1  ;;  %v10817_v1 = vld [vmem:[%s24254_s14 + $0x470] sm:$0xff] }
0x1192   : > { %14146 = vmatpush1.bf16.msra.mxu0 %v15880_v6  ;;  %14340 = vmatprep.subr.bf16.mxu1 %v15971_v45  ;;  %v16010_v6 = vcombine.low %v10886_v30, %v10890_v60  ;;  %v15928_v45 = vcombine.low %v10805_v58, %v10809_v24  ;;  %v15937_v2 = vcombine.high %v10813_v12, %v10817_v1  ;;  %v10938_v30 = vld [vmem:[%s24254_s14 + $0x838] sm:$0xff]  ;;  %v10853_v60 = vld [vmem:[%s24254_s14 + $0x590] sm:$0xff] }
0x1193   : > { %14147 = vmatprep.subr.bf16.mxu0 %v15889_v63  ;;  %v16019_v63 = vcombine.high %v10894_v51, %v10898_v49  ;;  %v10857_v58 = vld [vmem:[%s24254_s14 + $0x5b0] sm:$0xff] }
0x1195   : > { %14341 = vmatpush1.bf16.msra.mxu1 %v15970_v26  ;;  %v10825_v26 = vld [vmem:[%s24254_s14 + $0x4b0] sm:$0xff] }
0x1196   : > { %14148 = vmatpush1.bf16.msra.mxu0 %v15888_v53  ;;  %14342 = vmatprep.subr.bf16.mxu1 %v15979_v44  ;;  %v16018_v53 = vcombine.low %v10894_v51, %v10898_v49  ;;  %v15936_v44 = vcombine.low %v10813_v12, %v10817_v1  ;;  %v15945_v9 = vcombine.high %v10821_v32, %v10825_v26  ;;  %v10946_v51 = vld [vmem:[%s24254_s14 + $0x878] sm:$0xff]  ;;  %v10861_v49 = vld [vmem:[%s24254_s14 + $0x5d0] sm:$0xff] }
0x1197   : > { %14149 = vmatprep.subr.bf16.mxu0 %v15897_v10  ;;  %v16027_v10 = vcombine.high %v10902_v15, %v10906_v20  ;;  %v10865_v12 = vld [vmem:[%s24254_s14 + $0x5f0] sm:$0xff]  ;;  %v10954_v15 = vld [vmem:[%s24254_s14 + $0x8b8] sm:$0xff] }
0x1198   : > { %v10869_v20 = vld [vmem:[%s24254_s14 + $0x610] sm:$0xff] }
0x1199   : > { %14343 = vmatpush1.bf16.msra.mxu1 %v15978_v57  ;;  %v15944_v57 = vcombine.low %v10821_v32, %v10825_v26  ;;  %v10873_v32 = vld [vmem:[%s24254_s14 + $0x630] sm:$0xff] }
0x119a   : > { %14150 = vmatpush1.bf16.msra.mxu0 %v15896_v16  ;;  %14344 = vmatprep.subr.bf16.mxu1 %v15987_v14  ;;  %v16035_v16 = vcombine.high %v10910_v23, %v10914_v46  ;;  %v10962_v23 = vld [vmem:[%s24254_s14 + $0x8f8] sm:$0xff]  ;;  %v10877_v46 = vld [vmem:[%s24254_s14 + $0x650] sm:$0xff] }
0x119b   : > { %14151 = vmatprep.subr.bf16.mxu0 %v15905_v31  ;;  %v10918_v31 = vld [vmem:[%s24254_s14 + $0x798] sm:$0xff] }
0x119c   : > { %v16042_v5 = vcombine.low %v10918_v31, %v10922_v47 }
0x119d   : > { %14345 = vmatpush1.bf16.msra.mxu1 %v15986_v54 }
0x119e   : > { %14152 = vmatpush1.bf16.msra.mxu0 %v15904_v18  ;;  %14346 = vmatprep.subr.bf16.mxu1 %v15995_v22  ;;  %v16043_v18 = vcombine.high %v10918_v31, %v10922_v47  ;;  %v15961_v22 = vcombine.high %v10837_v29, %v10841_v27  ;;  %v10970_v31 = vld [vmem:[%s24254_s14 + $0x938] sm:$0xff]  ;;  %v10885_v47 = vld [vmem:[%s24254_s14 + $0x690] sm:$0xff] }
0x119f   : > { %14153 = vmatprep.subr.bf16.mxu0 %v15913_v61  ;;  %v10926_v61 = vld [vmem:[%s24254_s14 + $0x7d8] sm:$0xff] }
0x11a0   : > { %v16050_v24 = vcombine.low %v10926_v61, %v10930_v55 }
0x11a1   : > { %14347 = vmatpush1.bf16.msra.mxu1 %v15994_v19  ;;  %v15960_v19 = vcombine.low %v10837_v29, %v10841_v27  ;;  %v10889_v29 = vld [vmem:[%s24254_s14 + $0x6b0] sm:$0xff] }
0x11a2   : > { %14154 = vmatpush1.bf16.msra.mxu0 %v15912_v21  ;;  %14348 = vmatprep.subr.bf16.mxu1 %v16003_v62  ;;  %v16051_v21 = vcombine.high %v10926_v61, %v10930_v55  ;;  %v15969_v62 = vcombine.high %v10845_v28, %v10849_v4  ;;  %v10978_v61 = vld [vmem:[%s24254_s14 + $0x978] sm:$0xff]  ;;  %v10893_v55 = vld [vmem:[%s24254_s14 + $0x6d0] sm:$0xff] }
0x11a3   : > { %14155 = vmatprep.subr.bf16.mxu0 %v15921_v48  ;;  %v10934_v48 = vld [vmem:[%s24254_s14 + $0x818] sm:$0xff] }
0x11a4   : > { %v16058_v1 = vcombine.low %v10934_v48, %v10938_v30 }
0x11a5   : > { %14349 = vmatpush1.bf16.msra.mxu1 %v16002_v35  ;;  %v15968_v35 = vcombine.low %v10845_v28, %v10849_v4  ;;  %v10897_v28 = vld [vmem:[%s24254_s14 + $0x6f0] sm:$0xff] }
0x11a6   : > { %14156 = vmatpush1.bf16.msra.mxu0 %v15920_v0  ;;  %14350 = vmatprep.subr.bf16.mxu1 %v16011_v43  ;;  %v16059_v0 = vcombine.high %v10934_v48, %v10938_v30  ;;  %v15977_v43 = vcombine.high %v10853_v60, %v10857_v58  ;;  %v10986_v48 = vld [vmem:[%s24254_s14 + $0x9b8] sm:$0xff]  ;;  %v10901_v30 = vld [vmem:[%s24254_s14 + $0x710] sm:$0xff] }
0x11a7   : > { %14166 = vmatprep.subr.bf16.mxu0 %v15929_v41  ;;  %v10942_v41 = vld [vmem:[%s24254_s14 + $0x858] sm:$0xff] }
0x11a8   : > { %v16066_v26 = vcombine.low %v10942_v41, %v10946_v51 }
0x11a9   : > { %14158 = vmatmul.mubr.bf16.vlgmr.msra.gmra.mrb[196].mxu0 %v22692_v38  ;;  %14351 = vmatpush1.bf16.msra.mxu1 %v16010_v6  ;;  %v10829_v38 = vld [vmem:[%s24254_s14 + $0x4d0] sm:$0xff]  ;;  %v15976_v6 = vcombine.low %v10853_v60, %v10857_v58 }
0x11aa   : > { %14167 = vmatpush1.bf16.msra.mxu0 %v15928_v45  ;;  %14198 = vmatprep.mubr.bf16.mxu0 %v22727_v33  ;;  %v10833_v33 = vld [vmem:[%s24254_s14 + $0x4f0] sm:$0xff]  ;;  %v16067_v45 = vcombine.high %v10942_v41, %v10946_v51  ;;  %v10994_v41 = vld [vmem:[%s24254_s14 + $0x9f8] sm:$0xff] }
0x11ab   : > { %14352 = vmatprep.subr.bf16.mxu1 %v16019_v63  ;;  %14168 = vmatprep.subr.bf16.mxu0 %v15937_v2  ;;  %v15953_v14 = vcombine.high %v10829_v38, %v10833_v33  ;;  %v15952_v54 = vcombine.low %v10829_v38, %v10833_v33  ;;  %v15985_v63 = vcombine.high %v10861_v49, %v10865_v12  ;;  %v10950_v2 = vld [vmem:[%s24254_s14 + $0x898] sm:$0xff]  ;;  %v10881_v38 = vld [vmem:[%s24254_s14 + $0x670] sm:$0xff] }
0x11ac   : > { %v16074_v33 = vcombine.low %v10950_v2, %v10954_v15  ;;  %v10905_v60 = vld [vmem:[%s24254_s14 + $0x730] sm:$0xff] }
0x11ad   : > { %14353 = vmatpush1.bf16.msra.mxu1 %v16018_v53  ;;  %v15984_v53 = vcombine.low %v10861_v49, %v10865_v12  ;;  %v10909_v51 = vld [vmem:[%s24254_s14 + $0x750] sm:$0xff] }
0x11ae   : > { %14169 = vmatpush1.bf16.msra.mxu0 %v15936_v44  ;;  %14354 = vmatprep.subr.bf16.mxu1 %v16027_v10  ;;  %v16075_v44 = vcombine.high %v10950_v2, %v10954_v15  ;;  %v15993_v10 = vcombine.high %v10869_v20, %v10873_v32  ;;  %v10913_v49 = vld [vmem:[%s24254_s14 + $0x770] sm:$0xff]  ;;  %v11002_v2 = vld [vmem:[%s24254_s14 + $0xa38] sm:$0xff] }
0x11af   : > { %14170 = vmatprep.subr.bf16.mxu0 %v15945_v9  ;;  %v10958_v9 = vld [vmem:[%s24254_s14 + $0x8d8] sm:$0xff]  ;;  %v10917_v15 = vld [vmem:[%s24254_s14 + $0x790] sm:$0xff] }
0x11b0   : > { %v16082_v27 = vcombine.low %v10958_v9, %v10962_v23 }
0x11b1   : > { %14355 = vmatpush1.bf16.msra.mxu1 %v16026_v8  ;;  %v15992_v8 = vcombine.low %v10869_v20, %v10873_v32  ;;  %v10921_v20 = vld [vmem:[%s24254_s14 + $0x7b0] sm:$0xff] }
0x11b2   : > { %14171 = vmatpush1.bf16.msra.mxu0 %v15944_v57  ;;  %14356 = vmatprep.subr.bf16.mxu1 %v16035_v16  ;;  %v16083_v57 = vcombine.high %v10958_v9, %v10962_v23  ;;  %v16001_v16 = vcombine.high %v10877_v46, %v10881_v38  ;;  %v11010_v9 = vld [vmem:[%s24254_s14 + $0xa78] sm:$0xff]  ;;  %v10925_v23 = vld [vmem:[%s24254_s14 + $0x7d0] sm:$0xff] }
0x11b3   : > { %14172 = vmatprep.subr.bf16.mxu0 %v15953_v14  ;;  %v10966_v14 = vld [vmem:[%s24254_s14 + $0x918] sm:$0xff] }
0x11b4   : > { %v16090_v4 = vcombine.low %v10966_v14, %v10970_v31 }
0x11b5   : > { %14357 = vmatpush1.bf16.msra.mxu1 %v16034_v56  ;;  %v16000_v56 = vcombine.low %v10877_v46, %v10881_v38  ;;  %v10929_v46 = vld [vmem:[%s24254_s14 + $0x7f0] sm:$0xff] }
0x11b6   : > { %14173 = vmatpush1.bf16.msra.mxu0 %v15952_v54  ;;  %14358 = vmatprep.subr.bf16.mxu1 %v16043_v18  ;;  %v16091_v54 = vcombine.high %v10966_v14, %v10970_v31  ;;  %v16009_v18 = vcombine.high %v10885_v47, %v10889_v29  ;;  %v11018_v14 = vld [vmem:[%s24254_s14 + $0xab8] sm:$0xff]  ;;  %v10933_v31 = vld [vmem:[%s24254_s14 + $0x810] sm:$0xff] }
0x11b7   : > { %14174 = vmatprep.subr.bf16.mxu0 %v15961_v22  ;;  %v10974_v22 = vld [vmem:[%s24254_s14 + $0x958] sm:$0xff] }
0x11b8   : > { %v16098_v58 = vcombine.low %v10974_v22, %v10978_v61 }
0x11b9   : > { %14359 = vmatpush1.bf16.msra.mxu1 %v16042_v5  ;;  %v16008_v5 = vcombine.low %v10885_v47, %v10889_v29  ;;  %v10937_v47 = vld [vmem:[%s24254_s14 + $0x830] sm:$0xff] }
0x11ba   : > { %14175 = vmatpush1.bf16.msra.mxu0 %v15960_v19  ;;  %14360 = vmatprep.subr.bf16.mxu1 %v16051_v21  ;;  %v16099_v19 = vcombine.high %v10974_v22, %v10978_v61  ;;  %v16017_v21 = vcombine.high %v10893_v55, %v10897_v28  ;;  %v11026_v22 = vld [vmem:[%s24254_s14 + $0xaf8] sm:$0xff]  ;;  %v10941_v61 = vld [vmem:[%s24254_s14 + $0x850] sm:$0xff] }
0x11bb   : > { %14176 = vmatprep.subr.bf16.mxu0 %v15969_v62  ;;  %v10982_v62 = vld [vmem:[%s24254_s14 + $0x998] sm:$0xff] }
0x11bc   : > { %v16106_v12 = vcombine.low %v10982_v62, %v10986_v48 }
0x11bd   : > { %14361 = vmatpush1.bf16.msra.mxu1 %v16050_v24  ;;  %v16016_v24 = vcombine.low %v10893_v55, %v10897_v28  ;;  %v10945_v55 = vld [vmem:[%s24254_s14 + $0x870] sm:$0xff] }
0x11be   : > { %14177 = vmatpush1.bf16.msra.mxu0 %v15968_v35  ;;  %14371 = vmatprep.subr.bf16.mxu1 %v16059_v0  ;;  %v16107_v35 = vcombine.high %v10982_v62, %v10986_v48  ;;  %v16025_v0 = vcombine.high %v10901_v30, %v10905_v60  ;;  %v11034_v62 = vld [vmem:[%s24254_s14 + $0xb38] sm:$0xff]  ;;  %v10949_v48 = vld [vmem:[%s24254_s14 + $0x890] sm:$0xff] }
0x11bf   : > { %14178 = vmatprep.subr.bf16.mxu0 %v15977_v43  ;;  %v10990_v43 = vld [vmem:[%s24254_s14 + $0x9d8] sm:$0xff] }
0x11c0   : > { %14363 = vmatmul.mubr.bf16.vlgmr.msra.gmra.mrb[212].mxu1 %v22900_v42  ;;  %v16114_v32 = vcombine.low %v10990_v43, %v10994_v41 }
0x11c1   : > { %14372 = vmatpush1.bf16.msra.mxu1 %v16058_v1  ;;  %14403 = vmatprep.mubr.bf16.mxu1 %v22979_v50  ;;  %v16024_v1 = vcombine.low %v10901_v30, %v10905_v60  ;;  %v10953_v30 = vld [vmem:[%s24254_s14 + $0x8b0] sm:$0xff] }
0x11c2   : > { %14179 = vmatpush1.bf16.msra.mxu0 %v15976_v6  ;;  %14373 = vmatprep.subr.bf16.mxu1 %v16067_v45  ;;  %v16115_v6 = vcombine.high %v10990_v43, %v10994_v41  ;;  %v16033_v45 = vcombine.high %v10909_v51, %v10913_v49  ;;  %v11042_v43 = vld [vmem:[%s24254_s14 + $0xb78] sm:$0xff] }
0x11c3   : > { %14180 = vmatprep.subr.bf16.mxu0 %v15985_v63  ;;  %v10998_v63 = vld [vmem:[%s24254_s14 + $0xa18] sm:$0xff] }
0x11c4   : > { %v16122_v38 = vcombine.low %v10998_v63, %v11002_v2 }
0x11c5   : > { %14374 = vmatpush1.bf16.msra.mxu1 %v16066_v26  ;;  %v16032_v26 = vcombine.low %v10909_v51, %v10913_v49  ;;  %v16072_v51 = vcombine.low %v10949_v48, %v10953_v30 }
0x11c6   : > { %14181 = vmatpush1.bf16.msra.mxu0 %v15984_v53  ;;  %14375 = vmatprep.subr.bf16.mxu1 %v16075_v44  ;;  %v16123_v53 = vcombine.high %v10998_v63, %v11002_v2  ;;  %v16041_v44 = vcombine.high %v10917_v15, %v10921_v20  ;;  %v10969_v63 = vld [vmem:[%s24254_s14 + $0x930] sm:$0xff] }
0x11c7   : > { %14182 = vmatprep.subr.bf16.mxu0 %v15993_v10  ;;  %v11006_v10 = vld [vmem:[%s24254_s14 + $0xa58] sm:$0xff] }
0x11c8   : > { %v16130_v29 = vcombine.low %v11006_v10, %v11010_v9 }
0x11c9   : > { %14376 = vmatpush1.bf16.msra.mxu1 %v16074_v33  ;;  %v16040_v33 = vcombine.low %v10917_v15, %v10921_v20 }
0x11ca   : > { %14183 = vmatpush1.bf16.msra.mxu0 %v15992_v8  ;;  %14377 = vmatprep.subr.bf16.mxu1 %v16083_v57  ;;  %v16131_v8 = vcombine.high %v11006_v10, %v11010_v9  ;;  %v16049_v57 = vcombine.high %v10925_v23, %v10929_v46  ;;  %v10977_v10 = vld [vmem:[%s24254_s14 + $0x970] sm:$0xff] }
0x11cb   : > { %14184 = vmatprep.subr.bf16.mxu0 %v16001_v16  ;;  %v11014_v16 = vld [vmem:[%s24254_s14 + $0xa98] sm:$0xff] }
0x11cc   : > { %v16138_v28 = vcombine.low %v11014_v16, %v11018_v14 }
0x11cd   : > { %14378 = vmatpush1.bf16.msra.mxu1 %v16082_v27  ;;  %v16048_v27 = vcombine.low %v10925_v23, %v10929_v46 }
0x11ce   : > { %14185 = vmatpush1.bf16.msra.mxu0 %v16000_v56  ;;  %14379 = vmatprep.subr.bf16.mxu1 %v16091_v54  ;;  %v16139_v56 = vcombine.high %v11014_v16, %v11018_v14  ;;  %v16057_v54 = vcombine.high %v10933_v31, %v10937_v47  ;;  %v10985_v16 = vld [vmem:[%s24254_s14 + $0x9b0] sm:$0xff] }
0x11cf   : > { %14186 = vmatprep.subr.bf16.mxu0 %v16009_v18  ;;  %v11022_v18 = vld [vmem:[%s24254_s14 + $0xad8] sm:$0xff] }
0x11d0   : > { %v16146_v60 = vcombine.low %v11022_v18, %v11026_v22 }
0x11d1   : > { %14380 = vmatpush1.bf16.msra.mxu1 %v16090_v4  ;;  %v16056_v4 = vcombine.low %v10933_v31, %v10937_v47 }
0x11d2   : > { %14187 = vmatpush1.bf16.msra.mxu0 %v16008_v5  ;;  %14381 = vmatprep.subr.bf16.mxu1 %v16099_v19  ;;  %v16147_v5 = vcombine.high %v11022_v18, %v11026_v22  ;;  %v16065_v19 = vcombine.high %v10941_v61, %v10945_v55  ;;  %v10993_v18 = vld [vmem:[%s24254_s14 + $0x9f0] sm:$0xff] }
0x11d3   : > { %14188 = vmatprep.subr.bf16.mxu0 %v16017_v21  ;;  %v11030_v21 = vld [vmem:[%s24254_s14 + $0xb18] sm:$0xff] }
0x11d4   : > { %v16154_v41 = vcombine.low %v11030_v21, %v11034_v62 }
0x11d5   : > { %14382 = vmatpush1.bf16.msra.mxu1 %v16098_v58  ;;  %v16064_v58 = vcombine.low %v10941_v61, %v10945_v55 }
0x11d6   : > { %14189 = vmatpush1.bf16.msra.mxu0 %v16016_v24  ;;  %14383 = vmatprep.subr.bf16.mxu1 %v16107_v35  ;;  %v16155_v24 = vcombine.high %v11030_v21, %v11034_v62  ;;  %v16073_v35 = vcombine.high %v10949_v48, %v10953_v30  ;;  %v11001_v21 = vld [vmem:[%s24254_s14 + $0xa30] sm:$0xff] }
0x11d7   : > { %14190 = vmatprep.subr.bf16.mxu0 %v16025_v0  ;;  %v11038_v0 = vld [vmem:[%s24254_s14 + $0xb58] sm:$0xff] }
0x11d8   : > { %v16163_v49 = vcombine.high %v11038_v0, %v11042_v43  ;;  %v16162_v2 = vcombine.low %v11038_v0, %v11042_v43  ;;  %v11009_v0 = vld [vmem:[%s24254_s14 + $0xa70] sm:$0xff] }
0x11d9   : > { %14384 = vmatpush1.bf16.msra.mxu1 %v16106_v12 }
0x11da   : > { %14191 = vmatpush1.bf16.msra.mxu0 %v16024_v1  ;;  %14385 = vmatprep.subr.bf16.mxu1 %v16115_v6  ;;  %v11046_v1 = vld [vmem:[%s24254_s14 + $0xb98] sm:$0xff] }
0x11db   : > { %14192 = vmatprep.subr.bf16.mxu0 %v16033_v45  ;;  %v11050_v6 = vld [vmem:[%s24254_s14 + $0xbb8] sm:$0xff]  ;;  %v10965_v45 = vld [vmem:[%s24254_s14 + $0x910] sm:$0xff] }
0x11dc   : > { %v16171_v20 = vcombine.high %v11046_v1, %v11050_v6  ;;  %v16170_v9 = vcombine.low %v11046_v1, %v11050_v6  ;;  %v16088_v23 = vcombine.low %v10965_v45, %v10969_v63  ;;  %v11017_v1 = vld [vmem:[%s24254_s14 + $0xab0] sm:$0xff] }
0x11dd   : > { %14386 = vmatpush1.bf16.msra.mxu1 %v16114_v32  ;;  %v16089_v32 = vcombine.high %v10965_v45, %v10969_v63 }
0x11de   : > { %14193 = vmatpush1.bf16.msra.mxu0 %v16032_v26  ;;  %14387 = vmatprep.subr.bf16.mxu1 %v16123_v53  ;;  %v11054_v26 = vld [vmem:[%s24254_s14 + $0xbd8] sm:$0xff] }
0x11df   : > { %14194 = vmatprep.subr.bf16.mxu0 %v16041_v44  ;;  %v11058_v53 = vld [vmem:[%s24254_s14 + $0xbf8] sm:$0xff]  ;;  %v10973_v44 = vld [vmem:[%s24254_s14 + $0x950] sm:$0xff] }
0x11e0   : > { %v16179_v46 = vcombine.high %v11054_v26, %v11058_v53  ;;  %v16178_v14 = vcombine.low %v11054_v26, %v11058_v53  ;;  %v16096_v31 = vcombine.low %v10973_v44, %v10977_v10  ;;  %v11025_v26 = vld [vmem:[%s24254_s14 + $0xaf0] sm:$0xff] }
0x11e1   : > { %14388 = vmatpush1.bf16.msra.mxu1 %v16122_v38  ;;  %v16097_v38 = vcombine.high %v10973_v44, %v10977_v10 }
0x11e2   : > { %14195 = vmatpush1.bf16.msra.mxu0 %v16040_v33  ;;  %14389 = vmatprep.subr.bf16.mxu1 %v16131_v8  ;;  %v11062_v33 = vld [vmem:[%s24254_s14 + $0xc18] sm:$0xff] }
0x11e3   : > { %14196 = vmatprep.subr.bf16.mxu0 %v16049_v57  ;;  %v11066_v8 = vld [vmem:[%s24254_s14 + $0xc38] sm:$0xff]  ;;  %v10981_v57 = vld [vmem:[%s24254_s14 + $0x990] sm:$0xff] }
0x11e4   : > { %v16187_v47 = vcombine.high %v11062_v33, %v11066_v8  ;;  %v16186_v22 = vcombine.low %v11062_v33, %v11066_v8  ;;  %v16104_v61 = vcombine.low %v10981_v57, %v10985_v16  ;;  %v11033_v33 = vld [vmem:[%s24254_s14 + $0xb30] sm:$0xff] }
0x11e5   : > { %14390 = vmatpush1.bf16.msra.mxu1 %v16130_v29  ;;  %v16105_v29 = vcombine.high %v10981_v57, %v10985_v16 }
0x11e6   : > { %14197 = vmatpush1.bf16.msra.mxu0 %v16048_v27  ;;  %14391 = vmatprep.subr.bf16.mxu1 %v16139_v56  ;;  %v11070_v27 = vld [vmem:[%s24254_s14 + $0xc58] sm:$0xff] }
0x11e7   : > { %14207 = vmatprep.subr.bf16.mxu0 %v16057_v54  ;;  %v11074_v56 = vld [vmem:[%s24254_s14 + $0xc78] sm:$0xff]  ;;  %v10989_v54 = vld [vmem:[%s24254_s14 + $0x9d0] sm:$0xff] }
0x11e8   : > { %v16195_v55 = vcombine.high %v11070_v27, %v11074_v56  ;;  %v16194_v62 = vcombine.low %v11070_v27, %v11074_v56  ;;  %v16112_v48 = vcombine.low %v10989_v54, %v10993_v18  ;;  %v11037_v56 = vld [vmem:[%s24254_s14 + $0xb50] sm:$0xff] }
0x11e9   : > { %14199 = vmatmul.mubr.bf16.vlgmr.msra.gmra.mrb[196].mxu0 %v22900_v42  ;;  %14392 = vmatpush1.bf16.msra.mxu1 %v16138_v28  ;;  %v10957_v42 = vld [vmem:[%s24254_s14 + $0x8d0] sm:$0xff]  ;;  %v16113_v28 = vcombine.high %v10989_v54, %v10993_v18 }
0x11ea   : > { %14208 = vmatpush1.bf16.msra.mxu0 %v16056_v4  ;;  %14239 = vmatprep.mubr.bf16.mxu0 %v22979_v50  ;;  %v10961_v50 = vld [vmem:[%s24254_s14 + $0x8f0] sm:$0xff]  ;;  %v11078_v4 = vld [vmem:[%s24254_s14 + $0xc98] sm:$0xff] }
0x11eb   : > { %14393 = vmatprep.subr.bf16.mxu1 %v16147_v5  ;;  %14209 = vmatprep.subr.bf16.mxu0 %v16065_v19  ;;  %v16081_v12 = vcombine.high %v10957_v42, %v10961_v50  ;;  %v16080_v15 = vcombine.low %v10957_v42, %v10961_v50  ;;  %v11082_v5 = vld [vmem:[%s24254_s14 + $0xcb8] sm:$0xff]  ;;  %v10997_v19 = vld [vmem:[%s24254_s14 + $0xa10] sm:$0xff] }
0x11ec   : > { %v16203_v30 = vcombine.high %v11078_v4, %v11082_v5  ;;  %v16202_v43 = vcombine.low %v11078_v4, %v11082_v5  ;;  %v16120_v42 = vcombine.low %v10997_v19, %v11001_v21  ;;  %v11041_v54 = vld [vmem:[%s24254_s14 + $0xb70] sm:$0xff]  ;;  %v11126_v5 = vld [vmem:[%s24254_s14 + $0xe18] sm:$0xff] }
0x11ed   : > { %14394 = vmatpush1.bf16.msra.mxu1 %v16146_v60  ;;  %v16121_v60 = vcombine.high %v10997_v19, %v11001_v21  ;;  %v16161_v4 = vcombine.high %v11037_v56, %v11041_v54  ;;  %v11130_v19 = vld [vmem:[%s24254_s14 + $0xe38] sm:$0xff]  ;;  %v11045_v21 = vld [vmem:[%s24254_s14 + $0xb90] sm:$0xff] }
0x11ee   : > { %14210 = vmatpush1.bf16.msra.mxu0 %v16064_v58  ;;  %14395 = vmatprep.subr.bf16.mxu1 %v16155_v24  ;;  %v11086_v58 = vld [vmem:[%s24254_s14 + $0xcd8] sm:$0xff] }
0x11ef   : > { %14211 = vmatprep.subr.bf16.mxu0 %v16073_v35  ;;  %v11090_v24 = vld [vmem:[%s24254_s14 + $0xcf8] sm:$0xff]  ;;  %v11005_v35 = vld [vmem:[%s24254_s14 + $0xa50] sm:$0xff] }
0x11f0   : > { %v16211_v50 = vcombine.high %v11086_v58, %v11090_v24  ;;  %v16210_v6 = vcombine.low %v11086_v58, %v11090_v24  ;;  %v16128_v45 = vcombine.low %v11005_v35, %v11009_v0  ;;  %v11134_v24 = vld [vmem:[%s24254_s14 + $0xe58] sm:$0xff] }
0x11f1   : > { %14396 = vmatpush1.bf16.msra.mxu1 %v16154_v41  ;;  %v16129_v41 = vcombine.high %v11005_v35, %v11009_v0  ;;  %v11138_v35 = vld [vmem:[%s24254_s14 + $0xe78] sm:$0xff]  ;;  %v11053_v0 = vld [vmem:[%s24254_s14 + $0xbd0] sm:$0xff] }
0x11f2   : > { %14212 = vmatpush1.bf16.msra.mxu0 %v16072_v51  ;;  %14397 = vmatprep.subr.bf16.mxu1 %v16163_v49  ;;  %v11094_v51 = vld [vmem:[%s24254_s14 + $0xd18] sm:$0xff] }
0x11f3   : > { %14213 = vmatprep.subr.bf16.mxu0 %v16081_v12  ;;  %v11098_v49 = vld [vmem:[%s24254_s14 + $0xd38] sm:$0xff]  ;;  %v11013_v12 = vld [vmem:[%s24254_s14 + $0xa90] sm:$0xff] }
0x11f4   : > { %v16219_v63 = vcombine.high %v11094_v51, %v11098_v49  ;;  %v16218_v53 = vcombine.low %v11094_v51, %v11098_v49  ;;  %v16136_v44 = vcombine.low %v11013_v12, %v11017_v1  ;;  %v11142_v49 = vld [vmem:[%s24254_s14 + $0xe98] sm:$0xff] }
0x11f5   : > { %14398 = vmatpush1.bf16.msra.mxu1 %v16162_v2  ;;  %v16137_v2 = vcombine.high %v11013_v12, %v11017_v1  ;;  %v11146_v12 = vld [vmem:[%s24254_s14 + $0xeb8] sm:$0xff]  ;;  %v11061_v1 = vld [vmem:[%s24254_s14 + $0xc10] sm:$0xff] }
0x11f6   : > { %14214 = vmatpush1.bf16.msra.mxu0 %v16080_v15  ;;  %14399 = vmatprep.subr.bf16.mxu1 %v16171_v20  ;;  %v11102_v15 = vld [vmem:[%s24254_s14 + $0xd58] sm:$0xff] }
0x11f7   : > { %14215 = vmatprep.subr.bf16.mxu0 %v16089_v32  ;;  %v11106_v20 = vld [vmem:[%s24254_s14 + $0xd78] sm:$0xff]  ;;  %v11021_v32 = vld [vmem:[%s24254_s14 + $0xad0] sm:$0xff] }
0x11f8   : > { %v16227_v10 = vcombine.high %v11102_v15, %v11106_v20  ;;  %v16226_v8 = vcombine.low %v11102_v15, %v11106_v20  ;;  %v16144_v57 = vcombine.low %v11021_v32, %v11025_v26  ;;  %v11150_v20 = vld [vmem:[%s24254_s14 + $0xed8] sm:$0xff] }
0x11f9   : > { %14400 = vmatpush1.bf16.msra.mxu1 %v16170_v9  ;;  %v16145_v9 = vcombine.high %v11021_v32, %v11025_v26  ;;  %v11154_v32 = vld [vmem:[%s24254_s14 + $0xef8] sm:$0xff]  ;;  %v11069_v26 = vld [vmem:[%s24254_s14 + $0xc50] sm:$0xff] }
0x11fa   : > { %14216 = vmatpush1.bf16.msra.mxu0 %v16088_v23  ;;  %14401 = vmatprep.subr.bf16.mxu1 %v16179_v46  ;;  %v11110_v23 = vld [vmem:[%s24254_s14 + $0xd98] sm:$0xff] }
0x11fb   : > { %14217 = vmatprep.subr.bf16.mxu0 %v16097_v38  ;;  %v11114_v46 = vld [vmem:[%s24254_s14 + $0xdb8] sm:$0xff]  ;;  %v11029_v38 = vld [vmem:[%s24254_s14 + $0xb10] sm:$0xff] }
0x11fc   : > { %v16235_v16 = vcombine.high %v11110_v23, %v11114_v46 }
0x11fd   : > { %14402 = vmatpush1.bf16.msra.mxu1 %v16178_v14 }
0x11fe   : > { %14218 = vmatpush1.bf16.msra.mxu0 %v16096_v31  ;;  %14412 = vmatprep.subr.bf16.mxu1 %v16187_v47  ;;  %v16153_v31 = vcombine.high %v11029_v38, %v11033_v33  ;;  %v11118_v47 = vld [vmem:[%s24254_s14 + $0xdd8] sm:$0xff] }
0x11ff   : > { %14219 = vmatprep.subr.bf16.mxu0 %v16105_v29  ;;  %v11122_v29 = vld [vmem:[%s24254_s14 + $0xdf8] sm:$0xff] }
0x1200   : > { %14404 = vmatmul.mubr.bf16.vlgmr.msra.gmra.mrb[212].mxu1 %v23104_v40 }
0x1201   : > { %14413 = vmatpush1.bf16.msra.mxu1 %v16186_v22  ;;  %14444 = vmatprep.mubr.bf16.mxu1 %v23346_v52  ;;  %v16234_v22 = vcombine.low %v11110_v23, %v11114_v46  ;;  %v11158_v46 = vld [vmem:[%s24254_s14 + $0xf18] sm:$0xff] }
0x1202   : > { %14220 = vmatpush1.bf16.msra.mxu0 %v16104_v61  ;;  %14414 = vmatprep.subr.bf16.mxu1 %v16195_v55  ;;  %v16152_v55 = vcombine.low %v11029_v38, %v11033_v33  ;;  %v11162_v38 = vld [vmem:[%s24254_s14 + $0xf38] sm:$0xff]  ;;  %v11077_v33 = vld [vmem:[%s24254_s14 + $0xc90] sm:$0xff] }
0x1203   : > { %14221 = vmatprep.subr.bf16.mxu0 %v16113_v28  ;;  %v16243_v28 = vcombine.high %v11118_v47, %v11122_v29 }
0x1205   : > { %14415 = vmatpush1.bf16.msra.mxu1 %v16194_v62  ;;  %v11049_v62 = vld [vmem:[%s24254_s14 + $0xbb0] sm:$0xff] }
0x1206   : > { %14222 = vmatpush1.bf16.msra.mxu0 %v16112_v48  ;;  %14416 = vmatprep.subr.bf16.mxu1 %v16203_v30  ;;  %v16242_v48 = vcombine.low %v11118_v47, %v11122_v29  ;;  %v16160_v30 = vcombine.low %v11037_v56, %v11041_v54  ;;  %v16169_v58 = vcombine.high %v11045_v21, %v11049_v62  ;;  %v11166_v29 = vld [vmem:[%s24254_s14 + $0xf58] sm:$0xff] }
0x1207   : > { %14223 = vmatprep.subr.bf16.mxu0 %v16121_v60  ;;  %v16251_v60 = vcombine.high %v11126_v5, %v11130_v19  ;;  %v11170_v56 = vld [vmem:[%s24254_s14 + $0xf78] sm:$0xff]  ;;  %v16282_v54 = vcombine.low %v11158_v46, %v11162_v38 }
0x1209   : > { %14417 = vmatpush1.bf16.msra.mxu1 %v16202_v43  ;;  %v11057_v43 = vld [vmem:[%s24254_s14 + $0xbf0] sm:$0xff] }
0x120a   : > { %14224 = vmatpush1.bf16.msra.mxu0 %v16120_v42  ;;  %14418 = vmatprep.subr.bf16.mxu1 %v16211_v50  ;;  %v16250_v42 = vcombine.low %v11126_v5, %v11130_v19  ;;  %v16168_v50 = vcombine.low %v11045_v21, %v11049_v62  ;;  %v16177_v51 = vcombine.high %v11053_v0, %v11057_v43  ;;  %v11097_v5 = vld [vmem:[%s24254_s14 + $0xd30] sm:$0xff] }
0x120b   : > { %14225 = vmatprep.subr.bf16.mxu0 %v16129_v41  ;;  %v16259_v41 = vcombine.high %v11134_v24, %v11138_v35  ;;  %v16290_v19 = vcombine.low %v11166_v29, %v11170_v56 }
0x120d   : > { %14419 = vmatpush1.bf16.msra.mxu1 %v16210_v6  ;;  %v11065_v6 = vld [vmem:[%s24254_s14 + $0xc30] sm:$0xff] }
0x120e   : > { %14226 = vmatpush1.bf16.msra.mxu0 %v16128_v45  ;;  %14420 = vmatprep.subr.bf16.mxu1 %v16219_v63  ;;  %v16258_v45 = vcombine.low %v11134_v24, %v11138_v35  ;;  %v16176_v63 = vcombine.low %v11053_v0, %v11057_v43  ;;  %v16185_v15 = vcombine.high %v11061_v1, %v11065_v6  ;;  %v11105_v24 = vld [vmem:[%s24254_s14 + $0xd70] sm:$0xff] }
0x120f   : > { %14227 = vmatprep.subr.bf16.mxu0 %v16137_v2  ;;  %v16267_v2 = vcombine.high %v11142_v49, %v11146_v12 }
0x1211   : > { %14421 = vmatpush1.bf16.msra.mxu1 %v16218_v53  ;;  %v11073_v53 = vld [vmem:[%s24254_s14 + $0xc70] sm:$0xff] }
0x1212   : > { %14228 = vmatpush1.bf16.msra.mxu0 %v16136_v44  ;;  %14422 = vmatprep.subr.bf16.mxu1 %v16227_v10  ;;  %v16266_v44 = vcombine.low %v11142_v49, %v11146_v12  ;;  %v16184_v10 = vcombine.low %v11061_v1, %v11065_v6  ;;  %v16193_v23 = vcombine.high %v11069_v26, %v11073_v53 }
0x1213   : > { %v24002_v14 = vpop.f32.mrb[208].mxu1  ;;  %14229 = vmatprep.subr.bf16.mxu0 %v16145_v9  ;;  %v16275_v9 = vcombine.high %v11150_v20, %v11154_v32 }
0x1214   : > { %v24010_v27 = vpop.f32.mrb[209].mxu1 }
0x1215   : > { %14423 = vmatpush1.bf16.msra.mxu1 %v16226_v8  ;;  %v14122_v18 = vpop.f32.mrb[210].mxu1  ;;  %v11081_v8 = vld [vmem:[%s24254_s14 + $0xcb0] sm:$0xff] }
0x1216   : > { %14230 = vmatpush1.bf16.msra.mxu0 %v16144_v57  ;;  %v14123_v61 = vpop.f32.mrb[211].mxu1  ;;  %14424 = vmatprep.subr.bf16.mxu1 %v16235_v16  ;;  %v16274_v57 = vcombine.low %v11150_v20, %v11154_v32  ;;  %v16192_v16 = vcombine.low %v11069_v26, %v11073_v53  ;;  %v16201_v47 = vcombine.high %v11077_v33, %v11081_v8  ;;  %v11125_v26 = vld [vmem:[%s24254_s14 + $0xe10] sm:$0xff] }
0x1217   : > { %14231 = vmatprep.subr.bf16.mxu0 %v16153_v31  ;;  %v16283_v31 = vcombine.high %v11158_v46, %v11162_v38  ;;  %v16200_v18 = vcombine.low %v11077_v33, %v11081_v8  ;;  %v11129_v53 = vld [vmem:[%s24254_s14 + $0xe30] sm:$0xff] }
0x1218   : > { %v16248_v46 = vcombine.low %v11125_v26, %v11129_v53  ;;  %v11141_v33 = vld [vmem:[%s24254_s14 + $0xe90] sm:$0xff] }
0x1219   : > { %14425 = vmatpush1.bf16.msra.mxu1 %v16234_v22  ;;  %v16291_v22 = vcombine.high %v11166_v29, %v11170_v56  ;;  %v11145_v8 = vld [vmem:[%s24254_s14 + $0xeb0] sm:$0xff] }
0x121a   : > { %14232 = vmatpush1.bf16.msra.mxu0 %v16152_v55  ;;  %14426 = vmatprep.subr.bf16.mxu1 %v16243_v28  ;;  %v11174_v55 = vld [vmem:[%s24254_s14 + $0xf98] sm:$0xff]  ;;  %v16264_v29 = vcombine.low %v11141_v33, %v11145_v8 }
0x121b   : > { %14233 = vmatprep.subr.bf16.mxu0 %v16161_v4  ;;  %v11178_v28 = vld [vmem:[%s24254_s14 + $0xfb8] sm:$0xff]  ;;  %v11093_v4 = vld [vmem:[%s24254_s14 + $0xd10] sm:$0xff] }
0x121c   : > { %v16299_v62 = vcombine.high %v11174_v55, %v11178_v28  ;;  %v16298_v35 = vcombine.low %v11174_v55, %v11178_v28  ;;  %v16216_v0 = vcombine.low %v11093_v4, %v11097_v5 }
0x121d   : > { %14427 = vmatpush1.bf16.msra.mxu1 %v16242_v48  ;;  %v16217_v48 = vcombine.high %v11093_v4, %v11097_v5  ;;  %v11195_v4 = vld [vmem:[%s24255_s15] sm:$0xff]  ;;  %v11173_v5 = vld [vmem:[%s24254_s14 + $0xf90] sm:$0xff] }
0x121e   : > { %14234 = vmatpush1.bf16.msra.mxu0 %v16160_v30  ;;  %14428 = vmatprep.subr.bf16.mxu1 %v16251_v60  ;;  %v11182_v30 = vld [vmem:[%s24254_s14 + $0xfd8] sm:$0xff] }
0x121f   : > { %14235 = vmatprep.subr.bf16.mxu0 %v16169_v58  ;;  %v11186_v60 = vld [vmem:[%s24254_s14 + $0xff8] sm:$0xff]  ;;  %v11101_v58 = vld [vmem:[%s24254_s14 + $0xd50] sm:$0xff] }
0x1220   : > { %v16307_v43 = vcombine.high %v11182_v30, %v11186_v60  ;;  %v16224_v49 = vcombine.low %v11101_v58, %v11105_v24 }
0x1221   : > { %14429 = vmatpush1.bf16.msra.mxu1 %v16250_v42  ;;  %v16225_v42 = vcombine.high %v11101_v58, %v11105_v24  ;;  %v11185_v58 = vld [vmem:[%s24254_s14 + $0xff0] sm:$0xff]  ;;  %v11212_v24 = vrot.slane %v11195_v4, %v21667_v36 }
0x1222   : > { %14236 = vmatpush1.bf16.msra.mxu0 %v16168_v50  ;;  %14430 = vmatprep.subr.bf16.mxu1 %v16259_v41  ;;  %v11109_v50 = vld [vmem:[%s24254_s14 + $0xd90] sm:$0xff] }
0x1223   : > { %14237 = vmatprep.subr.bf16.mxu0 %v16177_v51  ;;  %v11113_v41 = vld [vmem:[%s24254_s14 + $0xdb0] sm:$0xff]  ;;  %v16306_v51 = vcombine.low %v11182_v30, %v11186_v60 }
0x1224   : > { %v16233_v1 = vcombine.high %v11109_v50, %v11113_v41  ;;  %v16232_v20 = vcombine.low %v11109_v50, %v11113_v41  ;;  %v11181_v60 = vld [vmem:[%s24254_s14 + $0xfd0] sm:$0xff] }
0x1225   : > { %14431 = vmatpush1.bf16.msra.mxu1 %v16258_v45  ;;  %v11117_v45 = vld [vmem:[%s24254_s14 + $0xdd0] sm:$0xff] }
0x1226   : > { %14238 = vmatpush1.bf16.msra.mxu0 %v16176_v63  ;;  %14432 = vmatprep.subr.bf16.mxu1 %v16267_v2  ;;  %v11121_v63 = vld [vmem:[%s24254_s14 + $0xdf0] sm:$0xff] }
0x1227   : > { %14248 = vmatprep.subr.bf16.mxu0 %v16185_v15  ;;  %v16241_v32 = vcombine.high %v11117_v45, %v11121_v63 }
0x1229   : > { %14240 = vmatmul.mubr.bf16.vlgmr.msra.gmra.mrb[196].mxu0 %v23104_v40  ;;  %14433 = vmatpush1.bf16.msra.mxu1 %v16266_v44  ;;  %v11085_v40 = vld [vmem:[%s24254_s14 + $0xcd0] sm:$0xff]  ;;  %v16240_v44 = vcombine.low %v11117_v45, %v11121_v63 }
0x122a   : > { %14249 = vmatpush1.bf16.msra.mxu0 %v16184_v10  ;;  %14280 = vmatprep.mubr.bf16.mxu0 %v23346_v52  ;;  %v11089_v52 = vld [vmem:[%s24254_s14 + $0xcf0] sm:$0xff]  ;;  %v16249_v10 = vcombine.high %v11125_v26, %v11129_v53  ;;  %v11228_v26 = vrot.slane %v11195_v4, %v8832_v37  ;;  %v11216_v53 = vrot.slane %v11195_v4, %v8820_v59 }
0x122b   : > { %14434 = vmatprep.subr.bf16.mxu1 %v16275_v9  ;;  %14250 = vmatprep.subr.bf16.mxu0 %v16193_v23  ;;  %v16209_v61 = vcombine.high %v11085_v40, %v11089_v52  ;;  %v16208_v21 = vcombine.low %v11085_v40, %v11089_v52  ;;  %v11133_v9 = vld [vmem:[%s24254_s14 + $0xe50] sm:$0xff] }
0x122c   : > { %v11137_v23 = vld [vmem:[%s24254_s14 + $0xe70] sm:$0xff] }
0x122d   : > { %14435 = vmatpush1.bf16.msra.mxu1 %v16274_v57  ;;  %v16257_v38 = vcombine.high %v11133_v9, %v11137_v23  ;;  %v16256_v57 = vcombine.low %v11133_v9, %v11137_v23  ;;  %v11157_v40 = vld [vmem:[%s24254_s14 + $0xf10] sm:$0xff] }
0x122e   : > { %14251 = vmatpush1.bf16.msra.mxu0 %v16192_v16  ;;  %14436 = vmatprep.subr.bf16.mxu1 %v16283_v31  ;;  %v16265_v16 = vcombine.high %v11141_v33, %v11145_v8  ;;  %v11149_v31 = vld [vmem:[%s24254_s14 + $0xed0] sm:$0xff] }
0x122f   : > { %14252 = vmatprep.subr.bf16.mxu0 %v16201_v47  ;;  %v11153_v47 = vld [vmem:[%s24254_s14 + $0xef0] sm:$0xff] }
0x1230   : > { %v16273_v56 = vcombine.high %v11149_v31, %v11153_v47  ;;  %v11161_v52 = vld [vmem:[%s24254_s14 + $0xf30] sm:$0xff] }
0x1231   : > { %14437 = vmatpush1.bf16.msra.mxu1 %v16282_v54  ;;  %v16272_v54 = vcombine.low %v11149_v31, %v11153_v47  ;;  %v16280_v55 = vcombine.low %v11157_v40, %v11161_v52 }
0x1232   : > { %14253 = vmatpush1.bf16.msra.mxu0 %v16200_v18  ;;  %14438 = vmatprep.subr.bf16.mxu1 %v16291_v22  ;;  %v16281_v18 = vcombine.high %v11157_v40, %v11161_v52  ;;  %v11165_v22 = vld [vmem:[%s24254_s14 + $0xf50] sm:$0xff] }
0x1233   : > { %14254 = vmatprep.subr.bf16.mxu0 %v16209_v61  ;;  %v11169_v61 = vld [vmem:[%s24254_s14 + $0xf70] sm:$0xff] }
0x1234   : > { %v16289_v28 = vcombine.high %v11165_v22, %v11169_v61 }
0x1235   : > { %14439 = vmatpush1.bf16.msra.mxu1 %v16290_v19  ;;  %v11177_v19 = vld [vmem:[%s24254_s14 + $0xfb0] sm:$0xff] }
0x1236   : > { %14255 = vmatpush1.bf16.msra.mxu0 %v16208_v21  ;;  %14440 = vmatprep.subr.bf16.mxu1 %v16299_v62  ;;  %v11200_v21 = vrot.slane %v11195_v4, %v21213_v3  ;;  %v11204_v62 = vrot.slane %v11195_v4, %v21219_v7  ;;  %v16297_v30 = vcombine.high %v11173_v5, %v11177_v19 }
0x1237   : > { %14256 = vmatprep.subr.bf16.mxu0 %v16217_v48  ;;  %v16288_v48 = vcombine.low %v11165_v22, %v11169_v61  ;;  %v16296_v3 = vcombine.low %v11173_v5, %v11177_v19  ;;  %v16305_v7 = vcombine.high %v11181_v60, %v11185_v58 }
0x1239   : > { %14441 = vmatpush1.bf16.msra.mxu1 %v16298_v35 }
0x123a   : > { %14257 = vmatpush1.bf16.msra.mxu0 %v16216_v0  ;;  %14442 = vmatprep.subr.bf16.mxu1 %v16307_v43  ;;  %v11208_v43 = vrot.slane %v11195_v4, %v21664_v25 }
0x123b   : > { %v13954_v12 = vpop.f32.mrb[192].mxu0  ;;  %14258 = vmatprep.subr.bf16.mxu0 %v16225_v42  ;;  %v16482_v42 = vadd.f32 %v24010_v27, %v11212_v24 }
0x123c   : > { %v13956_v6 = vpop.f32.mrb[193].mxu0  ;;  %v16479_v35 = vadd.f32 %v13954_v12, %v11200_v21 }
0x123d   : > { %14443 = vmatpush1.bf16.msra.mxu1 %v16306_v51  ;;  %v13958_v2 = vpop.f32.mrb[194].mxu0  ;;  %v16480_v0 = vadd.f32 %v13956_v6, %v11204_v62  ;;  %v16304_v51 = vcombine.low %v11181_v60, %v11185_v58 }
0x123e   : > { %14259 = vmatpush1.bf16.msra.mxu0 %v16224_v49  ;;  %v13959_v15 = vpop.f32.mrb[195].mxu0  ;;  %v14453_v50 = vmax.f32 %v16479_v35, 0.0  ;;  %v16481_v49 = vadd.f32 %v24002_v14, %v11208_v43  ;;  %v17432_v14 = vld [vmem:[%s24258_s18] sm:$0xff]  }
0x123f   : > { %14260 = vmatprep.subr.bf16.mxu0 %v16233_v1  ;;  %v14454_v41 = vmax.f32 %v16480_v0, 0.0  ;;  %v14456_v1 = vmax.f32 %v16482_v42, 0.0 }
0x1240   : > { %14445 = vmatmul.mubr.bf16.vlgmr.msra.gmra.mrb[212].mxu1 %v23338_v39  ;;  %v14463_v45 = vpack.c.bf16 %v14453_v50, %v14453_v50  ;;  %v14455_v12 = vmax.f32 %v16481_v49, 0.0 }
0x1241   : > { %v14464_v36 = vpack.c.bf16 %v14454_v41, %v14454_v41  ;;  %v14466_v6 = vpack.c.bf16 %v14456_v1, %v14456_v1 }
0x1242   : > { %14261 = vmatpush1.bf16.msra.mxu0 %v16232_v20  ;;  %v14482_v25 = vsel %vm14480_vm2, %v14463_v45, 0  ;;  %v14465_v27 = vpack.c.bf16 %v14455_v12, %v14455_v12 }
0x1243   : > { %14262 = vmatprep.subr.bf16.mxu0 %v16241_v32  ;;  %v11224_v32 = vrot.slane %v11195_v4, %v8828_v11 }
0x1244   : > { %v14488_v63 = vsel %vm14480_vm2, %v14465_v27, 0 }
0x1246   : > { %14263 = vmatpush1.bf16.msra.mxu0 %v16240_v44  ;;  %v11220_v44 = vrot.slane %v11195_v4, %v8824_v17 }
0x1247   : > { %14264 = vmatprep.subr.bf16.mxu0 %v16249_v10 }
0x124a   : > { %14265 = vmatpush1.bf16.msra.mxu0 %v16248_v46 }
0x124b   : > { %14266 = vmatprep.subr.bf16.mxu0 %v16257_v38 }
0x124e   : > { %14267 = vmatpush1.bf16.msra.mxu0 %v16256_v57 }
0x124f   : > { %14268 = vmatprep.subr.bf16.mxu0 %v16265_v16 }
0x1252   : > { %14269 = vmatpush1.bf16.msra.mxu0 %v16264_v29 }
0x1253   : > { %14270 = vmatprep.subr.bf16.mxu0 %v16273_v56 }
0x1256   : > { %14271 = vmatpush1.bf16.msra.mxu0 %v16272_v54 }
0x1257   : > { %14272 = vmatprep.subr.bf16.mxu0 %v16281_v18 }
0x125a   : > { %14273 = vmatpush1.bf16.msra.mxu0 %v16280_v55 }
0x125b   : > { %14274 = vmatprep.subr.bf16.mxu0 %v16289_v28 }
0x125e   : > { %14275 = vmatpush1.bf16.msra.mxu0 %v16288_v48 }
0x125f   : > { %14276 = vmatprep.subr.bf16.mxu0 %v16297_v30 }
0x1262   : > { %14277 = vmatpush1.bf16.msra.mxu0 %v16296_v3 }
0x1263   : > { %14278 = vmatprep.subr.bf16.mxu0 %v16305_v7 }
0x1266   : > { %14279 = vmatpush1.bf16.msra.mxu0 %v16304_v51 }
0x1267   : > { %16309 = vmatprep.subr.msk.bf16.mxu0 %vm14480_vm2, %v14464_v36 }
0x1269   : > { %14281 = vmatmul.mubr.bf16.vlgmr.msra.gmra.mrb[196].mxu0 %v23338_v39 }
0x126a   : > { %14506 = vmatpush1.bf16.msra.mxu0 %v14482_v25  ;;  %14537 = vmatprep.mubr.bf16.mxu0 %v24483_v34 }
0x126b   : > { %16311 = vmatprep.subr.msk.bf16.mxu0 %vm14480_vm2, %v14466_v6 }
0x1271   : > { %16310 = vmatmul.mubr.msk.bf16.vlgmr.msra.gmra.mrb[200].mxu0 %vm14476_vm3, %v17432_v14 }
0x1272   : > { %14549 = vmatpush1.bf16.msra.mxu0 %v14488_v63  ;;  %14580 = vmatprep.mubr.bf16.mxu0 %v24483_v34 }
0x1279   : > { %16312 = vmatmul.mubr.msk.bf16.vlgmr.msra.gmra.mrb[204].mxu0 %vm14476_vm3, %v17432_v14 }
0x127a   : > { %14623 = vmatprep.mubr.bf16.mxu0 %v24483_v34 }
0x1313   : > { %v14446_v39 = vpop.f32.mrb[212].mxu1 }
0x1314   : > { %v14448_v2 = vpop.f32.mrb[213].mxu1  ;;  %v16485_v10 = vadd.f32 %v14446_v39, %v11224_v32 }
0x1315   : > { %v14450_v15 = vpop.f32.mrb[214].mxu1  ;;  %v16486_v9 = vadd.f32 %v14448_v2, %v11228_v26 }
0x1316   : > { %v14451_v20 = vpop.f32.mrb[215].mxu1  ;;  %v14459_v11 = vmax.f32 %v16485_v10, 0.0 }
0x1317   : > { %v14460_v31 = vmax.f32 %v16486_v9, 0.0 }
0x1318   : > { %v14469_v59 = vpack.c.bf16 %v14459_v11, %v14459_v11 }
0x1319   : > { %v14470_v17 = vpack.c.bf16 %v14460_v31, %v14460_v31 }
0x131a   : > { %v14500_v18 = vsel %vm14480_vm2, %v14469_v59, 0 }
0x133c   : > { %v14282_v23 = vpop.f32.mrb[196].mxu0 }
0x133d   : > { %v16483_v46 = vadd.f32 %v14282_v23, %v11216_v53  ;;  %v14284_v38 = vpop.f32.mrb[197].mxu0 }
0x133e   : > { %v16484_v33 = vadd.f32 %v14284_v38, %v11220_v44  ;;  %v14286_v8 = vpop.f32.mrb[198].mxu0 }
0x133f   : > { %v14457_v57 = vmax.f32 %v16483_v46, 0.0  ;;  %v14287_v16 = vpop.f32.mrb[199].mxu0 }
0x1340   : > { %v14458_v47 = vmax.f32 %v16484_v33, 0.0 }
0x1341   : > { %v14467_v37 = vpack.c.bf16 %v14457_v57, %v14457_v57 }
0x1342   : > { %v14468_v29 = vpack.c.bf16 %v14458_v47, %v14458_v47 }
0x1343   : > { %v14494_v13 = vsel %vm14480_vm2, %v14467_v37, 0 }
0x1344   : > { %16313 = vmatprep.subr.msk.bf16.mxu0 %vm14480_vm2, %v14468_v29  ;;  %v14539_v56 = vpop.f32.mrb[200].mxu0 }
0x1345   : > { %14592 = vmatpush1.bf16.msra.mxu0 %v14494_v13  ;;  %14677 = vst [vmem:[%s24212_s5] sm:$0xff] %v14539_v56  ;;  %v14541_v40 = vpop.f32.mrb[201].mxu0 }
0x1346   : > { %16315 = vmatprep.subr.msk.bf16.mxu0 %vm14480_vm2, %v14470_v17  ;;  %14678 = vst [vmem:[%s24212_s5 + $0x8] sm:$0xff] %v14541_v40  ;;  %v14543_v52 = vpop.f32.mrb[202].mxu0 }
0x1347   : > { %14685 = vst [vmem:[%s24212_s5 + $0x40] sm:$0xff] %v14543_v52  ;;  %v14545_v54 = vpop.f32.mrb[203].mxu0 }
0x1348   : > { %16314 = vmatmul.mubr.msk.bf16.vlgmr.msra.gmra.mrb[208].mxu0 %vm14476_vm3, %v17432_v14  ;;  %14686 = vst [vmem:[%s24212_s5 + $0x48] sm:$0xff] %v14545_v54 }
0x1349   : > { %14635 = vmatpush1.bf16.msra.mxu0 %v14500_v18  ;;  %14666 = vmatprep.mubr.bf16.mxu0 %v24483_v34 }
0x134c   : > { %v14582_v22 = vpop.f32.mrb[204].mxu0 }
0x134d   : > { %14679 = vst [vmem:[%s24212_s5 + $0x10] sm:$0xff] %v14582_v22  ;;  %v14584_v61 = vpop.f32.mrb[205].mxu0 }
0x134e   : > { %14680 = vst [vmem:[%s24212_s5 + $0x18] sm:$0xff] %v14584_v61  ;;  %v14586_v55 = vpop.f32.mrb[206].mxu0 }
0x134f   : > { %14687 = vst [vmem:[%s24212_s5 + $0x50] sm:$0xff] %v14586_v55  ;;  %v14588_v28 = vpop.f32.mrb[207].mxu0 }
0x1350   : > { %16316 = vmatmul.mubr.msk.bf16.vlgmr.msra.gmra.mrb[212].mxu0 %vm14476_vm3, %v17432_v14  ;;  %14688 = vst [vmem:[%s24212_s5 + $0x58] sm:$0xff] %v14588_v28 }
0x141b   : > { %v14625_v4 = vpop.f32.mrb[208].mxu0 }
0x141c   : > { %14681 = vst [vmem:[%s24212_s5 + $0x20] sm:$0xff] %v14625_v4  ;;  %v14627_v5 = vpop.f32.mrb[209].mxu0 }
0x141d   : > { %14682 = vst [vmem:[%s24212_s5 + $0x28] sm:$0xff] %v14627_v5  ;;  %v14629_v34 = vpop.f32.mrb[210].mxu0 }
0x141e   : > { %14689 = vst [vmem:[%s24212_s5 + $0x60] sm:$0xff] %v14629_v34  ;;  %v14631_v19 = vpop.f32.mrb[211].mxu0 }
0x141f   : > { %14690 = vst [vmem:[%s24212_s5 + $0x68] sm:$0xff] %v14631_v19 }
0x1423   : > { %v14668_v21 = vpop.f32.mrb[212].mxu0 }
0x1424   : > { %14683 = vst [vmem:[%s24212_s5 + $0x30] sm:$0xff] %v14668_v21  ;;  %v14670_v62 = vpop.f32.mrb[213].mxu0 }
0x1425   : > { %14684 = vst [vmem:[%s24212_s5 + $0x38] sm:$0xff] %v14670_v62  ;;  %v14672_v48 = vpop.f32.mrb[214].mxu0 }
0x1426   : > { %14691 = vst [vmem:[%s24212_s5 + $0x70] sm:$0xff] %v14672_v48  ;;  %v14674_v30 = vpop.f32.mrb[215].mxu0 }
0x1427   : > { %14692 = vst [vmem:[%s24212_s5 + $0x78] sm:$0xff] %v14674_v30 }
0x1428 PF: > { %s34_s4 = sadd.s32 1, %s17443_s4  }
0x1429   : > { %p31_p4 = scmp.ge.s32.totalorder %s34_s4, 4  }
0x142b   :  { %33 = sbr.rel (!%p31_p4) target bundleno = 9 (0x9), region = 174 }

</bundles_post_ra>
